<compile_context>
chip_gen: v6e
topology: v6e:2x2x1
jax: 0.10.0
libtpu: 0.0.40
codegen_flags: <defaults>
</compile_context>

<pallas_src>
import math

import jax
import jax.numpy as jnp
from jax.experimental import pallas as pl
from jax.experimental.pallas import tpu as pltpu

# ----- small synthetic config (both encoder and decoder use the same sizes) -----
B = 2          # batch
S = 8          # sequence length
H = 128        # hidden size
NH = 4         # attention heads
DH = H // NH   # head dim
I_FF = 256     # intermediate (FFN) size
VOCAB = 256    # vocab size
MAXPOS = 32    # max position embeddings
NLAYERS = 2    # layers per stack
LN_EPS = 1e-12
NEG = -1e9     # additive mask value (HF uses finfo.min; identical masking semantics)
SCALE = 1.0 / math.sqrt(DH)


# ====================== in-kernel math helpers (on values) ======================

def _mm(a, w):
    """MXU matmul: bf16 operands, f32 accumulation."""
    return jnp.dot(a.astype(jnp.bfloat16), w.astype(jnp.bfloat16),
                   preferred_element_type=jnp.float32)


def _gelu(x):
    # exact (erf) GELU, matching HF ACT2FN["gelu"]
    return 0.5 * x * (1.0 + jax.lax.erf(x * (1.0 / math.sqrt(2.0))))


def _ln(x, g, b, eps=LN_EPS):
    mean = jnp.mean(x, axis=-1, keepdims=True)
    var = jnp.mean(jnp.square(x - mean), axis=-1, keepdims=True)   # biased var (torch LN)
    return (x - mean) * jax.lax.rsqrt(var + eps) * g + b


def _self_attention(x, mask, qkv_w, qkv_b, o_w, o_b):
    """x: (S,H) f32, mask: (S,S) additive f32.  Fused QKV, all heads in one step,
    head-merged lane-dense output (S,H)."""
    qkv = _mm(x, qkv_w) + qkv_b                                     # (S, 3H)
    ctx = []
    for h in range(NH):
        qh = qkv[:, h * DH:(h + 1) * DH].astype(jnp.bfloat16)
        kh = qkv[:, H + h * DH:H + (h + 1) * DH].astype(jnp.bfloat16)
        vh = qkv[:, 2 * H + h * DH:2 * H + (h + 1) * DH].astype(jnp.bfloat16)
        s = jax.lax.dot_general(qh, kh, (((1,), (1,)), ((), ())),   # no explicit k.T
                                preferred_element_type=jnp.float32)
        s = s * SCALE + mask
        s = s - jnp.max(s, axis=-1, keepdims=True)
        p = jnp.exp(s)
        p = p * pl.reciprocal(jnp.sum(p, axis=-1, keepdims=True), approx=True)
        ctx.append(jnp.dot(p.astype(jnp.bfloat16), vh,
                           preferred_element_type=jnp.float32))
    ctx = jnp.concatenate(ctx, axis=-1)                             # (S, H) lane-dense
    return _mm(ctx, o_w) + o_b


def _enc_layer(x, mask, l, qkv_w, qkv_b, ao_w, ao_b, ln1_g, ln1_b,
               fi_w, fi_b, fo_w, fo_b, ln2_g, ln2_b):
    attn = _self_attention(x, mask, qkv_w[l], qkv_b[l], ao_w[l], ao_b[l])
    x = _ln(attn + x, ln1_g[l], ln1_b[l])                           # fused residual + LN
    h = _gelu(_mm(x, fi_w[l]) + fi_b[l])
    f = _mm(h, fo_w[l]) + fo_b[l]
    return _ln(f + x, ln2_g[l], ln2_b[l])


# ============================== Pallas kernels ==============================

def _encoder_stack_kernel(x_ref, mask_ref,
                          emb_ln_g, emb_ln_b,
                          qkv_w, qkv_b, ao_w, ao_b, ln1_g, ln1_b,
                          fi_w, fi_b, fo_w, fo_b, ln2_g, ln2_b,
                          pool_w, pool_b,
                          pooled_ref):
    """Whole encoder (embedding LN + NLAYERS layers + pooler) for one batch element."""
    x = _ln(x_ref[0], emb_ln_g[...], emb_ln_b[...])                 # (S, H)
    mask = mask_ref[0]                                              # (S, S)
    for l in range(NLAYERS):                                        # static unroll
        x = _enc_layer(x, mask, l, qkv_w, qkv_b, ao_w, ao_b, ln1_g, ln1_b,
                       fi_w, fi_b, fo_w, fo_b, ln2_g, ln2_b)
    # pooled_output = Linear(last_hidden_state[:, 0]).unsqueeze(1)  (pooler folded in)
    cls = x[0:1, :]                                                 # (1, H)
    pooled_ref[0] = _mm(cls, pool_w[...]) + pool_b[...]


def _decoder_stack_kernel(y_ref, mask_ref, pooled_ref, labels_ref,
                          emb_ln_g, emb_ln_b,
                          qkv_w, qkv_b, ao_w, ao_b, ln1_g, ln1_b,
                          cv_w, cv_b, co_w, co_b, cln_g, cln_b,
                          fi_w, fi_b, fo_w, fo_b, ln2_g, ln2_b,
                          lm_w, lm_b,
                          logits_ref, per_tok_ref):
    """Whole decoder (embedding LN + NLAYERS layers + LM head + per-token CE) for one
    batch element.  Logits never round-trip HBM before the loss terms are computed."""
    y = _ln(y_ref[0], emb_ln_g[...], emb_ln_b[...])                 # (S, H)
    mask = mask_ref[0]                                              # (S, S) causal+pad
    pooled = pooled_ref[0]                                          # (1, H)
    for l in range(NLAYERS):                                        # static unroll
        # causal + padding masked self-attention
        attn = _self_attention(y, mask, qkv_w[l], qkv_b[l], ao_w[l], ao_b[l])
        y = _ln(attn + y, ln1_g[l], ln1_b[l])
        # cross-attention over a single encoder position (Skv=1): softmax == 1, so the
        # context equals the V projection of the pooled vector (Q/K projections are
        # mathematically irrelevant and skipped).
        cross_v = _mm(pooled, cv_w[l]) + cv_b[l]                    # (1, H)
        cross_out = _mm(cross_v, co_w[l]) + co_b[l]                 # (1, H)
        y = _ln(y + cross_out, cln_g[l], cln_b[l])                  # broadcast over S
        # FFN
        h = _gelu(_mm(y, fi_w[l]) + fi_b[l])
        f = _mm(h, fo_w[l]) + fo_b[l]
        y = _ln(f + y, ln2_g[l], ln2_b[l])

    # LM head + shifted cross-entropy (per-token), fused onto the stack.
    logits = _mm(y, lm_w[...]) + lm_b[...]                          # (S, V) f32
    logits_ref[0] = logits
    lbl = labels_ref[0]                                             # (S, 1) int32 (shifted, -100 invalid)
    m = jnp.max(logits, axis=-1, keepdims=True)
    lse = jnp.log(jnp.sum(jnp.exp(logits - m), axis=-1, keepdims=True)) + m
    idx = jax.lax.broadcasted_iota(jnp.int32, logits.shape, 1)
    picked = jnp.sum(jnp.where(idx == lbl, logits, 0.0), axis=-1, keepdims=True)
    valid = (lbl != -100).astype(jnp.float32)                       # ignore_index=-100
    per_tok_ref[0] = (lse - picked) * valid                         # (S, 1)


# ============================== pallas_call wrappers ==============================

def _wspec(shape):
    """Full-array weight block, constant block index => DMA'd once, reused over batch."""
    zeros = (0,) * len(shape)
    return pl.BlockSpec(shape, lambda b, z=zeros: z)


_PARALLEL_B = pltpu.CompilerParams(dimension_semantics=("parallel",))


def encoder_stack(x, enc_mask, enc):
    lw = enc["layers"]
    return pl.pallas_call(
        _encoder_stack_kernel,
        out_shape=jax.ShapeDtypeStruct((B, 1, H), jnp.float32),
        grid=(B,),
        in_specs=[
            pl.BlockSpec((1, S, H), lambda b: (b, 0, 0)),
            pl.BlockSpec((1, S, S), lambda b: (b, 0, 0)),
            _wspec((1, H)), _wspec((1, H)),                          # embedding LN
            _wspec((NLAYERS, H, 3 * H)), _wspec((NLAYERS, 1, 3 * H)),
            _wspec((NLAYERS, H, H)), _wspec((NLAYERS, 1, H)),
            _wspec((NLAYERS, 1, H)), _wspec((NLAYERS, 1, H)),
            _wspec((NLAYERS, H, I_FF)), _wspec((NLAYERS, 1, I_FF)),
            _wspec((NLAYERS, I_FF, H)), _wspec((NLAYERS, 1, H)),
            _wspec((NLAYERS, 1, H)), _wspec((NLAYERS, 1, H)),
            _wspec((H, H)), _wspec((1, H)),                          # pooler
        ],
        out_specs=pl.BlockSpec((1, 1, H), lambda b: (b, 0, 0)),
        compiler_params=_PARALLEL_B,
    )(x, enc_mask, enc["emb_ln_g"], enc["emb_ln_b"],
      lw["qkv_w"], lw["qkv_b"], lw["ao_w"], lw["ao_b"], lw["ln1_g"], lw["ln1_b"],
      lw["fi_w"], lw["fi_b"], lw["fo_w"], lw["fo_b"], lw["ln2_g"], lw["ln2_b"],
      enc["pool_w"], enc["pool_b"])


def decoder_stack_lmhead(y, dec_mask, pooled, shift_labels, dec):
    lw = dec["layers"]
    logits, per_tok = pl.pallas_call(
        _decoder_stack_kernel,
        out_shape=(jax.ShapeDtypeStruct((B, S, VOCAB), jnp.float32),
                   jax.ShapeDtypeStruct((B, S, 1), jnp.float32)),
        grid=(B,),
        in_specs=[
            pl.BlockSpec((1, S, H), lambda b: (b, 0, 0)),
            pl.BlockSpec((1, S, S), lambda b: (b, 0, 0)),
            pl.BlockSpec((1, 1, H), lambda b: (b, 0, 0)),
            pl.BlockSpec((1, S, 1), lambda b: (b, 0, 0)),
            _wspec((1, H)), _wspec((1, H)),                          # embedding LN
            _wspec((NLAYERS, H, 3 * H)), _wspec((NLAYERS, 1, 3 * H)),
            _wspec((NLAYERS, H, H)), _wspec((NLAYERS, 1, H)),
            _wspec((NLAYERS, 1, H)), _wspec((NLAYERS, 1, H)),
            _wspec((NLAYERS, H, H)), _wspec((NLAYERS, 1, H)),        # cross V
            _wspec((NLAYERS, H, H)), _wspec((NLAYERS, 1, H)),        # cross out
            _wspec((NLAYERS, 1, H)), _wspec((NLAYERS, 1, H)),        # cross LN
            _wspec((NLAYERS, H, I_FF)), _wspec((NLAYERS, 1, I_FF)),
            _wspec((NLAYERS, I_FF, H)), _wspec((NLAYERS, 1, H)),
            _wspec((NLAYERS, 1, H)), _wspec((NLAYERS, 1, H)),
            _wspec((H, VOCAB)), _wspec((1, VOCAB)),                  # LM head (tied)
        ],
        out_specs=(pl.BlockSpec((1, S, VOCAB), lambda b: (b, 0, 0)),
                   pl.BlockSpec((1, S, 1), lambda b: (b, 0, 0))),
        compiler_params=_PARALLEL_B,
    )(y, dec_mask, pooled, shift_labels,
      dec["emb_ln_g"], dec["emb_ln_b"],
      lw["qkv_w"], lw["qkv_b"], lw["ao_w"], lw["ao_b"], lw["ln1_g"], lw["ln1_b"],
      lw["cv_w"], lw["cv_b"], lw["co_w"], lw["co_b"], lw["cln_g"], lw["cln_b"],
      lw["fi_w"], lw["fi_b"], lw["fo_w"], lw["fo_b"], lw["ln2_g"], lw["ln2_b"],
      dec["lm_w"], dec["lm_b"])
    return logits, per_tok


# ============================== model forward ==============================

def autoencoder_forward(params, input_ids, attention_mask, labels):
    am = attention_mask.astype(jnp.float32)
    Bsz, Sq = input_ids.shape

    # ----------------- Encoder (bidirectional self-attention) -----------------
    enc = params["encoder"]
    x = jnp.take(enc["word_emb"], input_ids, axis=0) + enc["pos_emb"][:Sq][None]
    enc_mask = jnp.broadcast_to((1.0 - am)[:, None, :] * NEG, (Bsz, Sq, Sq))
    pooled = encoder_stack(x, enc_mask, enc)                        # (B, 1, H)

    # ----------------- Decoder (causal self-attn + cross-attn) ----------------
    dec = params["decoder"]
    y = jnp.take(dec["word_emb"], input_ids, axis=0) + dec["pos_emb"][:Sq][None]
    causal = jnp.tril(jnp.ones((Sq, Sq), jnp.float32))
    dec_mask = (1.0 - causal[None, :, :] * am[:, None, :]) * NEG    # (B, S, S)

    # HF-style shifted next-token labels (position i predicts labels[i+1]; last -> -100)
    shift_labels = jnp.concatenate(
        [labels[:, 1:], jnp.full((Bsz, 1), -100, labels.dtype)], axis=1
    ).astype(jnp.int32)[..., None]                                  # (B, S, 1)

    logits, per_tok = decoder_stack_lmhead(y, dec_mask, pooled, shift_labels, dec)

    # Final scalar normalization of the CE loss (cross-batch reduction) in plain JAX.
    valid = (shift_labels != -100).astype(jnp.float32)
    loss = jnp.sum(per_tok) / jnp.maximum(jnp.sum(valid), 1.0)
    return loss, logits


# ============================== parameter init ==============================

def _nrm(key, shape, scale=0.02):
    return scale * jax.random.normal(key, shape, dtype=jnp.float32)


def _init_enc_layer(key):
    ks = jax.random.split(key, 6)
    return {
        "qkv_w": jnp.concatenate([_nrm(ks[0], (H, H)), _nrm(ks[1], (H, H)),
                                  _nrm(ks[2], (H, H))], axis=1).astype(jnp.bfloat16),
        "qkv_b": jnp.zeros((1, 3 * H), jnp.float32),
        "ao_w": _nrm(ks[3], (H, H)).astype(jnp.bfloat16),
        "ao_b": jnp.zeros((1, H), jnp.float32),
        "ln1_g": jnp.ones((1, H), jnp.float32),
        "ln1_b": jnp.zeros((1, H), jnp.float32),
        "fi_w": _nrm(ks[4], (H, I_FF)).astype(jnp.bfloat16),
        "fi_b": jnp.zeros((1, I_FF), jnp.float32),
        "fo_w": _nrm(ks[5], (I_FF, H)).astype(jnp.bfloat16),
        "fo_b": jnp.zeros((1, H), jnp.float32),
        "ln2_g": jnp.ones((1, H), jnp.float32),
        "ln2_b": jnp.zeros((1, H), jnp.float32),
    }


def _init_dec_layer(key):
    k0, kv, ko = jax.random.split(key, 3)
    d = _init_enc_layer(k0)
    # Cross-attention Q/K projections are never materialized: with a single encoder
    # position the softmax is identically 1, so only V and the output dense matter.
    d.update({
        "cv_w": _nrm(kv, (H, H)).astype(jnp.bfloat16),
        "cv_b": jnp.zeros((1, H), jnp.float32),
        "co_w": _nrm(ko, (H, H)).astype(jnp.bfloat16),
        "co_b": jnp.zeros((1, H), jnp.float32),
        "cln_g": jnp.ones((1, H), jnp.float32),
        "cln_b": jnp.zeros((1, H), jnp.float32),
    })
    return d


def _stack_layers(layer_dicts):
    """list of per-layer dicts -> dict of stacked (NLAYERS, ...) arrays."""
    return {k: jnp.stack([ld[k] for ld in layer_dicts], axis=0)
            for k in layer_dicts[0].keys()}


def init_params(key):
    ek, dk, pk = jax.random.split(key, 3)

    # Encoder
    eks = jax.random.split(ek, 2 + NLAYERS)
    encoder = {"word_emb": _nrm(eks[0], (VOCAB, H)),
               "pos_emb": _nrm(eks[1], (MAXPOS, H)),
               "emb_ln_g": jnp.ones((1, H), jnp.float32),
               "emb_ln_b": jnp.zeros((1, H), jnp.float32),
               "pool_w": _nrm(pk, (H, H)).astype(jnp.bfloat16),
               "pool_b": jnp.zeros((1, H), jnp.float32),
               "layers": _stack_layers([_init_enc_layer(eks[2 + l])
                                        for l in range(NLAYERS)])}

    # Decoder
    dks = jax.random.split(dk, 2 + NLAYERS)
    dec_word_emb = _nrm(dks[0], (VOCAB, H))
    decoder = {"word_emb": dec_word_emb,
               "pos_emb": _nrm(dks[1], (MAXPOS, H)),
               "emb_ln_g": jnp.ones((1, H), jnp.float32),
               "emb_ln_b": jnp.zeros((1, H), jnp.float32),
               "lm_w": dec_word_emb.T.astype(jnp.bfloat16),          # tied LM head
               "lm_b": jnp.zeros((1, VOCAB), jnp.float32),
               "layers": _stack_layers([_init_dec_layer(dks[2 + l])
                                        for l in range(NLAYERS)])}
    return {"encoder": encoder, "decoder": decoder}


# ==================================== main ===================================

if __name__ == "__main__":
    key = jax.random.PRNGKey(0)
    pkey, ikey = jax.random.split(key)
    params = init_params(pkey)

    input_ids = jax.random.randint(ikey, (B, S), 0, VOCAB, dtype=jnp.int32)
    attention_mask = jnp.ones((B, S), jnp.int32).at[1, S - 2:].set(0)   # some padding
    labels = input_ids                                                  # HF-style LM labels

    fwd = jax.jit(autoencoder_forward)
    loss, logits = fwd(params, input_ids, attention_mask, labels)
    jax.block_until_ready((loss, logits))

    assert logits.shape == (B, S, VOCAB)
    assert jnp.isfinite(loss)
    # TODO(synk): HF returns a CausalLMOutputWithCrossAttentions dataclass; we return (loss, logits).
    print("KERNEL_OK")
</pallas_src>

<mosaic_0001>
module attributes {stable_mosaic.version = 11 : i64} {
  func.func @_encoder_stack_kernel(%arg0: i32, %arg1: memref<1x8x128xf32, #tpu.memory_space<vmem>>, %arg2: memref<1x8x8xf32, #tpu.memory_space<vmem>>, %arg3: memref<1x128xf32, #tpu.memory_space<vmem>>, %arg4: memref<1x128xf32, #tpu.memory_space<vmem>>, %arg5: memref<2x128x384xbf16, #tpu.memory_space<vmem>>, %arg6: memref<2x1x384xf32, #tpu.memory_space<vmem>>, %arg7: memref<2x128x128xbf16, #tpu.memory_space<vmem>>, %arg8: memref<2x1x128xf32, #tpu.memory_space<vmem>>, %arg9: memref<2x1x128xf32, #tpu.memory_space<vmem>>, %arg10: memref<2x1x128xf32, #tpu.memory_space<vmem>>, %arg11: memref<2x128x256xbf16, #tpu.memory_space<vmem>>, %arg12: memref<2x1x256xf32, #tpu.memory_space<vmem>>, %arg13: memref<2x256x128xbf16, #tpu.memory_space<vmem>>, %arg14: memref<2x1x128xf32, #tpu.memory_space<vmem>>, %arg15: memref<2x1x128xf32, #tpu.memory_space<vmem>>, %arg16: memref<2x1x128xf32, #tpu.memory_space<vmem>>, %arg17: memref<128x128xbf16, #tpu.memory_space<vmem>>, %arg18: memref<1x128xf32, #tpu.memory_space<vmem>>, %arg19: memref<1x1x128xf32, #tpu.memory_space<vmem>>) attributes {dimension_semantics = [#tpu.dimension_semantics<parallel>], iteration_bounds = array<i64: 2>, scalar_prefetch = 0 : i64, scratch_operands = 0 : i64, tpu.core_type = #tpu.core_type<tc>, window_params = [{transform_indices = @transform_0, window_bounds = array<i64: 1, 8, 128>}, {transform_indices = @transform_1, window_bounds = array<i64: 1, 8, 8>}, {pipeline_mode = #tpu.pipeline_mode<synchronous>, transform_indices = @transform_2, window_bounds = array<i64: 1, 128>}, {pipeline_mode = #tpu.pipeline_mode<synchronous>, transform_indices = @transform_3, window_bounds = array<i64: 1, 128>}, {pipeline_mode = #tpu.pipeline_mode<synchronous>, transform_indices = @transform_4, window_bounds = array<i64: 2, 128, 384>}, {pipeline_mode = #tpu.pipeline_mode<synchronous>, transform_indices = @transform_5, window_bounds = array<i64: 2, 1, 384>}, {pipeline_mode = #tpu.pipeline_mode<synchronous>, transform_indices = @transform_6, window_bounds = array<i64: 2, 128, 128>}, {pipeline_mode = #tpu.pipeline_mode<synchronous>, transform_indices = @transform_7, window_bounds = array<i64: 2, 1, 128>}, {pipeline_mode = #tpu.pipeline_mode<synchronous>, transform_indices = @transform_8, window_bounds = array<i64: 2, 1, 128>}, {pipeline_mode = #tpu.pipeline_mode<synchronous>, transform_indices = @transform_9, window_bounds = array<i64: 2, 1, 128>}, {pipeline_mode = #tpu.pipeline_mode<synchronous>, transform_indices = @transform_10, window_bounds = array<i64: 2, 128, 256>}, {pipeline_mode = #tpu.pipeline_mode<synchronous>, transform_indices = @transform_11, window_bounds = array<i64: 2, 1, 256>}, {pipeline_mode = #tpu.pipeline_mode<synchronous>, transform_indices = @transform_12, window_bounds = array<i64: 2, 256, 128>}, {pipeline_mode = #tpu.pipeline_mode<synchronous>, transform_indices = @transform_13, window_bounds = array<i64: 2, 1, 128>}, {pipeline_mode = #tpu.pipeline_mode<synchronous>, transform_indices = @transform_14, window_bounds = array<i64: 2, 1, 128>}, {pipeline_mode = #tpu.pipeline_mode<synchronous>, transform_indices = @transform_15, window_bounds = array<i64: 2, 1, 128>}, {pipeline_mode = #tpu.pipeline_mode<synchronous>, transform_indices = @transform_16, window_bounds = array<i64: 128, 128>}, {pipeline_mode = #tpu.pipeline_mode<synchronous>, transform_indices = @transform_17, window_bounds = array<i64: 1, 128>}, {transform_indices = @transform_18, window_bounds = array<i64: 1, 1, 128>}]} {
    %c0 = arith.constant 0 : index
    %c0_0 = arith.constant 0 : index
    %c0_1 = arith.constant 0 : index
    %0 = vector.load %arg1[%c0, %c0_0, %c0_1] : memref<1x8x128xf32, #tpu.memory_space<vmem>>, vector<1x8x128xf32>
    %1 = vector.shape_cast %0 : vector<1x8x128xf32> to vector<8x128xf32>
    %c0_2 = arith.constant 0 : index
    %c0_3 = arith.constant 0 : index
    %2 = vector.load %arg3[%c0_2, %c0_3] : memref<1x128xf32, #tpu.memory_space<vmem>>, vector<1x128xf32>
    %c0_4 = arith.constant 0 : index
    %c0_5 = arith.constant 0 : index
    %3 = vector.load %arg4[%c0_4, %c0_5] : memref<1x128xf32, #tpu.memory_space<vmem>>, vector<1x128xf32>
    %cst = arith.constant dense<0.000000e+00> : vector<8xf32>
    %4 = vector.multi_reduction <add>, %1, %cst [1] : vector<8x128xf32> to vector<8xf32>
    %5 = vector.shape_cast %4 : vector<8xf32> to vector<8x1xf32>
    %cst_6 = arith.constant 1.280000e+02 : f32
    %6 = vector.broadcast %cst_6 : f32 to vector<8x1xf32>
    %7 = arith.divf %5, %6 : vector<8x1xf32>
    %8 = vector.broadcast %7 : vector<8x1xf32> to vector<8x128xf32>
    %9 = arith.subf %1, %8 : vector<8x128xf32>
    %10 = arith.mulf %9, %9 : vector<8x128xf32>
    %cst_7 = arith.constant dense<0.000000e+00> : vector<8xf32>
    %11 = vector.multi_reduction <add>, %10, %cst_7 [1] : vector<8x128xf32> to vector<8xf32>
    %12 = vector.shape_cast %11 : vector<8xf32> to vector<8x1xf32>
    %cst_8 = arith.constant 1.280000e+02 : f32
    %13 = vector.broadcast %cst_8 : f32 to vector<8x1xf32>
    %14 = arith.divf %12, %13 : vector<8x1xf32>
    %15 = vector.broadcast %7 : vector<8x1xf32> to vector<8x128xf32>
    %16 = arith.subf %1, %15 : vector<8x128xf32>
    %cst_9 = arith.constant 9.99999996E-13 : f32
    %17 = vector.broadcast %cst_9 : f32 to vector<8x1xf32>
    %18 = arith.addf %14, %17 : vector<8x1xf32>
    %19 = math.rsqrt %18 : vector<8x1xf32>
    %20 = vector.broadcast %19 : vector<8x1xf32> to vector<8x128xf32>
    %21 = arith.mulf %16, %20 : vector<8x128xf32>
    %22 = vector.broadcast %2 : vector<1x128xf32> to vector<8x128xf32>
    %23 = arith.mulf %21, %22 : vector<8x128xf32>
    %24 = vector.broadcast %3 : vector<1x128xf32> to vector<8x128xf32>
    %25 = arith.addf %23, %24 : vector<8x128xf32>
    %c0_10 = arith.constant 0 : index
    %c0_11 = arith.constant 0 : index
    %c0_12 = arith.constant 0 : index
    %26 = vector.load %arg2[%c0_10, %c0_11, %c0_12] : memref<1x8x8xf32, #tpu.memory_space<vmem>>, vector<1x8x8xf32>
    %27 = vector.shape_cast %26 : vector<1x8x8xf32> to vector<8x8xf32>
    %c0_13 = arith.constant 0 : index
    %c0_14 = arith.constant 0 : index
    %c0_15 = arith.constant 0 : index
    %28 = vector.load %arg5[%c0_13, %c0_14, %c0_15] : memref<2x128x384xbf16, #tpu.memory_space<vmem>>, vector<1x128x384xbf16>
    %29 = vector.shape_cast %28 : vector<1x128x384xbf16> to vector<128x384xbf16>
    %c0_16 = arith.constant 0 : index
    %c0_17 = arith.constant 0 : index
    %c0_18 = arith.constant 0 : index
    %30 = vector.load %arg6[%c0_16, %c0_17, %c0_18] : memref<2x1x384xf32, #tpu.memory_space<vmem>>, vector<1x1x384xf32>
    %31 = vector.shape_cast %30 : vector<1x1x384xf32> to vector<1x384xf32>
    %c0_19 = arith.constant 0 : index
    %c0_20 = arith.constant 0 : index
    %c0_21 = arith.constant 0 : index
    %32 = vector.load %arg7[%c0_19, %c0_20, %c0_21] : memref<2x128x128xbf16, #tpu.memory_space<vmem>>, vector<1x128x128xbf16>
    %33 = vector.shape_cast %32 : vector<1x128x128xbf16> to vector<128x128xbf16>
    %c0_22 = arith.constant 0 : index
    %c0_23 = arith.constant 0 : index
    %c0_24 = arith.constant 0 : index
    %34 = vector.load %arg8[%c0_22, %c0_23, %c0_24] : memref<2x1x128xf32, #tpu.memory_space<vmem>>, vector<1x1x128xf32>
    %35 = vector.shape_cast %34 : vector<1x1x128xf32> to vector<1x128xf32>
    %36 = arith.truncf %25 : vector<8x128xf32> to vector<8x128xbf16>
    %cst_25 = arith.constant dense<0.000000e+00> : vector<8x384xf32>
    %37 = tpu.matmul %36, %29, %cst_25 {dimension_numbers = #tpu.dot_dimension_numbers<[1], [0], [0], [1], [0, 0, 1, 1], [], []>} : vector<8x128xbf16>, vector<128x384xbf16>, vector<8x384xf32> -> vector<8x384xf32>
    %38 = vector.broadcast %31 : vector<1x384xf32> to vector<8x384xf32>
    %39 = arith.addf %37, %38 : vector<8x384xf32>
    %40 = vector.extract_strided_slice %39 {offsets = [0, 0], sizes = [8, 32], strides = [1, 1]} : vector<8x384xf32> to vector<8x32xf32>
    %41 = arith.truncf %40 : vector<8x32xf32> to vector<8x32xbf16>
    %42 = vector.extract_strided_slice %39 {offsets = [0, 128], sizes = [8, 32], strides = [1, 1]} : vector<8x384xf32> to vector<8x32xf32>
    %43 = arith.truncf %42 : vector<8x32xf32> to vector<8x32xbf16>
    %44 = vector.extract_strided_slice %39 {offsets = [0, 256], sizes = [8, 32], strides = [1, 1]} : vector<8x384xf32> to vector<8x32xf32>
    %45 = arith.truncf %44 : vector<8x32xf32> to vector<8x32xbf16>
    %cst_26 = arith.constant dense<0.000000e+00> : vector<8x8xf32>
    %46 = tpu.matmul %41, %43, %cst_26 {dimension_numbers = #tpu.dot_dimension_numbers<[1], [1], [0], [0], [0, 0, 1, 0], [], []>} : vector<8x32xbf16>, vector<8x32xbf16>, vector<8x8xf32> -> vector<8x8xf32>
    %cst_27 = arith.constant 0.176776692 : f32
    %47 = vector.broadcast %cst_27 : f32 to vector<8x8xf32>
    %48 = arith.mulf %46, %47 : vector<8x8xf32>
    %49 = arith.addf %48, %27 : vector<8x8xf32>
    %cst_28 = arith.constant dense<0xFF800000> : vector<8xf32>
    %50 = vector.multi_reduction <maximumf>, %49, %cst_28 [1] : vector<8x8xf32> to vector<8xf32>
    %51 = vector.shape_cast %50 : vector<8xf32> to vector<8x1xf32>
    %52 = vector.broadcast %51 : vector<8x1xf32> to vector<8x8xf32>
    %53 = arith.subf %49, %52 : vector<8x8xf32>
    %54 = math.exp %53 : vector<8x8xf32>
    %cst_29 = arith.constant dense<0.000000e+00> : vector<8xf32>
    %55 = vector.multi_reduction <add>, %54, %cst_29 [1] : vector<8x8xf32> to vector<8xf32>
    %56 = vector.shape_cast %55 : vector<8xf32> to vector<8x1xf32>
    %57 = tpu.reciprocal %56 {approx = true} : vector<8x1xf32> -> vector<8x1xf32>
    %58 = vector.broadcast %57 : vector<8x1xf32> to vector<8x8xf32>
    %59 = arith.mulf %54, %58 : vector<8x8xf32>
    %60 = arith.truncf %59 : vector<8x8xf32> to vector<8x8xbf16>
    %cst_30 = arith.constant dense<0.000000e+00> : vector<8x32xf32>
    %61 = tpu.matmul %60, %45, %cst_30 {dimension_numbers = #tpu.dot_dimension_numbers<[1], [0], [0], [1], [0, 0, 1, 1], [], []>} : vector<8x8xbf16>, vector<8x32xbf16>, vector<8x32xf32> -> vector<8x32xf32>
    %62 = vector.extract_strided_slice %39 {offsets = [0, 32], sizes = [8, 32], strides = [1, 1]} : vector<8x384xf32> to vector<8x32xf32>
    %63 = arith.truncf %62 : vector<8x32xf32> to vector<8x32xbf16>
    %64 = vector.extract_strided_slice %39 {offsets = [0, 160], sizes = [8, 32], strides = [1, 1]} : vector<8x384xf32> to vector<8x32xf32>
    %65 = arith.truncf %64 : vector<8x32xf32> to vector<8x32xbf16>
    %66 = vector.extract_strided_slice %39 {offsets = [0, 288], sizes = [8, 32], strides = [1, 1]} : vector<8x384xf32> to vector<8x32xf32>
    %67 = arith.truncf %66 : vector<8x32xf32> to vector<8x32xbf16>
    %cst_31 = arith.constant dense<0.000000e+00> : vector<8x8xf32>
    %68 = tpu.matmul %63, %65, %cst_31 {dimension_numbers = #tpu.dot_dimension_numbers<[1], [1], [0], [0], [0, 0, 1, 0], [], []>} : vector<8x32xbf16>, vector<8x32xbf16>, vector<8x8xf32> -> vector<8x8xf32>
    %cst_32 = arith.constant 0.176776692 : f32
    %69 = vector.broadcast %cst_32 : f32 to vector<8x8xf32>
    %70 = arith.mulf %68, %69 : vector<8x8xf32>
    %71 = arith.addf %70, %27 : vector<8x8xf32>
    %cst_33 = arith.constant dense<0xFF800000> : vector<8xf32>
    %72 = vector.multi_reduction <maximumf>, %71, %cst_33 [1] : vector<8x8xf32> to vector<8xf32>
    %73 = vector.shape_cast %72 : vector<8xf32> to vector<8x1xf32>
    %74 = vector.broadcast %73 : vector<8x1xf32> to vector<8x8xf32>
    %75 = arith.subf %71, %74 : vector<8x8xf32>
    %76 = math.exp %75 : vector<8x8xf32>
    %cst_34 = arith.constant dense<0.000000e+00> : vector<8xf32>
    %77 = vector.multi_reduction <add>, %76, %cst_34 [1] : vector<8x8xf32> to vector<8xf32>
    %78 = vector.shape_cast %77 : vector<8xf32> to vector<8x1xf32>
    %79 = tpu.reciprocal %78 {approx = true} : vector<8x1xf32> -> vector<8x1xf32>
    %80 = vector.broadcast %79 : vector<8x1xf32> to vector<8x8xf32>
    %81 = arith.mulf %76, %80 : vector<8x8xf32>
    %82 = arith.truncf %81 : vector<8x8xf32> to vector<8x8xbf16>
    %cst_35 = arith.constant dense<0.000000e+00> : vector<8x32xf32>
    %83 = tpu.matmul %82, %67, %cst_35 {dimension_numbers = #tpu.dot_dimension_numbers<[1], [0], [0], [1], [0, 0, 1, 1], [], []>} : vector<8x8xbf16>, vector<8x32xbf16>, vector<8x32xf32> -> vector<8x32xf32>
    %84 = vector.extract_strided_slice %39 {offsets = [0, 64], sizes = [8, 32], strides = [1, 1]} : vector<8x384xf32> to vector<8x32xf32>
    %85 = arith.truncf %84 : vector<8x32xf32> to vector<8x32xbf16>
    %86 = vector.extract_strided_slice %39 {offsets = [0, 192], sizes = [8, 32], strides = [1, 1]} : vector<8x384xf32> to vector<8x32xf32>
    %87 = arith.truncf %86 : vector<8x32xf32> to vector<8x32xbf16>
    %88 = vector.extract_strided_slice %39 {offsets = [0, 320], sizes = [8, 32], strides = [1, 1]} : vector<8x384xf32> to vector<8x32xf32>
    %89 = arith.truncf %88 : vector<8x32xf32> to vector<8x32xbf16>
    %cst_36 = arith.constant dense<0.000000e+00> : vector<8x8xf32>
    %90 = tpu.matmul %85, %87, %cst_36 {dimension_numbers = #tpu.dot_dimension_numbers<[1], [1], [0], [0], [0, 0, 1, 0], [], []>} : vector<8x32xbf16>, vector<8x32xbf16>, vector<8x8xf32> -> vector<8x8xf32>
    %cst_37 = arith.constant 0.176776692 : f32
    %91 = vector.broadcast %cst_37 : f32 to vector<8x8xf32>
    %92 = arith.mulf %90, %91 : vector<8x8xf32>
    %93 = arith.addf %92, %27 : vector<8x8xf32>
    %cst_38 = arith.constant dense<0xFF800000> : vector<8xf32>
    %94 = vector.multi_reduction <maximumf>, %93, %cst_38 [1] : vector<8x8xf32> to vector<8xf32>
    %95 = vector.shape_cast %94 : vector<8xf32> to vector<8x1xf32>
    %96 = vector.broadcast %95 : vector<8x1xf32> to vector<8x8xf32>
    %97 = arith.subf %93, %96 : vector<8x8xf32>
    %98 = math.exp %97 : vector<8x8xf32>
    %cst_39 = arith.constant dense<0.000000e+00> : vector<8xf32>
    %99 = vector.multi_reduction <add>, %98, %cst_39 [1] : vector<8x8xf32> to vector<8xf32>
    %100 = vector.shape_cast %99 : vector<8xf32> to vector<8x1xf32>
    %101 = tpu.reciprocal %100 {approx = true} : vector<8x1xf32> -> vector<8x1xf32>
    %102 = vector.broadcast %101 : vector<8x1xf32> to vector<8x8xf32>
    %103 = arith.mulf %98, %102 : vector<8x8xf32>
    %104 = arith.truncf %103 : vector<8x8xf32> to vector<8x8xbf16>
    %cst_40 = arith.constant dense<0.000000e+00> : vector<8x32xf32>
    %105 = tpu.matmul %104, %89, %cst_40 {dimension_numbers = #tpu.dot_dimension_numbers<[1], [0], [0], [1], [0, 0, 1, 1], [], []>} : vector<8x8xbf16>, vector<8x32xbf16>, vector<8x32xf32> -> vector<8x32xf32>
    %106 = vector.extract_strided_slice %39 {offsets = [0, 96], sizes = [8, 32], strides = [1, 1]} : vector<8x384xf32> to vector<8x32xf32>
    %107 = arith.truncf %106 : vector<8x32xf32> to vector<8x32xbf16>
    %108 = vector.extract_strided_slice %39 {offsets = [0, 224], sizes = [8, 32], strides = [1, 1]} : vector<8x384xf32> to vector<8x32xf32>
    %109 = arith.truncf %108 : vector<8x32xf32> to vector<8x32xbf16>
    %110 = vector.extract_strided_slice %39 {offsets = [0, 352], sizes = [8, 32], strides = [1, 1]} : vector<8x384xf32> to vector<8x32xf32>
    %111 = arith.truncf %110 : vector<8x32xf32> to vector<8x32xbf16>
    %cst_41 = arith.constant dense<0.000000e+00> : vector<8x8xf32>
    %112 = tpu.matmul %107, %109, %cst_41 {dimension_numbers = #tpu.dot_dimension_numbers<[1], [1], [0], [0], [0, 0, 1, 0], [], []>} : vector<8x32xbf16>, vector<8x32xbf16>, vector<8x8xf32> -> vector<8x8xf32>
    %cst_42 = arith.constant 0.176776692 : f32
    %113 = vector.broadcast %cst_42 : f32 to vector<8x8xf32>
    %114 = arith.mulf %112, %113 : vector<8x8xf32>
    %115 = arith.addf %114, %27 : vector<8x8xf32>
    %cst_43 = arith.constant dense<0xFF800000> : vector<8xf32>
    %116 = vector.multi_reduction <maximumf>, %115, %cst_43 [1] : vector<8x8xf32> to vector<8xf32>
    %117 = vector.shape_cast %116 : vector<8xf32> to vector<8x1xf32>
    %118 = vector.broadcast %117 : vector<8x1xf32> to vector<8x8xf32>
    %119 = arith.subf %115, %118 : vector<8x8xf32>
    %120 = math.exp %119 : vector<8x8xf32>
    %cst_44 = arith.constant dense<0.000000e+00> : vector<8xf32>
    %121 = vector.multi_reduction <add>, %120, %cst_44 [1] : vector<8x8xf32> to vector<8xf32>
    %122 = vector.shape_cast %121 : vector<8xf32> to vector<8x1xf32>
    %123 = tpu.reciprocal %122 {approx = true} : vector<8x1xf32> -> vector<8x1xf32>
    %124 = vector.broadcast %123 : vector<8x1xf32> to vector<8x8xf32>
    %125 = arith.mulf %120, %124 : vector<8x8xf32>
    %126 = arith.truncf %125 : vector<8x8xf32> to vector<8x8xbf16>
    %cst_45 = arith.constant dense<0.000000e+00> : vector<8x32xf32>
    %127 = tpu.matmul %126, %111, %cst_45 {dimension_numbers = #tpu.dot_dimension_numbers<[1], [0], [0], [1], [0, 0, 1, 1], [], []>} : vector<8x8xbf16>, vector<8x32xbf16>, vector<8x32xf32> -> vector<8x32xf32>
    %128 = tpu.concatenate %61, %83, %105, %127 in 1 : vector<8x32xf32>, vector<8x32xf32>, vector<8x32xf32>, vector<8x32xf32> -> vector<8x128xf32>
    %129 = arith.truncf %128 : vector<8x128xf32> to vector<8x128xbf16>
    %cst_46 = arith.constant dense<0.000000e+00> : vector<8x128xf32>
    %130 = tpu.matmul %129, %33, %cst_46 {dimension_numbers = #tpu.dot_dimension_numbers<[1], [0], [0], [1], [0, 0, 1, 1], [], []>} : vector<8x128xbf16>, vector<128x128xbf16>, vector<8x128xf32> -> vector<8x128xf32>
    %131 = vector.broadcast %35 : vector<1x128xf32> to vector<8x128xf32>
    %132 = arith.addf %130, %131 : vector<8x128xf32>
    %133 = arith.addf %132, %25 : vector<8x128xf32>
    %c0_47 = arith.constant 0 : index
    %c0_48 = arith.constant 0 : index
    %c0_49 = arith.constant 0 : index
    %134 = vector.load %arg9[%c0_47, %c0_48, %c0_49] : memref<2x1x128xf32, #tpu.memory_space<vmem>>, vector<1x1x128xf32>
    %135 = vector.shape_cast %134 : vector<1x1x128xf32> to vector<1x128xf32>
    %c0_50 = arith.constant 0 : index
    %c0_51 = arith.constant 0 : index
    %c0_52 = arith.constant 0 : index
    %136 = vector.load %arg10[%c0_50, %c0_51, %c0_52] : memref<2x1x128xf32, #tpu.memory_space<vmem>>, vector<1x1x128xf32>
    %137 = vector.shape_cast %136 : vector<1x1x128xf32> to vector<1x128xf32>
    %cst_53 = arith.constant dense<0.000000e+00> : vector<8xf32>
    %138 = vector.multi_reduction <add>, %133, %cst_53 [1] : vector<8x128xf32> to vector<8xf32>
    %139 = vector.shape_cast %138 : vector<8xf32> to vector<8x1xf32>
    %cst_54 = arith.constant 1.280000e+02 : f32
    %140 = vector.broadcast %cst_54 : f32 to vector<8x1xf32>
    %141 = arith.divf %139, %140 : vector<8x1xf32>
    %142 = vector.broadcast %141 : vector<8x1xf32> to vector<8x128xf32>
    %143 = arith.subf %133, %142 : vector<8x128xf32>
    %144 = arith.mulf %143, %143 : vector<8x128xf32>
    %cst_55 = arith.constant dense<0.000000e+00> : vector<8xf32>
    %145 = vector.multi_reduction <add>, %144, %cst_55 [1] : vector<8x128xf32> to vector<8xf32>
    %146 = vector.shape_cast %145 : vector<8xf32> to vector<8x1xf32>
    %cst_56 = arith.constant 1.280000e+02 : f32
    %147 = vector.broadcast %cst_56 : f32 to vector<8x1xf32>
    %148 = arith.divf %146, %147 : vector<8x1xf32>
    %149 = vector.broadcast %141 : vector<8x1xf32> to vector<8x128xf32>
    %150 = arith.subf %133, %149 : vector<8x128xf32>
    %cst_57 = arith.constant 9.99999996E-13 : f32
    %151 = vector.broadcast %cst_57 : f32 to vector<8x1xf32>
    %152 = arith.addf %148, %151 : vector<8x1xf32>
    %153 = math.rsqrt %152 : vector<8x1xf32>
    %154 = vector.broadcast %153 : vector<8x1xf32> to vector<8x128xf32>
    %155 = arith.mulf %150, %154 : vector<8x128xf32>
    %156 = vector.broadcast %135 : vector<1x128xf32> to vector<8x128xf32>
    %157 = arith.mulf %155, %156 : vector<8x128xf32>
    %158 = vector.broadcast %137 : vector<1x128xf32> to vector<8x128xf32>
    %159 = arith.addf %157, %158 : vector<8x128xf32>
    %c0_58 = arith.constant 0 : index
    %c0_59 = arith.constant 0 : index
    %c0_60 = arith.constant 0 : index
    %160 = vector.load %arg11[%c0_58, %c0_59, %c0_60] : memref<2x128x256xbf16, #tpu.memory_space<vmem>>, vector<1x128x256xbf16>
    %161 = vector.shape_cast %160 : vector<1x128x256xbf16> to vector<128x256xbf16>
    %162 = arith.truncf %159 : vector<8x128xf32> to vector<8x128xbf16>
    %cst_61 = arith.constant dense<0.000000e+00> : vector<8x256xf32>
    %163 = tpu.matmul %162, %161, %cst_61 {dimension_numbers = #tpu.dot_dimension_numbers<[1], [0], [0], [1], [0, 0, 1, 1], [], []>} : vector<8x128xbf16>, vector<128x256xbf16>, vector<8x256xf32> -> vector<8x256xf32>
    %c0_62 = arith.constant 0 : index
    %c0_63 = arith.constant 0 : index
    %c0_64 = arith.constant 0 : index
    %164 = vector.load %arg12[%c0_62, %c0_63, %c0_64] : memref<2x1x256xf32, #tpu.memory_space<vmem>>, vector<1x1x256xf32>
    %165 = vector.shape_cast %164 : vector<1x1x256xf32> to vector<1x256xf32>
    %166 = vector.broadcast %165 : vector<1x256xf32> to vector<8x256xf32>
    %167 = arith.addf %163, %166 : vector<8x256xf32>
    %cst_65 = arith.constant 5.000000e-01 : f32
    %168 = vector.broadcast %cst_65 : f32 to vector<8x256xf32>
    %169 = arith.mulf %168, %167 : vector<8x256xf32>
    %cst_66 = arith.constant 0.707106769 : f32
    %170 = vector.broadcast %cst_66 : f32 to vector<8x256xf32>
    %171 = arith.mulf %167, %170 : vector<8x256xf32>
    %172 = math.erf %171 : vector<8x256xf32>
    %cst_67 = arith.constant 1.000000e+00 : f32
    %173 = vector.broadcast %cst_67 : f32 to vector<8x256xf32>
    %174 = arith.addf %173, %172 : vector<8x256xf32>
    %175 = arith.mulf %169, %174 : vector<8x256xf32>
    %c0_68 = arith.constant 0 : index
    %c0_69 = arith.constant 0 : index
    %c0_70 = arith.constant 0 : index
    %176 = vector.load %arg13[%c0_68, %c0_69, %c0_70] : memref<2x256x128xbf16, #tpu.memory_space<vmem>>, vector<1x256x128xbf16>
    %177 = vector.shape_cast %176 : vector<1x256x128xbf16> to vector<256x128xbf16>
    %178 = arith.truncf %175 : vector<8x256xf32> to vector<8x256xbf16>
    %cst_71 = arith.constant dense<0.000000e+00> : vector<8x128xf32>
    %179 = tpu.matmul %178, %177, %cst_71 {dimension_numbers = #tpu.dot_dimension_numbers<[1], [0], [0], [1], [0, 0, 1, 1], [], []>} : vector<8x256xbf16>, vector<256x128xbf16>, vector<8x128xf32> -> vector<8x128xf32>
    %c0_72 = arith.constant 0 : index
    %c0_73 = arith.constant 0 : index
    %c0_74 = arith.constant 0 : index
    %180 = vector.load %arg14[%c0_72, %c0_73, %c0_74] : memref<2x1x128xf32, #tpu.memory_space<vmem>>, vector<1x1x128xf32>
    %181 = vector.shape_cast %180 : vector<1x1x128xf32> to vector<1x128xf32>
    %182 = vector.broadcast %181 : vector<1x128xf32> to vector<8x128xf32>
    %183 = arith.addf %179, %182 : vector<8x128xf32>
    %184 = arith.addf %183, %159 : vector<8x128xf32>
    %c0_75 = arith.constant 0 : index
    %c0_76 = arith.constant 0 : index
    %c0_77 = arith.constant 0 : index
    %185 = vector.load %arg15[%c0_75, %c0_76, %c0_77] : memref<2x1x128xf32, #tpu.memory_space<vmem>>, vector<1x1x128xf32>
    %186 = vector.shape_cast %185 : vector<1x1x128xf32> to vector<1x128xf32>
    %c0_78 = arith.constant 0 : index
    %c0_79 = arith.constant 0 : index
    %c0_80 = arith.constant 0 : index
    %187 = vector.load %arg16[%c0_78, %c0_79, %c0_80] : memref<2x1x128xf32, #tpu.memory_space<vmem>>, vector<1x1x128xf32>
    %188 = vector.shape_cast %187 : vector<1x1x128xf32> to vector<1x128xf32>
    %cst_81 = arith.constant dense<0.000000e+00> : vector<8xf32>
    %189 = vector.multi_reduction <add>, %184, %cst_81 [1] : vector<8x128xf32> to vector<8xf32>
    %190 = vector.shape_cast %189 : vector<8xf32> to vector<8x1xf32>
    %cst_82 = arith.constant 1.280000e+02 : f32
    %191 = vector.broadcast %cst_82 : f32 to vector<8x1xf32>
    %192 = arith.divf %190, %191 : vector<8x1xf32>
    %193 = vector.broadcast %192 : vector<8x1xf32> to vector<8x128xf32>
    %194 = arith.subf %184, %193 : vector<8x128xf32>
    %195 = arith.mulf %194, %194 : vector<8x128xf32>
    %cst_83 = arith.constant dense<0.000000e+00> : vector<8xf32>
    %196 = vector.multi_reduction <add>, %195, %cst_83 [1] : vector<8x128xf32> to vector<8xf32>
    %197 = vector.shape_cast %196 : vector<8xf32> to vector<8x1xf32>
    %cst_84 = arith.constant 1.280000e+02 : f32
    %198 = vector.broadcast %cst_84 : f32 to vector<8x1xf32>
    %199 = arith.divf %197, %198 : vector<8x1xf32>
    %200 = vector.broadcast %192 : vector<8x1xf32> to vector<8x128xf32>
    %201 = arith.subf %184, %200 : vector<8x128xf32>
    %cst_85 = arith.constant 9.99999996E-13 : f32
    %202 = vector.broadcast %cst_85 : f32 to vector<8x1xf32>
    %203 = arith.addf %199, %202 : vector<8x1xf32>
    %204 = math.rsqrt %203 : vector<8x1xf32>
    %205 = vector.broadcast %204 : vector<8x1xf32> to vector<8x128xf32>
    %206 = arith.mulf %201, %205 : vector<8x128xf32>
    %207 = vector.broadcast %186 : vector<1x128xf32> to vector<8x128xf32>
    %208 = arith.mulf %206, %207 : vector<8x128xf32>
    %209 = vector.broadcast %188 : vector<1x128xf32> to vector<8x128xf32>
    %210 = arith.addf %208, %209 : vector<8x128xf32>
    %c1 = arith.constant 1 : index
    %c0_86 = arith.constant 0 : index
    %c0_87 = arith.constant 0 : index
    %211 = vector.load %arg5[%c1, %c0_86, %c0_87] : memref<2x128x384xbf16, #tpu.memory_space<vmem>>, vector<1x128x384xbf16>
    %212 = vector.shape_cast %211 : vector<1x128x384xbf16> to vector<128x384xbf16>
    %c1_88 = arith.constant 1 : index
    %c0_89 = arith.constant 0 : index
    %c0_90 = arith.constant 0 : index
    %213 = vector.load %arg6[%c1_88, %c0_89, %c0_90] : memref<2x1x384xf32, #tpu.memory_space<vmem>>, vector<1x1x384xf32>
    %214 = vector.shape_cast %213 : vector<1x1x384xf32> to vector<1x384xf32>
    %c1_91 = arith.constant 1 : index
    %c0_92 = arith.constant 0 : index
    %c0_93 = arith.constant 0 : index
    %215 = vector.load %arg7[%c1_91, %c0_92, %c0_93] : memref<2x128x128xbf16, #tpu.memory_space<vmem>>, vector<1x128x128xbf16>
    %216 = vector.shape_cast %215 : vector<1x128x128xbf16> to vector<128x128xbf16>
    %c1_94 = arith.constant 1 : index
    %c0_95 = arith.constant 0 : index
    %c0_96 = arith.constant 0 : index
    %217 = vector.load %arg8[%c1_94, %c0_95, %c0_96] : memref<2x1x128xf32, #tpu.memory_space<vmem>>, vector<1x1x128xf32>
    %218 = vector.shape_cast %217 : vector<1x1x128xf32> to vector<1x128xf32>
    %219 = arith.truncf %210 : vector<8x128xf32> to vector<8x128xbf16>
    %cst_97 = arith.constant dense<0.000000e+00> : vector<8x384xf32>
    %220 = tpu.matmul %219, %212, %cst_97 {dimension_numbers = #tpu.dot_dimension_numbers<[1], [0], [0], [1], [0, 0, 1, 1], [], []>} : vector<8x128xbf16>, vector<128x384xbf16>, vector<8x384xf32> -> vector<8x384xf32>
    %221 = vector.broadcast %214 : vector<1x384xf32> to vector<8x384xf32>
    %222 = arith.addf %220, %221 : vector<8x384xf32>
    %223 = vector.extract_strided_slice %222 {offsets = [0, 0], sizes = [8, 32], strides = [1, 1]} : vector<8x384xf32> to vector<8x32xf32>
    %224 = arith.truncf %223 : vector<8x32xf32> to vector<8x32xbf16>
    %225 = vector.extract_strided_slice %222 {offsets = [0, 128], sizes = [8, 32], strides = [1, 1]} : vector<8x384xf32> to vector<8x32xf32>
    %226 = arith.truncf %225 : vector<8x32xf32> to vector<8x32xbf16>
    %227 = vector.extract_strided_slice %222 {offsets = [0, 256], sizes = [8, 32], strides = [1, 1]} : vector<8x384xf32> to vector<8x32xf32>
    %228 = arith.truncf %227 : vector<8x32xf32> to vector<8x32xbf16>
    %cst_98 = arith.constant dense<0.000000e+00> : vector<8x8xf32>
    %229 = tpu.matmul %224, %226, %cst_98 {dimension_numbers = #tpu.dot_dimension_numbers<[1], [1], [0], [0], [0, 0, 1, 0], [], []>} : vector<8x32xbf16>, vector<8x32xbf16>, vector<8x8xf32> -> vector<8x8xf32>
    %cst_99 = arith.constant 0.176776692 : f32
    %230 = vector.broadcast %cst_99 : f32 to vector<8x8xf32>
    %231 = arith.mulf %229, %230 : vector<8x8xf32>
    %232 = arith.addf %231, %27 : vector<8x8xf32>
    %cst_100 = arith.constant dense<0xFF800000> : vector<8xf32>
    %233 = vector.multi_reduction <maximumf>, %232, %cst_100 [1] : vector<8x8xf32> to vector<8xf32>
    %234 = vector.shape_cast %233 : vector<8xf32> to vector<8x1xf32>
    %235 = vector.broadcast %234 : vector<8x1xf32> to vector<8x8xf32>
    %236 = arith.subf %232, %235 : vector<8x8xf32>
    %237 = math.exp %236 : vector<8x8xf32>
    %cst_101 = arith.constant dense<0.000000e+00> : vector<8xf32>
    %238 = vector.multi_reduction <add>, %237, %cst_101 [1] : vector<8x8xf32> to vector<8xf32>
    %239 = vector.shape_cast %238 : vector<8xf32> to vector<8x1xf32>
    %240 = tpu.reciprocal %239 {approx = true} : vector<8x1xf32> -> vector<8x1xf32>
    %241 = vector.broadcast %240 : vector<8x1xf32> to vector<8x8xf32>
    %242 = arith.mulf %237, %241 : vector<8x8xf32>
    %243 = arith.truncf %242 : vector<8x8xf32> to vector<8x8xbf16>
    %cst_102 = arith.constant dense<0.000000e+00> : vector<8x32xf32>
    %244 = tpu.matmul %243, %228, %cst_102 {dimension_numbers = #tpu.dot_dimension_numbers<[1], [0], [0], [1], [0, 0, 1, 1], [], []>} : vector<8x8xbf16>, vector<8x32xbf16>, vector<8x32xf32> -> vector<8x32xf32>
    %245 = vector.extract_strided_slice %222 {offsets = [0, 32], sizes = [8, 32], strides = [1, 1]} : vector<8x384xf32> to vector<8x32xf32>
    %246 = arith.truncf %245 : vector<8x32xf32> to vector<8x32xbf16>
    %247 = vector.extract_strided_slice %222 {offsets = [0, 160], sizes = [8, 32], strides = [1, 1]} : vector<8x384xf32> to vector<8x32xf32>
    %248 = arith.truncf %247 : vector<8x32xf32> to vector<8x32xbf16>
    %249 = vector.extract_strided_slice %222 {offsets = [0, 288], sizes = [8, 32], strides = [1, 1]} : vector<8x384xf32> to vector<8x32xf32>
    %250 = arith.truncf %249 : vector<8x32xf32> to vector<8x32xbf16>
    %cst_103 = arith.constant dense<0.000000e+00> : vector<8x8xf32>
    %251 = tpu.matmul %246, %248, %cst_103 {dimension_numbers = #tpu.dot_dimension_numbers<[1], [1], [0], [0], [0, 0, 1, 0], [], []>} : vector<8x32xbf16>, vector<8x32xbf16>, vector<8x8xf32> -> vector<8x8xf32>
    %cst_104 = arith.constant 0.176776692 : f32
    %252 = vector.broadcast %cst_104 : f32 to vector<8x8xf32>
    %253 = arith.mulf %251, %252 : vector<8x8xf32>
    %254 = arith.addf %253, %27 : vector<8x8xf32>
    %cst_105 = arith.constant dense<0xFF800000> : vector<8xf32>
    %255 = vector.multi_reduction <maximumf>, %254, %cst_105 [1] : vector<8x8xf32> to vector<8xf32>
    %256 = vector.shape_cast %255 : vector<8xf32> to vector<8x1xf32>
    %257 = vector.broadcast %256 : vector<8x1xf32> to vector<8x8xf32>
    %258 = arith.subf %254, %257 : vector<8x8xf32>
    %259 = math.exp %258 : vector<8x8xf32>
    %cst_106 = arith.constant dense<0.000000e+00> : vector<8xf32>
    %260 = vector.multi_reduction <add>, %259, %cst_106 [1] : vector<8x8xf32> to vector<8xf32>
    %261 = vector.shape_cast %260 : vector<8xf32> to vector<8x1xf32>
    %262 = tpu.reciprocal %261 {approx = true} : vector<8x1xf32> -> vector<8x1xf32>
    %263 = vector.broadcast %262 : vector<8x1xf32> to vector<8x8xf32>
    %264 = arith.mulf %259, %263 : vector<8x8xf32>
    %265 = arith.truncf %264 : vector<8x8xf32> to vector<8x8xbf16>
    %cst_107 = arith.constant dense<0.000000e+00> : vector<8x32xf32>
    %266 = tpu.matmul %265, %250, %cst_107 {dimension_numbers = #tpu.dot_dimension_numbers<[1], [0], [0], [1], [0, 0, 1, 1], [], []>} : vector<8x8xbf16>, vector<8x32xbf16>, vector<8x32xf32> -> vector<8x32xf32>
    %267 = vector.extract_strided_slice %222 {offsets = [0, 64], sizes = [8, 32], strides = [1, 1]} : vector<8x384xf32> to vector<8x32xf32>
    %268 = arith.truncf %267 : vector<8x32xf32> to vector<8x32xbf16>
    %269 = vector.extract_strided_slice %222 {offsets = [0, 192], sizes = [8, 32], strides = [1, 1]} : vector<8x384xf32> to vector<8x32xf32>
    %270 = arith.truncf %269 : vector<8x32xf32> to vector<8x32xbf16>
    %271 = vector.extract_strided_slice %222 {offsets = [0, 320], sizes = [8, 32], strides = [1, 1]} : vector<8x384xf32> to vector<8x32xf32>
    %272 = arith.truncf %271 : vector<8x32xf32> to vector<8x32xbf16>
    %cst_108 = arith.constant dense<0.000000e+00> : vector<8x8xf32>
    %273 = tpu.matmul %268, %270, %cst_108 {dimension_numbers = #tpu.dot_dimension_numbers<[1], [1], [0], [0], [0, 0, 1, 0], [], []>} : vector<8x32xbf16>, vector<8x32xbf16>, vector<8x8xf32> -> vector<8x8xf32>
    %cst_109 = arith.constant 0.176776692 : f32
    %274 = vector.broadcast %cst_109 : f32 to vector<8x8xf32>
    %275 = arith.mulf %273, %274 : vector<8x8xf32>
    %276 = arith.addf %275, %27 : vector<8x8xf32>
    %cst_110 = arith.constant dense<0xFF800000> : vector<8xf32>
    %277 = vector.multi_reduction <maximumf>, %276, %cst_110 [1] : vector<8x8xf32> to vector<8xf32>
    %278 = vector.shape_cast %277 : vector<8xf32> to vector<8x1xf32>
    %279 = vector.broadcast %278 : vector<8x1xf32> to vector<8x8xf32>
    %280 = arith.subf %276, %279 : vector<8x8xf32>
    %281 = math.exp %280 : vector<8x8xf32>
    %cst_111 = arith.constant dense<0.000000e+00> : vector<8xf32>
    %282 = vector.multi_reduction <add>, %281, %cst_111 [1] : vector<8x8xf32> to vector<8xf32>
    %283 = vector.shape_cast %282 : vector<8xf32> to vector<8x1xf32>
    %284 = tpu.reciprocal %283 {approx = true} : vector<8x1xf32> -> vector<8x1xf32>
    %285 = vector.broadcast %284 : vector<8x1xf32> to vector<8x8xf32>
    %286 = arith.mulf %281, %285 : vector<8x8xf32>
    %287 = arith.truncf %286 : vector<8x8xf32> to vector<8x8xbf16>
    %cst_112 = arith.constant dense<0.000000e+00> : vector<8x32xf32>
    %288 = tpu.matmul %287, %272, %cst_112 {dimension_numbers = #tpu.dot_dimension_numbers<[1], [0], [0], [1], [0, 0, 1, 1], [], []>} : vector<8x8xbf16>, vector<8x32xbf16>, vector<8x32xf32> -> vector<8x32xf32>
    %289 = vector.extract_strided_slice %222 {offsets = [0, 96], sizes = [8, 32], strides = [1, 1]} : vector<8x384xf32> to vector<8x32xf32>
    %290 = arith.truncf %289 : vector<8x32xf32> to vector<8x32xbf16>
    %291 = vector.extract_strided_slice %222 {offsets = [0, 224], sizes = [8, 32], strides = [1, 1]} : vector<8x384xf32> to vector<8x32xf32>
    %292 = arith.truncf %291 : vector<8x32xf32> to vector<8x32xbf16>
    %293 = vector.extract_strided_slice %222 {offsets = [0, 352], sizes = [8, 32], strides = [1, 1]} : vector<8x384xf32> to vector<8x32xf32>
    %294 = arith.truncf %293 : vector<8x32xf32> to vector<8x32xbf16>
    %cst_113 = arith.constant dense<0.000000e+00> : vector<8x8xf32>
    %295 = tpu.matmul %290, %292, %cst_113 {dimension_numbers = #tpu.dot_dimension_numbers<[1], [1], [0], [0], [0, 0, 1, 0], [], []>} : vector<8x32xbf16>, vector<8x32xbf16>, vector<8x8xf32> -> vector<8x8xf32>
    %cst_114 = arith.constant 0.176776692 : f32
    %296 = vector.broadcast %cst_114 : f32 to vector<8x8xf32>
    %297 = arith.mulf %295, %296 : vector<8x8xf32>
    %298 = arith.addf %297, %27 : vector<8x8xf32>
    %cst_115 = arith.constant dense<0xFF800000> : vector<8xf32>
    %299 = vector.multi_reduction <maximumf>, %298, %cst_115 [1] : vector<8x8xf32> to vector<8xf32>
    %300 = vector.shape_cast %299 : vector<8xf32> to vector<8x1xf32>
    %301 = vector.broadcast %300 : vector<8x1xf32> to vector<8x8xf32>
    %302 = arith.subf %298, %301 : vector<8x8xf32>
    %303 = math.exp %302 : vector<8x8xf32>
    %cst_116 = arith.constant dense<0.000000e+00> : vector<8xf32>
    %304 = vector.multi_reduction <add>, %303, %cst_116 [1] : vector<8x8xf32> to vector<8xf32>
    %305 = vector.shape_cast %304 : vector<8xf32> to vector<8x1xf32>
    %306 = tpu.reciprocal %305 {approx = true} : vector<8x1xf32> -> vector<8x1xf32>
    %307 = vector.broadcast %306 : vector<8x1xf32> to vector<8x8xf32>
    %308 = arith.mulf %303, %307 : vector<8x8xf32>
    %309 = arith.truncf %308 : vector<8x8xf32> to vector<8x8xbf16>
    %cst_117 = arith.constant dense<0.000000e+00> : vector<8x32xf32>
    %310 = tpu.matmul %309, %294, %cst_117 {dimension_numbers = #tpu.dot_dimension_numbers<[1], [0], [0], [1], [0, 0, 1, 1], [], []>} : vector<8x8xbf16>, vector<8x32xbf16>, vector<8x32xf32> -> vector<8x32xf32>
    %311 = tpu.concatenate %244, %266, %288, %310 in 1 : vector<8x32xf32>, vector<8x32xf32>, vector<8x32xf32>, vector<8x32xf32> -> vector<8x128xf32>
    %312 = arith.truncf %311 : vector<8x128xf32> to vector<8x128xbf16>
    %cst_118 = arith.constant dense<0.000000e+00> : vector<8x128xf32>
    %313 = tpu.matmul %312, %216, %cst_118 {dimension_numbers = #tpu.dot_dimension_numbers<[1], [0], [0], [1], [0, 0, 1, 1], [], []>} : vector<8x128xbf16>, vector<128x128xbf16>, vector<8x128xf32> -> vector<8x128xf32>
    %314 = vector.broadcast %218 : vector<1x128xf32> to vector<8x128xf32>
    %315 = arith.addf %313, %314 : vector<8x128xf32>
    %316 = arith.addf %315, %210 : vector<8x128xf32>
    %c1_119 = arith.constant 1 : index
    %c0_120 = arith.constant 0 : index
    %c0_121 = arith.constant 0 : index
    %317 = vector.load %arg9[%c1_119, %c0_120, %c0_121] : memref<2x1x128xf32, #tpu.memory_space<vmem>>, vector<1x1x128xf32>
    %318 = vector.shape_cast %317 : vector<1x1x128xf32> to vector<1x128xf32>
    %c1_122 = arith.constant 1 : index
    %c0_123 = arith.constant 0 : index
    %c0_124 = arith.constant 0 : index
    %319 = vector.load %arg10[%c1_122, %c0_123, %c0_124] : memref<2x1x128xf32, #tpu.memory_space<vmem>>, vector<1x1x128xf32>
    %320 = vector.shape_cast %319 : vector<1x1x128xf32> to vector<1x128xf32>
    %cst_125 = arith.constant dense<0.000000e+00> : vector<8xf32>
    %321 = vector.multi_reduction <add>, %316, %cst_125 [1] : vector<8x128xf32> to vector<8xf32>
    %322 = vector.shape_cast %321 : vector<8xf32> to vector<8x1xf32>
    %cst_126 = arith.constant 1.280000e+02 : f32
    %323 = vector.broadcast %cst_126 : f32 to vector<8x1xf32>
    %324 = arith.divf %322, %323 : vector<8x1xf32>
    %325 = vector.broadcast %324 : vector<8x1xf32> to vector<8x128xf32>
    %326 = arith.subf %316, %325 : vector<8x128xf32>
    %327 = arith.mulf %326, %326 : vector<8x128xf32>
    %cst_127 = arith.constant dense<0.000000e+00> : vector<8xf32>
    %328 = vector.multi_reduction <add>, %327, %cst_127 [1] : vector<8x128xf32> to vector<8xf32>
    %329 = vector.shape_cast %328 : vector<8xf32> to vector<8x1xf32>
    %cst_128 = arith.constant 1.280000e+02 : f32
    %330 = vector.broadcast %cst_128 : f32 to vector<8x1xf32>
    %331 = arith.divf %329, %330 : vector<8x1xf32>
    %332 = vector.broadcast %324 : vector<8x1xf32> to vector<8x128xf32>
    %333 = arith.subf %316, %332 : vector<8x128xf32>
    %cst_129 = arith.constant 9.99999996E-13 : f32
    %334 = vector.broadcast %cst_129 : f32 to vector<8x1xf32>
    %335 = arith.addf %331, %334 : vector<8x1xf32>
    %336 = math.rsqrt %335 : vector<8x1xf32>
    %337 = vector.broadcast %336 : vector<8x1xf32> to vector<8x128xf32>
    %338 = arith.mulf %333, %337 : vector<8x128xf32>
    %339 = vector.broadcast %318 : vector<1x128xf32> to vector<8x128xf32>
    %340 = arith.mulf %338, %339 : vector<8x128xf32>
    %341 = vector.broadcast %320 : vector<1x128xf32> to vector<8x128xf32>
    %342 = arith.addf %340, %341 : vector<8x128xf32>
    %c1_130 = arith.constant 1 : index
    %c0_131 = arith.constant 0 : index
    %c0_132 = arith.constant 0 : index
    %343 = vector.load %arg11[%c1_130, %c0_131, %c0_132] : memref<2x128x256xbf16, #tpu.memory_space<vmem>>, vector<1x128x256xbf16>
    %344 = vector.shape_cast %343 : vector<1x128x256xbf16> to vector<128x256xbf16>
    %345 = arith.truncf %342 : vector<8x128xf32> to vector<8x128xbf16>
    %cst_133 = arith.constant dense<0.000000e+00> : vector<8x256xf32>
    %346 = tpu.matmul %345, %344, %cst_133 {dimension_numbers = #tpu.dot_dimension_numbers<[1], [0], [0], [1], [0, 0, 1, 1], [], []>} : vector<8x128xbf16>, vector<128x256xbf16>, vector<8x256xf32> -> vector<8x256xf32>
    %c1_134 = arith.constant 1 : index
    %c0_135 = arith.constant 0 : index
    %c0_136 = arith.constant 0 : index
    %347 = vector.load %arg12[%c1_134, %c0_135, %c0_136] : memref<2x1x256xf32, #tpu.memory_space<vmem>>, vector<1x1x256xf32>
    %348 = vector.shape_cast %347 : vector<1x1x256xf32> to vector<1x256xf32>
    %349 = vector.broadcast %348 : vector<1x256xf32> to vector<8x256xf32>
    %350 = arith.addf %346, %349 : vector<8x256xf32>
    %cst_137 = arith.constant 5.000000e-01 : f32
    %351 = vector.broadcast %cst_137 : f32 to vector<8x256xf32>
    %352 = arith.mulf %351, %350 : vector<8x256xf32>
    %cst_138 = arith.constant 0.707106769 : f32
    %353 = vector.broadcast %cst_138 : f32 to vector<8x256xf32>
    %354 = arith.mulf %350, %353 : vector<8x256xf32>
    %355 = math.erf %354 : vector<8x256xf32>
    %cst_139 = arith.constant 1.000000e+00 : f32
    %356 = vector.broadcast %cst_139 : f32 to vector<8x256xf32>
    %357 = arith.addf %356, %355 : vector<8x256xf32>
    %358 = arith.mulf %352, %357 : vector<8x256xf32>
    %c1_140 = arith.constant 1 : index
    %c0_141 = arith.constant 0 : index
    %c0_142 = arith.constant 0 : index
    %359 = vector.load %arg13[%c1_140, %c0_141, %c0_142] : memref<2x256x128xbf16, #tpu.memory_space<vmem>>, vector<1x256x128xbf16>
    %360 = vector.shape_cast %359 : vector<1x256x128xbf16> to vector<256x128xbf16>
    %361 = arith.truncf %358 : vector<8x256xf32> to vector<8x256xbf16>
    %cst_143 = arith.constant dense<0.000000e+00> : vector<8x128xf32>
    %362 = tpu.matmul %361, %360, %cst_143 {dimension_numbers = #tpu.dot_dimension_numbers<[1], [0], [0], [1], [0, 0, 1, 1], [], []>} : vector<8x256xbf16>, vector<256x128xbf16>, vector<8x128xf32> -> vector<8x128xf32>
    %c1_144 = arith.constant 1 : index
    %c0_145 = arith.constant 0 : index
    %c0_146 = arith.constant 0 : index
    %363 = vector.load %arg14[%c1_144, %c0_145, %c0_146] : memref<2x1x128xf32, #tpu.memory_space<vmem>>, vector<1x1x128xf32>
    %364 = vector.shape_cast %363 : vector<1x1x128xf32> to vector<1x128xf32>
    %365 = vector.broadcast %364 : vector<1x128xf32> to vector<8x128xf32>
    %366 = arith.addf %362, %365 : vector<8x128xf32>
    %367 = arith.addf %366, %342 : vector<8x128xf32>
    %c1_147 = arith.constant 1 : index
    %c0_148 = arith.constant 0 : index
    %c0_149 = arith.constant 0 : index
    %368 = vector.load %arg15[%c1_147, %c0_148, %c0_149] : memref<2x1x128xf32, #tpu.memory_space<vmem>>, vector<1x1x128xf32>
    %369 = vector.shape_cast %368 : vector<1x1x128xf32> to vector<1x128xf32>
    %c1_150 = arith.constant 1 : index
    %c0_151 = arith.constant 0 : index
    %c0_152 = arith.constant 0 : index
    %370 = vector.load %arg16[%c1_150, %c0_151, %c0_152] : memref<2x1x128xf32, #tpu.memory_space<vmem>>, vector<1x1x128xf32>
    %371 = vector.shape_cast %370 : vector<1x1x128xf32> to vector<1x128xf32>
    %cst_153 = arith.constant dense<0.000000e+00> : vector<8xf32>
    %372 = vector.multi_reduction <add>, %367, %cst_153 [1] : vector<8x128xf32> to vector<8xf32>
    %373 = vector.shape_cast %372 : vector<8xf32> to vector<8x1xf32>
    %cst_154 = arith.constant 1.280000e+02 : f32
    %374 = vector.broadcast %cst_154 : f32 to vector<8x1xf32>
    %375 = arith.divf %373, %374 : vector<8x1xf32>
    %376 = vector.broadcast %375 : vector<8x1xf32> to vector<8x128xf32>
    %377 = arith.subf %367, %376 : vector<8x128xf32>
    %378 = arith.mulf %377, %377 : vector<8x128xf32>
    %cst_155 = arith.constant dense<0.000000e+00> : vector<8xf32>
    %379 = vector.multi_reduction <add>, %378, %cst_155 [1] : vector<8x128xf32> to vector<8xf32>
    %380 = vector.shape_cast %379 : vector<8xf32> to vector<8x1xf32>
    %cst_156 = arith.constant 1.280000e+02 : f32
    %381 = vector.broadcast %cst_156 : f32 to vector<8x1xf32>
    %382 = arith.divf %380, %381 : vector<8x1xf32>
    %383 = vector.broadcast %375 : vector<8x1xf32> to vector<8x128xf32>
    %384 = arith.subf %367, %383 : vector<8x128xf32>
    %cst_157 = arith.constant 9.99999996E-13 : f32
    %385 = vector.broadcast %cst_157 : f32 to vector<8x1xf32>
    %386 = arith.addf %382, %385 : vector<8x1xf32>
    %387 = math.rsqrt %386 : vector<8x1xf32>
    %388 = vector.broadcast %387 : vector<8x1xf32> to vector<8x128xf32>
    %389 = arith.mulf %384, %388 : vector<8x128xf32>
    %390 = vector.broadcast %369 : vector<1x128xf32> to vector<8x128xf32>
    %391 = arith.mulf %389, %390 : vector<8x128xf32>
    %392 = vector.broadcast %371 : vector<1x128xf32> to vector<8x128xf32>
    %393 = arith.addf %391, %392 : vector<8x128xf32>
    %394 = vector.extract_strided_slice %393 {offsets = [0, 0], sizes = [1, 128], strides = [1, 1]} : vector<8x128xf32> to vector<1x128xf32>
    %c0_158 = arith.constant 0 : index
    %c0_159 = arith.constant 0 : index
    %395 = vector.load %arg17[%c0_158, %c0_159] : memref<128x128xbf16, #tpu.memory_space<vmem>>, vector<128x128xbf16>
    %396 = arith.truncf %394 : vector<1x128xf32> to vector<1x128xbf16>
    %cst_160 = arith.constant dense<0.000000e+00> : vector<1x128xf32>
    %397 = tpu.matmul %396, %395, %cst_160 {dimension_numbers = #tpu.dot_dimension_numbers<[1], [0], [0], [1], [0, 0, 1, 1], [], []>} : vector<1x128xbf16>, vector<128x128xbf16>, vector<1x128xf32> -> vector<1x128xf32>
    %c0_161 = arith.constant 0 : index
    %c0_162 = arith.constant 0 : index
    %398 = vector.load %arg18[%c0_161, %c0_162] : memref<1x128xf32, #tpu.memory_space<vmem>>, vector<1x128xf32>
    %399 = arith.addf %397, %398 : vector<1x128xf32>
    %c0_163 = arith.constant 0 : index
    %c0_164 = arith.constant 0 : index
    %c0_165 = arith.constant 0 : index
    %400 = vector.load %arg19[%c0_163, %c0_164, %c0_165] : memref<1x1x128xf32, #tpu.memory_space<vmem>>, vector<1x1x128xf32>
    %401 = vector.shape_cast %400 : vector<1x1x128xf32> to vector<1x128xf32>
    %402 = vector.shape_cast %399 : vector<1x128xf32> to vector<1x1x128xf32>
    tpu.vector_store %arg19[%c0_163, %c0_164, %c0_165], %402 {strides = array<i32>} : memref<1x1x128xf32, #tpu.memory_space<vmem>>, vector<1x1x128xf32>,
    return
  }
  func.func @transform_0(%arg0: i32) -> (i32, i32, i32) {
    %c0_i32 = arith.constant 0 : i32
    %c0_i32_0 = arith.constant 0 : i32
    %c0_i32_1 = arith.constant 0 : i32
    return %arg0, %c0_i32, %c0_i32_0 : i32, i32, i32
  }
  func.func @transform_1(%arg0: i32) -> (i32, i32, i32) {
    %c0_i32 = arith.constant 0 : i32
    %c0_i32_0 = arith.constant 0 : i32
    %c0_i32_1 = arith.constant 0 : i32
    return %arg0, %c0_i32, %c0_i32_0 : i32, i32, i32
  }
  func.func @transform_2(%arg0: i32) -> (i32, i32) {
    %c0_i32 = arith.constant 0 : i32
    %c0_i32_0 = arith.constant 0 : i32
    %c0_i32_1 = arith.constant 0 : i32
    return %c0_i32, %c0_i32_0 : i32, i32
  }
  func.func @transform_3(%arg0: i32) -> (i32, i32) {
    %c0_i32 = arith.constant 0 : i32
    %c0_i32_0 = arith.constant 0 : i32
    %c0_i32_1 = arith.constant 0 : i32
    return %c0_i32, %c0_i32_0 : i32, i32
  }
  func.func @transform_4(%arg0: i32) -> (i32, i32, i32) {
    %c0_i32 = arith.constant 0 : i32
    %c0_i32_0 = arith.constant 0 : i32
    %c0_i32_1 = arith.constant 0 : i32
    %c0_i32_2 = arith.constant 0 : i32
    return %c0_i32, %c0_i32_0, %c0_i32_1 : i32, i32, i32
  }
  func.func @transform_5(%arg0: i32) -> (i32, i32, i32) {
    %c0_i32 = arith.constant 0 : i32
    %c0_i32_0 = arith.constant 0 : i32
    %c0_i32_1 = arith.constant 0 : i32
    %c0_i32_2 = arith.constant 0 : i32
    return %c0_i32, %c0_i32_0, %c0_i32_1 : i32, i32, i32
  }
  func.func @transform_6(%arg0: i32) -> (i32, i32, i32) {
    %c0_i32 = arith.constant 0 : i32
    %c0_i32_0 = arith.constant 0 : i32
    %c0_i32_1 = arith.constant 0 : i32
    %c0_i32_2 = arith.constant 0 : i32
    return %c0_i32, %c0_i32_0, %c0_i32_1 : i32, i32, i32
  }
  func.func @transform_7(%arg0: i32) -> (i32, i32, i32) {
    %c0_i32 = arith.constant 0 : i32
    %c0_i32_0 = arith.constant 0 : i32
    %c0_i32_1 = arith.constant 0 : i32
    %c0_i32_2 = arith.constant 0 : i32
    return %c0_i32, %c0_i32_0, %c0_i32_1 : i32, i32, i32
  }
  func.func @transform_8(%arg0: i32) -> (i32, i32, i32) {
    %c0_i32 = arith.constant 0 : i32
    %c0_i32_0 = arith.constant 0 : i32
    %c0_i32_1 = arith.constant 0 : i32
    %c0_i32_2 = arith.constant 0 : i32
    return %c0_i32, %c0_i32_0, %c0_i32_1 : i32, i32, i32
  }
  func.func @transform_9(%arg0: i32) -> (i32, i32, i32) {
    %c0_i32 = arith.constant 0 : i32
    %c0_i32_0 = arith.constant 0 : i32
    %c0_i32_1 = arith.constant 0 : i32
    %c0_i32_2 = arith.constant 0 : i32
    return %c0_i32, %c0_i32_0, %c0_i32_1 : i32, i32, i32
  }
  func.func @transform_10(%arg0: i32) -> (i32, i32, i32) {
    %c0_i32 = arith.constant 0 : i32
    %c0_i32_0 = arith.constant 0 : i32
    %c0_i32_1 = arith.constant 0 : i32
    %c0_i32_2 = arith.constant 0 : i32
    return %c0_i32, %c0_i32_0, %c0_i32_1 : i32, i32, i32
  }
  func.func @transform_11(%arg0: i32) -> (i32, i32, i32) {
    %c0_i32 = arith.constant 0 : i32
    %c0_i32_0 = arith.constant 0 : i32
    %c0_i32_1 = arith.constant 0 : i32
    %c0_i32_2 = arith.constant 0 : i32
    return %c0_i32, %c0_i32_0, %c0_i32_1 : i32, i32, i32
  }
  func.func @transform_12(%arg0: i32) -> (i32, i32, i32) {
    %c0_i32 = arith.constant 0 : i32
    %c0_i32_0 = arith.constant 0 : i32
    %c0_i32_1 = arith.constant 0 : i32
    %c0_i32_2 = arith.constant 0 : i32
    return %c0_i32, %c0_i32_0, %c0_i32_1 : i32, i32, i32
  }
  func.func @transform_13(%arg0: i32) -> (i32, i32, i32) {
    %c0_i32 = arith.constant 0 : i32
    %c0_i32_0 = arith.constant 0 : i32
    %c0_i32_1 = arith.constant 0 : i32
    %c0_i32_2 = arith.constant 0 : i32
    return %c0_i32, %c0_i32_0, %c0_i32_1 : i32, i32, i32
  }
  func.func @transform_14(%arg0: i32) -> (i32, i32, i32) {
    %c0_i32 = arith.constant 0 : i32
    %c0_i32_0 = arith.constant 0 : i32
    %c0_i32_1 = arith.constant 0 : i32
    %c0_i32_2 = arith.constant 0 : i32
    return %c0_i32, %c0_i32_0, %c0_i32_1 : i32, i32, i32
  }
  func.func @transform_15(%arg0: i32) -> (i32, i32, i32) {
    %c0_i32 = arith.constant 0 : i32
    %c0_i32_0 = arith.constant 0 : i32
    %c0_i32_1 = arith.constant 0 : i32
    %c0_i32_2 = arith.constant 0 : i32
    return %c0_i32, %c0_i32_0, %c0_i32_1 : i32, i32, i32
  }
  func.func @transform_16(%arg0: i32) -> (i32, i32) {
    %c0_i32 = arith.constant 0 : i32
    %c0_i32_0 = arith.constant 0 : i32
    %c0_i32_1 = arith.constant 0 : i32
    return %c0_i32, %c0_i32_0 : i32, i32
  }
  func.func @transform_17(%arg0: i32) -> (i32, i32) {
    %c0_i32 = arith.constant 0 : i32
    %c0_i32_0 = arith.constant 0 : i32
    %c0_i32_1 = arith.constant 0 : i32
    return %c0_i32, %c0_i32_0 : i32, i32
  }
  func.func @transform_18(%arg0: i32) -> (i32, i32, i32) {
    %c0_i32 = arith.constant 0 : i32
    %c0_i32_0 = arith.constant 0 : i32
    %c0_i32_1 = arith.constant 0 : i32
    return %arg0, %c0_i32, %c0_i32_0 : i32, i32, i32
  }
}

module attributes {stable_mosaic.version = 11 : i64} {
  func.func @_decoder_stack_kernel(%arg0: i32, %arg1: memref<1x8x128xf32, #tpu.memory_space<vmem>>, %arg2: memref<1x8x8xf32, #tpu.memory_space<vmem>>, %arg3: memref<1x1x128xf32, #tpu.memory_space<vmem>>, %arg4: memref<1x8x1xi32, #tpu.memory_space<vmem>>, %arg5: memref<1x128xf32, #tpu.memory_space<vmem>>, %arg6: memref<1x128xf32, #tpu.memory_space<vmem>>, %arg7: memref<2x128x384xbf16, #tpu.memory_space<vmem>>, %arg8: memref<2x1x384xf32, #tpu.memory_space<vmem>>, %arg9: memref<2x128x128xbf16, #tpu.memory_space<vmem>>, %arg10: memref<2x1x128xf32, #tpu.memory_space<vmem>>, %arg11: memref<2x1x128xf32, #tpu.memory_space<vmem>>, %arg12: memref<2x1x128xf32, #tpu.memory_space<vmem>>, %arg13: memref<2x128x128xbf16, #tpu.memory_space<vmem>>, %arg14: memref<2x1x128xf32, #tpu.memory_space<vmem>>, %arg15: memref<2x128x128xbf16, #tpu.memory_space<vmem>>, %arg16: memref<2x1x128xf32, #tpu.memory_space<vmem>>, %arg17: memref<2x1x128xf32, #tpu.memory_space<vmem>>, %arg18: memref<2x1x128xf32, #tpu.memory_space<vmem>>, %arg19: memref<2x128x256xbf16, #tpu.memory_space<vmem>>, %arg20: memref<2x1x256xf32, #tpu.memory_space<vmem>>, %arg21: memref<2x256x128xbf16, #tpu.memory_space<vmem>>, %arg22: memref<2x1x128xf32, #tpu.memory_space<vmem>>, %arg23: memref<2x1x128xf32, #tpu.memory_space<vmem>>, %arg24: memref<2x1x128xf32, #tpu.memory_space<vmem>>, %arg25: memref<128x256xbf16, #tpu.memory_space<vmem>>, %arg26: memref<1x256xf32, #tpu.memory_space<vmem>>, %arg27: memref<1x8x256xf32, #tpu.memory_space<vmem>>, %arg28: memref<1x8x1xf32, #tpu.memory_space<vmem>>) attributes {dimension_semantics = [#tpu.dimension_semantics<parallel>], iteration_bounds = array<i64: 2>, scalar_prefetch = 0 : i64, scratch_operands = 0 : i64, tpu.core_type = #tpu.core_type<tc>, window_params = [{transform_indices = @transform_0, window_bounds = array<i64: 1, 8, 128>}, {transform_indices = @transform_1, window_bounds = array<i64: 1, 8, 8>}, {transform_indices = @transform_2, window_bounds = array<i64: 1, 1, 128>}, {transform_indices = @transform_3, window_bounds = array<i64: 1, 8, 1>}, {pipeline_mode = #tpu.pipeline_mode<synchronous>, transform_indices = @transform_4, window_bounds = array<i64: 1, 128>}, {pipeline_mode = #tpu.pipeline_mode<synchronous>, transform_indices = @transform_5, window_bounds = array<i64: 1, 128>}, {pipeline_mode = #tpu.pipeline_mode<synchronous>, transform_indices = @transform_6, window_bounds = array<i64: 2, 128, 384>}, {pipeline_mode = #tpu.pipeline_mode<synchronous>, transform_indices = @transform_7, window_bounds = array<i64: 2, 1, 384>}, {pipeline_mode = #tpu.pipeline_mode<synchronous>, transform_indices = @transform_8, window_bounds = array<i64: 2, 128, 128>}, {pipeline_mode = #tpu.pipeline_mode<synchronous>, transform_indices = @transform_9, window_bounds = array<i64: 2, 1, 128>}, {pipeline_mode = #tpu.pipeline_mode<synchronous>, transform_indices = @transform_10, window_bounds = array<i64: 2, 1, 128>}, {pipeline_mode = #tpu.pipeline_mode<synchronous>, transform_indices = @transform_11, window_bounds = array<i64: 2, 1, 128>}, {pipeline_mode = #tpu.pipeline_mode<synchronous>, transform_indices = @transform_12, window_bounds = array<i64: 2, 128, 128>}, {pipeline_mode = #tpu.pipeline_mode<synchronous>, transform_indices = @transform_13, window_bounds = array<i64: 2, 1, 128>}, {pipeline_mode = #tpu.pipeline_mode<synchronous>, transform_indices = @transform_14, window_bounds = array<i64: 2, 128, 128>}, {pipeline_mode = #tpu.pipeline_mode<synchronous>, transform_indices = @transform_15, window_bounds = array<i64: 2, 1, 128>}, {pipeline_mode = #tpu.pipeline_mode<synchronous>, transform_indices = @transform_16, window_bounds = array<i64: 2, 1, 128>}, {pipeline_mode = #tpu.pipeline_mode<synchronous>, transform_indices = @transform_17, window_bounds = array<i64: 2, 1, 128>}, {pipeline_mode = #tpu.pipeline_mode<synchronous>, transform_indices = @transform_18, window_bounds = array<i64: 2, 128, 256>}, {pipeline_mode = #tpu.pipeline_mode<synchronous>, transform_indices = @transform_19, window_bounds = array<i64: 2, 1, 256>}, {pipeline_mode = #tpu.pipeline_mode<synchronous>, transform_indices = @transform_20, window_bounds = array<i64: 2, 256, 128>}, {pipeline_mode = #tpu.pipeline_mode<synchronous>, transform_indices = @transform_21, window_bounds = array<i64: 2, 1, 128>}, {pipeline_mode = #tpu.pipeline_mode<synchronous>, transform_indices = @transform_22, window_bounds = array<i64: 2, 1, 128>}, {pipeline_mode = #tpu.pipeline_mode<synchronous>, transform_indices = @transform_23, window_bounds = array<i64: 2, 1, 128>}, {pipeline_mode = #tpu.pipeline_mode<synchronous>, transform_indices = @transform_24, window_bounds = array<i64: 128, 256>}, {pipeline_mode = #tpu.pipeline_mode<synchronous>, transform_indices = @transform_25, window_bounds = array<i64: 1, 256>}, {transform_indices = @transform_26, window_bounds = array<i64: 1, 8, 256>}, {transform_indices = @transform_27, window_bounds = array<i64: 1, 8, 1>}]} {
    %c0 = arith.constant 0 : index
    %c0_0 = arith.constant 0 : index
    %c0_1 = arith.constant 0 : index
    %0 = vector.load %arg1[%c0, %c0_0, %c0_1] : memref<1x8x128xf32, #tpu.memory_space<vmem>>, vector<1x8x128xf32>
    %1 = vector.shape_cast %0 : vector<1x8x128xf32> to vector<8x128xf32>
    %c0_2 = arith.constant 0 : index
    %c0_3 = arith.constant 0 : index
    %2 = vector.load %arg5[%c0_2, %c0_3] : memref<1x128xf32, #tpu.memory_space<vmem>>, vector<1x128xf32>
    %c0_4 = arith.constant 0 : index
    %c0_5 = arith.constant 0 : index
    %3 = vector.load %arg6[%c0_4, %c0_5] : memref<1x128xf32, #tpu.memory_space<vmem>>, vector<1x128xf32>
    %cst = arith.constant dense<0.000000e+00> : vector<8xf32>
    %4 = vector.multi_reduction <add>, %1, %cst [1] : vector<8x128xf32> to vector<8xf32>
    %5 = vector.shape_cast %4 : vector<8xf32> to vector<8x1xf32>
    %cst_6 = arith.constant 1.280000e+02 : f32
    %6 = vector.broadcast %cst_6 : f32 to vector<8x1xf32>
    %7 = arith.divf %5, %6 : vector<8x1xf32>
    %8 = vector.broadcast %7 : vector<8x1xf32> to vector<8x128xf32>
    %9 = arith.subf %1, %8 : vector<8x128xf32>
    %10 = arith.mulf %9, %9 : vector<8x128xf32>
    %cst_7 = arith.constant dense<0.000000e+00> : vector<8xf32>
    %11 = vector.multi_reduction <add>, %10, %cst_7 [1] : vector<8x128xf32> to vector<8xf32>
    %12 = vector.shape_cast %11 : vector<8xf32> to vector<8x1xf32>
    %cst_8 = arith.constant 1.280000e+02 : f32
    %13 = vector.broadcast %cst_8 : f32 to vector<8x1xf32>
    %14 = arith.divf %12, %13 : vector<8x1xf32>
    %15 = vector.broadcast %7 : vector<8x1xf32> to vector<8x128xf32>
    %16 = arith.subf %1, %15 : vector<8x128xf32>
    %cst_9 = arith.constant 9.99999996E-13 : f32
    %17 = vector.broadcast %cst_9 : f32 to vector<8x1xf32>
    %18 = arith.addf %14, %17 : vector<8x1xf32>
    %19 = math.rsqrt %18 : vector<8x1xf32>
    %20 = vector.broadcast %19 : vector<8x1xf32> to vector<8x128xf32>
    %21 = arith.mulf %16, %20 : vector<8x128xf32>
    %22 = vector.broadcast %2 : vector<1x128xf32> to vector<8x128xf32>
    %23 = arith.mulf %21, %22 : vector<8x128xf32>
    %24 = vector.broadcast %3 : vector<1x128xf32> to vector<8x128xf32>
    %25 = arith.addf %23, %24 : vector<8x128xf32>
    %c0_10 = arith.constant 0 : index
    %c0_11 = arith.constant 0 : index
    %c0_12 = arith.constant 0 : index
    %26 = vector.load %arg2[%c0_10, %c0_11, %c0_12] : memref<1x8x8xf32, #tpu.memory_space<vmem>>, vector<1x8x8xf32>
    %27 = vector.shape_cast %26 : vector<1x8x8xf32> to vector<8x8xf32>
    %c0_13 = arith.constant 0 : index
    %c0_14 = arith.constant 0 : index
    %c0_15 = arith.constant 0 : index
    %28 = vector.load %arg3[%c0_13, %c0_14, %c0_15] : memref<1x1x128xf32, #tpu.memory_space<vmem>>, vector<1x1x128xf32>
    %29 = vector.shape_cast %28 : vector<1x1x128xf32> to vector<1x128xf32>
    %c0_16 = arith.constant 0 : index
    %c0_17 = arith.constant 0 : index
    %c0_18 = arith.constant 0 : index
    %30 = vector.load %arg7[%c0_16, %c0_17, %c0_18] : memref<2x128x384xbf16, #tpu.memory_space<vmem>>, vector<1x128x384xbf16>
    %31 = vector.shape_cast %30 : vector<1x128x384xbf16> to vector<128x384xbf16>
    %c0_19 = arith.constant 0 : index
    %c0_20 = arith.constant 0 : index
    %c0_21 = arith.constant 0 : index
    %32 = vector.load %arg8[%c0_19, %c0_20, %c0_21] : memref<2x1x384xf32, #tpu.memory_space<vmem>>, vector<1x1x384xf32>
    %33 = vector.shape_cast %32 : vector<1x1x384xf32> to vector<1x384xf32>
    %c0_22 = arith.constant 0 : index
    %c0_23 = arith.constant 0 : index
    %c0_24 = arith.constant 0 : index
    %34 = vector.load %arg9[%c0_22, %c0_23, %c0_24] : memref<2x128x128xbf16, #tpu.memory_space<vmem>>, vector<1x128x128xbf16>
    %35 = vector.shape_cast %34 : vector<1x128x128xbf16> to vector<128x128xbf16>
    %c0_25 = arith.constant 0 : index
    %c0_26 = arith.constant 0 : index
    %c0_27 = arith.constant 0 : index
    %36 = vector.load %arg10[%c0_25, %c0_26, %c0_27] : memref<2x1x128xf32, #tpu.memory_space<vmem>>, vector<1x1x128xf32>
    %37 = vector.shape_cast %36 : vector<1x1x128xf32> to vector<1x128xf32>
    %38 = arith.truncf %25 : vector<8x128xf32> to vector<8x128xbf16>
    %cst_28 = arith.constant dense<0.000000e+00> : vector<8x384xf32>
    %39 = tpu.matmul %38, %31, %cst_28 {dimension_numbers = #tpu.dot_dimension_numbers<[1], [0], [0], [1], [0, 0, 1, 1], [], []>} : vector<8x128xbf16>, vector<128x384xbf16>, vector<8x384xf32> -> vector<8x384xf32>
    %40 = vector.broadcast %33 : vector<1x384xf32> to vector<8x384xf32>
    %41 = arith.addf %39, %40 : vector<8x384xf32>
    %42 = vector.extract_strided_slice %41 {offsets = [0, 0], sizes = [8, 32], strides = [1, 1]} : vector<8x384xf32> to vector<8x32xf32>
    %43 = arith.truncf %42 : vector<8x32xf32> to vector<8x32xbf16>
    %44 = vector.extract_strided_slice %41 {offsets = [0, 128], sizes = [8, 32], strides = [1, 1]} : vector<8x384xf32> to vector<8x32xf32>
    %45 = arith.truncf %44 : vector<8x32xf32> to vector<8x32xbf16>
    %46 = vector.extract_strided_slice %41 {offsets = [0, 256], sizes = [8, 32], strides = [1, 1]} : vector<8x384xf32> to vector<8x32xf32>
    %47 = arith.truncf %46 : vector<8x32xf32> to vector<8x32xbf16>
    %cst_29 = arith.constant dense<0.000000e+00> : vector<8x8xf32>
    %48 = tpu.matmul %43, %45, %cst_29 {dimension_numbers = #tpu.dot_dimension_numbers<[1], [1], [0], [0], [0, 0, 1, 0], [], []>} : vector<8x32xbf16>, vector<8x32xbf16>, vector<8x8xf32> -> vector<8x8xf32>
    %cst_30 = arith.constant 0.176776692 : f32
    %49 = vector.broadcast %cst_30 : f32 to vector<8x8xf32>
    %50 = arith.mulf %48, %49 : vector<8x8xf32>
    %51 = arith.addf %50, %27 : vector<8x8xf32>
    %cst_31 = arith.constant dense<0xFF800000> : vector<8xf32>
    %52 = vector.multi_reduction <maximumf>, %51, %cst_31 [1] : vector<8x8xf32> to vector<8xf32>
    %53 = vector.shape_cast %52 : vector<8xf32> to vector<8x1xf32>
    %54 = vector.broadcast %53 : vector<8x1xf32> to vector<8x8xf32>
    %55 = arith.subf %51, %54 : vector<8x8xf32>
    %56 = math.exp %55 : vector<8x8xf32>
    %cst_32 = arith.constant dense<0.000000e+00> : vector<8xf32>
    %57 = vector.multi_reduction <add>, %56, %cst_32 [1] : vector<8x8xf32> to vector<8xf32>
    %58 = vector.shape_cast %57 : vector<8xf32> to vector<8x1xf32>
    %59 = tpu.reciprocal %58 {approx = true} : vector<8x1xf32> -> vector<8x1xf32>
    %60 = vector.broadcast %59 : vector<8x1xf32> to vector<8x8xf32>
    %61 = arith.mulf %56, %60 : vector<8x8xf32>
    %62 = arith.truncf %61 : vector<8x8xf32> to vector<8x8xbf16>
    %cst_33 = arith.constant dense<0.000000e+00> : vector<8x32xf32>
    %63 = tpu.matmul %62, %47, %cst_33 {dimension_numbers = #tpu.dot_dimension_numbers<[1], [0], [0], [1], [0, 0, 1, 1], [], []>} : vector<8x8xbf16>, vector<8x32xbf16>, vector<8x32xf32> -> vector<8x32xf32>
    %64 = vector.extract_strided_slice %41 {offsets = [0, 32], sizes = [8, 32], strides = [1, 1]} : vector<8x384xf32> to vector<8x32xf32>
    %65 = arith.truncf %64 : vector<8x32xf32> to vector<8x32xbf16>
    %66 = vector.extract_strided_slice %41 {offsets = [0, 160], sizes = [8, 32], strides = [1, 1]} : vector<8x384xf32> to vector<8x32xf32>
    %67 = arith.truncf %66 : vector<8x32xf32> to vector<8x32xbf16>
    %68 = vector.extract_strided_slice %41 {offsets = [0, 288], sizes = [8, 32], strides = [1, 1]} : vector<8x384xf32> to vector<8x32xf32>
    %69 = arith.truncf %68 : vector<8x32xf32> to vector<8x32xbf16>
    %cst_34 = arith.constant dense<0.000000e+00> : vector<8x8xf32>
    %70 = tpu.matmul %65, %67, %cst_34 {dimension_numbers = #tpu.dot_dimension_numbers<[1], [1], [0], [0], [0, 0, 1, 0], [], []>} : vector<8x32xbf16>, vector<8x32xbf16>, vector<8x8xf32> -> vector<8x8xf32>
    %cst_35 = arith.constant 0.176776692 : f32
    %71 = vector.broadcast %cst_35 : f32 to vector<8x8xf32>
    %72 = arith.mulf %70, %71 : vector<8x8xf32>
    %73 = arith.addf %72, %27 : vector<8x8xf32>
    %cst_36 = arith.constant dense<0xFF800000> : vector<8xf32>
    %74 = vector.multi_reduction <maximumf>, %73, %cst_36 [1] : vector<8x8xf32> to vector<8xf32>
    %75 = vector.shape_cast %74 : vector<8xf32> to vector<8x1xf32>
    %76 = vector.broadcast %75 : vector<8x1xf32> to vector<8x8xf32>
    %77 = arith.subf %73, %76 : vector<8x8xf32>
    %78 = math.exp %77 : vector<8x8xf32>
    %cst_37 = arith.constant dense<0.000000e+00> : vector<8xf32>
    %79 = vector.multi_reduction <add>, %78, %cst_37 [1] : vector<8x8xf32> to vector<8xf32>
    %80 = vector.shape_cast %79 : vector<8xf32> to vector<8x1xf32>
    %81 = tpu.reciprocal %80 {approx = true} : vector<8x1xf32> -> vector<8x1xf32>
    %82 = vector.broadcast %81 : vector<8x1xf32> to vector<8x8xf32>
    %83 = arith.mulf %78, %82 : vector<8x8xf32>
    %84 = arith.truncf %83 : vector<8x8xf32> to vector<8x8xbf16>
    %cst_38 = arith.constant dense<0.000000e+00> : vector<8x32xf32>
    %85 = tpu.matmul %84, %69, %cst_38 {dimension_numbers = #tpu.dot_dimension_numbers<[1], [0], [0], [1], [0, 0, 1, 1], [], []>} : vector<8x8xbf16>, vector<8x32xbf16>, vector<8x32xf32> -> vector<8x32xf32>
    %86 = vector.extract_strided_slice %41 {offsets = [0, 64], sizes = [8, 32], strides = [1, 1]} : vector<8x384xf32> to vector<8x32xf32>
    %87 = arith.truncf %86 : vector<8x32xf32> to vector<8x32xbf16>
    %88 = vector.extract_strided_slice %41 {offsets = [0, 192], sizes = [8, 32], strides = [1, 1]} : vector<8x384xf32> to vector<8x32xf32>
    %89 = arith.truncf %88 : vector<8x32xf32> to vector<8x32xbf16>
    %90 = vector.extract_strided_slice %41 {offsets = [0, 320], sizes = [8, 32], strides = [1, 1]} : vector<8x384xf32> to vector<8x32xf32>
    %91 = arith.truncf %90 : vector<8x32xf32> to vector<8x32xbf16>
    %cst_39 = arith.constant dense<0.000000e+00> : vector<8x8xf32>
    %92 = tpu.matmul %87, %89, %cst_39 {dimension_numbers = #tpu.dot_dimension_numbers<[1], [1], [0], [0], [0, 0, 1, 0], [], []>} : vector<8x32xbf16>, vector<8x32xbf16>, vector<8x8xf32> -> vector<8x8xf32>
    %cst_40 = arith.constant 0.176776692 : f32
    %93 = vector.broadcast %cst_40 : f32 to vector<8x8xf32>
    %94 = arith.mulf %92, %93 : vector<8x8xf32>
    %95 = arith.addf %94, %27 : vector<8x8xf32>
    %cst_41 = arith.constant dense<0xFF800000> : vector<8xf32>
    %96 = vector.multi_reduction <maximumf>, %95, %cst_41 [1] : vector<8x8xf32> to vector<8xf32>
    %97 = vector.shape_cast %96 : vector<8xf32> to vector<8x1xf32>
    %98 = vector.broadcast %97 : vector<8x1xf32> to vector<8x8xf32>
    %99 = arith.subf %95, %98 : vector<8x8xf32>
    %100 = math.exp %99 : vector<8x8xf32>
    %cst_42 = arith.constant dense<0.000000e+00> : vector<8xf32>
    %101 = vector.multi_reduction <add>, %100, %cst_42 [1] : vector<8x8xf32> to vector<8xf32>
    %102 = vector.shape_cast %101 : vector<8xf32> to vector<8x1xf32>
    %103 = tpu.reciprocal %102 {approx = true} : vector<8x1xf32> -> vector<8x1xf32>
    %104 = vector.broadcast %103 : vector<8x1xf32> to vector<8x8xf32>
    %105 = arith.mulf %100, %104 : vector<8x8xf32>
    %106 = arith.truncf %105 : vector<8x8xf32> to vector<8x8xbf16>
    %cst_43 = arith.constant dense<0.000000e+00> : vector<8x32xf32>
    %107 = tpu.matmul %106, %91, %cst_43 {dimension_numbers = #tpu.dot_dimension_numbers<[1], [0], [0], [1], [0, 0, 1, 1], [], []>} : vector<8x8xbf16>, vector<8x32xbf16>, vector<8x32xf32> -> vector<8x32xf32>
    %108 = vector.extract_strided_slice %41 {offsets = [0, 96], sizes = [8, 32], strides = [1, 1]} : vector<8x384xf32> to vector<8x32xf32>
    %109 = arith.truncf %108 : vector<8x32xf32> to vector<8x32xbf16>
    %110 = vector.extract_strided_slice %41 {offsets = [0, 224], sizes = [8, 32], strides = [1, 1]} : vector<8x384xf32> to vector<8x32xf32>
    %111 = arith.truncf %110 : vector<8x32xf32> to vector<8x32xbf16>
    %112 = vector.extract_strided_slice %41 {offsets = [0, 352], sizes = [8, 32], strides = [1, 1]} : vector<8x384xf32> to vector<8x32xf32>
    %113 = arith.truncf %112 : vector<8x32xf32> to vector<8x32xbf16>
    %cst_44 = arith.constant dense<0.000000e+00> : vector<8x8xf32>
    %114 = tpu.matmul %109, %111, %cst_44 {dimension_numbers = #tpu.dot_dimension_numbers<[1], [1], [0], [0], [0, 0, 1, 0], [], []>} : vector<8x32xbf16>, vector<8x32xbf16>, vector<8x8xf32> -> vector<8x8xf32>
    %cst_45 = arith.constant 0.176776692 : f32
    %115 = vector.broadcast %cst_45 : f32 to vector<8x8xf32>
    %116 = arith.mulf %114, %115 : vector<8x8xf32>
    %117 = arith.addf %116, %27 : vector<8x8xf32>
    %cst_46 = arith.constant dense<0xFF800000> : vector<8xf32>
    %118 = vector.multi_reduction <maximumf>, %117, %cst_46 [1] : vector<8x8xf32> to vector<8xf32>
    %119 = vector.shape_cast %118 : vector<8xf32> to vector<8x1xf32>
    %120 = vector.broadcast %119 : vector<8x1xf32> to vector<8x8xf32>
    %121 = arith.subf %117, %120 : vector<8x8xf32>
    %122 = math.exp %121 : vector<8x8xf32>
    %cst_47 = arith.constant dense<0.000000e+00> : vector<8xf32>
    %123 = vector.multi_reduction <add>, %122, %cst_47 [1] : vector<8x8xf32> to vector<8xf32>
    %124 = vector.shape_cast %123 : vector<8xf32> to vector<8x1xf32>
    %125 = tpu.reciprocal %124 {approx = true} : vector<8x1xf32> -> vector<8x1xf32>
    %126 = vector.broadcast %125 : vector<8x1xf32> to vector<8x8xf32>
    %127 = arith.mulf %122, %126 : vector<8x8xf32>
    %128 = arith.truncf %127 : vector<8x8xf32> to vector<8x8xbf16>
    %cst_48 = arith.constant dense<0.000000e+00> : vector<8x32xf32>
    %129 = tpu.matmul %128, %113, %cst_48 {dimension_numbers = #tpu.dot_dimension_numbers<[1], [0], [0], [1], [0, 0, 1, 1], [], []>} : vector<8x8xbf16>, vector<8x32xbf16>, vector<8x32xf32> -> vector<8x32xf32>
    %130 = tpu.concatenate %63, %85, %107, %129 in 1 : vector<8x32xf32>, vector<8x32xf32>, vector<8x32xf32>, vector<8x32xf32> -> vector<8x128xf32>
    %131 = arith.truncf %130 : vector<8x128xf32> to vector<8x128xbf16>
    %cst_49 = arith.constant dense<0.000000e+00> : vector<8x128xf32>
    %132 = tpu.matmul %131, %35, %cst_49 {dimension_numbers = #tpu.dot_dimension_numbers<[1], [0], [0], [1], [0, 0, 1, 1], [], []>} : vector<8x128xbf16>, vector<128x128xbf16>, vector<8x128xf32> -> vector<8x128xf32>
    %133 = vector.broadcast %37 : vector<1x128xf32> to vector<8x128xf32>
    %134 = arith.addf %132, %133 : vector<8x128xf32>
    %135 = arith.addf %134, %25 : vector<8x128xf32>
    %c0_50 = arith.constant 0 : index
    %c0_51 = arith.constant 0 : index
    %c0_52 = arith.constant 0 : index
    %136 = vector.load %arg11[%c0_50, %c0_51, %c0_52] : memref<2x1x128xf32, #tpu.memory_space<vmem>>, vector<1x1x128xf32>
    %137 = vector.shape_cast %136 : vector<1x1x128xf32> to vector<1x128xf32>
    %c0_53 = arith.constant 0 : index
    %c0_54 = arith.constant 0 : index
    %c0_55 = arith.constant 0 : index
    %138 = vector.load %arg12[%c0_53, %c0_54, %c0_55] : memref<2x1x128xf32, #tpu.memory_space<vmem>>, vector<1x1x128xf32>
    %139 = vector.shape_cast %138 : vector<1x1x128xf32> to vector<1x128xf32>
    %cst_56 = arith.constant dense<0.000000e+00> : vector<8xf32>
    %140 = vector.multi_reduction <add>, %135, %cst_56 [1] : vector<8x128xf32> to vector<8xf32>
    %141 = vector.shape_cast %140 : vector<8xf32> to vector<8x1xf32>
    %cst_57 = arith.constant 1.280000e+02 : f32
    %142 = vector.broadcast %cst_57 : f32 to vector<8x1xf32>
    %143 = arith.divf %141, %142 : vector<8x1xf32>
    %144 = vector.broadcast %143 : vector<8x1xf32> to vector<8x128xf32>
    %145 = arith.subf %135, %144 : vector<8x128xf32>
    %146 = arith.mulf %145, %145 : vector<8x128xf32>
    %cst_58 = arith.constant dense<0.000000e+00> : vector<8xf32>
    %147 = vector.multi_reduction <add>, %146, %cst_58 [1] : vector<8x128xf32> to vector<8xf32>
    %148 = vector.shape_cast %147 : vector<8xf32> to vector<8x1xf32>
    %cst_59 = arith.constant 1.280000e+02 : f32
    %149 = vector.broadcast %cst_59 : f32 to vector<8x1xf32>
    %150 = arith.divf %148, %149 : vector<8x1xf32>
    %151 = vector.broadcast %143 : vector<8x1xf32> to vector<8x128xf32>
    %152 = arith.subf %135, %151 : vector<8x128xf32>
    %cst_60 = arith.constant 9.99999996E-13 : f32
    %153 = vector.broadcast %cst_60 : f32 to vector<8x1xf32>
    %154 = arith.addf %150, %153 : vector<8x1xf32>
    %155 = math.rsqrt %154 : vector<8x1xf32>
    %156 = vector.broadcast %155 : vector<8x1xf32> to vector<8x128xf32>
    %157 = arith.mulf %152, %156 : vector<8x128xf32>
    %158 = vector.broadcast %137 : vector<1x128xf32> to vector<8x128xf32>
    %159 = arith.mulf %157, %158 : vector<8x128xf32>
    %160 = vector.broadcast %139 : vector<1x128xf32> to vector<8x128xf32>
    %161 = arith.addf %159, %160 : vector<8x128xf32>
    %c0_61 = arith.constant 0 : index
    %c0_62 = arith.constant 0 : index
    %c0_63 = arith.constant 0 : index
    %162 = vector.load %arg13[%c0_61, %c0_62, %c0_63] : memref<2x128x128xbf16, #tpu.memory_space<vmem>>, vector<1x128x128xbf16>
    %163 = vector.shape_cast %162 : vector<1x128x128xbf16> to vector<128x128xbf16>
    %164 = arith.truncf %29 : vector<1x128xf32> to vector<1x128xbf16>
    %cst_64 = arith.constant dense<0.000000e+00> : vector<1x128xf32>
    %165 = tpu.matmul %164, %163, %cst_64 {dimension_numbers = #tpu.dot_dimension_numbers<[1], [0], [0], [1], [0, 0, 1, 1], [], []>} : vector<1x128xbf16>, vector<128x128xbf16>, vector<1x128xf32> -> vector<1x128xf32>
    %c0_65 = arith.constant 0 : index
    %c0_66 = arith.constant 0 : index
    %c0_67 = arith.constant 0 : index
    %166 = vector.load %arg14[%c0_65, %c0_66, %c0_67] : memref<2x1x128xf32, #tpu.memory_space<vmem>>, vector<1x1x128xf32>
    %167 = vector.shape_cast %166 : vector<1x1x128xf32> to vector<1x128xf32>
    %168 = arith.addf %165, %167 : vector<1x128xf32>
    %c0_68 = arith.constant 0 : index
    %c0_69 = arith.constant 0 : index
    %c0_70 = arith.constant 0 : index
    %169 = vector.load %arg15[%c0_68, %c0_69, %c0_70] : memref<2x128x128xbf16, #tpu.memory_space<vmem>>, vector<1x128x128xbf16>
    %170 = vector.shape_cast %169 : vector<1x128x128xbf16> to vector<128x128xbf16>
    %171 = arith.truncf %168 : vector<1x128xf32> to vector<1x128xbf16>
    %cst_71 = arith.constant dense<0.000000e+00> : vector<1x128xf32>
    %172 = tpu.matmul %171, %170, %cst_71 {dimension_numbers = #tpu.dot_dimension_numbers<[1], [0], [0], [1], [0, 0, 1, 1], [], []>} : vector<1x128xbf16>, vector<128x128xbf16>, vector<1x128xf32> -> vector<1x128xf32>
    %c0_72 = arith.constant 0 : index
    %c0_73 = arith.constant 0 : index
    %c0_74 = arith.constant 0 : index
    %173 = vector.load %arg16[%c0_72, %c0_73, %c0_74] : memref<2x1x128xf32, #tpu.memory_space<vmem>>, vector<1x1x128xf32>
    %174 = vector.shape_cast %173 : vector<1x1x128xf32> to vector<1x128xf32>
    %175 = arith.addf %172, %174 : vector<1x128xf32>
    %176 = vector.broadcast %175 : vector<1x128xf32> to vector<8x128xf32>
    %177 = arith.addf %161, %176 : vector<8x128xf32>
    %c0_75 = arith.constant 0 : index
    %c0_76 = arith.constant 0 : index
    %c0_77 = arith.constant 0 : index
    %178 = vector.load %arg17[%c0_75, %c0_76, %c0_77] : memref<2x1x128xf32, #tpu.memory_space<vmem>>, vector<1x1x128xf32>
    %179 = vector.shape_cast %178 : vector<1x1x128xf32> to vector<1x128xf32>
    %c0_78 = arith.constant 0 : index
    %c0_79 = arith.constant 0 : index
    %c0_80 = arith.constant 0 : index
    %180 = vector.load %arg18[%c0_78, %c0_79, %c0_80] : memref<2x1x128xf32, #tpu.memory_space<vmem>>, vector<1x1x128xf32>
    %181 = vector.shape_cast %180 : vector<1x1x128xf32> to vector<1x128xf32>
    %cst_81 = arith.constant dense<0.000000e+00> : vector<8xf32>
    %182 = vector.multi_reduction <add>, %177, %cst_81 [1] : vector<8x128xf32> to vector<8xf32>
    %183 = vector.shape_cast %182 : vector<8xf32> to vector<8x1xf32>
    %cst_82 = arith.constant 1.280000e+02 : f32
    %184 = vector.broadcast %cst_82 : f32 to vector<8x1xf32>
    %185 = arith.divf %183, %184 : vector<8x1xf32>
    %186 = vector.broadcast %185 : vector<8x1xf32> to vector<8x128xf32>
    %187 = arith.subf %177, %186 : vector<8x128xf32>
    %188 = arith.mulf %187, %187 : vector<8x128xf32>
    %cst_83 = arith.constant dense<0.000000e+00> : vector<8xf32>
    %189 = vector.multi_reduction <add>, %188, %cst_83 [1] : vector<8x128xf32> to vector<8xf32>
    %190 = vector.shape_cast %189 : vector<8xf32> to vector<8x1xf32>
    %cst_84 = arith.constant 1.280000e+02 : f32
    %191 = vector.broadcast %cst_84 : f32 to vector<8x1xf32>
    %192 = arith.divf %190, %191 : vector<8x1xf32>
    %193 = vector.broadcast %185 : vector<8x1xf32> to vector<8x128xf32>
    %194 = arith.subf %177, %193 : vector<8x128xf32>
    %cst_85 = arith.constant 9.99999996E-13 : f32
    %195 = vector.broadcast %cst_85 : f32 to vector<8x1xf32>
    %196 = arith.addf %192, %195 : vector<8x1xf32>
    %197 = math.rsqrt %196 : vector<8x1xf32>
    %198 = vector.broadcast %197 : vector<8x1xf32> to vector<8x128xf32>
    %199 = arith.mulf %194, %198 : vector<8x128xf32>
    %200 = vector.broadcast %179 : vector<1x128xf32> to vector<8x128xf32>
    %201 = arith.mulf %199, %200 : vector<8x128xf32>
    %202 = vector.broadcast %181 : vector<1x128xf32> to vector<8x128xf32>
    %203 = arith.addf %201, %202 : vector<8x128xf32>
    %c0_86 = arith.constant 0 : index
    %c0_87 = arith.constant 0 : index
    %c0_88 = arith.constant 0 : index
    %204 = vector.load %arg19[%c0_86, %c0_87, %c0_88] : memref<2x128x256xbf16, #tpu.memory_space<vmem>>, vector<1x128x256xbf16>
    %205 = vector.shape_cast %204 : vector<1x128x256xbf16> to vector<128x256xbf16>
    %206 = arith.truncf %203 : vector<8x128xf32> to vector<8x128xbf16>
    %cst_89 = arith.constant dense<0.000000e+00> : vector<8x256xf32>
    %207 = tpu.matmul %206, %205, %cst_89 {dimension_numbers = #tpu.dot_dimension_numbers<[1], [0], [0], [1], [0, 0, 1, 1], [], []>} : vector<8x128xbf16>, vector<128x256xbf16>, vector<8x256xf32> -> vector<8x256xf32>
    %c0_90 = arith.constant 0 : index
    %c0_91 = arith.constant 0 : index
    %c0_92 = arith.constant 0 : index
    %208 = vector.load %arg20[%c0_90, %c0_91, %c0_92] : memref<2x1x256xf32, #tpu.memory_space<vmem>>, vector<1x1x256xf32>
    %209 = vector.shape_cast %208 : vector<1x1x256xf32> to vector<1x256xf32>
    %210 = vector.broadcast %209 : vector<1x256xf32> to vector<8x256xf32>
    %211 = arith.addf %207, %210 : vector<8x256xf32>
    %cst_93 = arith.constant 5.000000e-01 : f32
    %212 = vector.broadcast %cst_93 : f32 to vector<8x256xf32>
    %213 = arith.mulf %212, %211 : vector<8x256xf32>
    %cst_94 = arith.constant 0.707106769 : f32
    %214 = vector.broadcast %cst_94 : f32 to vector<8x256xf32>
    %215 = arith.mulf %211, %214 : vector<8x256xf32>
    %216 = math.erf %215 : vector<8x256xf32>
    %cst_95 = arith.constant 1.000000e+00 : f32
    %217 = vector.broadcast %cst_95 : f32 to vector<8x256xf32>
    %218 = arith.addf %217, %216 : vector<8x256xf32>
    %219 = arith.mulf %213, %218 : vector<8x256xf32>
    %c0_96 = arith.constant 0 : index
    %c0_97 = arith.constant 0 : index
    %c0_98 = arith.constant 0 : index
    %220 = vector.load %arg21[%c0_96, %c0_97, %c0_98] : memref<2x256x128xbf16, #tpu.memory_space<vmem>>, vector<1x256x128xbf16>
    %221 = vector.shape_cast %220 : vector<1x256x128xbf16> to vector<256x128xbf16>
    %222 = arith.truncf %219 : vector<8x256xf32> to vector<8x256xbf16>
    %cst_99 = arith.constant dense<0.000000e+00> : vector<8x128xf32>
    %223 = tpu.matmul %222, %221, %cst_99 {dimension_numbers = #tpu.dot_dimension_numbers<[1], [0], [0], [1], [0, 0, 1, 1], [], []>} : vector<8x256xbf16>, vector<256x128xbf16>, vector<8x128xf32> -> vector<8x128xf32>
    %c0_100 = arith.constant 0 : index
    %c0_101 = arith.constant 0 : index
    %c0_102 = arith.constant 0 : index
    %224 = vector.load %arg22[%c0_100, %c0_101, %c0_102] : memref<2x1x128xf32, #tpu.memory_space<vmem>>, vector<1x1x128xf32>
    %225 = vector.shape_cast %224 : vector<1x1x128xf32> to vector<1x128xf32>
    %226 = vector.broadcast %225 : vector<1x128xf32> to vector<8x128xf32>
    %227 = arith.addf %223, %226 : vector<8x128xf32>
    %228 = arith.addf %227, %203 : vector<8x128xf32>
    %c0_103 = arith.constant 0 : index
    %c0_104 = arith.constant 0 : index
    %c0_105 = arith.constant 0 : index
    %229 = vector.load %arg23[%c0_103, %c0_104, %c0_105] : memref<2x1x128xf32, #tpu.memory_space<vmem>>, vector<1x1x128xf32>
    %230 = vector.shape_cast %229 : vector<1x1x128xf32> to vector<1x128xf32>
    %c0_106 = arith.constant 0 : index
    %c0_107 = arith.constant 0 : index
    %c0_108 = arith.constant 0 : index
    %231 = vector.load %arg24[%c0_106, %c0_107, %c0_108] : memref<2x1x128xf32, #tpu.memory_space<vmem>>, vector<1x1x128xf32>
    %232 = vector.shape_cast %231 : vector<1x1x128xf32> to vector<1x128xf32>
    %cst_109 = arith.constant dense<0.000000e+00> : vector<8xf32>
    %233 = vector.multi_reduction <add>, %228, %cst_109 [1] : vector<8x128xf32> to vector<8xf32>
    %234 = vector.shape_cast %233 : vector<8xf32> to vector<8x1xf32>
    %cst_110 = arith.constant 1.280000e+02 : f32
    %235 = vector.broadcast %cst_110 : f32 to vector<8x1xf32>
    %236 = arith.divf %234, %235 : vector<8x1xf32>
    %237 = vector.broadcast %236 : vector<8x1xf32> to vector<8x128xf32>
    %238 = arith.subf %228, %237 : vector<8x128xf32>
    %239 = arith.mulf %238, %238 : vector<8x128xf32>
    %cst_111 = arith.constant dense<0.000000e+00> : vector<8xf32>
    %240 = vector.multi_reduction <add>, %239, %cst_111 [1] : vector<8x128xf32> to vector<8xf32>
    %241 = vector.shape_cast %240 : vector<8xf32> to vector<8x1xf32>
    %cst_112 = arith.constant 1.280000e+02 : f32
    %242 = vector.broadcast %cst_112 : f32 to vector<8x1xf32>
    %243 = arith.divf %241, %242 : vector<8x1xf32>
    %244 = vector.broadcast %236 : vector<8x1xf32> to vector<8x128xf32>
    %245 = arith.subf %228, %244 : vector<8x128xf32>
    %cst_113 = arith.constant 9.99999996E-13 : f32
    %246 = vector.broadcast %cst_113 : f32 to vector<8x1xf32>
    %247 = arith.addf %243, %246 : vector<8x1xf32>
    %248 = math.rsqrt %247 : vector<8x1xf32>
    %249 = vector.broadcast %248 : vector<8x1xf32> to vector<8x128xf32>
    %250 = arith.mulf %245, %249 : vector<8x128xf32>
    %251 = vector.broadcast %230 : vector<1x128xf32> to vector<8x128xf32>
    %252 = arith.mulf %250, %251 : vector<8x128xf32>
    %253 = vector.broadcast %232 : vector<1x128xf32> to vector<8x128xf32>
    %254 = arith.addf %252, %253 : vector<8x128xf32>
    %c1 = arith.constant 1 : index
    %c0_114 = arith.constant 0 : index
    %c0_115 = arith.constant 0 : index
    %255 = vector.load %arg7[%c1, %c0_114, %c0_115] : memref<2x128x384xbf16, #tpu.memory_space<vmem>>, vector<1x128x384xbf16>
    %256 = vector.shape_cast %255 : vector<1x128x384xbf16> to vector<128x384xbf16>
    %c1_116 = arith.constant 1 : index
    %c0_117 = arith.constant 0 : index
    %c0_118 = arith.constant 0 : index
    %257 = vector.load %arg8[%c1_116, %c0_117, %c0_118] : memref<2x1x384xf32, #tpu.memory_space<vmem>>, vector<1x1x384xf32>
    %258 = vector.shape_cast %257 : vector<1x1x384xf32> to vector<1x384xf32>
    %c1_119 = arith.constant 1 : index
    %c0_120 = arith.constant 0 : index
    %c0_121 = arith.constant 0 : index
    %259 = vector.load %arg9[%c1_119, %c0_120, %c0_121] : memref<2x128x128xbf16, #tpu.memory_space<vmem>>, vector<1x128x128xbf16>
    %260 = vector.shape_cast %259 : vector<1x128x128xbf16> to vector<128x128xbf16>
    %c1_122 = arith.constant 1 : index
    %c0_123 = arith.constant 0 : index
    %c0_124 = arith.constant 0 : index
    %261 = vector.load %arg10[%c1_122, %c0_123, %c0_124] : memref<2x1x128xf32, #tpu.memory_space<vmem>>, vector<1x1x128xf32>
    %262 = vector.shape_cast %261 : vector<1x1x128xf32> to vector<1x128xf32>
    %263 = arith.truncf %254 : vector<8x128xf32> to vector<8x128xbf16>
    %cst_125 = arith.constant dense<0.000000e+00> : vector<8x384xf32>
    %264 = tpu.matmul %263, %256, %cst_125 {dimension_numbers = #tpu.dot_dimension_numbers<[1], [0], [0], [1], [0, 0, 1, 1], [], []>} : vector<8x128xbf16>, vector<128x384xbf16>, vector<8x384xf32> -> vector<8x384xf32>
    %265 = vector.broadcast %258 : vector<1x384xf32> to vector<8x384xf32>
    %266 = arith.addf %264, %265 : vector<8x384xf32>
    %267 = vector.extract_strided_slice %266 {offsets = [0, 0], sizes = [8, 32], strides = [1, 1]} : vector<8x384xf32> to vector<8x32xf32>
    %268 = arith.truncf %267 : vector<8x32xf32> to vector<8x32xbf16>
    %269 = vector.extract_strided_slice %266 {offsets = [0, 128], sizes = [8, 32], strides = [1, 1]} : vector<8x384xf32> to vector<8x32xf32>
    %270 = arith.truncf %269 : vector<8x32xf32> to vector<8x32xbf16>
    %271 = vector.extract_strided_slice %266 {offsets = [0, 256], sizes = [8, 32], strides = [1, 1]} : vector<8x384xf32> to vector<8x32xf32>
    %272 = arith.truncf %271 : vector<8x32xf32> to vector<8x32xbf16>
    %cst_126 = arith.constant dense<0.000000e+00> : vector<8x8xf32>
    %273 = tpu.matmul %268, %270, %cst_126 {dimension_numbers = #tpu.dot_dimension_numbers<[1], [1], [0], [0], [0, 0, 1, 0], [], []>} : vector<8x32xbf16>, vector<8x32xbf16>, vector<8x8xf32> -> vector<8x8xf32>
    %cst_127 = arith.constant 0.176776692 : f32
    %274 = vector.broadcast %cst_127 : f32 to vector<8x8xf32>
    %275 = arith.mulf %273, %274 : vector<8x8xf32>
    %276 = arith.addf %275, %27 : vector<8x8xf32>
    %cst_128 = arith.constant dense<0xFF800000> : vector<8xf32>
    %277 = vector.multi_reduction <maximumf>, %276, %cst_128 [1] : vector<8x8xf32> to vector<8xf32>
    %278 = vector.shape_cast %277 : vector<8xf32> to vector<8x1xf32>
    %279 = vector.broadcast %278 : vector<8x1xf32> to vector<8x8xf32>
    %280 = arith.subf %276, %279 : vector<8x8xf32>
    %281 = math.exp %280 : vector<8x8xf32>
    %cst_129 = arith.constant dense<0.000000e+00> : vector<8xf32>
    %282 = vector.multi_reduction <add>, %281, %cst_129 [1] : vector<8x8xf32> to vector<8xf32>
    %283 = vector.shape_cast %282 : vector<8xf32> to vector<8x1xf32>
    %284 = tpu.reciprocal %283 {approx = true} : vector<8x1xf32> -> vector<8x1xf32>
    %285 = vector.broadcast %284 : vector<8x1xf32> to vector<8x8xf32>
    %286 = arith.mulf %281, %285 : vector<8x8xf32>
    %287 = arith.truncf %286 : vector<8x8xf32> to vector<8x8xbf16>
    %cst_130 = arith.constant dense<0.000000e+00> : vector<8x32xf32>
    %288 = tpu.matmul %287, %272, %cst_130 {dimension_numbers = #tpu.dot_dimension_numbers<[1], [0], [0], [1], [0, 0, 1, 1], [], []>} : vector<8x8xbf16>, vector<8x32xbf16>, vector<8x32xf32> -> vector<8x32xf32>
    %289 = vector.extract_strided_slice %266 {offsets = [0, 32], sizes = [8, 32], strides = [1, 1]} : vector<8x384xf32> to vector<8x32xf32>
    %290 = arith.truncf %289 : vector<8x32xf32> to vector<8x32xbf16>
    %291 = vector.extract_strided_slice %266 {offsets = [0, 160], sizes = [8, 32], strides = [1, 1]} : vector<8x384xf32> to vector<8x32xf32>
    %292 = arith.truncf %291 : vector<8x32xf32> to vector<8x32xbf16>
    %293 = vector.extract_strided_slice %266 {offsets = [0, 288], sizes = [8, 32], strides = [1, 1]} : vector<8x384xf32> to vector<8x32xf32>
    %294 = arith.truncf %293 : vector<8x32xf32> to vector<8x32xbf16>
    %cst_131 = arith.constant dense<0.000000e+00> : vector<8x8xf32>
    %295 = tpu.matmul %290, %292, %cst_131 {dimension_numbers = #tpu.dot_dimension_numbers<[1], [1], [0], [0], [0, 0, 1, 0], [], []>} : vector<8x32xbf16>, vector<8x32xbf16>, vector<8x8xf32> -> vector<8x8xf32>
    %cst_132 = arith.constant 0.176776692 : f32
    %296 = vector.broadcast %cst_132 : f32 to vector<8x8xf32>
    %297 = arith.mulf %295, %296 : vector<8x8xf32>
    %298 = arith.addf %297, %27 : vector<8x8xf32>
    %cst_133 = arith.constant dense<0xFF800000> : vector<8xf32>
    %299 = vector.multi_reduction <maximumf>, %298, %cst_133 [1] : vector<8x8xf32> to vector<8xf32>
    %300 = vector.shape_cast %299 : vector<8xf32> to vector<8x1xf32>
    %301 = vector.broadcast %300 : vector<8x1xf32> to vector<8x8xf32>
    %302 = arith.subf %298, %301 : vector<8x8xf32>
    %303 = math.exp %302 : vector<8x8xf32>
    %cst_134 = arith.constant dense<0.000000e+00> : vector<8xf32>
    %304 = vector.multi_reduction <add>, %303, %cst_134 [1] : vector<8x8xf32> to vector<8xf32>
    %305 = vector.shape_cast %304 : vector<8xf32> to vector<8x1xf32>
    %306 = tpu.reciprocal %305 {approx = true} : vector<8x1xf32> -> vector<8x1xf32>
    %307 = vector.broadcast %306 : vector<8x1xf32> to vector<8x8xf32>
    %308 = arith.mulf %303, %307 : vector<8x8xf32>
    %309 = arith.truncf %308 : vector<8x8xf32> to vector<8x8xbf16>
    %cst_135 = arith.constant dense<0.000000e+00> : vector<8x32xf32>
    %310 = tpu.matmul %309, %294, %cst_135 {dimension_numbers = #tpu.dot_dimension_numbers<[1], [0], [0], [1], [0, 0, 1, 1], [], []>} : vector<8x8xbf16>, vector<8x32xbf16>, vector<8x32xf32> -> vector<8x32xf32>
    %311 = vector.extract_strided_slice %266 {offsets = [0, 64], sizes = [8, 32], strides = [1, 1]} : vector<8x384xf32> to vector<8x32xf32>
    %312 = arith.truncf %311 : vector<8x32xf32> to vector<8x32xbf16>
    %313 = vector.extract_strided_slice %266 {offsets = [0, 192], sizes = [8, 32], strides = [1, 1]} : vector<8x384xf32> to vector<8x32xf32>
    %314 = arith.truncf %313 : vector<8x32xf32> to vector<8x32xbf16>
    %315 = vector.extract_strided_slice %266 {offsets = [0, 320], sizes = [8, 32], strides = [1, 1]} : vector<8x384xf32> to vector<8x32xf32>
    %316 = arith.truncf %315 : vector<8x32xf32> to vector<8x32xbf16>
    %cst_136 = arith.constant dense<0.000000e+00> : vector<8x8xf32>
    %317 = tpu.matmul %312, %314, %cst_136 {dimension_numbers = #tpu.dot_dimension_numbers<[1], [1], [0], [0], [0, 0, 1, 0], [], []>} : vector<8x32xbf16>, vector<8x32xbf16>, vector<8x8xf32> -> vector<8x8xf32>
    %cst_137 = arith.constant 0.176776692 : f32
    %318 = vector.broadcast %cst_137 : f32 to vector<8x8xf32>
    %319 = arith.mulf %317, %318 : vector<8x8xf32>
    %320 = arith.addf %319, %27 : vector<8x8xf32>
    %cst_138 = arith.constant dense<0xFF800000> : vector<8xf32>
    %321 = vector.multi_reduction <maximumf>, %320, %cst_138 [1] : vector<8x8xf32> to vector<8xf32>
    %322 = vector.shape_cast %321 : vector<8xf32> to vector<8x1xf32>
    %323 = vector.broadcast %322 : vector<8x1xf32> to vector<8x8xf32>
    %324 = arith.subf %320, %323 : vector<8x8xf32>
    %325 = math.exp %324 : vector<8x8xf32>
    %cst_139 = arith.constant dense<0.000000e+00> : vector<8xf32>
    %326 = vector.multi_reduction <add>, %325, %cst_139 [1] : vector<8x8xf32> to vector<8xf32>
    %327 = vector.shape_cast %326 : vector<8xf32> to vector<8x1xf32>
    %328 = tpu.reciprocal %327 {approx = true} : vector<8x1xf32> -> vector<8x1xf32>
    %329 = vector.broadcast %328 : vector<8x1xf32> to vector<8x8xf32>
    %330 = arith.mulf %325, %329 : vector<8x8xf32>
    %331 = arith.truncf %330 : vector<8x8xf32> to vector<8x8xbf16>
    %cst_140 = arith.constant dense<0.000000e+00> : vector<8x32xf32>
    %332 = tpu.matmul %331, %316, %cst_140 {dimension_numbers = #tpu.dot_dimension_numbers<[1], [0], [0], [1], [0, 0, 1, 1], [], []>} : vector<8x8xbf16>, vector<8x32xbf16>, vector<8x32xf32> -> vector<8x32xf32>
    %333 = vector.extract_strided_slice %266 {offsets = [0, 96], sizes = [8, 32], strides = [1, 1]} : vector<8x384xf32> to vector<8x32xf32>
    %334 = arith.truncf %333 : vector<8x32xf32> to vector<8x32xbf16>
    %335 = vector.extract_strided_slice %266 {offsets = [0, 224], sizes = [8, 32], strides = [1, 1]} : vector<8x384xf32> to vector<8x32xf32>
    %336 = arith.truncf %335 : vector<8x32xf32> to vector<8x32xbf16>
    %337 = vector.extract_strided_slice %266 {offsets = [0, 352], sizes = [8, 32], strides = [1, 1]} : vector<8x384xf32> to vector<8x32xf32>
    %338 = arith.truncf %337 : vector<8x32xf32> to vector<8x32xbf16>
    %cst_141 = arith.constant dense<0.000000e+00> : vector<8x8xf32>
    %339 = tpu.matmul %334, %336, %cst_141 {dimension_numbers = #tpu.dot_dimension_numbers<[1], [1], [0], [0], [0, 0, 1, 0], [], []>} : vector<8x32xbf16>, vector<8x32xbf16>, vector<8x8xf32> -> vector<8x8xf32>
    %cst_142 = arith.constant 0.176776692 : f32
    %340 = vector.broadcast %cst_142 : f32 to vector<8x8xf32>
    %341 = arith.mulf %339, %340 : vector<8x8xf32>
    %342 = arith.addf %341, %27 : vector<8x8xf32>
    %cst_143 = arith.constant dense<0xFF800000> : vector<8xf32>
    %343 = vector.multi_reduction <maximumf>, %342, %cst_143 [1] : vector<8x8xf32> to vector<8xf32>
    %344 = vector.shape_cast %343 : vector<8xf32> to vector<8x1xf32>
    %345 = vector.broadcast %344 : vector<8x1xf32> to vector<8x8xf32>
    %346 = arith.subf %342, %345 : vector<8x8xf32>
    %347 = math.exp %346 : vector<8x8xf32>
    %cst_144 = arith.constant dense<0.000000e+00> : vector<8xf32>
    %348 = vector.multi_reduction <add>, %347, %cst_144 [1] : vector<8x8xf32> to vector<8xf32>
    %349 = vector.shape_cast %348 : vector<8xf32> to vector<8x1xf32>
    %350 = tpu.reciprocal %349 {approx = true} : vector<8x1xf32> -> vector<8x1xf32>
    %351 = vector.broadcast %350 : vector<8x1xf32> to vector<8x8xf32>
    %352 = arith.mulf %347, %351 : vector<8x8xf32>
    %353 = arith.truncf %352 : vector<8x8xf32> to vector<8x8xbf16>
    %cst_145 = arith.constant dense<0.000000e+00> : vector<8x32xf32>
    %354 = tpu.matmul %353, %338, %cst_145 {dimension_numbers = #tpu.dot_dimension_numbers<[1], [0], [0], [1], [0, 0, 1, 1], [], []>} : vector<8x8xbf16>, vector<8x32xbf16>, vector<8x32xf32> -> vector<8x32xf32>
    %355 = tpu.concatenate %288, %310, %332, %354 in 1 : vector<8x32xf32>, vector<8x32xf32>, vector<8x32xf32>, vector<8x32xf32> -> vector<8x128xf32>
    %356 = arith.truncf %355 : vector<8x128xf32> to vector<8x128xbf16>
    %cst_146 = arith.constant dense<0.000000e+00> : vector<8x128xf32>
    %357 = tpu.matmul %356, %260, %cst_146 {dimension_numbers = #tpu.dot_dimension_numbers<[1], [0], [0], [1], [0, 0, 1, 1], [], []>} : vector<8x128xbf16>, vector<128x128xbf16>, vector<8x128xf32> -> vector<8x128xf32>
    %358 = vector.broadcast %262 : vector<1x128xf32> to vector<8x128xf32>
    %359 = arith.addf %357, %358 : vector<8x128xf32>
    %360 = arith.addf %359, %254 : vector<8x128xf32>
    %c1_147 = arith.constant 1 : index
    %c0_148 = arith.constant 0 : index
    %c0_149 = arith.constant 0 : index
    %361 = vector.load %arg11[%c1_147, %c0_148, %c0_149] : memref<2x1x128xf32, #tpu.memory_space<vmem>>, vector<1x1x128xf32>
    %362 = vector.shape_cast %361 : vector<1x1x128xf32> to vector<1x128xf32>
    %c1_150 = arith.constant 1 : index
    %c0_151 = arith.constant 0 : index
    %c0_152 = arith.constant 0 : index
    %363 = vector.load %arg12[%c1_150, %c0_151, %c0_152] : memref<2x1x128xf32, #tpu.memory_space<vmem>>, vector<1x1x128xf32>
    %364 = vector.shape_cast %363 : vector<1x1x128xf32> to vector<1x128xf32>
    %cst_153 = arith.constant dense<0.000000e+00> : vector<8xf32>
    %365 = vector.multi_reduction <add>, %360, %cst_153 [1] : vector<8x128xf32> to vector<8xf32>
    %366 = vector.shape_cast %365 : vector<8xf32> to vector<8x1xf32>
    %cst_154 = arith.constant 1.280000e+02 : f32
    %367 = vector.broadcast %cst_154 : f32 to vector<8x1xf32>
    %368 = arith.divf %366, %367 : vector<8x1xf32>
    %369 = vector.broadcast %368 : vector<8x1xf32> to vector<8x128xf32>
    %370 = arith.subf %360, %369 : vector<8x128xf32>
    %371 = arith.mulf %370, %370 : vector<8x128xf32>
    %cst_155 = arith.constant dense<0.000000e+00> : vector<8xf32>
    %372 = vector.multi_reduction <add>, %371, %cst_155 [1] : vector<8x128xf32> to vector<8xf32>
    %373 = vector.shape_cast %372 : vector<8xf32> to vector<8x1xf32>
    %cst_156 = arith.constant 1.280000e+02 : f32
    %374 = vector.broadcast %cst_156 : f32 to vector<8x1xf32>
    %375 = arith.divf %373, %374 : vector<8x1xf32>
    %376 = vector.broadcast %368 : vector<8x1xf32> to vector<8x128xf32>
    %377 = arith.subf %360, %376 : vector<8x128xf32>
    %cst_157 = arith.constant 9.99999996E-13 : f32
    %378 = vector.broadcast %cst_157 : f32 to vector<8x1xf32>
    %379 = arith.addf %375, %378 : vector<8x1xf32>
    %380 = math.rsqrt %379 : vector<8x1xf32>
    %381 = vector.broadcast %380 : vector<8x1xf32> to vector<8x128xf32>
    %382 = arith.mulf %377, %381 : vector<8x128xf32>
    %383 = vector.broadcast %362 : vector<1x128xf32> to vector<8x128xf32>
    %384 = arith.mulf %382, %383 : vector<8x128xf32>
    %385 = vector.broadcast %364 : vector<1x128xf32> to vector<8x128xf32>
    %386 = arith.addf %384, %385 : vector<8x128xf32>
    %c1_158 = arith.constant 1 : index
    %c0_159 = arith.constant 0 : index
    %c0_160 = arith.constant 0 : index
    %387 = vector.load %arg13[%c1_158, %c0_159, %c0_160] : memref<2x128x128xbf16, #tpu.memory_space<vmem>>, vector<1x128x128xbf16>
    %388 = vector.shape_cast %387 : vector<1x128x128xbf16> to vector<128x128xbf16>
    %389 = arith.truncf %29 : vector<1x128xf32> to vector<1x128xbf16>
    %cst_161 = arith.constant dense<0.000000e+00> : vector<1x128xf32>
    %390 = tpu.matmul %389, %388, %cst_161 {dimension_numbers = #tpu.dot_dimension_numbers<[1], [0], [0], [1], [0, 0, 1, 1], [], []>} : vector<1x128xbf16>, vector<128x128xbf16>, vector<1x128xf32> -> vector<1x128xf32>
    %c1_162 = arith.constant 1 : index
    %c0_163 = arith.constant 0 : index
    %c0_164 = arith.constant 0 : index
    %391 = vector.load %arg14[%c1_162, %c0_163, %c0_164] : memref<2x1x128xf32, #tpu.memory_space<vmem>>, vector<1x1x128xf32>
    %392 = vector.shape_cast %391 : vector<1x1x128xf32> to vector<1x128xf32>
    %393 = arith.addf %390, %392 : vector<1x128xf32>
    %c1_165 = arith.constant 1 : index
    %c0_166 = arith.constant 0 : index
    %c0_167 = arith.constant 0 : index
    %394 = vector.load %arg15[%c1_165, %c0_166, %c0_167] : memref<2x128x128xbf16, #tpu.memory_space<vmem>>, vector<1x128x128xbf16>
    %395 = vector.shape_cast %394 : vector<1x128x128xbf16> to vector<128x128xbf16>
    %396 = arith.truncf %393 : vector<1x128xf32> to vector<1x128xbf16>
    %cst_168 = arith.constant dense<0.000000e+00> : vector<1x128xf32>
    %397 = tpu.matmul %396, %395, %cst_168 {dimension_numbers = #tpu.dot_dimension_numbers<[1], [0], [0], [1], [0, 0, 1, 1], [], []>} : vector<1x128xbf16>, vector<128x128xbf16>, vector<1x128xf32> -> vector<1x128xf32>
    %c1_169 = arith.constant 1 : index
    %c0_170 = arith.constant 0 : index
    %c0_171 = arith.constant 0 : index
    %398 = vector.load %arg16[%c1_169, %c0_170, %c0_171] : memref<2x1x128xf32, #tpu.memory_space<vmem>>, vector<1x1x128xf32>
    %399 = vector.shape_cast %398 : vector<1x1x128xf32> to vector<1x128xf32>
    %400 = arith.addf %397, %399 : vector<1x128xf32>
    %401 = vector.broadcast %400 : vector<1x128xf32> to vector<8x128xf32>
    %402 = arith.addf %386, %401 : vector<8x128xf32>
    %c1_172 = arith.constant 1 : index
    %c0_173 = arith.constant 0 : index
    %c0_174 = arith.constant 0 : index
    %403 = vector.load %arg17[%c1_172, %c0_173, %c0_174] : memref<2x1x128xf32, #tpu.memory_space<vmem>>, vector<1x1x128xf32>
    %404 = vector.shape_cast %403 : vector<1x1x128xf32> to vector<1x128xf32>
    %c1_175 = arith.constant 1 : index
    %c0_176 = arith.constant 0 : index
    %c0_177 = arith.constant 0 : index
    %405 = vector.load %arg18[%c1_175, %c0_176, %c0_177] : memref<2x1x128xf32, #tpu.memory_space<vmem>>, vector<1x1x128xf32>
    %406 = vector.shape_cast %405 : vector<1x1x128xf32> to vector<1x128xf32>
    %cst_178 = arith.constant dense<0.000000e+00> : vector<8xf32>
    %407 = vector.multi_reduction <add>, %402, %cst_178 [1] : vector<8x128xf32> to vector<8xf32>
    %408 = vector.shape_cast %407 : vector<8xf32> to vector<8x1xf32>
    %cst_179 = arith.constant 1.280000e+02 : f32
    %409 = vector.broadcast %cst_179 : f32 to vector<8x1xf32>
    %410 = arith.divf %408, %409 : vector<8x1xf32>
    %411 = vector.broadcast %410 : vector<8x1xf32> to vector<8x128xf32>
    %412 = arith.subf %402, %411 : vector<8x128xf32>
    %413 = arith.mulf %412, %412 : vector<8x128xf32>
    %cst_180 = arith.constant dense<0.000000e+00> : vector<8xf32>
    %414 = vector.multi_reduction <add>, %413, %cst_180 [1] : vector<8x128xf32> to vector<8xf32>
    %415 = vector.shape_cast %414 : vector<8xf32> to vector<8x1xf32>
    %cst_181 = arith.constant 1.280000e+02 : f32
    %416 = vector.broadcast %cst_181 : f32 to vector<8x1xf32>
    %417 = arith.divf %415, %416 : vector<8x1xf32>
    %418 = vector.broadcast %410 : vector<8x1xf32> to vector<8x128xf32>
    %419 = arith.subf %402, %418 : vector<8x128xf32>
    %cst_182 = arith.constant 9.99999996E-13 : f32
    %420 = vector.broadcast %cst_182 : f32 to vector<8x1xf32>
    %421 = arith.addf %417, %420 : vector<8x1xf32>
    %422 = math.rsqrt %421 : vector<8x1xf32>
    %423 = vector.broadcast %422 : vector<8x1xf32> to vector<8x128xf32>
    %424 = arith.mulf %419, %423 : vector<8x128xf32>
    %425 = vector.broadcast %404 : vector<1x128xf32> to vector<8x128xf32>
    %426 = arith.mulf %424, %425 : vector<8x128xf32>
    %427 = vector.broadcast %406 : vector<1x128xf32> to vector<8x128xf32>
    %428 = arith.addf %426, %427 : vector<8x128xf32>
    %c1_183 = arith.constant 1 : index
    %c0_184 = arith.constant 0 : index
    %c0_185 = arith.constant 0 : index
    %429 = vector.load %arg19[%c1_183, %c0_184, %c0_185] : memref<2x128x256xbf16, #tpu.memory_space<vmem>>, vector<1x128x256xbf16>
    %430 = vector.shape_cast %429 : vector<1x128x256xbf16> to vector<128x256xbf16>
    %431 = arith.truncf %428 : vector<8x128xf32> to vector<8x128xbf16>
    %cst_186 = arith.constant dense<0.000000e+00> : vector<8x256xf32>
    %432 = tpu.matmul %431, %430, %cst_186 {dimension_numbers = #tpu.dot_dimension_numbers<[1], [0], [0], [1], [0, 0, 1, 1], [], []>} : vector<8x128xbf16>, vector<128x256xbf16>, vector<8x256xf32> -> vector<8x256xf32>
    %c1_187 = arith.constant 1 : index
    %c0_188 = arith.constant 0 : index
    %c0_189 = arith.constant 0 : index
    %433 = vector.load %arg20[%c1_187, %c0_188, %c0_189] : memref<2x1x256xf32, #tpu.memory_space<vmem>>, vector<1x1x256xf32>
    %434 = vector.shape_cast %433 : vector<1x1x256xf32> to vector<1x256xf32>
    %435 = vector.broadcast %434 : vector<1x256xf32> to vector<8x256xf32>
    %436 = arith.addf %432, %435 : vector<8x256xf32>
    %cst_190 = arith.constant 5.000000e-01 : f32
    %437 = vector.broadcast %cst_190 : f32 to vector<8x256xf32>
    %438 = arith.mulf %437, %436 : vector<8x256xf32>
    %cst_191 = arith.constant 0.707106769 : f32
    %439 = vector.broadcast %cst_191 : f32 to vector<8x256xf32>
    %440 = arith.mulf %436, %439 : vector<8x256xf32>
    %441 = math.erf %440 : vector<8x256xf32>
    %cst_192 = arith.constant 1.000000e+00 : f32
    %442 = vector.broadcast %cst_192 : f32 to vector<8x256xf32>
    %443 = arith.addf %442, %441 : vector<8x256xf32>
    %444 = arith.mulf %438, %443 : vector<8x256xf32>
    %c1_193 = arith.constant 1 : index
    %c0_194 = arith.constant 0 : index
    %c0_195 = arith.constant 0 : index
    %445 = vector.load %arg21[%c1_193, %c0_194, %c0_195] : memref<2x256x128xbf16, #tpu.memory_space<vmem>>, vector<1x256x128xbf16>
    %446 = vector.shape_cast %445 : vector<1x256x128xbf16> to vector<256x128xbf16>
    %447 = arith.truncf %444 : vector<8x256xf32> to vector<8x256xbf16>
    %cst_196 = arith.constant dense<0.000000e+00> : vector<8x128xf32>
    %448 = tpu.matmul %447, %446, %cst_196 {dimension_numbers = #tpu.dot_dimension_numbers<[1], [0], [0], [1], [0, 0, 1, 1], [], []>} : vector<8x256xbf16>, vector<256x128xbf16>, vector<8x128xf32> -> vector<8x128xf32>
    %c1_197 = arith.constant 1 : index
    %c0_198 = arith.constant 0 : index
    %c0_199 = arith.constant 0 : index
    %449 = vector.load %arg22[%c1_197, %c0_198, %c0_199] : memref<2x1x128xf32, #tpu.memory_space<vmem>>, vector<1x1x128xf32>
    %450 = vector.shape_cast %449 : vector<1x1x128xf32> to vector<1x128xf32>
    %451 = vector.broadcast %450 : vector<1x128xf32> to vector<8x128xf32>
    %452 = arith.addf %448, %451 : vector<8x128xf32>
    %453 = arith.addf %452, %428 : vector<8x128xf32>
    %c1_200 = arith.constant 1 : index
    %c0_201 = arith.constant 0 : index
    %c0_202 = arith.constant 0 : index
    %454 = vector.load %arg23[%c1_200, %c0_201, %c0_202] : memref<2x1x128xf32, #tpu.memory_space<vmem>>, vector<1x1x128xf32>
    %455 = vector.shape_cast %454 : vector<1x1x128xf32> to vector<1x128xf32>
    %c1_203 = arith.constant 1 : index
    %c0_204 = arith.constant 0 : index
    %c0_205 = arith.constant 0 : index
    %456 = vector.load %arg24[%c1_203, %c0_204, %c0_205] : memref<2x1x128xf32, #tpu.memory_space<vmem>>, vector<1x1x128xf32>
    %457 = vector.shape_cast %456 : vector<1x1x128xf32> to vector<1x128xf32>
    %cst_206 = arith.constant dense<0.000000e+00> : vector<8xf32>
    %458 = vector.multi_reduction <add>, %453, %cst_206 [1] : vector<8x128xf32> to vector<8xf32>
    %459 = vector.shape_cast %458 : vector<8xf32> to vector<8x1xf32>
    %cst_207 = arith.constant 1.280000e+02 : f32
    %460 = vector.broadcast %cst_207 : f32 to vector<8x1xf32>
    %461 = arith.divf %459, %460 : vector<8x1xf32>
    %462 = vector.broadcast %461 : vector<8x1xf32> to vector<8x128xf32>
    %463 = arith.subf %453, %462 : vector<8x128xf32>
    %464 = arith.mulf %463, %463 : vector<8x128xf32>
    %cst_208 = arith.constant dense<0.000000e+00> : vector<8xf32>
    %465 = vector.multi_reduction <add>, %464, %cst_208 [1] : vector<8x128xf32> to vector<8xf32>
    %466 = vector.shape_cast %465 : vector<8xf32> to vector<8x1xf32>
    %cst_209 = arith.constant 1.280000e+02 : f32
    %467 = vector.broadcast %cst_209 : f32 to vector<8x1xf32>
    %468 = arith.divf %466, %467 : vector<8x1xf32>
    %469 = vector.broadcast %461 : vector<8x1xf32> to vector<8x128xf32>
    %470 = arith.subf %453, %469 : vector<8x128xf32>
    %cst_210 = arith.constant 9.99999996E-13 : f32
    %471 = vector.broadcast %cst_210 : f32 to vector<8x1xf32>
    %472 = arith.addf %468, %471 : vector<8x1xf32>
    %473 = math.rsqrt %472 : vector<8x1xf32>
    %474 = vector.broadcast %473 : vector<8x1xf32> to vector<8x128xf32>
    %475 = arith.mulf %470, %474 : vector<8x128xf32>
    %476 = vector.broadcast %455 : vector<1x128xf32> to vector<8x128xf32>
    %477 = arith.mulf %475, %476 : vector<8x128xf32>
    %478 = vector.broadcast %457 : vector<1x128xf32> to vector<8x128xf32>
    %479 = arith.addf %477, %478 : vector<8x128xf32>
    %c0_211 = arith.constant 0 : index
    %c0_212 = arith.constant 0 : index
    %480 = vector.load %arg25[%c0_211, %c0_212] : memref<128x256xbf16, #tpu.memory_space<vmem>>, vector<128x256xbf16>
    %481 = arith.truncf %479 : vector<8x128xf32> to vector<8x128xbf16>
    %cst_213 = arith.constant dense<0.000000e+00> : vector<8x256xf32>
    %482 = tpu.matmul %481, %480, %cst_213 {dimension_numbers = #tpu.dot_dimension_numbers<[1], [0], [0], [1], [0, 0, 1, 1], [], []>} : vector<8x128xbf16>, vector<128x256xbf16>, vector<8x256xf32> -> vector<8x256xf32>
    %c0_214 = arith.constant 0 : index
    %c0_215 = arith.constant 0 : index
    %483 = vector.load %arg26[%c0_214, %c0_215] : memref<1x256xf32, #tpu.memory_space<vmem>>, vector<1x256xf32>
    %484 = vector.broadcast %483 : vector<1x256xf32> to vector<8x256xf32>
    %485 = arith.addf %482, %484 : vector<8x256xf32>
    %c0_216 = arith.constant 0 : index
    %c0_217 = arith.constant 0 : index
    %c0_218 = arith.constant 0 : index
    %486 = vector.load %arg27[%c0_216, %c0_217, %c0_218] : memref<1x8x256xf32, #tpu.memory_space<vmem>>, vector<1x8x256xf32>
    %487 = vector.shape_cast %486 : vector<1x8x256xf32> to vector<8x256xf32>
    %488 = vector.shape_cast %485 : vector<8x256xf32> to vector<1x8x256xf32>
    tpu.vector_store %arg27[%c0_216, %c0_217, %c0_218], %488 {strides = array<i32>} : memref<1x8x256xf32, #tpu.memory_space<vmem>>, vector<1x8x256xf32>,
    %c0_219 = arith.constant 0 : index
    %c0_220 = arith.constant 0 : index
    %c0_221 = arith.constant 0 : index
    %489 = vector.load %arg4[%c0_219, %c0_220, %c0_221] : memref<1x8x1xi32, #tpu.memory_space<vmem>>, vector<1x8x1xi32>
    %490 = vector.shape_cast %489 : vector<1x8x1xi32> to vector<8x1xi32>
    %cst_222 = arith.constant dense<0xFF800000> : vector<8xf32>
    %491 = vector.multi_reduction <maximumf>, %485, %cst_222 [1] : vector<8x256xf32> to vector<8xf32>
    %492 = vector.shape_cast %491 : vector<8xf32> to vector<8x1xf32>
    %493 = vector.broadcast %492 : vector<8x1xf32> to vector<8x256xf32>
    %494 = arith.subf %485, %493 : vector<8x256xf32>
    %495 = math.exp %494 : vector<8x256xf32>
    %cst_223 = arith.constant dense<0.000000e+00> : vector<8xf32>
    %496 = vector.multi_reduction <add>, %495, %cst_223 [1] : vector<8x256xf32> to vector<8xf32>
    %497 = vector.shape_cast %496 : vector<8xf32> to vector<8x1xf32>
    %498 = math.log %497 : vector<8x1xf32>
    %499 = arith.addf %498, %492 : vector<8x1xf32>
    %500 = tpu.iota {dimensions = array<i32: 1>} : vector<8x256xi32>
    %501 = vector.broadcast %490 : vector<8x1xi32> to vector<8x256xi32>
    %502 = arith.cmpi eq, %500, %501 : vector<8x256xi32>
    %cst_224 = arith.constant 0.000000e+00 : f32
    %503 = vector.broadcast %cst_224 : f32 to vector<8x256xf32>
    %504 = arith.select %502, %485, %503 : vector<8x256xi1>, vector<8x256xf32>
    %cst_225 = arith.constant dense<0.000000e+00> : vector<8xf32>
    %505 = vector.multi_reduction <add>, %504, %cst_225 [1] : vector<8x256xf32> to vector<8xf32>
    %506 = vector.shape_cast %505 : vector<8xf32> to vector<8x1xf32>
    %c-100_i32 = arith.constant -100 : i32
    %507 = vector.broadcast %c-100_i32 : i32 to vector<8x1xi32>
    %508 = arith.cmpi ne, %490, %507 : vector<8x1xi32>
    %509 = arith.extui %508 : vector<8x1xi1> to vector<8x1xi32>
    %510 = arith.sitofp %509 : vector<8x1xi32> to vector<8x1xf32>
    %511 = arith.subf %499, %506 : vector<8x1xf32>
    %512 = arith.mulf %511, %510 : vector<8x1xf32>
    %c0_226 = arith.constant 0 : index
    %c0_227 = arith.constant 0 : index
    %c0_228 = arith.constant 0 : index
    %513 = vector.load %arg28[%c0_226, %c0_227, %c0_228] : memref<1x8x1xf32, #tpu.memory_space<vmem>>, vector<1x8x1xf32>
    %514 = vector.shape_cast %513 : vector<1x8x1xf32> to vector<8x1xf32>
    %515 = vector.shape_cast %512 : vector<8x1xf32> to vector<1x8x1xf32>
    tpu.vector_store %arg28[%c0_226, %c0_227, %c0_228], %515 {strides = array<i32>} : memref<1x8x1xf32, #tpu.memory_space<vmem>>, vector<1x8x1xf32>,
    return
  }
  func.func @transform_0(%arg0: i32) -> (i32, i32, i32) {
    %c0_i32 = arith.constant 0 : i32
    %c0_i32_0 = arith.constant 0 : i32
    %c0_i32_1 = arith.constant 0 : i32
    return %arg0, %c0_i32, %c0_i32_0 : i32, i32, i32
  }
  func.func @transform_1(%arg0: i32) -> (i32, i32, i32) {
    %c0_i32 = arith.constant 0 : i32
    %c0_i32_0 = arith.constant 0 : i32
    %c0_i32_1 = arith.constant 0 : i32
    return %arg0, %c0_i32, %c0_i32_0 : i32, i32, i32
  }
  func.func @transform_2(%arg0: i32) -> (i32, i32, i32) {
    %c0_i32 = arith.constant 0 : i32
    %c0_i32_0 = arith.constant 0 : i32
    %c0_i32_1 = arith.constant 0 : i32
    return %arg0, %c0_i32, %c0_i32_0 : i32, i32, i32
  }
  func.func @transform_3(%arg0: i32) -> (i32, i32, i32) {
    %c0_i32 = arith.constant 0 : i32
    %c0_i32_0 = arith.constant 0 : i32
    %c0_i32_1 = arith.constant 0 : i32
    return %arg0, %c0_i32, %c0_i32_0 : i32, i32, i32
  }
  func.func @transform_4(%arg0: i32) -> (i32, i32) {
    %c0_i32 = arith.constant 0 : i32
    %c0_i32_0 = arith.constant 0 : i32
    %c0_i32_1 = arith.constant 0 : i32
    return %c0_i32, %c0_i32_0 : i32, i32
  }
  func.func @transform_5(%arg0: i32) -> (i32, i32) {
    %c0_i32 = arith.constant 0 : i32
    %c0_i32_0 = arith.constant 0 : i32
    %c0_i32_1 = arith.constant 0 : i32
    return %c0_i32, %c0_i32_0 : i32, i32
  }
  func.func @transform_6(%arg0: i32) -> (i32, i32, i32) {
    %c0_i32 = arith.constant 0 : i32
    %c0_i32_0 = arith.constant 0 : i32
    %c0_i32_1 = arith.constant 0 : i32
    %c0_i32_2 = arith.constant 0 : i32
    return %c0_i32, %c0_i32_0, %c0_i32_1 : i32, i32, i32
  }
  func.func @transform_7(%arg0: i32) -> (i32, i32, i32) {
    %c0_i32 = arith.constant 0 : i32
    %c0_i32_0 = arith.constant 0 : i32
    %c0_i32_1 = arith.constant 0 : i32
    %c0_i32_2 = arith.constant 0 : i32
    return %c0_i32, %c0_i32_0, %c0_i32_1 : i32, i32, i32
  }
  func.func @transform_8(%arg0: i32) -> (i32, i32, i32) {
    %c0_i32 = arith.constant 0 : i32
    %c0_i32_0 = arith.constant 0 : i32
    %c0_i32_1 = arith.constant 0 : i32
    %c0_i32_2 = arith.constant 0 : i32
    return %c0_i32, %c0_i32_0, %c0_i32_1 : i32, i32, i32
  }
  func.func @transform_9(%arg0: i32) -> (i32, i32, i32) {
    %c0_i32 = arith.constant 0 : i32
    %c0_i32_0 = arith.constant 0 : i32
    %c0_i32_1 = arith.constant 0 : i32
    %c0_i32_2 = arith.constant 0 : i32
    return %c0_i32, %c0_i32_0, %c0_i32_1 : i32, i32, i32
  }
  func.func @transform_10(%arg0: i32) -> (i32, i32, i32) {
    %c0_i32 = arith.constant 0 : i32
    %c0_i32_0 = arith.constant 0 : i32
    %c0_i32_1 = arith.constant 0 : i32
    %c0_i32_2 = arith.constant 0 : i32
    return %c0_i32, %c0_i32_0, %c0_i32_1 : i32, i32, i32
  }
  func.func @transform_11(%arg0: i32) -> (i32, i32, i32) {
    %c0_i32 = arith.constant 0 : i32
    %c0_i32_0 = arith.constant 0 : i32
    %c0_i32_1 = arith.constant 0 : i32
    %c0_i32_2 = arith.constant 0 : i32
    return %c0_i32, %c0_i32_0, %c0_i32_1 : i32, i32, i32
  }
  func.func @transform_12(%arg0: i32) -> (i32, i32, i32) {
    %c0_i32 = arith.constant 0 : i32
    %c0_i32_0 = arith.constant 0 : i32
    %c0_i32_1 = arith.constant 0 : i32
    %c0_i32_2 = arith.constant 0 : i32
    return %c0_i32, %c0_i32_0, %c0_i32_1 : i32, i32, i32
  }
  func.func @transform_13(%arg0: i32) -> (i32, i32, i32) {
    %c0_i32 = arith.constant 0 : i32
    %c0_i32_0 = arith.constant 0 : i32
    %c0_i32_1 = arith.constant 0 : i32
    %c0_i32_2 = arith.constant 0 : i32
    return %c0_i32, %c0_i32_0, %c0_i32_1 : i32, i32, i32
  }
  func.func @transform_14(%arg0: i32) -> (i32, i32, i32) {
    %c0_i32 = arith.constant 0 : i32
    %c0_i32_0 = arith.constant 0 : i32
    %c0_i32_1 = arith.constant 0 : i32
    %c0_i32_2 = arith.constant 0 : i32
    return %c0_i32, %c0_i32_0, %c0_i32_1 : i32, i32, i32
  }
  func.func @transform_15(%arg0: i32) -> (i32, i32, i32) {
    %c0_i32 = arith.constant 0 : i32
    %c0_i32_0 = arith.constant 0 : i32
    %c0_i32_1 = arith.constant 0 : i32
    %c0_i32_2 = arith.constant 0 : i32
    return %c0_i32, %c0_i32_0, %c0_i32_1 : i32, i32, i32
  }
  func.func @transform_16(%arg0: i32) -> (i32, i32, i32) {
    %c0_i32 = arith.constant 0 : i32
    %c0_i32_0 = arith.constant 0 : i32
    %c0_i32_1 = arith.constant 0 : i32
    %c0_i32_2 = arith.constant 0 : i32
    return %c0_i32, %c0_i32_0, %c0_i32_1 : i32, i32, i32
  }
  func.func @transform_17(%arg0: i32) -> (i32, i32, i32) {
    %c0_i32 = arith.constant 0 : i32
    %c0_i32_0 = arith.constant 0 : i32
    %c0_i32_1 = arith.constant 0 : i32
    %c0_i32_2 = arith.constant 0 : i32
    return %c0_i32, %c0_i32_0, %c0_i32_1 : i32, i32, i32
  }
  func.func @transform_18(%arg0: i32) -> (i32, i32, i32) {
    %c0_i32 = arith.constant 0 : i32
    %c0_i32_0 = arith.constant 0 : i32
    %c0_i32_1 = arith.constant 0 : i32
    %c0_i32_2 = arith.constant 0 : i32
    return %c0_i32, %c0_i32_0, %c0_i32_1 : i32, i32, i32
  }
  func.func @transform_19(%arg0: i32) -> (i32, i32, i32) {
    %c0_i32 = arith.constant 0 : i32
    %c0_i32_0 = arith.constant 0 : i32
    %c0_i32_1 = arith.constant 0 : i32
    %c0_i32_2 = arith.constant 0 : i32
    return %c0_i32, %c0_i32_0, %c0_i32_1 : i32, i32, i32
  }
  func.func @transform_20(%arg0: i32) -> (i32, i32, i32) {
    %c0_i32 = arith.constant 0 : i32
    %c0_i32_0 = arith.constant 0 : i32
    %c0_i32_1 = arith.constant 0 : i32
    %c0_i32_2 = arith.constant 0 : i32
    return %c0_i32, %c0_i32_0, %c0_i32_1 : i32, i32, i32
  }
  func.func @transform_21(%arg0: i32) -> (i32, i32, i32) {
    %c0_i32 = arith.constant 0 : i32
    %c0_i32_0 = arith.constant 0 : i32
    %c0_i32_1 = arith.constant 0 : i32
    %c0_i32_2 = arith.constant 0 : i32
    return %c0_i32, %c0_i32_0, %c0_i32_1 : i32, i32, i32
  }
  func.func @transform_22(%arg0: i32) -> (i32, i32, i32) {
    %c0_i32 = arith.constant 0 : i32
    %c0_i32_0 = arith.constant 0 : i32
    %c0_i32_1 = arith.constant 0 : i32
    %c0_i32_2 = arith.constant 0 : i32
    return %c0_i32, %c0_i32_0, %c0_i32_1 : i32, i32, i32
  }
  func.func @transform_23(%arg0: i32) -> (i32, i32, i32) {
    %c0_i32 = arith.constant 0 : i32
    %c0_i32_0 = arith.constant 0 : i32
    %c0_i32_1 = arith.constant 0 : i32
    %c0_i32_2 = arith.constant 0 : i32
    return %c0_i32, %c0_i32_0, %c0_i32_1 : i32, i32, i32
  }
  func.func @transform_24(%arg0: i32) -> (i32, i32) {
    %c0_i32 = arith.constant 0 : i32
    %c0_i32_0 = arith.constant 0 : i32
    %c0_i32_1 = arith.constant 0 : i32
    return %c0_i32, %c0_i32_0 : i32, i32
  }
  func.func @transform_25(%arg0: i32) -> (i32, i32) {
    %c0_i32 = arith.constant 0 : i32
    %c0_i32_0 = arith.constant 0 : i32
    %c0_i32_1 = arith.constant 0 : i32
    return %c0_i32, %c0_i32_0 : i32, i32
  }
  func.func @transform_26(%arg0: i32) -> (i32, i32, i32) {
    %c0_i32 = arith.constant 0 : i32
    %c0_i32_0 = arith.constant 0 : i32
    %c0_i32_1 = arith.constant 0 : i32
    return %arg0, %c0_i32, %c0_i32_0 : i32, i32, i32
  }
  func.func @transform_27(%arg0: i32) -> (i32, i32, i32) {
    %c0_i32 = arith.constant 0 : i32
    %c0_i32_0 = arith.constant 0 : i32
    %c0_i32_1 = arith.constant 0 : i32
    return %arg0, %c0_i32, %c0_i32_0 : i32, i32, i32
  }
}

</mosaic_0001>

<bundles_post_ra>
// kernel: autoencoder_forward.2
= control target key start
LH: loop header
LB: loop body
LE: loop exit
PB: predicated region body
PF: predicated region fallthrough
CT: control target
= control target key end

     0   :  { %s5168_s0 = inlined_call_operand.vmem [shape: f32[2,8,128], index: 0, kind: input, shape index: {}]   ;;  %s5169_s1 = inlined_call_operand.vmem [shape: f32[2,8,8], index: 1, kind: input, shape index: {}]   ;;  %s5170_s2 = inlined_call_operand.vmem [shape: f32[1,128], index: 2, kind: input, shape index: {}]   ;;  %s5171_s3 = inlined_call_operand.vmem [shape: f32[1,128], index: 3, kind: input, shape index: {}]   ;;  %s5172_s4 = inlined_call_operand.vmem [shape: bf16[2,128,384], index: 4, kind: input, shape index: {}]   ;;  %s5173_s5 = inlined_call_operand.vmem [shape: f32[2,1,384], index: 5, kind: input, shape index: {}]   ;;  %s5174_s6 = inlined_call_operand.hbm [shape: bf16[2,128,128], index: 6, kind: input, shape index: {}]   ;;  %s5175_s7 = inlined_call_operand.vmem [shape: f32[2,1,128], index: 7, kind: input, shape index: {}]   ;;  %s5176_s8 = inlined_call_operand.vmem [shape: f32[2,1,128], index: 8, kind: input, shape index: {}]   ;;  %s5177_s9 = inlined_call_operand.vmem [shape: f32[2,1,128], index: 9, kind: input, shape index: {}]   ;;  %s5178_s10 = inlined_call_operand.hbm [shape: bf16[2,128,256], index: 10, kind: input, shape index: {}]   ;;  %s5179_s11 = inlined_call_operand.vmem [shape: f32[2,1,256], index: 11, kind: input, shape index: {}]   ;;  %s5180_s12 = inlined_call_operand.hbm [shape: bf16[2,256,128], index: 12, kind: input, shape index: {}]   ;;  %s5181_s13 = inlined_call_operand.vmem [shape: f32[2,1,128], index: 13, kind: input, shape index: {}]   ;;  %s5182_s14 = inlined_call_operand.hbm [shape: f32[2,1,128], index: 14, kind: input, shape index: {}]   ;;  %s5183_s15 = inlined_call_operand.hbm [shape: f32[2,1,128], index: 15, kind: input, shape index: {}]   ;;  %s5184_s16 = inlined_call_operand.hbm [shape: bf16[128,128], index: 16, kind: input, shape index: {}]   ;;  %s5185_s17 = inlined_call_operand.hbm [shape: f32[1,128], index: 17, kind: input, shape index: {}]   ;;  %s5186_s18 = inlined_call_operand.vmem [shape: f32[2,1,128], index: 18, kind: output, shape index: {}]  }
   0x1   :  { %5189 = sst [smem:[#allocation17_spill]] %s5168_s0 }
   0x2   :  { %5190 = sst [smem:[#allocation18_spill]] %s5169_s1 }
   0x3   :  { %5191 = sst [smem:[#allocation19_spill]] %s5170_s2 }
   0x4   :  { %5192 = sst [smem:[#allocation20_spill]] %s5178_s10 }
   0x5   :  { %23 = vsyncpa [#allocation3], 0 }
   0x6   :  { %24 = vsyncpa [#allocation5], 0 }
   0x7   :  { %25 = vsyncpa [#allocation8], 0 }
   0x8   :  { %26 = vsyncpa [#allocation11], 0  ;;  %s4596_s27 = smov 0  }
   0x9 LB: > { %s4482_s28 = smov [#allocation4]   ;;  %s4602_s30 = sadd.s32 4294967295, %s4480_s27   ;;  %s4480_s27 = sphi %s4596_s27, %s32_s27  }
   0xa   : > { %s497_s29 = sshll.u32 %s4482_s28, 4  ;;  %p3425_p0 = scmp.ge.s32.totalorder %s4480_s27, 1  ;;  %s498_s29 = int_to_ptr.vmem [resolvable:$true] %s497_s29 }
   0xb   : > { %p451_p1 = scmp.lt.s32.totalorder %s4480_s27, 3  ;;  %p4017_p2 = scmp.eq.s32.totalorder %s4602_s30, 0 }
   0xc   : > { %s4483_s19 = smov [#allocation7]   ;;  %s4287_s22 = scalar_lea.vmem %s498_s29, 4096 }
   0xd   : > { %p4607_p3 = pnand %p3425_p0, %p451_p1  ;;  %s529_s1 = sshll.u32 %s4483_s19, 4  ;;  %s4613_s1 = int_to_ptr.vmem [resolvable:$true] %s529_s1 }
   0xe   : > { %p4288_p7 = scmp.ne.s32.totalorder %s498_s29, %s4287_s22  ;;  %p4295_p10 = scmp.lt.s32.totalorder %s498_s29, %s498_s29 }
   0xf   : > { %p3995_p4 = pneg %p4607_p3  ;;  %p4296_p11 = scmp.lt.s32.totalorder %s4287_s22, %s4287_s22 }
  0x11   : > { %p4617_p5 = pnand %p4017_p2, %p3995_p4  ;;  %p4297_p12 = por %p4296_p11, %p4295_p10 }
  0x13   : > { %p4623_p6 = pneg %p4617_p5 }
  0x15   : > { %p4290_p8 = pnand %p4288_p7, %p4623_p6 }
  0x17   : > { %p4291_p9 = pneg %p4290_p8 }
  0x19   : > { %p4298_p13 = pnand %p4297_p12, %p4291_p9 }
  0x1b   : > { %4301 = shalt.err (!%p4298_p13)
}
  0x1c   : > { %s4484_s2 = smov 128   ;;  %s4485_s23 = smov 8  }
  0x1d   : > { %s5196_s10 = sld [smem:[#allocation20_spill]]  ;;  %s4313_s26 = scalar_lea.vmem %s4613_s1, 32 }
  0x1e   : > { %p4314_p0 = scmp.ne.s32.totalorder %s4613_s1, %s4313_s26  ;;  %p4321_p7 = scmp.lt.s32.totalorder %s4613_s1, %s4613_s1 }
  0x1f   : > { %p4322_p8 = scmp.lt.s32.totalorder %s4313_s26, %s4313_s26 }
  0x20   : > { %p4316_p1 = pnand %p4314_p0, %p4623_p6 }
  0x21   : > { %p4323_p9 = por %p4322_p8, %p4321_p7 }
  0x22   : > { %p4317_p4 = pneg %p4316_p1 }
  0x23   : > { %4001 = dma.hbm_to_vmem [thread:$0]  (!%p4617_p5), %s5196_s10, 4096, %s498_s29, [#allocation5], %s4484_s2, %s4484_s2, %s4485_s23  }
  0x24   : > { %p4324_p10 = pnand %p4323_p9, %p4317_p4 }
  0x26   : > { %4327 = shalt.err (!%p4324_p10)
}
  0x27   : > { %s5187_s28 = smov 16   ;;  %s5188_s19 = smov 1  }
  0x28   : > { %4007 = dma.hbm_to_vmem [thread:$0]  (!%p4617_p5), %s5182_s14, 32, %s4613_s1, [#allocation8], %s5187_s28, %s5187_s28, %s5188_s19  }
  0x29   : > { %s4488_s2 = smov [#allocation10]   ;;  %s4489_s24 = smov [#allocation2]  }
  0x2a   : > { %s555_s23 = sshll.u32 %s4488_s2, 4  ;;  %s475_s25 = sshll.u32 %s4489_s24, 4  ;;  %s556_s23 = int_to_ptr.vmem [resolvable:$true] %s555_s23  ;;  %s476_s25 = int_to_ptr.vmem [resolvable:$true] %s475_s25 }
  0x2b   : > { %s4339_s26 = scalar_lea.vmem %s556_s23, 1024  ;;  %p4347_p0 = scmp.lt.s32.totalorder %s556_s23, %s556_s23 }
  0x2c   : > { %p4340_p11 = scmp.ne.s32.totalorder %s556_s23, %s4339_s26  ;;  %p4348_p1 = scmp.lt.s32.totalorder %s4339_s26, %s4339_s26 }
  0x2e   : > { %p4342_p12 = pnand %p4340_p11, %p4623_p6  ;;  %p4349_p4 = por %p4348_p1, %p4347_p0 }
  0x30   : > { %p4343_p13 = pneg %p4342_p12 }
  0x32   : > { %p4350_p7 = pnand %p4349_p4, %p4343_p13 }
  0x34   : > { %4353 = shalt.err (!%p4350_p7)
}
  0x35   : > { %s4490_s10 = smov 64   ;;  %s4491_s29 = smov 4  }
  0x36   : > { %4013 = dma.hbm_to_vmem [thread:$0]  (!%p4617_p5), %s5184_s16, 1024, %s556_s23, [#allocation11], %s4490_s10, %s4490_s10, %s4491_s29  }
  0x37   : > { %s4365_s2 = scalar_lea.vmem %s476_s25, 2048  ;;  %p4373_p11 = scmp.lt.s32.totalorder %s476_s25, %s476_s25 }
  0x38   : > { %p4366_p8 = scmp.ne.s32.totalorder %s476_s25, %s4365_s2  ;;  %p4374_p12 = scmp.lt.s32.totalorder %s4365_s2, %s4365_s2 }
  0x3a   : > { %p4368_p9 = pnand %p4366_p8, %p4623_p6  ;;  %p4375_p13 = por %p4374_p12, %p4373_p11 }
  0x3c   : > { %p4369_p10 = pneg %p4368_p9 }
  0x3e   : > { %p4376_p0 = pnand %p4375_p13, %p4369_p10 }
  0x40   : > { %4379 = shalt.err (!%p4376_p0)
}
  0x41   : > { %3998 = dma.hbm_to_vmem [thread:$0]  (!%p4617_p5), %s5174_s6, 2048, %s476_s25, [#allocation3], %s4490_s10, %s4490_s10, %s4491_s29  }
  0x42   : > { %s4492_s23 = smov [#allocation6]   ;;  %s4493_s22 = smov [#allocation9]  }
  0x43   : > { %s513_s1 = sshll.u32 %s4492_s23, 4  ;;  %s542_s28 = sshll.u32 %s4493_s22, 4  ;;  %s514_s1 = int_to_ptr.vmem [resolvable:$true] %s513_s1  ;;  %s543_s28 = int_to_ptr.vmem [resolvable:$true] %s542_s28 }
  0x44   : > { %s4391_s19 = scalar_lea.vmem %s514_s1, 4096  ;;  %p4399_p8 = scmp.lt.s32.totalorder %s514_s1, %s514_s1 }
  0x45   : > { %p4392_p1 = scmp.ne.s32.totalorder %s514_s1, %s4391_s19  ;;  %p4400_p9 = scmp.lt.s32.totalorder %s4391_s19, %s4391_s19 }
  0x47   : > { %p4394_p4 = pnand %p4392_p1, %p4623_p6  ;;  %p4401_p10 = por %p4400_p9, %p4399_p8 }
  0x49   : > { %p4395_p7 = pneg %p4394_p4 }
  0x4b   : > { %p4402_p11 = pnand %p4401_p10, %p4395_p7 }
  0x4d   : > { %4405 = shalt.err (!%p4402_p11)
}
  0x4e   : > { %4004 = dma.hbm_to_vmem [thread:$0]  (!%p4617_p5), %s5180_s12, 4096, %s514_s1, [#allocation5], %s4490_s10, %s4490_s10, %s4491_s29  }
  0x4f   : > { %s4417_s24 = scalar_lea.vmem %s543_s28, 32  ;;  %p4425_p1 = scmp.lt.s32.totalorder %s543_s28, %s543_s28 }
  0x50   : > { %p4418_p12 = scmp.ne.s32.totalorder %s543_s28, %s4417_s24  ;;  %p4426_p4 = scmp.lt.s32.totalorder %s4417_s24, %s4417_s24 }
  0x52   : > { %p4420_p13 = pnand %p4418_p12, %p4623_p6  ;;  %p4427_p7 = por %p4426_p4, %p4425_p1 }
  0x54   : > { %p4421_p0 = pneg %p4420_p13 }
  0x56   : > { %p4428_p8 = pnand %p4427_p7, %p4421_p0 }
  0x58   : > { %4431 = shalt.err (!%p4428_p8)
}
  0x59   : > { %s5197_s19 = smov 1   ;;  %s5198_s26 = smov 16  }
  0x5a   : > { %4010 = dma.hbm_to_vmem [thread:$0]  (!%p4617_p5), %s5183_s15, 32, %s543_s28, [#allocation8], %s5198_s26, %s5198_s26, %s5197_s19  }
  0x5b   : > { %s4494_s10 = smov [#allocation12]  }
  0x5c   : > { %s569_s29 = sshll.u32 %s4494_s10, 4  ;;  %s570_s29 = int_to_ptr.vmem [resolvable:$true] %s569_s29 }
  0x5d   : > { %s4443_s1 = scalar_lea.vmem %s570_s29, 16  ;;  %s4450_s25 = scalar_lea.vmem %s570_s29, 32 }
  0x5e   : > { %p4444_p9 = scmp.ne.s32.totalorder %s570_s29, %s4443_s1  ;;  %p4451_p12 = scmp.lt.s32.totalorder %s570_s29, %s570_s29 }
  0x5f   : > { %p4452_p13 = scmp.lt.s32.totalorder %s4450_s25, %s4443_s1 }
  0x60   : > { %p4446_p10 = pnand %p4444_p9, %p4623_p6 }
  0x61   : > { %p4453_p0 = por %p4452_p13, %p4451_p12 }
  0x62   : > { %p4447_p11 = pneg %p4446_p10 }
  0x64   : > { %p4454_p1 = pnand %p4453_p0, %p4447_p11 }
  0x66   : > { %4457 = shalt.err (!%p4454_p1)
}
  0x67   : > { %4016 = dma.hbm_to_vmem [thread:$0]  (!%p4617_p5), %s5185_s17, 16, %s570_s29, [#allocation11]  }
  0x68   : > { %596 = sbr.rel (%p4607_p3) target bundleno = 5862 (0x16e6), region = 92 }
  0x6d   : > { %4463 = dma.done.wait (%p4017_p2), [#allocation3], 2048  }
  0x6e   : > { %4465 = vsyncadd (%p4017_p2), [#allocation3], 4294965248 }
  0x6f   : > { %4467 = dma.done.wait (%p4017_p2), [#allocation5], 8192  }
  0x70   : > { %4469 = vsyncadd (%p4017_p2), [#allocation5], 4294959104 }
  0x71   : > { %4471 = dma.done.wait (%p4017_p2), [#allocation8], 64  }
  0x72   : > { %4473 = vsyncadd (%p4017_p2), [#allocation8], 4294967232 }
  0x73   : > { %4475 = dma.done.wait (%p4017_p2), [#allocation11], 1040  }
  0x74   : > { %4477 = vsyncadd (%p4017_p2), [#allocation11], 4294966256  ;;  %p675_p3 = scmp.lt.s32.totalorder %s4602_s30, 1  ;;  %s5199_s28 = sld [smem:[#allocation17_spill]]  ;;  %v4058_v1 = vld [vmem:[%s5172_s4 + $0xac] ss:$12 sps:$4 sm:$0xff]   ;;  %v769_v41 = vlaneseq }
  0x75   : > { %v4060_v2 = vld [vmem:[%s5172_s4 + $0xa8] ss:$12 sps:$4 sm:$0xff]   ;;  %v4495_v3 = vmov 0.0   ;;  %v4061_v4 = vld [vmem:[%s5172_s4 + $0xb0] ss:$12 sps:$4 sm:$0xff]   ;;  %912 = vmatprep.subr.bf16.mxu0 %v4058_v1  ;;  %v4496_v22 = vmov 0  }
  0x76   : > { %s5203_s30 = smov (!%p675_p3, %s4602_s30), 1  ;;  %3771 = vmatprep.subr.bf16.mxu1 %v4495_v3  ;;  %v4062_v5 = vld [vmem:[%s5172_s4 + $0x94] ss:$12 sps:$4 sm:$0xff]   ;;  %v4064_v6 = vld [vmem:[%s5172_s4 + $0x90] ss:$12 sps:$4 sm:$0xff]   ;;  %913 = vmatpush1.bf16.msra.mxu0 %v4060_v2  ;;  %vm4497_vm0 = vmmov 0  }
  0x77   : > { %s3442_s0 = sshll.u32 %s5203_s30, 3  ;;  %v4065_v7 = vld [vmem:[%s5172_s4 + $0x98] ss:$12 sps:$4 sm:$0xff]   ;;  %3772 = vmatpush3.bf16.msra.mxu1 %v4061_v4  ;;  %914 = vmatprep.subr.bf16.mxu0 %v4062_v5  ;;  %v4066_v12 = vld [vmem:[%s5172_s4 + $0x7c] ss:$12 sps:$4 sm:$0xff]   ;;  %v4823_v42 = vshrl.u32 %v769_v41, 7 }
  0x78   : > { %3773 = vmatprep.subr.bf16.mxu1 %v4495_v3  ;;  %v4068_v13 = vld [vmem:[%s5172_s4 + $0x78] ss:$12 sps:$4 sm:$0xff]   ;;  %v4069_v14 = vld [vmem:[%s5172_s4 + $0x80] ss:$12 sps:$4 sm:$0xff]   ;;  %v4073_v17 = vld [vmem:[%s5172_s4 + $0x68] ss:$12 sps:$4 sm:$0xff]   ;;  %944 = vmatprep.mubr.bf16.mxu0 %v4496_v22 }
  0x79   : > { %v4070_v15 = vld [vmem:[%s5172_s4 + $0x64] ss:$12 sps:$4 sm:$0xff]   ;;  %v4072_v16 = vld [vmem:[%s5172_s4 + $0x60] ss:$12 sps:$4 sm:$0xff]   ;;  %v4076_v19 = vld [vmem:[%s5172_s4 + $0x48] ss:$12 sps:$4 sm:$0xff]   ;;  %3787 = vmatprep.mubr.msk.bf16.mxu1 %vm4497_vm0, %v4495_v3 }
  0x7a   : > { %s678_s19 = scalar_lea.vmem %s5199_s28, %s3442_s0  ;;  %915 = vmatpush1.bf16.msra.mxu0 %v4064_v6  ;;  %v4074_v18 = vld [vmem:[%s5172_s4 + $0x4c] ss:$12 sps:$4 sm:$0xff]   ;;  %v4077_v20 = vld [vmem:[%s5172_s4 + $0x50] ss:$12 sps:$4 sm:$0xff]   ;;  %v4078_v21 = vld [vmem:[%s5172_s4 + $0x34] ss:$12 sps:$4 sm:$0xff]  }
  0x7b   : > { %v687_v0 = vld [vmem:[%s678_s19] sm:$0xff]  ;;  %3774 = vmatpush3.bf16.msra.mxu1 %v4065_v7  ;;  %916 = vmatprep.subr.bf16.mxu0 %v4066_v12  ;;  %v4080_v23 = vld [vmem:[%s5172_s4 + $0x30] ss:$12 sps:$4 sm:$0xff]   ;;  %v4089_v30 = vld [vmem:[%s5172_s4 + $0x8] ss:$12 sps:$4 sm:$0xff]   ;;  %s5200_s28 = sld [smem:[#allocation19_spill]]  ;;  %s685_s19 = scalar_lea.vmem %s5186_s18, %s5203_s30 }
  0x7c   : > { %690 = vadd.xlane.f32.xlu0 %v687_v0  ;;  %3775 = vmatprep.subr.bf16.mxu1 %v4495_v3  ;;  %v4081_v24 = vld [vmem:[%s5172_s4 + $0x38] ss:$12 sps:$4 sm:$0xff]   ;;  %v4082_v25 = vld [vmem:[%s5172_s4 + $0x1c] ss:$12 sps:$4 sm:$0xff]   ;;  %v4085_v27 = vld [vmem:[%s5172_s4 + $0x20] ss:$12 sps:$4 sm:$0xff]  }
  0x7d   : > { %v4084_v26 = vld [vmem:[%s5172_s4 + $0x18] ss:$12 sps:$4 sm:$0xff]   ;;  %v4088_v29 = vld [vmem:[%s5172_s4] ss:$12 sps:$4 sm:$0xff]   ;;  %v779_v43 = vsub.s32 2, %v4823_v42  ;;  %v4830_v45 = vsub.s32 1, %v4823_v42 }
  0x7e   : > { %917 = vmatpush1.bf16.msra.mxu0 %v4068_v13  ;;  %v4086_v28 = vld [vmem:[%s5172_s4 + $0x4] ss:$12 sps:$4 sm:$0xff]   ;;  %v3445_v37 = vld [vmem:[%s5171_s3] ss:$0 sm:$0xff]  ;;  %v4833_v46 = vsub.s32 0, %v4823_v42  ;;  %vm1061_vm1 = vcmask 1043456  }
  0x7f   : > { %3776 = vmatpush3.bf16.msra.mxu1 %v4069_v14  ;;  %918 = vmatprep.subr.bf16.mxu0 %v4070_v15  ;;  %v749_v44 = vld [vmem:[%s5173_s5] sm:$0x7]  ;;  %vm996_vm2 = vcmask 261120   ;;  %s4498_s10 = smov 64   ;;  %s4499_s29 = smov 96   ;;  %vm1045_vm3 = vcmask 64512  }
  0x80   : > { %3777 = vmatprep.subr.bf16.mxu1 %v4495_v3  ;;  %v780_v47 = vrot.slane %v749_v44, %v779_v43  ;;  %v776_v48 = vrot.slane %v749_v44, %v4830_v45  ;;  %v772_v51 = vrot.slane %v749_v44, %v4833_v46  ;;  %s4500_s1 = smov 32   ;;  %s5201_s24 = sld [smem:[#allocation18_spill]]  ;;  %vm1457_vm4 = vcmask 523264  }
  0x81   : > { %v3444_v35 = vld [vmem:[%s5200_s28] ss:$0 sm:$0xff]  ;;  %vm1459_vm5 = vcmask 785408  }
  0x82   : > { %919 = vmatpush1.bf16.msra.mxu0 %v4072_v16 }
  0x83   : > { %3778 = vmatpush3.bf16.msra.mxu1 %v4073_v17  ;;  %920 = vmatprep.subr.bf16.mxu0 %v4074_v18 }
  0x84   : > { %3779 = vmatprep.subr.bf16.mxu1 %v4495_v3 }
  0x86   : > { %921 = vmatpush1.bf16.msra.mxu0 %v4076_v19  ;;  %s682_s20 = scalar_lea.vmem %s5201_s24, %s3442_s0 }
  0x87   : > { %3780 = vmatpush3.bf16.msra.mxu1 %v4077_v20  ;;  %922 = vmatprep.subr.bf16.mxu0 %v4078_v21  ;;  %v4875_v12 = vld [vmem:[%s682_s20] sm:$0xff] }
  0x88   : > { %3781 = vmatprep.subr.bf16.mxu1 %v4495_v3 }
  0x8a   : > { %923 = vmatpush1.bf16.msra.mxu0 %v4080_v23 }
  0x8b   : > { %3782 = vmatpush3.bf16.msra.mxu1 %v4081_v24  ;;  %924 = vmatprep.subr.bf16.mxu0 %v4082_v25 }
  0x8c   : > { %3783 = vmatprep.subr.bf16.mxu1 %v4495_v3 }
  0x8e   : > { %925 = vmatpush1.bf16.msra.mxu0 %v4084_v26 }
  0x8f   : > { %3784 = vmatpush3.bf16.msra.mxu1 %v4085_v27  ;;  %926 = vmatprep.subr.bf16.mxu0 %v4086_v28 }
  0x90   : > { %3785 = vmatprep.subr.bf16.mxu1 %v4495_v3 }
  0x92   : > { %927 = vmatpush1.bf16.msra.mxu0 %v4088_v29 }
  0x93   : > { %3786 = vmatpush3.bf16.msra.mxu1 %v4089_v30  ;;  %3791 = vmatprep.subr.bf16.mxu0 %v4495_v3 }
  0x94   : > { %3797 = vmatprep.subr.bf16.mxu1 %v4495_v3 }
 0x105   : > { %v691_v8 = vpop.xlane.xlu0 %690 }
 0x106   : > { %v693_v9 = vmul.f32 0.0078125, %v691_v8 }
 0x108   : > { %v694_v10 = vsub.f32 %v687_v0, %v693_v9 }
 0x10a   : > { %v695_v11 = vmul.f32 %v694_v10, %v694_v10 }
 0x10c   : > { %696 = vadd.xlane.f32.xlu0 %v695_v11 }
 0x195   : > { %v697_v31 = vpop.xlane.xlu0 %696 }
 0x196   : > { %v698_v32 = vmul.f32 0.0078125, %v697_v31 }
 0x198   : > { %v699_v33 = vadd.f32 1e-12, %v698_v32 }
 0x19a   : > { %4226 = vrsqrt.f32 %v699_v33 }
 0x1a7   : > { %v4227_v34 = vpop.eup %4226 }
 0x1a8   : > { %v701_v36 = vmul.f32 %v4227_v34, %v694_v10 }
 0x1aa   : > { %v708_v38 = vmul.f32 %v3444_v35, %v701_v36 }
 0x1ac   : > { %v4815_v39 = vadd.f32 %v3445_v37, %v708_v38 }
 0x1ae   : > { %v767_v40 = vpack.c.bf16 %v4815_v39, %v4815_v39 }
 0x1b0   : > { %945 = vmatmul.mubr.bf16.vlgmr.msra.gmra.mxu0 %v767_v40  ;;  %3788 = vmatmul.mubr.bf16.vlgmr.msra.gmra.mxu1 %v767_v40 }
 0x1b1   : > { %3793 = vmatprep.mubr.msk.bf16.mxu0 %vm4497_vm0, %v4495_v3  ;;  %3799 = vmatprep.mubr.msk.bf16.mxu1 %vm4497_vm0, %v4495_v3 }
 0x270   : > { %v946_v49 = vpop.f32.mrf.mxu0  ;;  %v987_v50 = vpop.f32.mrf.mxu1 }
 0x271   : > { %v988_v52 = vadd.f32 %v987_v50, %v780_v47  ;;  %v947_v59 = vadd.f32 %v946_v49, %v772_v51 }
 0x272   : > { %v948_v53 = vpop.f32.mrf.mxu0  ;;  %v3789_v54 = vpop.f32.mrf.mxu1 }
 0x273   : > { %v4839_v55 = vpack.c.bf16 %v988_v52, %v988_v52  ;;  %v949_v56 = vadd.f32 %v948_v53, %v776_v48  ;;  %v993_v1 = vpack.c.bf16 %v947_v59, %v947_v59 }
 0x274   : > { %v950_v57 = vpop.f32.mrf.mxu0  ;;  %v990_v58 = vpop.f32.mrf.mxu1 }
 0x275   : > { %v994_v60 = vpack.c.bf16 %v949_v56, %v949_v56  ;;  %v1063_v61 = vsel %vm1061_vm1, %v4839_v55, 0 }
 0x276   : > { %v951_v62 = vpop.f32.mrf.mxu0  ;;  %v3790_v63 = vpop.f32.mrf.mxu1  ;;  %3798 = vmatpush3.bf16.msra.mxu1 %v1063_v61 }
 0x277   : > { %1222 = vrot.lane.b32.xlu0 %v994_v60, %s4498_s10  ;;  %1109 = vrot.lane.b32.xlu1 %v994_v60, %s4499_s29  ;;  %v1001_v0 = vsel %vm996_vm2, %v994_v60, 0 }
 0x278   : > { %3792 = vmatpush3.bf16.xpose.msra.mxu0 %v1001_v0  ;;  %3809 = vmatprep.subr.bf16.mxu1 %v4495_v3 }
 0x279   : > { %3803 = vmatprep.subr.bf16.mxu0 %v4495_v3 }
 0x27b   : > { %1106 = vrot.lane.b32.xlu1 %v993_v1, %s4499_s29 }
 0x27f   : > { %1220 = vrot.lane.b32.xlu1 %v993_v1, %s4498_s10  ;;  %3794 = vmatmul.mubr.msk.bf16.vlgmr.msra.gmra.mxu0 %vm996_vm2, %v993_v1 }
 0x280   : > { %3805 = vmatprep.mubr.msk.bf16.mxu0 %vm4497_vm0, %v4495_v3 }
 0x283   : > { %1334 = vrot.lane.b32.xlu1 %v994_v60, %s4500_s1 }
 0x287   : > { %1332 = vrot.lane.b32.xlu1 %v993_v1, %s4500_s1 }
 0x2e9   : > { %v1110_v2 = vpop.permute.xlu1 %1109  ;;  %v1223_v6 = vpop.permute.xlu0 %1222 }
 0x2ea   : > { %v1115_v4 = vsel %vm996_vm2, %v1110_v2, 0  ;;  %v1228_v8 = vsel %vm996_vm2, %v1223_v6, 0 }
 0x2eb   : > { %3804 = vmatpush3.bf16.xpose.msra.mxu0 %v1115_v4 }
 0x2ec   : > { %3815 = vmatprep.subr.bf16.mxu0 %v4495_v3 }
 0x2ed   : > { %v1107_v5 = vpop.permute.xlu1 %1106 }
 0x2f1   : > { %v1221_v7 = vpop.permute.xlu1 %1220 }
 0x2f2   : > { %3806 = vmatmul.mubr.msk.bf16.vlgmr.msra.gmra.mxu0 %vm996_vm2, %v1107_v5 }
 0x2f3   : > { %3816 = vmatpush3.bf16.xpose.msra.mxu0 %v1228_v8  ;;  %3817 = vmatprep.mubr.msk.bf16.mxu0 %vm4497_vm0, %v4495_v3 }
 0x2f4   : > { %3827 = vmatprep.subr.bf16.mxu0 %v4495_v3 }
 0x2f5   : > { %v1335_v9 = vpop.permute.xlu1 %1334 }
 0x2f6   : > { %v1340_v10 = vsel %vm996_vm2, %v1335_v9, 0 }
 0x2f9   : > { %v1333_v11 = vpop.permute.xlu1 %1332 }
 0x2fa   : > { %3818 = vmatmul.mubr.msk.bf16.vlgmr.msra.gmra.mxu0 %vm996_vm2, %v1221_v7 }
 0x2fb   : > { %3828 = vmatpush3.bf16.xpose.msra.mxu0 %v1340_v10  ;;  %3829 = vmatprep.mubr.msk.bf16.mxu0 %vm4497_vm0, %v4495_v3 }
 0x2fc   : > { %3839 = vmatprep.subr.bf16.mxu0 %v4495_v3 }
 0x302   : > { %3830 = vmatmul.mubr.msk.bf16.vlgmr.msra.gmra.mxu0 %vm996_vm2, %v1333_v11 }
 0x303   : > { %3855 = vmatprep.mubr.msk.bf16.mxu0 %vm4497_vm0, %v4495_v3 }
 0x33f   : > { %v1037_v13 = vpop.f32.mrf.mxu0 }
 0x340   : > { %v1043_v14 = vmul.f32 0.17677669, %v1037_v13 }
 0x341   : > { %v3795_v15 = vpop.f32.mrf.mxu0 }
 0x342   : > { %v1044_v16 = vadd.f32 %v1043_v14, %v4875_v12 }
 0x343   : > { %v1040_v17 = vpop.f32.mrf.mxu0 }
 0x344   : > { %v1046_v18 = vsel %vm1045_vm3, %v1044_v16, -inf }
 0x345   : > { %1047 = vmax.xlane.f32.xlu1 %v1046_v18  ;;  %v3796_v19 = vpop.f32.mrf.mxu0 }
 0x3b2   : > { %v1151_v20 = vpop.f32.mrf.mxu0 }
 0x3b3   : > { %v1157_v21 = vmul.f32 0.17677669, %v1151_v20 }
 0x3b4   : > { %v3807_v23 = vpop.f32.mrf.mxu0 }
 0x3b5   : > { %v1158_v24 = vadd.f32 %v1157_v21, %v4875_v12 }
 0x3b6   : > { %v1154_v25 = vpop.f32.mrf.mxu0 }
 0x3b7   : > { %v1159_v26 = vsel %vm1045_vm3, %v1158_v24, -inf }
 0x3b8   : > { %1160 = vmax.xlane.f32.xlu0 %v1159_v26  ;;  %v3808_v27 = vpop.f32.mrf.mxu0 }
 0x3ba   : > { %v1264_v28 = vpop.f32.mrf.mxu0 }
 0x3bb   : > { %v1270_v29 = vmul.f32 0.17677669, %v1264_v28 }
 0x3bc   : > { %v3819_v30 = vpop.f32.mrf.mxu0 }
 0x3bd   : > { %v1271_v31 = vadd.f32 %v1270_v29, %v4875_v12 }
 0x3be   : > { %v1267_v32 = vpop.f32.mrf.mxu0 }
 0x3bf   : > { %v1272_v33 = vsel %vm1045_vm3, %v1271_v31, -inf  ;;  %v4090_v32 = vld [vmem:[#allocation2 + $0x38] sm:$0xff]  }
 0x3c0   : > { %1273 = vmax.xlane.f32.xlu1 %v1272_v33  ;;  %v3820_v34 = vpop.f32.mrf.mxu0  ;;  %3840 = vmatpush3.bf16.msra.mxu0 %v4090_v32  ;;  %v4091_v33 = vld [vmem:[#allocation2 + $0x30] sm:$0xff]  }
 0x3c1   : > { %3841 = vmatprep.subr.bf16.mxu0 %v4495_v3 }
 0x3c2   : > { %v1376_v35 = vpop.f32.mrf.mxu0 }
 0x3c3   : > { %v1382_v36 = vmul.f32 0.17677669, %v1376_v35 }
 0x3c4   : > { %v3831_v37 = vpop.f32.mrf.mxu0  ;;  %3842 = vmatpush3.bf16.msra.mxu0 %v4091_v33 }
 0x3c5   : > { %v1383_v38 = vadd.f32 %v1382_v36, %v4875_v12  ;;  %v4092_v36 = vld [vmem:[#allocation2 + $0x28] sm:$0xff]   ;;  %3843 = vmatprep.subr.bf16.mxu0 %v4495_v3 }
 0x3c6   : > { %v1379_v40 = vpop.f32.mrf.mxu0 }
 0x3c7   : > { %v1384_v41 = vsel %vm1045_vm3, %v1383_v38, -inf  ;;  %v4093_v40 = vld [vmem:[#allocation2 + $0x20] sm:$0xff]  }
 0x3c8   : > { %1385 = vmax.xlane.f32.xlu1 %v1384_v41  ;;  %v3832_v44 = vpop.f32.mrf.mxu0  ;;  %3844 = vmatpush3.bf16.msra.mxu0 %v4092_v36 }
 0x3c9   : > { %3845 = vmatprep.subr.bf16.mxu0 %v4495_v3 }
 0x3cc   : > { %3846 = vmatpush3.bf16.msra.mxu0 %v4093_v40 }
 0x3cd   : > { %3847 = vmatprep.subr.bf16.mxu0 %v4495_v3 }
 0x3ce   : > { %v1048_v47 = vpop.xlane.xlu1 %1047 }
 0x3cf   : > { %v1049_v48 = vsub.f32 %v1044_v16, %v1048_v47  ;;  %v4094_v47 = vld [vmem:[#allocation2 + $0x18] sm:$0xff]  }
 0x3d0   : > { %3848 = vmatpush3.bf16.msra.mxu0 %v4094_v47  ;;  %v4125_v47 = vld [vmem:[#allocation6 + $0x30] sm:$0xff]  }
 0x3d1   : > { %v1050_v49 = vmul.f32 1.442695, %v1049_v48  ;;  %3849 = vmatprep.subr.bf16.mxu0 %v4495_v3 }
 0x3d3   : > { %4228 = vpow2.f32 %v1050_v49 }
 0x3e0   : > { %v4229_v50 = vpop.eup %4228 }
 0x3e1   : > { %v1052_v51 = vsel %vm1045_vm3, %v4229_v50, 0.0 }
 0x3e2   : > { %1053 = vadd.xlane.f32.xlu0 %v1052_v51  ;;  %v4096_v51 = vld [vmem:[#allocation2 + $0x8] sm:$0xff]  }
 0x441   : > { %v1161_v52 = vpop.xlane.xlu0 %1160 }
 0x442   : > { %v1162_v53 = vsub.f32 %v1158_v24, %v1161_v52  ;;  %v4097_v52 = vld [vmem:[#allocation2] sm:$0xff]  }
 0x444   : > { %v1163_v54 = vmul.f32 1.442695, %v1162_v53 }
 0x446   : > { %4230 = vpow2.f32 %v1163_v54 }
 0x449   : > { %v1274_v56 = vpop.xlane.xlu1 %1273 }
 0x44a   : > { %v1275_v57 = vsub.f32 %v1271_v31, %v1274_v56 }
 0x44c   : > { %v1276_v58 = vmul.f32 1.442695, %v1275_v57 }
 0x44e   : > { %4232 = vpow2.f32 %v1276_v58 }
 0x451   : > { %v1386_v0 = vpop.xlane.xlu1 %1385 }
 0x452   : > { %v1387_v1 = vsub.f32 %v1383_v38, %v1386_v0 }
 0x453   : > { %v4231_v59 = vpop.eup %4230 }
 0x454   : > { %v1165_v60 = vsel %vm1045_vm3, %v4231_v59, 0.0  ;;  %v1388_v2 = vmul.f32 1.442695, %v1387_v1  ;;  %v3478_v1 = vld [vmem:[%s5175_s7] ss:$0 sm:$0xff] }
 0x455   : > { %1166 = vadd.xlane.f32.xlu1 %v1165_v60 }
 0x45b   : > { %v4233_v61 = vpop.eup %4232 }
 0x45c   : > { %v1278_v62 = vsel %vm1045_vm3, %v4233_v61, 0.0 }
 0x45d   : > { %1279 = vadd.xlane.f32.xlu0 %v1278_v62 }
 0x466   : > { %1284 = vrot.lane.b32.xlu1 %v4839_v55, %s4498_s10 }
 0x46b   : > { %v1054_v63 = vpop.xlane.xlu0 %1053 }
 0x46c   : > { %4234 = vrcp.f32 %v1054_v63 }
 0x46d   : > { %4236 = vpow2.f32 %v1388_v2 }
 0x473   : > { %1172 = vrot.lane.b32.xlu0 %v4839_v55, %s4499_s29 }
 0x479   : > { %v4235_v4 = vpop.eup %4234 }
 0x47a   : > { %v1056_v5 = vmul.f32 %v4235_v4, %v4229_v50  ;;  %v4237_v7 = vpop.eup %4236  ;;  %v4095_v50 = vld [vmem:[#allocation2 + $0x10] sm:$0xff]  }
 0x47b   : > { %v1390_v8 = vsel %vm1045_vm3, %v4237_v7, 0.0  ;;  %3850 = vmatpush3.bf16.msra.mxu0 %v4095_v50  ;;  %v4128_v50 = vld [vmem:[#allocation6 + $0x60] sm:$0xff]  }
 0x47c   : > { %v1057_v6 = vpack.c.bf16 %v1056_v5, %v1056_v5  ;;  %3851 = vmatprep.subr.bf16.mxu0 %v4495_v3 }
 0x47e   : > { %3800 = vmatmul.mubr.msk.bf16.vlgmr.msra.gmra.mxu1 %vm1045_vm3, %v1057_v6 }
 0x47f   : > { %3811 = vmatprep.mubr.msk.bf16.mxu1 %vm4497_vm0, %v4495_v3  ;;  %3852 = vmatpush3.bf16.msra.mxu0 %v4096_v51  ;;  %v4129_v51 = vld [vmem:[#allocation6 + $0x20] sm:$0xff]  }
 0x480   : > { %3853 = vmatprep.subr.bf16.mxu0 %v4495_v3 }
 0x483   : > { %3854 = vmatpush3.bf16.msra.mxu0 %v4097_v52  ;;  %v4130_v52 = vld [vmem:[#allocation6 + $0x58] sm:$0xff]  }
 0x48a   : > { %1391 = vadd.xlane.f32.xlu1 %v1390_v8 }
 0x49b   : > { %1396 = vrot.lane.b32.xlu1 %v4839_v55, %s4500_s1 }
 0x4de   : > { %v1167_v9 = vpop.xlane.xlu1 %1166 }
 0x4df   : > { %4238 = vrcp.f32 %v1167_v9  ;;  %v4098_v9 = vld [vmem:[#allocation4 + $0x70] ss:$8 sps:$4 sm:$0xff]  }
 0x4e2   : > { %v1285_v16 = vpop.permute.xlu1 %1284 }
 0x4e3   : > { %v1290_v18 = vsel %vm1061_vm1, %v1285_v16, 0 }
 0x4e6   : > { %v1280_v10 = vpop.xlane.xlu0 %1279 }
 0x4e7   : > { %4240 = vrcp.f32 %v1280_v10  ;;  %v4100_v10 = vld [vmem:[#allocation4 + $0x74] ss:$8 sps:$4 sm:$0xff]  }
 0x4ea   : > { %v1173_v11 = vpop.permute.xlu0 %1172 }
 0x4eb   : > { %v1178_v13 = vsel %vm1061_vm1, %v1173_v11, 0  ;;  %v4103_v11 = vld [vmem:[#allocation4 + $0x64] ss:$8 sps:$4 sm:$0xff]  }
 0x4ec   : > { %v4239_v14 = vpop.eup %4238  ;;  %3810 = vmatpush3.bf16.msra.mxu1 %v1178_v13  ;;  %v4101_v13 = vld [vmem:[#allocation4 + $0x60] ss:$8 sps:$4 sm:$0xff]  }
 0x4ed   : > { %3821 = vmatprep.subr.bf16.mxu1 %v4495_v3  ;;  %v1169_v15 = vmul.f32 %v4239_v14, %v4231_v59 }
 0x4ef   : > { %v1170_v17 = vpack.c.bf16 %v1169_v15, %v1169_v15 }
 0x4f1   : > { %3812 = vmatmul.mubr.msk.bf16.vlgmr.msra.gmra.mxu1 %vm1045_vm3, %v1170_v17 }
 0x4f2   : > { %3822 = vmatpush3.bf16.msra.mxu1 %v1290_v18  ;;  %3823 = vmatprep.mubr.msk.bf16.mxu1 %vm4497_vm0, %v4495_v3  ;;  %v4106_v18 = vld [vmem:[#allocation4 + $0x54] ss:$8 sps:$4 sm:$0xff]  }
 0x4f3   : > { %3833 = vmatprep.subr.bf16.mxu1 %v4495_v3 }
 0x4f4   : > { %v4241_v55 = vpop.eup %4240 }
 0x4f5   : > { %v1282_v19 = vmul.f32 %v4241_v55, %v4233_v61  ;;  %v4104_v55 = vld [vmem:[#allocation4 + $0x50] ss:$8 sps:$4 sm:$0xff]  }
 0x4f7   : > { %v1283_v20 = vpack.c.bf16 %v1282_v19, %v1282_v19  ;;  %v4109_v19 = vld [vmem:[#allocation4 + $0x44] ss:$8 sps:$4 sm:$0xff]  }
 0x4f9   : > { %3824 = vmatmul.mubr.msk.bf16.vlgmr.msra.gmra.mxu1 %vm1045_vm3, %v1283_v20  ;;  %v4112_v20 = vld [vmem:[#allocation4 + $0x34] ss:$8 sps:$4 sm:$0xff]  }
 0x4fa   : > { %3835 = vmatprep.mubr.msk.bf16.mxu1 %vm4497_vm0, %v4495_v3 }
 0x513   : > { %v1392_v21 = vpop.xlane.xlu1 %1391 }
 0x514   : > { %4242 = vrcp.f32 %v1392_v21  ;;  %v4110_v21 = vld [vmem:[#allocation4 + $0x30] ss:$8 sps:$4 sm:$0xff]  }
 0x517   : > { %v1397_v23 = vpop.permute.xlu1 %1396 }
 0x518   : > { %v1402_v24 = vsel %vm1061_vm1, %v1397_v23, 0  ;;  %v4115_v23 = vld [vmem:[#allocation4 + $0x24] ss:$8 sps:$4 sm:$0xff]  }
 0x519   : > { %3834 = vmatpush3.bf16.msra.mxu1 %v1402_v24  ;;  %v4113_v24 = vld [vmem:[#allocation4 + $0x20] ss:$8 sps:$4 sm:$0xff]  }
 0x51a   : > { %1693 = vmatprep.subr.bf16.mxu1 %v4100_v10 }
 0x521   : > { %v4243_v25 = vpop.eup %4242 }
 0x522   : > { %v1394_v26 = vmul.f32 %v4243_v25, %v4237_v7  ;;  %v4118_v25 = vld [vmem:[#allocation4 + $0x14] ss:$8 sps:$4 sm:$0xff]  }
 0x524   : > { %v1395_v27 = vpack.c.bf16 %v1394_v26, %v1394_v26  ;;  %v4116_v26 = vld [vmem:[#allocation4 + $0x10] ss:$8 sps:$4 sm:$0xff]  }
 0x526   : > { %3836 = vmatmul.mubr.msk.bf16.vlgmr.msra.gmra.mxu1 %vm1045_vm3, %v1395_v27  ;;  %v4121_v27 = vld [vmem:[#allocation4 + $0x4] ss:$8 sps:$4 sm:$0xff]  }
 0x527   : > { %1725 = vmatprep.mubr.bf16.mxu1 %v4496_v22  ;;  %1694 = vmatpush1.bf16.msra.mxu1 %v4098_v9 }
 0x528   : > { %1695 = vmatprep.subr.bf16.mxu1 %v4103_v11 }
 0x52b   : > { %1696 = vmatpush1.bf16.msra.mxu1 %v4101_v13 }
 0x52c   : > { %1697 = vmatprep.subr.bf16.mxu1 %v4106_v18 }
 0x52f   : > { %1698 = vmatpush1.bf16.msra.mxu1 %v4104_v55 }
 0x530   : > { %1699 = vmatprep.subr.bf16.mxu1 %v4109_v19  ;;  %v3505_v19 = vld [vmem:[%s5181_s13] ss:$0 sm:$0xff] }
 0x53e   : > { %v1099_v28 = vpop.f32.mrf.mxu1 }
 0x540   : > { %v3801_v29 = vpop.f32.mrf.mxu1 }
 0x541   : > { %v4122_v29 = vld [vmem:[#allocation6 + $0x78] sm:$0xff]  }
 0x542   : > { %v1102_v30 = vpop.f32.mrf.mxu1  ;;  %3684 = vmatprep.subr.bf16.mxu0 %v4122_v29  ;;  %v4141_v29 = vld [vmem:[%s5172_s4 + $0x170] ss:$12 sps:$4 sm:$0xff]  }
 0x543   : > { %v4123_v30 = vld [vmem:[#allocation6 + $0x38] sm:$0xff]  }
 0x544   : > { %v3802_v31 = vpop.f32.mrf.mxu1 }
 0x5b1   : > { %v1214_v34 = vpop.f32.mrf.mxu1 }
 0x5b2   : > { %1445 = vrot.lane.b32.xlu0 %v1214_v34, %s4500_s1 }
 0x5b3   : > { %v3813_v35 = vpop.f32.mrf.mxu1 }
 0x5b4   : > { %v3487_v35 = vld [vmem:[%s5176_s8] ss:$0 sm:$0xff] }
 0x5b5   : > { %v1217_v37 = vpop.f32.mrf.mxu1 }
 0x5b6   : > { %v3488_v37 = vld [vmem:[%s5177_s9] ss:$0 sm:$0xff] }
 0x5b7   : > { %v3814_v38 = vpop.f32.mrf.mxu1 }
 0x5b9   : > { %v1326_v41 = vpop.f32.mrf.mxu1 }
 0x5ba   : > { %1449 = vrot.lane.b32.xlu1 %v1326_v41, %s4498_s10 }
 0x5bb   : > { %v3825_v44 = vpop.f32.mrf.mxu1 }
 0x5bc   : > { %v4124_v44 = vld [vmem:[#allocation6 + $0x70] sm:$0xff]  }
 0x5bd   : > { %v1329_v48 = vpop.f32.mrf.mxu1 }
 0x5be   : > { %v4126_v48 = vld [vmem:[#allocation6 + $0x68] sm:$0xff]  }
 0x5bf   : > { %v3826_v49 = vpop.f32.mrf.mxu1 }
 0x5c0   : > { %v4127_v49 = vld [vmem:[#allocation6 + $0x28] sm:$0xff]  }
 0x5e6   : > { %v1438_v53 = vpop.f32.mrf.mxu1 }
 0x5e7   : > { %1453 = vrot.lane.b32.xlu0 %v1438_v53, %s4499_s29  ;;  %v4131_v53 = vld [vmem:[#allocation6 + $0x18] sm:$0xff]  }
 0x5e8   : > { %v3837_v54 = vpop.f32.mrf.mxu1 }
 0x5e9   : > { %v4132_v54 = vld [vmem:[#allocation6 + $0x50] sm:$0xff]  }
 0x5ea   : > { %v1441_v56 = vpop.f32.mrf.mxu1 }
 0x5eb   : > { %v4133_v56 = vld [vmem:[#allocation6 + $0x10] sm:$0xff]  }
 0x5ec   : > { %v3838_v57 = vpop.f32.mrf.mxu1 }
 0x5ed   : > { %v4134_v57 = vld [vmem:[#allocation6 + $0x48] sm:$0xff]  }
 0x624   : > { %v1446_v58 = vpop.permute.xlu0 %1445 }
 0x625   : > { %v1456_v60 = vsel %vm996_vm2, %v1099_v28, %v1446_v58  ;;  %v4119_v28 = vld [vmem:[#allocation4] ss:$8 sps:$4 sm:$0xff]  }
 0x626   : > { %v4135_v58 = vld [vmem:[#allocation6 + $0x8] sm:$0xff]  }
 0x62c   : > { %v1450_v59 = vpop.permute.xlu1 %1449 }
 0x62d   : > { %v1458_v61 = vsel %vm1457_vm4, %v1456_v60, %v1450_v59  ;;  %v4136_v59 = vld [vmem:[#allocation6 + $0x40] sm:$0xff]  }
 0x62e   : > { %v4137_v60 = vld [vmem:[#allocation6] sm:$0xff]  }
 0x659   : > { %v1454_v62 = vpop.permute.xlu0 %1453 }
 0x65a   : > { %v1460_v63 = vsel %vm1459_vm5, %v1458_v61, %v1454_v62  ;;  %v1601_v61 = vld [vmem:[%s5179_s11] sm:$0x3] }
 0x65b   : > { %v1461_v0 = vpack.c.bf16 %v1460_v63, %v1460_v63  ;;  %v1606_v62 = vrot.slane %v1601_v61, %v4833_v46  ;;  %v1610_v63 = vrot.slane %v1601_v61, %v4830_v45 }
 0x65d   : > { %3856 = vmatmul.mubr.bf16.vlgmr.msra.gmra.mxu0 %v1461_v0 }
 0x65e   : > { %3685 = vmatpush3.bf16.msra.mxu0 %v4123_v30  ;;  %v4144_v30 = vld [vmem:[%s5172_s4 + $0x154] ss:$12 sps:$4 sm:$0xff]  }
 0x65f   : > { %3686 = vmatprep.subr.bf16.mxu0 %v4124_v44  ;;  %v4152_v44 = vld [vmem:[%s5172_s4 + $0x124] ss:$12 sps:$4 sm:$0xff]  }
 0x662   : > { %3687 = vmatpush3.bf16.msra.mxu0 %v4125_v47  ;;  %v4153_v47 = vld [vmem:[%s5172_s4 + $0x128] ss:$12 sps:$4 sm:$0xff]  }
 0x663   : > { %3688 = vmatprep.subr.bf16.mxu0 %v4126_v48  ;;  %v4156_v48 = vld [vmem:[%s5172_s4 + $0x10c] ss:$12 sps:$4 sm:$0xff]  }
 0x666   : > { %3689 = vmatpush3.bf16.msra.mxu0 %v4127_v49  ;;  %v4154_v49 = vld [vmem:[%s5172_s4 + $0x108] ss:$12 sps:$4 sm:$0xff]  }
 0x667   : > { %3690 = vmatprep.subr.bf16.mxu0 %v4128_v50  ;;  %v4157_v50 = vld [vmem:[%s5172_s4 + $0x110] ss:$12 sps:$4 sm:$0xff]  }
 0x66a   : > { %3691 = vmatpush3.bf16.msra.mxu0 %v4129_v51  ;;  %v4160_v51 = vld [vmem:[%s5172_s4 + $0xf4] ss:$12 sps:$4 sm:$0xff]  }
 0x66b   : > { %3692 = vmatprep.subr.bf16.mxu0 %v4130_v52  ;;  %v4158_v52 = vld [vmem:[%s5172_s4 + $0xf0] ss:$12 sps:$4 sm:$0xff]  }
 0x66e   : > { %3693 = vmatpush3.bf16.msra.mxu0 %v4131_v53  ;;  %v4161_v53 = vld [vmem:[%s5172_s4 + $0xf8] ss:$12 sps:$4 sm:$0xff]  }
 0x66f   : > { %3694 = vmatprep.subr.bf16.mxu0 %v4132_v54  ;;  %v4164_v54 = vld [vmem:[%s5172_s4 + $0xdc] ss:$12 sps:$4 sm:$0xff]  }
 0x672   : > { %3695 = vmatpush3.bf16.msra.mxu0 %v4133_v56  ;;  %v4162_v56 = vld [vmem:[%s5172_s4 + $0xd8] ss:$12 sps:$4 sm:$0xff]  }
 0x673   : > { %3696 = vmatprep.subr.bf16.mxu0 %v4134_v57  ;;  %v4165_v57 = vld [vmem:[%s5172_s4 + $0xe0] ss:$12 sps:$4 sm:$0xff]  }
 0x676   : > { %3697 = vmatpush3.bf16.msra.mxu0 %v4135_v58  ;;  %v4168_v58 = vld [vmem:[%s5172_s4 + $0xc4] ss:$12 sps:$4 sm:$0xff]  }
 0x677   : > { %3698 = vmatprep.subr.bf16.mxu0 %v4136_v59  ;;  %v4166_v59 = vld [vmem:[%s5172_s4 + $0xc0] ss:$12 sps:$4 sm:$0xff]  }
 0x67a   : > { %3699 = vmatpush3.bf16.msra.mxu0 %v4137_v60  ;;  %v4169_v60 = vld [vmem:[%s5172_s4 + $0xc8] ss:$12 sps:$4 sm:$0xff]  }
 0x67b   : > { %3859 = vmatprep.subr.bf16.mxu0 %v4495_v3 }
 0x71d   : > { %v1550_v2 = vpop.f32.mrf.mxu0 }
 0x71e   : > { %v1551_v4 = vadd.f32 %v3478_v1, %v1550_v2 }
 0x71f   : > { %v3857_v5 = vpop.f32.mrf.mxu0 }
 0x720   : > { %v1556_v6 = vadd.f32 %v1551_v4, %v4815_v39  ;;  %v4107_v39 = vld [vmem:[#allocation4 + $0x40] ss:$8 sps:$4 sm:$0xff]  }
 0x721   : > { %v1553_v7 = vpop.f32.mrf.mxu0  ;;  %1700 = vmatpush1.bf16.msra.mxu1 %v4107_v39 }
 0x722   : > { %1559 = vadd.xlane.f32.xlu1 %v1556_v6  ;;  %1701 = vmatprep.subr.bf16.mxu1 %v4112_v20 }
 0x723   : > { %v3858_v8 = vpop.f32.mrf.mxu0 }
 0x725   : > { %1702 = vmatpush1.bf16.msra.mxu1 %v4110_v21 }
 0x726   : > { %1703 = vmatprep.subr.bf16.mxu1 %v4115_v23 }
 0x729   : > { %1704 = vmatpush1.bf16.msra.mxu1 %v4113_v24 }
 0x72a   : > { %1705 = vmatprep.subr.bf16.mxu1 %v4118_v25 }
 0x72d   : > { %1706 = vmatpush1.bf16.msra.mxu1 %v4116_v26 }
 0x72e   : > { %1707 = vmatprep.subr.bf16.mxu1 %v4121_v27  ;;  %v4138_v27 = vld [vmem:[%s5172_s4 + $0x168] ss:$12 sps:$4 sm:$0xff]  }
 0x731   : > { %1708 = vmatpush1.bf16.msra.mxu1 %v4119_v28  ;;  %v4140_v28 = vld [vmem:[%s5172_s4 + $0x16c] ss:$12 sps:$4 sm:$0xff]  }
 0x732   : > { %2148 = vmatprep.subr.bf16.mxu1 %v4140_v28 }
 0x7ab   : > { %v1560_v14 = vpop.xlane.xlu1 %1559 }
 0x7ac   : > { %v1561_v15 = vmul.f32 0.0078125, %v1560_v14 }
 0x7ae   : > { %v1562_v16 = vsub.f32 %v1556_v6, %v1561_v15 }
 0x7b0   : > { %v1563_v17 = vmul.f32 %v1562_v16, %v1562_v16 }
 0x7b2   : > { %1564 = vadd.xlane.f32.xlu0 %v1563_v17 }
 0x83b   : > { %v1565_v31 = vpop.xlane.xlu0 %1564 }
 0x83c   : > { %v1566_v32 = vmul.f32 0.0078125, %v1565_v31  ;;  %v4145_v31 = vld [vmem:[%s5172_s4 + $0x158] ss:$12 sps:$4 sm:$0xff]  }
 0x83e   : > { %v1567_v33 = vadd.f32 1e-12, %v1566_v32  ;;  %v4142_v32 = vld [vmem:[%s5172_s4 + $0x150] ss:$12 sps:$4 sm:$0xff]  }
 0x840   : > { %4244 = vrsqrt.f32 %v1567_v33 }
 0x84d   : > { %v4245_v34 = vpop.eup %4244 }
 0x84e   : > { %v1569_v36 = vmul.f32 %v4245_v34, %v1562_v16 }
 0x850   : > { %v1576_v38 = vmul.f32 %v3487_v35, %v1569_v36 }
 0x852   : > { %v4934_v40 = vadd.f32 %v3488_v37, %v1576_v38  ;;  %v4148_v37 = vld [vmem:[%s5172_s4 + $0x13c] ss:$12 sps:$4 sm:$0xff]   ;;  %v4146_v38 = vld [vmem:[%s5172_s4 + $0x138] ss:$12 sps:$4 sm:$0xff]  }
 0x854   : > { %v1600_v41 = vpack.c.bf16 %v4934_v40, %v4934_v40 }
 0x856   : > { %1726 = vmatmul.mubr.bf16.vlgmr.msra.gmra.mxu1 %v1600_v41  ;;  %v4150_v41 = vld [vmem:[%s5172_s4 + $0x120] ss:$12 sps:$4 sm:$0xff]  }
 0x857   : > { %2180 = vmatprep.mubr.bf16.mxu1 %v4496_v22  ;;  %2149 = vmatpush1.bf16.msra.mxu1 %v4138_v27 }
 0x858   : > { %2150 = vmatprep.subr.bf16.mxu1 %v4144_v30 }
 0x85b   : > { %2151 = vmatpush1.bf16.msra.mxu1 %v4142_v32 }
 0x85c   : > { %2152 = vmatprep.subr.bf16.mxu1 %v4148_v37 }
 0x85f   : > { %2153 = vmatpush1.bf16.msra.mxu1 %v4146_v38 }
 0x860   : > { %2154 = vmatprep.subr.bf16.mxu1 %v4152_v44 }
 0x863   : > { %2155 = vmatpush1.bf16.msra.mxu1 %v4150_v41 }
 0x864   : > { %2156 = vmatprep.subr.bf16.mxu1 %v4156_v48 }
 0x867   : > { %2157 = vmatpush1.bf16.msra.mxu1 %v4154_v49 }
 0x868   : > { %2158 = vmatprep.subr.bf16.mxu1 %v4160_v51 }
 0x86b   : > { %2159 = vmatpush1.bf16.msra.mxu1 %v4158_v52 }
 0x86c   : > { %2160 = vmatprep.subr.bf16.mxu1 %v4164_v54 }
 0x86f   : > { %2161 = vmatpush1.bf16.msra.mxu1 %v4162_v56 }
 0x870   : > { %2162 = vmatprep.subr.bf16.mxu1 %v4168_v58 }
 0x873   : > { %2163 = vmatpush1.bf16.msra.mxu1 %v4166_v59 }
 0x874   : > { %3879 = vmatprep.subr.bf16.mxu1 %v4495_v3 }
 0x916   : > { %v1727_v0 = vpop.f32.mrf.mxu1 }
 0x917   : > { %v1728_v1 = vadd.f32 %v1727_v0, %v1606_v62 }
 0x918   : > { %v1729_v2 = vpop.f32.mrf.mxu1 }
 0x919   : > { %v1736_v4 = vmul.f32 0.70710677, %v1728_v1  ;;  %v1730_v5 = vadd.f32 %v1729_v2, %v1610_v63  ;;  %v1734_v13 = vmul.f32 0.5, %v1728_v1  ;;  %v3522_v1 = vld [vmem:[#allocation7] ss:$0 sm:$0xff] }
 0x91a   : > { %v1731_v6 = vpop.f32.mrf.mxu1 }
 0x91b   : > { %4246 = verf.f32 %v1736_v4  ;;  %v1737_v7 = vmul.f32 0.70710677, %v1730_v5  ;;  %v1735_v14 = vmul.f32 0.5, %v1730_v5  ;;  %v3523_v4 = vld [vmem:[#allocation9] ss:$0 sm:$0xff] }
 0x91c   : > { %v1732_v8 = vpop.f32.mrf.mxu1 }
 0x91d   : > { %4248 = verf.f32 %v1737_v7  ;;  %v3556_v8 = vld [vmem:[%s5173_s5 + $0x3] sm:$0x7] }
 0x928   : > { %v4247_v9 = vpop.eup %4246 }
 0x929   : > { %v1740_v10 = vadd.f32 1.0, %v4247_v9  ;;  %v2012_v9 = vrot.slane %v3556_v8, %v4830_v45 }
 0x92a   : > { %v4249_v11 = vpop.eup %4248 }
 0x92b   : > { %v1741_v15 = vadd.f32 1.0, %v4249_v11  ;;  %v1742_v16 = vmul.f32 %v1740_v10, %v1734_v13 }
 0x92d   : > { %v1743_v17 = vmul.f32 %v1741_v15, %v1735_v14  ;;  %v1776_v55 = vpack.c.bf16 %v1742_v16, %v1742_v16  ;;  %v2016_v15 = vrot.slane %v3556_v8, %v779_v43 }
 0x92f   : > { %v1777_v18 = vpack.c.bf16 %v1743_v17, %v1743_v17 }
 0x931   : > { %1913 = vmatprep.mubr.bf16.mxu0 %v1777_v18 }
 0x932   : > { %1914 = vmatmul.mubr.bf16.vlgmr.msra.gmra.mxu0 %v1776_v55  ;;  %v2008_v55 = vrot.slane %v3556_v8, %v4833_v46 }
 0x933   : > { %3875 = vmatprep.mubr.msk.bf16.mxu0 %vm4497_vm0, %v4495_v3  ;;  %3860 = vmatpush3.bf16.msra.mxu0 %v4141_v29 }
 0x934   : > { %3861 = vmatprep.subr.bf16.mxu0 %v4495_v3 }
 0x937   : > { %3862 = vmatpush3.bf16.msra.mxu0 %v4145_v31 }
 0x938   : > { %3863 = vmatprep.subr.bf16.mxu0 %v4495_v3 }
 0x9f2   : > { %v3700_v39 = vpop.f32.mrf.mxu0 }
 0x9f4   : > { %v3701_v20 = vpop.f32.mrf.mxu0 }
 0x9f5   : > { %v3702_v21 = vadd.f32 %v3701_v20, %v3700_v39 }
 0x9f6   : > { %v3703_v23 = vpop.f32.mrf.mxu0 }
 0x9f7   : > { %v1916_v24 = vadd.f32 %v3702_v21, %v3505_v19 }
 0x9f8   : > { %v3704_v25 = vpop.f32.mrf.mxu0 }
 0x9f9   : > { %v1921_v26 = vadd.f32 %v1916_v24, %v4934_v40  ;;  %v4149_v40 = vld [vmem:[%s5172_s4 + $0x140] ss:$12 sps:$4 sm:$0xff]  }
 0x9fa   : > { %3864 = vmatpush3.bf16.msra.mxu0 %v4149_v40 }
 0x9fb   : > { %1924 = vadd.xlane.f32.xlu0 %v1921_v26  ;;  %3865 = vmatprep.subr.bf16.mxu0 %v4495_v3 }
 0x9fe   : > { %3866 = vmatpush3.bf16.msra.mxu0 %v4153_v47 }
 0x9ff   : > { %3867 = vmatprep.subr.bf16.mxu0 %v4495_v3 }
 0xa02   : > { %3868 = vmatpush3.bf16.msra.mxu0 %v4157_v50 }
 0xa03   : > { %3869 = vmatprep.subr.bf16.mxu0 %v4495_v3 }
 0xa06   : > { %3870 = vmatpush3.bf16.msra.mxu0 %v4161_v53 }
 0xa07   : > { %3871 = vmatprep.subr.bf16.mxu0 %v4495_v3 }
 0xa0a   : > { %3872 = vmatpush3.bf16.msra.mxu0 %v4165_v57 }
 0xa0b   : > { %3873 = vmatprep.subr.bf16.mxu0 %v4495_v3 }
 0xa0e   : > { %3874 = vmatpush3.bf16.msra.mxu0 %v4169_v60 }
 0xa0f   : > { %3903 = vmatprep.subr.bf16.mxu0 %v4495_v3 }
 0xa84   : > { %v1925_v33 = vpop.xlane.xlu0 %1924 }
 0xa85   : > { %v1926_v34 = vmul.f32 0.0078125, %v1925_v33 }
 0xa87   : > { %v1927_v35 = vsub.f32 %v1921_v26, %v1926_v34 }
 0xa89   : > { %v1928_v36 = vmul.f32 %v1927_v35, %v1927_v35 }
 0xa8b   : > { %1929 = vadd.xlane.f32.xlu1 %v1928_v36 }
 0xb14   : > { %v1930_v61 = vpop.xlane.xlu1 %1929 }
 0xb15   : > { %v1931_v62 = vmul.f32 0.0078125, %v1930_v61 }
 0xb17   : > { %v1932_v63 = vadd.f32 1e-12, %v1931_v62 }
 0xb19   : > { %4250 = vrsqrt.f32 %v1932_v63 }
 0xb26   : > { %v4251_v0 = vpop.eup %4250 }
 0xb27   : > { %v1934_v2 = vmul.f32 %v4251_v0, %v1927_v35 }
 0xb29   : > { %v1941_v5 = vmul.f32 %v3522_v1, %v1934_v2 }
 0xb2b   : > { %v5032_v6 = vadd.f32 %v3523_v4, %v1941_v5 }
 0xb2d   : > { %v2003_v7 = vpack.c.bf16 %v5032_v6, %v5032_v6 }
 0xb2f   : > { %2181 = vmatmul.mubr.bf16.vlgmr.msra.gmra.mxu1 %v2003_v7  ;;  %3876 = vmatmul.mubr.bf16.vlgmr.msra.gmra.mxu0 %v2003_v7 }
 0xb30   : > { %3881 = vmatprep.mubr.msk.bf16.mxu1 %vm4497_vm0, %v4495_v3  ;;  %3905 = vmatprep.mubr.msk.bf16.mxu0 %vm4497_vm0, %v4495_v3 }
 0xbef   : > { %v2182_v10 = vpop.f32.mrf.mxu1  ;;  %v2223_v11 = vpop.f32.mrf.mxu0 }
 0xbf0   : > { %v2224_v21 = vadd.f32 %v2223_v11, %v2016_v15  ;;  %v2183_v24 = vadd.f32 %v2182_v10, %v2008_v55 }
 0xbf1   : > { %v2184_v13 = vpop.f32.mrf.mxu1  ;;  %v3877_v14 = vpop.f32.mrf.mxu0 }
 0xbf2   : > { %v2185_v16 = vadd.f32 %v2184_v13, %v2012_v9  ;;  %v5049_v25 = vpack.c.bf16 %v2224_v21, %v2224_v21  ;;  %v2229_v26 = vpack.c.bf16 %v2183_v24, %v2183_v24 }
 0xbf3   : > { %v2186_v17 = vpop.f32.mrf.mxu1  ;;  %v2226_v18 = vpop.f32.mrf.mxu0 }
 0xbf4   : > { %v2230_v39 = vpack.c.bf16 %v2185_v16, %v2185_v16  ;;  %v2296_v42 = vsel %vm1061_vm1, %v5049_v25, 0 }
 0xbf5   : > { %v2187_v19 = vpop.f32.mrf.mxu1  ;;  %v3878_v20 = vpop.f32.mrf.mxu0 }
 0xbf6   : > { %v2236_v23 = vsel %vm996_vm2, %v2230_v39, 0 }
 0xbf7   : > { %3880 = vmatpush3.bf16.xpose.msra.mxu1 %v2236_v23 }
 0xbf8   : > { %3885 = vmatprep.subr.bf16.mxu1 %v4495_v3 }
 0xbfe   : > { %3882 = vmatmul.mubr.msk.bf16.vlgmr.msra.gmra.mxu1 %vm996_vm2, %v2229_v26 }
 0xbff   : > { %3886 = vmatpush3.bf16.msra.mxu1 %v2296_v42  ;;  %3887 = vmatprep.mubr.msk.bf16.mxu1 %vm4497_vm0, %v4495_v3 }
 0xc00   : > { %3891 = vmatprep.subr.bf16.mxu1 %v4495_v3 }
 0xcbe   : > { %v2272_v43 = vpop.f32.mrf.mxu1 }
 0xcbf   : > { %v2278_v27 = vmul.f32 0.17677669, %v2272_v43 }
 0xcc0   : > { %v3883_v28 = vpop.f32.mrf.mxu1 }
 0xcc1   : > { %v2279_v29 = vadd.f32 %v2278_v27, %v4875_v12 }
 0xcc2   : > { %v2275_v30 = vpop.f32.mrf.mxu1 }
 0xcc3   : > { %v2280_v31 = vsel %vm1045_vm3, %v2279_v29, -inf }
 0xcc4   : > { %2281 = vmax.xlane.f32.xlu0 %v2280_v31  ;;  %v3884_v32 = vpop.f32.mrf.mxu1 }
 0xcda   : > { %2342 = vrot.lane.b32.xlu0 %v2230_v39, %s4499_s29 }
 0xcde   : > { %2453 = vrot.lane.b32.xlu0 %v2229_v26, %s4498_s10 }
 0xce2   : > { %2565 = vrot.lane.b32.xlu0 %v2229_v26, %s4500_s1 }
 0xd4d   : > { %v2282_v33 = vpop.xlane.xlu0 %2281 }
 0xd4e   : > { %v2283_v34 = vsub.f32 %v2279_v29, %v2282_v33 }
 0xd50   : > { %v2284_v35 = vmul.f32 1.442695, %v2283_v34 }
 0xd51   : > { %v2343_v47 = vpop.permute.xlu0 %2342 }
 0xd52   : > { %4252 = vpow2.f32 %v2284_v35  ;;  %v2348_v54 = vsel %vm996_vm2, %v2343_v47, 0 }
 0xd55   : > { %v2454_v51 = vpop.permute.xlu0 %2453 }
 0xd59   : > { %v2566_v56 = vpop.permute.xlu0 %2565 }
 0xd5f   : > { %v4253_v36 = vpop.eup %4252 }
 0xd60   : > { %v2286_v37 = vsel %vm1045_vm3, %v4253_v36, 0.0 }
 0xd61   : > { %2287 = vadd.xlane.f32.xlu1 %v2286_v37 }
 0xd72   : > { %2339 = vrot.lane.b32.xlu1 %v2229_v26, %s4499_s29 }
 0xd76   : > { %2455 = vrot.lane.b32.xlu1 %v2230_v39, %s4498_s10 }
 0xd7a   : > { %2567 = vrot.lane.b32.xlu1 %v2230_v39, %s4500_s1 }
 0xdea   : > { %v2288_v38 = vpop.xlane.xlu1 %2287 }
 0xdeb   : > { %4254 = vrcp.f32 %v2288_v38 }
 0xdee   : > { %v2340_v40 = vpop.permute.xlu1 %2339 }
 0xdf2   : > { %v2456_v41 = vpop.permute.xlu1 %2455 }
 0xdf3   : > { %v2461_v44 = vsel %vm996_vm2, %v2456_v41, 0 }
 0xdf4   : > { %3904 = vmatpush3.bf16.xpose.msra.mxu0 %v2461_v44 }
 0xdf5   : > { %3915 = vmatprep.subr.bf16.mxu0 %v4495_v3 }
 0xdf6   : > { %v2568_v49 = vpop.permute.xlu1 %2567 }
 0xdf7   : > { %v2573_v52 = vsel %vm996_vm2, %v2568_v49, 0 }
 0xdf8   : > { %v4255_v48 = vpop.eup %4254 }
 0xdf9   : > { %v2290_v50 = vmul.f32 %v4255_v48, %v4253_v36 }
 0xdfb   : > { %3906 = vmatmul.mubr.msk.bf16.vlgmr.msra.gmra.mxu0 %vm996_vm2, %v2454_v51  ;;  %v2291_v53 = vpack.c.bf16 %v2290_v50, %v2290_v50 }
 0xdfc   : > { %3916 = vmatpush3.bf16.xpose.msra.mxu0 %v2573_v52  ;;  %3917 = vmatprep.mubr.msk.bf16.mxu0 %vm4497_vm0, %v4495_v3 }
 0xdfd   : > { %3888 = vmatmul.mubr.msk.bf16.vlgmr.msra.gmra.mxu1 %vm1045_vm3, %v2291_v53  ;;  %3927 = vmatprep.subr.bf16.mxu0 %v4495_v3 }
 0xdfe   : > { %3892 = vmatpush3.bf16.xpose.msra.mxu1 %v2348_v54  ;;  %3893 = vmatprep.mubr.msk.bf16.mxu1 %vm4497_vm0, %v4495_v3 }
 0xdff   : > { %3897 = vmatprep.subr.bf16.mxu1 %v4495_v3 }
 0xe03   : > { %3918 = vmatmul.mubr.msk.bf16.vlgmr.msra.gmra.mxu0 %vm996_vm2, %v2566_v56  ;;  %v4170_v56 = vld [vmem:[#allocation2 + $0x78] sm:$0xff]  }
 0xe04   : > { %3943 = vmatprep.mubr.msk.bf16.mxu0 %vm4497_vm0, %v4495_v3  ;;  %3928 = vmatpush3.bf16.msra.mxu0 %v4170_v56 }
 0xe05   : > { %3894 = vmatmul.mubr.msk.bf16.vlgmr.msra.gmra.mxu1 %vm996_vm2, %v2340_v40  ;;  %3929 = vmatprep.subr.bf16.mxu0 %v4495_v3 }
 0xe06   : > { %3899 = vmatprep.mubr.msk.bf16.mxu1 %vm4497_vm0, %v4495_v3 }
 0xebb   : > { %v2497_v57 = vpop.f32.mrf.mxu0 }
 0xebc   : > { %v2503_v58 = vmul.f32 0.17677669, %v2497_v57  ;;  %v4171_v57 = vld [vmem:[#allocation2 + $0x70] sm:$0xff]  }
 0xebd   : > { %v5084_v59 = vpop.f32.mrf.mxu1  ;;  %v3907_v60 = vpop.f32.mrf.mxu0  ;;  %3930 = vmatpush3.bf16.msra.mxu0 %v4171_v57  ;;  %v3602_v57 = vld [vmem:[%s5177_s9 + $0x1] ss:$0 sm:$0xff] }
 0xebe   : > { %v2504_v61 = vadd.f32 %v2503_v58, %v4875_v12  ;;  %v4172_v58 = vld [vmem:[#allocation2 + $0x68] sm:$0xff]   ;;  %3931 = vmatprep.subr.bf16.mxu0 %v4495_v3  ;;  %v4173_v60 = vld [vmem:[#allocation2 + $0x60] sm:$0xff]  }
 0xebf   : > { %v3889_v62 = vpop.f32.mrf.mxu1  ;;  %v2500_v63 = vpop.f32.mrf.mxu0 }
 0xec0   : > { %v2505_v0 = vsel %vm1045_vm3, %v2504_v61, -inf  ;;  %v4176_v62 = vld [vmem:[#allocation2 + $0x48] sm:$0xff]  }
 0xec1   : > { %2506 = vmax.xlane.f32.xlu0 %v2505_v0  ;;  %v2335_v1 = vpop.f32.mrf.mxu1  ;;  %v3908_v2 = vpop.f32.mrf.mxu0  ;;  %3932 = vmatpush3.bf16.msra.mxu0 %v4172_v58 }
 0xec2   : > { %3933 = vmatprep.subr.bf16.mxu0 %v4495_v3  ;;  %v4177_v1 = vld [vmem:[#allocation2 + $0x40] sm:$0xff]  }
 0xec3   : > { %v3890_v4 = vpop.f32.mrf.mxu1  ;;  %v2609_v5 = vpop.f32.mrf.mxu0 }
 0xec4   : > { %v2615_v7 = vmul.f32 0.17677669, %v2609_v5 }
 0xec5   : > { %v2384_v8 = vpop.f32.mrf.mxu1  ;;  %v3919_v9 = vpop.f32.mrf.mxu0  ;;  %3934 = vmatpush3.bf16.msra.mxu0 %v4173_v60 }
 0xec6   : > { %v2390_v10 = vmul.f32 0.17677669, %v2384_v8  ;;  %v2616_v11 = vadd.f32 %v2615_v7, %v4875_v12  ;;  %3935 = vmatprep.subr.bf16.mxu0 %v4495_v3 }
 0xec7   : > { %v3895_v13 = vpop.f32.mrf.mxu1  ;;  %v2612_v14 = vpop.f32.mrf.mxu0 }
 0xec8   : > { %v2617_v15 = vsel %vm1045_vm3, %v2616_v11, -inf  ;;  %v2391_v16 = vadd.f32 %v2390_v10, %v4875_v12 }
 0xec9   : > { %2618 = vmax.xlane.f32.xlu0 %v2617_v15  ;;  %v2387_v17 = vpop.f32.mrf.mxu1  ;;  %v3920_v18 = vpop.f32.mrf.mxu0 }
 0xeca   : > { %v2392_v55 = vsel %vm1045_vm3, %v2391_v16, -inf }
 0xecb   : > { %2393 = vmax.xlane.f32.xlu1 %v2392_v55  ;;  %v3896_v39 = vpop.f32.mrf.mxu1 }
 0xf4a   : > { %v2507_v19 = vpop.xlane.xlu0 %2506 }
 0xf4b   : > { %v2508_v20 = vsub.f32 %v2504_v61, %v2507_v19  ;;  %v4174_v61 = vld [vmem:[#allocation2 + $0x58] sm:$0xff]  }
 0xf4c   : > { %3936 = vmatpush3.bf16.msra.mxu0 %v4174_v61 }
 0xf4d   : > { %v2509_v21 = vmul.f32 1.442695, %v2508_v20  ;;  %3937 = vmatprep.subr.bf16.mxu0 %v4495_v3  ;;  %v3590_v20 = vld [vmem:[%s5175_s7 + $0x1] ss:$0 sm:$0xff] }
 0xf4f   : > { %4256 = vpow2.f32 %v2509_v21 }
 0xf52   : > { %v2619_v23 = vpop.xlane.xlu0 %2618 }
 0xf53   : > { %v2620_v24 = vsub.f32 %v2616_v11, %v2619_v23 }
 0xf54   : > { %v2394_v26 = vpop.xlane.xlu1 %2393 }
 0xf55   : > { %v2621_v42 = vmul.f32 1.442695, %v2620_v24  ;;  %v2395_v43 = vsub.f32 %v2391_v16, %v2394_v26 }
 0xf57   : > { %4258 = vpow2.f32 %v2621_v42  ;;  %v2396_v27 = vmul.f32 1.442695, %v2395_v43 }
 0xf59   : > { %4260 = vpow2.f32 %v2396_v27  ;;  %v4180_v27 = vld [vmem:[#allocation4 + $0xf4] ss:$8 sps:$4 sm:$0xff]  }
 0xf5c   : > { %v4257_v12 = vpop.eup %4256 }
 0xf5d   : > { %v2511_v28 = vsel %vm1045_vm3, %v4257_v12, 0.0 }
 0xf5e   : > { %2512 = vadd.xlane.f32.xlu0 %v2511_v28  ;;  %v4181_v28 = vld [vmem:[#allocation4 + $0xe0] ss:$8 sps:$4 sm:$0xff]  }
 0xf64   : > { %v4259_v29 = vpop.eup %4258 }
 0xf65   : > { %v2623_v30 = vsel %vm1045_vm3, %v4259_v29, 0.0 }
 0xf66   : > { %v4261_v31 = vpop.eup %4260  ;;  %2624 = vadd.xlane.f32.xlu1 %v2623_v30 }
 0xf67   : > { %v2398_v32 = vsel %vm1045_vm3, %v4261_v31, 0.0 }
 0xf6a   : > { %2399 = vadd.xlane.f32.xlu1 %v2398_v32 }
 0xf74   : > { %2405 = vrot.lane.b32.xlu0 %v5049_v25, %s4499_s29 }
 0xf7b   : > { %2517 = vrot.lane.b32.xlu1 %v5049_v25, %s4498_s10 }
 0xf7f   : > { %2629 = vrot.lane.b32.xlu1 %v5049_v25, %s4500_s1 }
 0xfe7   : > { %v2513_v33 = vpop.xlane.xlu0 %2512 }
 0xfeb   : > { %v2406_v34 = vpop.permute.xlu0 %2405 }
 0xfec   : > { %v2411_v35 = vsel %vm1061_vm1, %v2406_v34, 0  ;;  %v4184_v34 = vld [vmem:[#allocation4 + $0xd0] ss:$8 sps:$4 sm:$0xff]  }
 0xfed   : > { %3898 = vmatpush3.bf16.msra.mxu1 %v2411_v35  ;;  %v4189_v35 = vld [vmem:[#allocation4 + $0xc4] ss:$8 sps:$4 sm:$0xff]  }
 0xfee   : > { %3909 = vmatprep.subr.bf16.mxu1 %v4495_v3 }
 0xfef   : > { %v2625_v36 = vpop.xlane.xlu1 %2624 }
 0xff3   : > { %v2400_v37 = vpop.xlane.xlu1 %2399 }
 0xff4   : > { %4262 = vrcp.f32 %v2400_v37  ;;  %v4190_v37 = vld [vmem:[#allocation4 + $0xb0] ss:$8 sps:$4 sm:$0xff]  }
 0xff5   : > { %4264 = vrcp.f32 %v2513_v33  ;;  %v4186_v33 = vld [vmem:[#allocation4 + $0xd4] ss:$8 sps:$4 sm:$0xff]  }
 0xff6   : > { %4266 = vrcp.f32 %v2625_v36  ;;  %v4192_v36 = vld [vmem:[#allocation4 + $0xb4] ss:$8 sps:$4 sm:$0xff]  }
 0xff7   : > { %v2518_v41 = vpop.permute.xlu1 %2517 }
 0xff8   : > { %v2523_v48 = vsel %vm1061_vm1, %v2518_v41, 0  ;;  %v4198_v41 = vld [vmem:[#allocation4 + $0x94] ss:$8 sps:$4 sm:$0xff]  }
 0xffb   : > { %v2630_v49 = vpop.permute.xlu1 %2629 }
 0xffc   : > { %v2635_v52 = vsel %vm1061_vm1, %v2630_v49, 0  ;;  %v4203_v49 = vld [vmem:[#allocation6 + $0xb8] sm:$0xff]  }
0x1001   : > { %v4263_v38 = vpop.eup %4262 }
0x1002   : > { %v2402_v40 = vmul.f32 %v4263_v38, %v4261_v31  ;;  %v4265_v47 = vpop.eup %4264  ;;  %v4195_v38 = vld [vmem:[#allocation4 + $0xa4] ss:$8 sps:$4 sm:$0xff]  }
0x1003   : > { %v2515_v25 = vmul.f32 %v4265_v47, %v4257_v12  ;;  %v4267_v51 = vpop.eup %4266  ;;  %v4183_v12 = vld [vmem:[#allocation4 + $0xe4] ss:$8 sps:$4 sm:$0xff]  }
0x1004   : > { %v2403_v44 = vpack.c.bf16 %v2402_v40, %v2402_v40  ;;  %v2627_v53 = vmul.f32 %v4267_v51, %v4259_v29  ;;  %v4193_v40 = vld [vmem:[#allocation4 + $0xa0] ss:$8 sps:$4 sm:$0xff]   ;;  %v4201_v47 = vld [vmem:[#allocation4 + $0x84] ss:$8 sps:$4 sm:$0xff]  }
0x1005   : > { %v2516_v50 = vpack.c.bf16 %v2515_v25, %v2515_v25  ;;  %v4202_v25 = vld [vmem:[#allocation6 + $0xf8] sm:$0xff]  }
0x1006   : > { %3900 = vmatmul.mubr.msk.bf16.vlgmr.msra.gmra.mxu1 %vm1045_vm3, %v2403_v44  ;;  %v2628_v54 = vpack.c.bf16 %v2627_v53, %v2627_v53  ;;  %v4196_v44 = vld [vmem:[#allocation4 + $0x90] ss:$8 sps:$4 sm:$0xff]  }
0x1007   : > { %3910 = vmatpush3.bf16.msra.mxu1 %v2523_v48  ;;  %3911 = vmatprep.mubr.msk.bf16.mxu1 %vm4497_vm0, %v4495_v3  ;;  %v4199_v48 = vld [vmem:[#allocation4 + $0x80] ss:$8 sps:$4 sm:$0xff]  }
0x1008   : > { %3921 = vmatprep.subr.bf16.mxu1 %v4495_v3 }
0x100e   : > { %3912 = vmatmul.mubr.msk.bf16.vlgmr.msra.gmra.mxu1 %vm1045_vm3, %v2516_v50 }
0x100f   : > { %3922 = vmatpush3.bf16.msra.mxu1 %v2635_v52  ;;  %3923 = vmatprep.mubr.msk.bf16.mxu1 %vm4497_vm0, %v4495_v3 }
0x1010   : > { %2928 = vmatprep.subr.bf16.mxu1 %v4180_v27 }
0x1016   : > { %3924 = vmatmul.mubr.msk.bf16.vlgmr.msra.gmra.mxu1 %vm1045_vm3, %v2628_v54  ;;  %v3601_v54 = vld [vmem:[%s5176_s8 + $0x1] ss:$0 sm:$0xff] }
0x1017   : > { %2960 = vmatprep.mubr.bf16.mxu1 %v4496_v22  ;;  %v4175_v22 = vld [vmem:[#allocation2 + $0x50] sm:$0xff]  }
0x1018   : > { %3938 = vmatpush3.bf16.msra.mxu0 %v4175_v22  ;;  %v4204_v22 = vld [vmem:[#allocation6 + $0xf0] sm:$0xff]  }
0x1019   : > { %3939 = vmatprep.subr.bf16.mxu0 %v4495_v3 }
0x101c   : > { %3940 = vmatpush3.bf16.msra.mxu0 %v4176_v62  ;;  %v4205_v62 = vld [vmem:[#allocation6 + $0xb0] sm:$0xff]  }
0x101d   : > { %3941 = vmatprep.subr.bf16.mxu0 %v4495_v3 }
0x1020   : > { %3942 = vmatpush3.bf16.msra.mxu0 %v4177_v1  ;;  %v4208_v1 = vld [vmem:[#allocation6 + $0xe0] sm:$0xff]  }
0x1021   : > { %3740 = vmatprep.subr.bf16.mxu0 %v4202_v25  ;;  %v4222_v25 = vld [vmem:[#allocation10 + $0x18] sm:$0xff]  }
0x10c6   : > { %v2447_v63 = vpop.f32.mrf.mxu1 }
0x10c7   : > { %2678 = vrot.lane.b32.xlu0 %v2447_v63, %s4500_s1  ;;  %v4206_v63 = vld [vmem:[#allocation6 + $0xe8] sm:$0xff]  }
0x10c8   : > { %v3901_v0 = vpop.f32.mrf.mxu1 }
0x10c9   : > { %v4207_v0 = vld [vmem:[#allocation6 + $0xa8] sm:$0xff]  }
0x10ca   : > { %v2450_v2 = vpop.f32.mrf.mxu1 }
0x10cb   : > { %v4209_v2 = vld [vmem:[#allocation6 + $0xa0] sm:$0xff]  }
0x10cc   : > { %v3902_v4 = vpop.f32.mrf.mxu1 }
0x10cd   : > { %v4210_v4 = vld [vmem:[#allocation6 + $0xd8] sm:$0xff]  }
0x10ce   : > { %v2559_v5 = vpop.f32.mrf.mxu1 }
0x10cf   : > { %2682 = vrot.lane.b32.xlu1 %v2559_v5, %s4498_s10  ;;  %v4211_v5 = vld [vmem:[#allocation6 + $0x98] sm:$0xff]  }
0x10d0   : > { %v3913_v7 = vpop.f32.mrf.mxu1 }
0x10d1   : > { %v4212_v7 = vld [vmem:[#allocation6 + $0xd0] sm:$0xff]  }
0x10d2   : > { %v2562_v8 = vpop.f32.mrf.mxu1 }
0x10d3   : > { %v4213_v8 = vld [vmem:[#allocation6 + $0x90] sm:$0xff]  }
0x10d4   : > { %v3914_v9 = vpop.f32.mrf.mxu1 }
0x10d5   : > { %v4214_v9 = vld [vmem:[#allocation6 + $0xc8] sm:$0xff]  }
0x10d6   : > { %v2671_v10 = vpop.f32.mrf.mxu1 }
0x10d7   : > { %2686 = vrot.lane.b32.xlu0 %v2671_v10, %s4499_s29  ;;  %v4215_v10 = vld [vmem:[#allocation6 + $0x88] sm:$0xff]  }
0x10d8   : > { %v3925_v11 = vpop.f32.mrf.mxu1 }
0x10d9   : > { %v4216_v11 = vld [vmem:[#allocation6 + $0xc0] sm:$0xff]  }
0x10da   : > { %v2674_v13 = vpop.f32.mrf.mxu1 }
0x10db   : > { %v4217_v13 = vld [vmem:[#allocation6 + $0x80] sm:$0xff]  }
0x10dc   : > { %v3926_v14 = vpop.f32.mrf.mxu1 }
0x10dd   : > { %v3603_v14 = vld [vmem:[%s5179_s11 + $0x2] sm:$0x3] }
0x1139   : > { %v2679_v15 = vpop.permute.xlu0 %2678 }
0x113a   : > { %v2689_v17 = vsel %vm996_vm2, %v5084_v59, %v2679_v15  ;;  %v4178_v59 = vld [vmem:[#allocation4 + $0xf0] ss:$8 sps:$4 sm:$0xff]   ;;  %v2841_v15 = vrot.slane %v3603_v14, %v4833_v46 }
0x113b   : > { %2929 = vmatpush1.bf16.msra.mxu1 %v4178_v59 }
0x113c   : > { %2930 = vmatprep.subr.bf16.mxu1 %v4183_v12 }
0x113f   : > { %2931 = vmatpush1.bf16.msra.mxu1 %v4181_v28 }
0x1140   : > { %2932 = vmatprep.subr.bf16.mxu1 %v4186_v33 }
0x1141   : > { %v2683_v16 = vpop.permute.xlu1 %2682 }
0x1142   : > { %v2690_v18 = vsel %vm1457_vm4, %v2689_v17, %v2683_v16  ;;  %v2845_v16 = vrot.slane %v3603_v14, %v4830_v45 }
0x1143   : > { %2933 = vmatpush1.bf16.msra.mxu1 %v4184_v34 }
0x1144   : > { %2934 = vmatprep.subr.bf16.mxu1 %v4189_v35 }
0x1149   : > { %v2687_v55 = vpop.permute.xlu0 %2686 }
0x114a   : > { %v2691_v39 = vsel %vm1459_vm5, %v2690_v18, %v2687_v55 }
0x114b   : > { %v2692_v19 = vpack.c.bf16 %v2691_v39, %v2691_v39 }
0x114d   : > { %3944 = vmatmul.mubr.bf16.vlgmr.msra.gmra.mxu0 %v2692_v19 }
0x114e   : > { %3741 = vmatpush3.bf16.msra.mxu0 %v4203_v49  ;;  %v4223_v49 = vld [vmem:[#allocation10 + $0x10] sm:$0xff]  }
0x114f   : > { %3742 = vmatprep.subr.bf16.mxu0 %v4204_v22 }
0x1152   : > { %3743 = vmatpush3.bf16.msra.mxu0 %v4205_v62 }
0x1153   : > { %3744 = vmatprep.subr.bf16.mxu0 %v4206_v63  ;;  %v3205_v63 = vld [vmem:[#allocation12] sm:$0x1] }
0x1156   : > { %3745 = vmatpush3.bf16.msra.mxu0 %v4207_v0 }
0x1157   : > { %3746 = vmatprep.subr.bf16.mxu0 %v4208_v1 }
0x115a   : > { %3747 = vmatpush3.bf16.msra.mxu0 %v4209_v2 }
0x115b   : > { %3748 = vmatprep.subr.bf16.mxu0 %v4210_v4 }
0x115e   : > { %3749 = vmatpush3.bf16.msra.mxu0 %v4211_v5 }
0x115f   : > { %3750 = vmatprep.subr.bf16.mxu0 %v4212_v7 }
0x1162   : > { %3751 = vmatpush3.bf16.msra.mxu0 %v4213_v8 }
0x1163   : > { %3752 = vmatprep.subr.bf16.mxu0 %v4214_v9 }
0x1166   : > { %3753 = vmatpush3.bf16.msra.mxu0 %v4215_v10 }
0x1167   : > { %3754 = vmatprep.subr.bf16.mxu0 %v4216_v11 }
0x116a   : > { %3755 = vmatpush3.bf16.msra.mxu0 %v4217_v13 }
0x120d   : > { %v2781_v21 = vpop.f32.mrf.mxu0 }
0x120e   : > { %v2782_v23 = vadd.f32 %v3590_v20, %v2781_v21 }
0x120f   : > { %v3945_v24 = vpop.f32.mrf.mxu0 }
0x1210   : > { %v2787_v26 = vadd.f32 %v2782_v23, %v5032_v6  ;;  %v4187_v6 = vld [vmem:[#allocation4 + $0xc0] ss:$8 sps:$4 sm:$0xff]  }
0x1211   : > { %v2784_v42 = vpop.f32.mrf.mxu0  ;;  %2935 = vmatpush1.bf16.msra.mxu1 %v4187_v6 }
0x1212   : > { %2792 = vadd.xlane.f32.xlu1 %v2787_v26  ;;  %2936 = vmatprep.subr.bf16.mxu1 %v4192_v36  ;;  %v4218_v36 = vld [vmem:[#allocation10 + $0x38] sm:$0xff]  }
0x1213   : > { %v3946_v43 = vpop.f32.mrf.mxu0 }
0x1215   : > { %2937 = vmatpush1.bf16.msra.mxu1 %v4190_v37  ;;  %v4219_v37 = vld [vmem:[#allocation10 + $0x30] sm:$0xff]  }
0x1216   : > { %2938 = vmatprep.subr.bf16.mxu1 %v4195_v38 }
0x1219   : > { %2939 = vmatpush1.bf16.msra.mxu1 %v4193_v40 }
0x121a   : > { %2940 = vmatprep.subr.bf16.mxu1 %v4198_v41 }
0x121d   : > { %2941 = vmatpush1.bf16.msra.mxu1 %v4196_v44 }
0x121e   : > { %2942 = vmatprep.subr.bf16.mxu1 %v4201_v47  ;;  %v4220_v47 = vld [vmem:[#allocation10 + $0x28] sm:$0xff]  }
0x1221   : > { %2943 = vmatpush1.bf16.msra.mxu1 %v4199_v48  ;;  %v4221_v48 = vld [vmem:[#allocation10 + $0x20] sm:$0xff]  }
0x1222   : > { %3947 = vmatprep.subr.bf16.mxu1 %v4495_v3 }
0x129b   : > { %v2793_v29 = vpop.xlane.xlu1 %2792 }
0x129c   : > { %v2794_v30 = vmul.f32 0.0078125, %v2793_v29 }
0x129e   : > { %v2795_v31 = vsub.f32 %v2787_v26, %v2794_v30  ;;  %v3621_v30 = vld [vmem:[%s5181_s13 + $0x1] ss:$0 sm:$0xff] }
0x12a0   : > { %v2796_v32 = vmul.f32 %v2795_v31, %v2795_v31 }
0x12a2   : > { %2797 = vadd.xlane.f32.xlu0 %v2796_v32 }
0x132b   : > { %v2798_v50 = vpop.xlane.xlu0 %2797 }
0x132c   : > { %v2799_v51 = vmul.f32 0.0078125, %v2798_v50  ;;  %v4224_v50 = vld [vmem:[#allocation10 + $0x8] sm:$0xff]  }
0x132e   : > { %v2800_v52 = vadd.f32 1e-12, %v2799_v51  ;;  %v4225_v51 = vld [vmem:[#allocation10] sm:$0xff]  }
0x1330   : > { %4268 = vrsqrt.f32 %v2800_v52 }
0x133d   : > { %v4269_v53 = vpop.eup %4268 }
0x133e   : > { %v2802_v56 = vmul.f32 %v4269_v53, %v2795_v31 }
0x1340   : > { %v2809_v58 = vmul.f32 %v3601_v54, %v2802_v56 }
0x1342   : > { %v5139_v60 = vadd.f32 %v3602_v57, %v2809_v58  ;;  %v3638_v57 = vld [vmem:[#allocation7 + $0x1] ss:$0 sm:$0xff] }
0x1344   : > { %v2834_v61 = vpack.c.bf16 %v5139_v60, %v5139_v60 }
0x1346   : > { %2961 = vmatmul.mubr.bf16.vlgmr.msra.gmra.mxu1 %v2834_v61 }
0x1347   : > { %3963 = vmatprep.mubr.msk.bf16.mxu1 %vm4497_vm0, %v4495_v3  ;;  %3948 = vmatpush3.bf16.msra.mxu1 %v4218_v36 }
0x1348   : > { %3949 = vmatprep.subr.bf16.mxu1 %v4495_v3 }
0x134b   : > { %3950 = vmatpush3.bf16.msra.mxu1 %v4219_v37 }
0x134c   : > { %3951 = vmatprep.subr.bf16.mxu1 %v4495_v3 }
0x134f   : > { %3952 = vmatpush3.bf16.msra.mxu1 %v4220_v47 }
0x1350   : > { %3953 = vmatprep.subr.bf16.mxu1 %v4495_v3 }
0x1353   : > { %3954 = vmatpush3.bf16.msra.mxu1 %v4221_v48 }
0x1354   : > { %3955 = vmatprep.subr.bf16.mxu1 %v4495_v3 }
0x1357   : > { %3956 = vmatpush3.bf16.msra.mxu1 %v4222_v25 }
0x1358   : > { %3957 = vmatprep.subr.bf16.mxu1 %v4495_v3 }
0x135b   : > { %3958 = vmatpush3.bf16.msra.mxu1 %v4223_v49 }
0x135c   : > { %3959 = vmatprep.subr.bf16.mxu1 %v4495_v3 }
0x135f   : > { %3960 = vmatpush3.bf16.msra.mxu1 %v4224_v50 }
0x1360   : > { %3961 = vmatprep.subr.bf16.mxu1 %v4495_v3 }
0x1363   : > { %3962 = vmatpush3.bf16.msra.mxu1 %v4225_v51 }
0x1406   : > { %v2962_v17 = vpop.f32.mrf.mxu1 }
0x1407   : > { %v2963_v18 = vadd.f32 %v2962_v17, %v2841_v15 }
0x1408   : > { %v2964_v55 = vpop.f32.mrf.mxu1 }
0x1409   : > { %v2971_v39 = vmul.f32 0.70710677, %v2963_v18  ;;  %v2965_v19 = vadd.f32 %v2964_v55, %v2845_v16  ;;  %v2969_v43 = vmul.f32 0.5, %v2963_v18 }
0x140a   : > { %v2966_v20 = vpop.f32.mrf.mxu1 }
0x140b   : > { %4270 = verf.f32 %v2971_v39  ;;  %v2972_v21 = vmul.f32 0.70710677, %v2965_v19  ;;  %v2970_v59 = vmul.f32 0.5, %v2965_v19 }
0x140c   : > { %v2967_v23 = vpop.f32.mrf.mxu1 }
0x140d   : > { %4272 = verf.f32 %v2972_v21 }
0x1418   : > { %v4271_v24 = vpop.eup %4270 }
0x1419   : > { %v2975_v26 = vadd.f32 1.0, %v4271_v24 }
0x141a   : > { %v4273_v42 = vpop.eup %4272 }
0x141b   : > { %v2976_v27 = vadd.f32 1.0, %v4273_v42  ;;  %v2977_v12 = vmul.f32 %v2975_v26, %v2969_v43 }
0x141d   : > { %v2978_v46 = vmul.f32 %v2976_v27, %v2970_v59  ;;  %v3012_v45 = vpack.c.bf16 %v2977_v12, %v2977_v12 }
0x141f   : > { %v3013_v28 = vpack.c.bf16 %v2978_v46, %v2978_v46 }
0x1421   : > { %3150 = vmatprep.mubr.bf16.mxu0 %v3013_v28 }
0x1422   : > { %3151 = vmatmul.mubr.bf16.vlgmr.msra.gmra.mxu0 %v3012_v45 }
0x14e2   : > { %v3756_v29 = vpop.f32.mrf.mxu0 }
0x14e4   : > { %v3757_v31 = vpop.f32.mrf.mxu0 }
0x14e5   : > { %v3758_v32 = vadd.f32 %v3757_v31, %v3756_v29 }
0x14e6   : > { %v3759_v33 = vpop.f32.mrf.mxu0 }
0x14e7   : > { %v3153_v34 = vadd.f32 %v3758_v32, %v3621_v30 }
0x14e8   : > { %v3760_v6 = vpop.f32.mrf.mxu0 }
0x14e9   : > { %v3158_v35 = vadd.f32 %v3153_v34, %v5139_v60  ;;  %v3639_v60 = vld [vmem:[#allocation9 + $0x1] ss:$0 sm:$0xff] }
0x14eb   : > { %3163 = vadd.xlane.f32.xlu0 %v3158_v35 }
0x1574   : > { %v3164_v38 = vpop.xlane.xlu0 %3163 }
0x1575   : > { %v3165_v40 = vmul.f32 0.0078125, %v3164_v38 }
0x1577   : > { %v3166_v41 = vsub.f32 %v3158_v35, %v3165_v40 }
0x1579   : > { %v3167_v44 = vmul.f32 %v3166_v41, %v3166_v41 }
0x157b   : > { %3168 = vadd.xlane.f32.xlu1 %v3167_v44 }
0x1604   : > { %v3169_v52 = vpop.xlane.xlu1 %3168 }
0x1605   : > { %v3170_v53 = vmul.f32 0.0078125, %v3169_v52 }
0x1607   : > { %v3171_v54 = vadd.f32 1e-12, %v3170_v53 }
0x1609   : > { %4274 = vrsqrt.f32 %v3171_v54 }
0x1616   : > { %v4275_v56 = vpop.eup %4274 }
0x1617   : > { %v3173_v58 = vmul.f32 %v4275_v56, %v3166_v41 }
0x1619   : > { %v3180_v61 = vmul.f32 %v3638_v57, %v3173_v58 }
0x161b   : > { %v3187_v22 = vadd.f32 %v3639_v60, %v3180_v61 }
0x161d   : > { %v3204_v62 = vpack.c.bf16 %v3187_v22, %v3187_v22 }
0x161f   : > { %3964 = vmatmul.mubr.bf16.vlgmr.msra.gmra.mxu1 %v3204_v62 }
0x16df   : > { %v3288_v0 = vpop.f32.mrf.mxu1 }
0x16e0   : > { %v3289_v3 = vadd.f32 %v3288_v0, %v3205_v63 }
0x16e1   : > { %v3965_v1 = vpop.f32.mrf.mxu1 }
0x16e2   : > { %3294 = vst [vmem:[%s685_s19] sm:$0x1] %v3289_v3 }
0x16e3   : > { %v3291_v2 = vpop.f32.mrf.mxu1 }
0x16e5   : > { %v3966_v4 = vpop.f32.mrf.mxu1 }
0x16e6 PF: > { %s32_s27 = sadd.s32 1, %s4480_s27  }
0x16e7   : > { %p29_p2 = scmp.ge.s32.totalorder %s32_s27, 4  }
0x16e9   :  { %31 = sbr.rel (!%p29_p2) target bundleno = 9 (0x9), region = 166 }
0x16ee   :  { %3312 = vsyncpa [#allocation3], 1 }
0x16ef   :  { %3314 = vsyncpa [#allocation3 + $0x1], 1 }
0x16f0   :  { %3315 = vsyncpa [#allocation5], 1 }
0x16f1   :  { %3316 = vsyncpa [#allocation8], 1 }
0x16f2   :  { %3317 = vsyncpa [#allocation11], 1 }

// kernel: autoencoder_forward.3
= control target key start
LH: loop header
LB: loop body
LE: loop exit
PB: predicated region body
PF: predicated region fallthrough
CT: control target
= control target key end

     0   :  { %s7505_s0 = inlined_call_operand.vmem [shape: f32[2,8,128], index: 0, kind: input, shape index: {}]   ;;  %s7506_s1 = inlined_call_operand.vmem [shape: f32[2,8,8], index: 1, kind: input, shape index: {}]   ;;  %s7507_s2 = inlined_call_operand.vmem [shape: f32[2,1,128], index: 2, kind: input, shape index: {}]   ;;  %s7508_s3 = inlined_call_operand.vmem [shape: s32[2,8,1], index: 3, kind: input, shape index: {}]   ;;  %s7509_s4 = inlined_call_operand.hbm [shape: f32[1,128], index: 4, kind: input, shape index: {}]   ;;  %s7510_s5 = inlined_call_operand.hbm [shape: f32[1,128], index: 5, kind: input, shape index: {}]   ;;  %s7511_s6 = inlined_call_operand.vmem [shape: bf16[2,128,384], index: 6, kind: input, shape index: {}]   ;;  %s7512_s7 = inlined_call_operand.vmem [shape: f32[2,1,384], index: 7, kind: input, shape index: {}]   ;;  %s7513_s8 = inlined_call_operand.vmem [shape: bf16[2,128,128], index: 8, kind: input, shape index: {}]   ;;  %s7514_s9 = inlined_call_operand.hbm [shape: f32[2,1,128], index: 9, kind: input, shape index: {}]   ;;  %s7515_s10 = inlined_call_operand.hbm [shape: f32[2,1,128], index: 10, kind: input, shape index: {}]   ;;  %s7516_s11 = inlined_call_operand.hbm [shape: f32[2,1,128], index: 11, kind: input, shape index: {}]   ;;  %s7517_s12 = inlined_call_operand.vmem [shape: bf16[2,128,128], index: 12, kind: input, shape index: {}]   ;;  %s7518_s13 = inlined_call_operand.hbm [shape: f32[2,1,128], index: 13, kind: input, shape index: {}]   ;;  %s7519_s14 = inlined_call_operand.vmem [shape: bf16[2,128,128], index: 14, kind: input, shape index: {}]   ;;  %s7520_s15 = inlined_call_operand.hbm [shape: f32[2,1,128], index: 15, kind: input, shape index: {}]   ;;  %s7521_s16 = inlined_call_operand.hbm [shape: f32[2,1,128], index: 16, kind: input, shape index: {}]   ;;  %s7522_s17 = inlined_call_operand.hbm [shape: f32[2,1,128], index: 17, kind: input, shape index: {}]   ;;  %s7523_s18 = inlined_call_operand.vmem [shape: bf16[2,128,256], index: 18, kind: input, shape index: {}]   ;;  %s7524_s19 = inlined_call_operand.vmem [shape: f32[2,1,256], index: 19, kind: input, shape index: {}]   ;;  %s7525_s20 = inlined_call_operand.vmem [shape: bf16[2,256,128], index: 20, kind: input, shape index: {}]   ;;  %s7526_s21 = inlined_call_operand.hbm [shape: f32[2,1,128], index: 21, kind: input, shape index: {}]   ;;  %s7527_s22 = inlined_call_operand.hbm [shape: f32[2,1,128], index: 22, kind: input, shape index: {}]   ;;  %s7528_s23 = inlined_call_operand.hbm [shape: f32[2,1,128], index: 23, kind: input, shape index: {}]   ;;  %s7529_s24 = inlined_call_operand.hbm [shape: bf16[128,256], index: 24, kind: input, shape index: {}]   ;;  %s7530_s25 = inlined_call_operand.hbm [shape: f32[1,256], index: 25, kind: input, shape index: {}]   ;;  %s7531_s26 = inlined_call_operand.hbm [shape: f32[2,8,256], index: 26, kind: output, shape index: {0}]   ;;  %s7532_s27 = inlined_call_operand.vmem [shape: f32[2,8,1], index: 27, kind: output, shape index: {1}]  }
   0x1   :  { %7555 = sst [smem:[#allocation41_spill]] %s7505_s0 }
   0x2   :  { %7556 = sst [smem:[#allocation42_spill]] %s7506_s1 }
   0x3   :  { %7557 = sst [smem:[#allocation43_spill]] %s7507_s2 }
   0x4   :  { %7558 = sst [smem:[#allocation44_spill]] %s7508_s3 }
   0x5   :  { %7559 = sst [smem:[#allocation45_spill]] %s7509_s4 }
   0x6   :  { %7560 = sst [smem:[#allocation46_spill]] %s7510_s5 }
   0x7   :  { %7561 = sst [smem:[#allocation47_spill]] %s7511_s6 }
   0x8   :  { %7562 = sst [smem:[#allocation48_spill]] %s7512_s7 }
   0x9   :  { %7563 = sst [smem:[#allocation49_spill]] %s7513_s8 }
   0xa   :  { %7564 = sst [smem:[#allocation50_spill]] %s7514_s9 }
   0xb   :  { %7565 = sst [smem:[#allocation51_spill]] %s7515_s10 }
   0xc   :  { %7566 = sst [smem:[#allocation52_spill]] %s7516_s11 }
   0xd   :  { %7567 = sst [smem:[#allocation53_spill]] %s7518_s13 }
   0xe   :  { %7568 = sst [smem:[#allocation54_spill]] %s7520_s15 }
   0xf   :  { %7569 = sst [smem:[#allocation55_spill]] %s7531_s26 }
  0x10   :  { %7570 = sst [smem:[#allocation56_spill]] %s7532_s27 }
  0x11   :  { %33 = vsyncpa [#allocation3], 0 }
  0x12   :  { %34 = vsyncpa [#allocation6], 0 }
  0x13   :  { %35 = vsyncpa [#allocation9], 0 }
  0x14   :  { %36 = vsyncpa [#allocation12], 0 }
  0x15   :  { %37 = vsyncpa [#allocation15], 0 }
  0x16   :  { %38 = vsyncpa [#allocation18], 0 }
  0x17   :  { %39 = vsyncpa [#allocation21], 0 }
  0x18   :  { %40 = vsyncpa [#allocation24], 0 }
  0x19   :  { %41 = vsyncpa [#allocation4], 0 }
  0x1a   :  { %43 = vsyncpa [#allocation4 + $0x1], 0  ;;  %s6409_s7 = smov 0   ;;  %s6411_s4 = smov 0  }
  0x1b   :  { %s6413_s8 = smov 0   ;;  %s6415_s30 = smov 0  }
  0x1c LB: > { %7571 = sst [smem:[#allocation35_spill]] %s6230_s7  ;;  %s6430_s9 = sadd.s32 4294967295, %s6242_s30   ;;  %s6242_s30 = sphi %s6415_s30, %s7621_s30   ;;  %s6238_s8 = sphi %s6413_s8, %s7623_s8   ;;  %s6234_s4 = sphi %s6411_s4, %s7625_s4   ;;  %s6230_s7 = sphi %s6409_s7, %s7624_s7  }
  0x1d   : > { %7572 = sst [smem:[#allocation36_spill]] %s6238_s8  ;;  %s4529_s5 = sadd.s32 4294967294, %s6242_s30  }
  0x1e   : > { %7573 = sst [smem:[#allocation37_spill]] %s6242_s30  ;;  %s6434_s28 = sadd.s32 1, %s6242_s30  }
  0x1f   : > { %7574 = sst [smem:[#allocation38_spill]] %s6434_s28  ;;  %s622_s0 = sadd.s32 1, %s6238_s8 }
  0x20   : > { %s619_s10 = ssub.s32 %s6242_s30, %s6434_s28  ;;  %p632_p0 = scmp.ne.s32.totalorder %s6238_s8, %s6234_s4 }
  0x21   : > { %p620_p1 = scmp.eq.s32.totalorder %s619_s10, 0  ;;  %p633_p2 = scmp.eq.s32.totalorder %s6430_s9, 1 }
  0x22   : > { %p638_p3 = scmp.ne.s32.totalorder %s6234_s4, %s6230_s7  ;;  %p639_p4 = scmp.eq.s32.totalorder %s4529_s5, 1 }
  0x23   : > { %s6445_s29 = scalar_select %p620_p1, %s6238_s8, %s622_s0  }
  0x24   : > { %p6447_p5 = por %p633_p2, %p632_p0  ;;  %p6451_p6 = por %p639_p4, %p638_p3 }
  0x25   : > { %7575 = sst [smem:[#allocation39_spill]] %s6445_s29  ;;  %p4530_p7 = scmp.ge.s32.totalorder %s6242_s30, 1 }
  0x26   : > { %s7577_s6 = scalar_select %p6451_p6, 1, 0 }
  0x27   : > { %p672_p8 = scmp.lt.s32.totalorder %s6242_s30, 3  ;;  %p7542_p9 = scmp.eq.s32.totalorder %s6430_s9, 0 }
  0x28   : > { %7578 = sst [smem:[#allocation40_spill]] %s7577_s6  ;;  %s6244_s2 = smov [#allocation5]  }
  0x29   : > { %p6458_p10 = pnand %p4530_p7, %p672_p8  ;;  %s696_s3 = sshll.u32 %s6244_s2, 4  ;;  %s697_s3 = int_to_ptr.vmem [resolvable:$true] %s696_s3 }
  0x2a   : > { %s6245_s0 = smov [#allocation8]   ;;  %s6246_s29 = smov [#allocation11]  }
  0x2b   : > { %p5375_p11 = pneg %p6458_p10  ;;  %s728_s10 = sshll.u32 %s6245_s0, 4  ;;  %s6470_s10 = int_to_ptr.vmem [resolvable:$true] %s728_s10 }
  0x2c   : > { %s757_s8 = sshll.u32 %s6246_s29, 4  ;;  %s5797_s2 = scalar_lea.vmem %s697_s3, 16  ;;  %s758_s8 = int_to_ptr.vmem [resolvable:$true] %s757_s8 }
  0x2d   : > { %p6466_p12 = pnand %p7542_p9, %p5375_p11  ;;  %p5798_p0 = scmp.ne.s32.totalorder %s697_s3, %s5797_s2 }
  0x2e   : > { %s5804_s6 = scalar_lea.vmem %s697_s3, 32  ;;  %p5805_p3 = scmp.lt.s32.totalorder %s697_s3, %s697_s3 }
  0x2f   : > { %p6474_p13 = pneg %p6466_p12  ;;  %p5806_p4 = scmp.lt.s32.totalorder %s5804_s6, %s5797_s2 }
  0x31   : > { %p5800_p1 = pnand %p5798_p0, %p6474_p13  ;;  %p5807_p7 = por %p5806_p4, %p5805_p3 }
  0x33   : > { %p5801_p2 = pneg %p5800_p1 }
  0x35   : > { %p5808_p8 = pnand %p5807_p7, %p5801_p2 }
  0x37   : > { %5811 = shalt.err (!%p5808_p8)
}
  0x38   : > { %s7582_s7 = sld [smem:[#allocation46_spill]]  ;;  %s5823_s30 = scalar_lea.vmem %s6470_s10, 32 }
  0x39   : > { %p5824_p11 = scmp.ne.s32.totalorder %s6470_s10, %s5823_s30  ;;  %p5831_p9 = scmp.lt.s32.totalorder %s6470_s10, %s6470_s10 }
  0x3a   : > { %p5832_p3 = scmp.lt.s32.totalorder %s5823_s30, %s5823_s30 }
  0x3b   : > { %p5826_p0 = pnand %p5824_p11, %p6474_p13 }
  0x3c   : > { %p5833_p2 = por %p5832_p3, %p5831_p9 }
  0x3d   : > { %p5827_p1 = pneg %p5826_p0 }
  0x3e   : > { %5381 = dma.hbm_to_vmem [thread:$0]  (!%p6466_p12), %s7582_s7, 16, %s697_s3, [#allocation6]  }
  0x3f   : > { %p5834_p4 = pnand %p5833_p2, %p5827_p1 }
  0x41   : > { %5837 = shalt.err (!%p5834_p4)
}
  0x42   : > { %s7544_s6 = smov 16   ;;  %s7546_s2 = smov 1  }
  0x43   : > { %s7583_s29 = sld [smem:[#allocation51_spill]]  ;;  %s5849_s0 = scalar_lea.vmem %s758_s8, 32 }
  0x44   : > { %p5850_p7 = scmp.ne.s32.totalorder %s758_s8, %s5849_s0  ;;  %p5857_p11 = scmp.lt.s32.totalorder %s758_s8, %s758_s8 }
  0x45   : > { %p5858_p0 = scmp.lt.s32.totalorder %s5849_s0, %s5849_s0 }
  0x46   : > { %p5852_p9 = pnand %p5850_p7, %p6474_p13 }
  0x47   : > { %p5859_p1 = por %p5858_p0, %p5857_p11 }
  0x48   : > { %p5853_p8 = pneg %p5852_p9 }
  0x49   : > { %5387 = dma.hbm_to_vmem [thread:$0]  (!%p6466_p12), %s7583_s29, 32, %s6470_s10, [#allocation9], %s7544_s6, %s7544_s6, %s7546_s2  }
  0x4a   : > { %p5860_p3 = pnand %p5859_p1, %p5853_p8 }
  0x4c   : > { %5863 = shalt.err (!%p5860_p3)
}
  0x4d   : > { %s7584_s13 = sld [smem:[#allocation53_spill]]  ;;  %s6249_s10 = smov [#allocation14]  }
  0x4e   : > { %s786_s7 = sshll.u32 %s6249_s10, 4  ;;  %s6250_s3 = smov [#allocation17]   ;;  %s787_s7 = int_to_ptr.vmem [resolvable:$true] %s786_s7 }
  0x4f   : > { %s821_s29 = sshll.u32 %s6250_s3, 4  ;;  %s5875_s26 = scalar_lea.vmem %s787_s7, 32  ;;  %s822_s29 = int_to_ptr.vmem [resolvable:$true] %s821_s29 }
  0x50   : > { %p5876_p2 = scmp.ne.s32.totalorder %s787_s7, %s5875_s26  ;;  %p5883_p9 = scmp.lt.s32.totalorder %s787_s7, %s787_s7 }
  0x51   : > { %p5884_p8 = scmp.lt.s32.totalorder %s5875_s26, %s5875_s26 }
  0x52   : > { %p5878_p4 = pnand %p5876_p2, %p6474_p13 }
  0x53   : > { %5393 = dma.hbm_to_vmem [thread:$0]  (!%p6466_p12), %s7584_s13, 32, %s758_s8, [#allocation12], %s7544_s6, %s7544_s6, %s7546_s2  }
  0x54   : > { %p5879_p7 = pneg %p5878_p4  ;;  %p5885_p11 = por %p5884_p8, %p5883_p9 }
  0x56   : > { %p5886_p0 = pnand %p5885_p11, %p5879_p7 }
  0x58   : > { %5889 = shalt.err (!%p5886_p0)
}
  0x59   : > { %5399 = dma.hbm_to_vmem [thread:$0]  (!%p6466_p12), %s7521_s16, 32, %s787_s7, [#allocation15], %s7544_s6, %s7544_s6, %s7546_s2  }
  0x5a   : > { %s5901_s0 = scalar_lea.vmem %s822_s29, 32  ;;  %p5909_p4 = scmp.lt.s32.totalorder %s822_s29, %s822_s29 }
  0x5b   : > { %p5902_p1 = scmp.ne.s32.totalorder %s822_s29, %s5901_s0  ;;  %p5910_p9 = scmp.lt.s32.totalorder %s5901_s0, %s5901_s0 }
  0x5d   : > { %p5904_p3 = pnand %p5902_p1, %p6474_p13  ;;  %p5911_p7 = por %p5910_p9, %p5909_p4 }
  0x5f   : > { %p5905_p2 = pneg %p5904_p3 }
  0x61   : > { %p5912_p8 = pnand %p5911_p7, %p5905_p2 }
  0x63   : > { %5915 = shalt.err (!%p5912_p8)
}
  0x64   : > { %5405 = dma.hbm_to_vmem [thread:$0]  (!%p6466_p12), %s7526_s21, 32, %s822_s29, [#allocation18], %s7544_s6, %s7544_s6, %s7546_s2  }
  0x65   : > { %s6251_s10 = smov [#allocation20]   ;;  %s6252_s3 = smov [#allocation2]  }
  0x66   : > { %s847_s7 = sshll.u32 %s6251_s10, 4  ;;  %s685_s27 = sshll.u32 %s6252_s3, 4  ;;  %s848_s7 = int_to_ptr.vmem [resolvable:$true] %s847_s7  ;;  %s686_s27 = int_to_ptr.vmem [resolvable:$true] %s685_s27 }
  0x67   : > { %s5927_s8 = scalar_lea.vmem %s848_s7, 32  ;;  %p5935_p3 = scmp.lt.s32.totalorder %s848_s7, %s848_s7 }
  0x68   : > { %p5928_p11 = scmp.ne.s32.totalorder %s848_s7, %s5927_s8  ;;  %p5936_p2 = scmp.lt.s32.totalorder %s5927_s8, %s5927_s8 }
  0x6a   : > { %p5930_p0 = pnand %p5928_p11, %p6474_p13  ;;  %p5937_p4 = por %p5936_p2, %p5935_p3 }
  0x6c   : > { %p5931_p1 = pneg %p5930_p0 }
  0x6e   : > { %p5938_p9 = pnand %p5937_p4, %p5931_p1 }
  0x70   : > { %5941 = shalt.err (!%p5938_p9)
}
  0x71   : > { %5411 = dma.hbm_to_vmem [thread:$0]  (!%p6466_p12), %s7528_s23, 32, %s848_s7, [#allocation21], %s7544_s6, %s7544_s6, %s7546_s2  }
  0x72   : > { %s5953_s26 = scalar_lea.vmem %s686_s27, 16  ;;  %s5960_s30 = scalar_lea.vmem %s686_s27, 32 }
  0x73   : > { %p5954_p7 = scmp.ne.s32.totalorder %s686_s27, %s5953_s26  ;;  %p5961_p0 = scmp.lt.s32.totalorder %s686_s27, %s686_s27 }
  0x74   : > { %p5962_p1 = scmp.lt.s32.totalorder %s5960_s30, %s5953_s26 }
  0x75   : > { %p5956_p8 = pnand %p5954_p7, %p6474_p13 }
  0x76   : > { %p5963_p3 = por %p5962_p1, %p5961_p0 }
  0x77   : > { %p5957_p11 = pneg %p5956_p8 }
  0x79   : > { %p5964_p2 = pnand %p5963_p3, %p5957_p11 }
  0x7b   : > { %5967 = shalt.err (!%p5964_p2)
}
  0x7c   : > { %s7585_s8 = sld [smem:[#allocation45_spill]]  ;;  %s6253_s7 = smov [#allocation7]  }
  0x7d   : > { %s715_s29 = sshll.u32 %s6253_s7, 4  ;;  %s6254_s0 = smov [#allocation10]   ;;  %s716_s29 = int_to_ptr.vmem [resolvable:$true] %s715_s29 }
  0x7e   : > { %s741_s6 = sshll.u32 %s6254_s0, 4  ;;  %s5979_s2 = scalar_lea.vmem %s716_s29, 32  ;;  %s742_s6 = int_to_ptr.vmem [resolvable:$true] %s741_s6 }
  0x7f   : > { %p5980_p4 = scmp.ne.s32.totalorder %s716_s29, %s5979_s2  ;;  %p5987_p8 = scmp.lt.s32.totalorder %s716_s29, %s716_s29 }
  0x80   : > { %p5988_p11 = scmp.lt.s32.totalorder %s5979_s2, %s5979_s2 }
  0x81   : > { %p5982_p9 = pnand %p5980_p4, %p6474_p13 }
  0x82   : > { %5378 = dma.hbm_to_vmem [thread:$0]  (!%p6466_p12), %s7585_s8, 16, %s686_s27, [#allocation3]  }
  0x83   : > { %p5983_p7 = pneg %p5982_p9  ;;  %p5989_p0 = por %p5988_p11, %p5987_p8 }
  0x85   : > { %p5990_p1 = pnand %p5989_p0, %p5983_p7 }
  0x87   : > { %5993 = shalt.err (!%p5990_p1)
}
  0x88   : > { %s7586_s26 = smov 1   ;;  %s7587_s30 = smov 16  }
  0x89   : > { %s7588_s3 = sld [smem:[#allocation50_spill]]  ;;  %s6005_s8 = scalar_lea.vmem %s742_s6, 32 }
  0x8a   : > { %p6006_p3 = scmp.ne.s32.totalorder %s742_s6, %s6005_s8  ;;  %p6013_p9 = scmp.lt.s32.totalorder %s742_s6, %s742_s6 }
  0x8b   : > { %p6014_p8 = scmp.lt.s32.totalorder %s6005_s8, %s6005_s8 }
  0x8c   : > { %p6008_p2 = pnand %p6006_p3, %p6474_p13 }
  0x8d   : > { %p6015_p7 = por %p6014_p8, %p6013_p9 }
  0x8e   : > { %p6009_p4 = pneg %p6008_p2 }
  0x8f   : > { %5384 = dma.hbm_to_vmem [thread:$0]  (!%p6466_p12), %s7588_s3, 32, %s716_s29, [#allocation6], %s7587_s30, %s7587_s30, %s7586_s26  }
  0x90   : > { %p6016_p11 = pnand %p6015_p7, %p6009_p4 }
  0x92   : > { %6019 = shalt.err (!%p6016_p11)
}
  0x93   : > { %s7589_s0 = sld [smem:[#allocation52_spill]]  ;;  %s6255_s29 = smov [#allocation13]  }
  0x94   : > { %s773_s27 = sshll.u32 %s6255_s29, 4  ;;  %s6256_s10 = smov [#allocation16]   ;;  %s774_s27 = int_to_ptr.vmem [resolvable:$true] %s773_s27 }
  0x95   : > { %s799_s3 = sshll.u32 %s6256_s10, 4  ;;  %s6031_s13 = scalar_lea.vmem %s774_s27, 32  ;;  %s800_s3 = int_to_ptr.vmem [resolvable:$true] %s799_s3 }
  0x96   : > { %p6032_p0 = scmp.ne.s32.totalorder %s774_s27, %s6031_s13  ;;  %p6039_p2 = scmp.lt.s32.totalorder %s774_s27, %s774_s27 }
  0x97   : > { %p6040_p4 = scmp.lt.s32.totalorder %s6031_s13, %s6031_s13 }
  0x98   : > { %p6034_p1 = pnand %p6032_p0, %p6474_p13 }
  0x99   : > { %5390 = dma.hbm_to_vmem [thread:$0]  (!%p6466_p12), %s7589_s0, 32, %s742_s6, [#allocation9], %s7587_s30, %s7587_s30, %s7586_s26  }
  0x9a   : > { %p6035_p3 = pneg %p6034_p1  ;;  %p6041_p9 = por %p6040_p4, %p6039_p2 }
  0x9c   : > { %p6042_p8 = pnand %p6041_p9, %p6035_p3 }
  0x9e   : > { %6045 = shalt.err (!%p6042_p8)
}
  0x9f   : > { %s7590_s15 = sld [smem:[#allocation54_spill]]  ;;  %s6057_s2 = scalar_lea.vmem %s800_s3, 32 }
  0xa0   : > { %p6058_p7 = scmp.ne.s32.totalorder %s800_s3, %s6057_s2  ;;  %p6065_p1 = scmp.lt.s32.totalorder %s800_s3, %s800_s3 }
  0xa1   : > { %p6066_p2 = scmp.lt.s32.totalorder %s6057_s2, %s6057_s2 }
  0xa2   : > { %p6060_p11 = pnand %p6058_p7, %p6474_p13 }
  0xa3   : > { %p6067_p3 = por %p6066_p2, %p6065_p1 }
  0xa4   : > { %p6061_p0 = pneg %p6060_p11 }
  0xa5   : > { %5396 = dma.hbm_to_vmem [thread:$0]  (!%p6466_p12), %s7590_s15, 32, %s774_s27, [#allocation12], %s7587_s30, %s7587_s30, %s7586_s26  }
  0xa6   : > { %p6068_p4 = pnand %p6067_p3, %p6061_p0 }
  0xa8   : > { %6071 = shalt.err (!%p6068_p4)
}
  0xa9   : > { %5402 = dma.hbm_to_vmem [thread:$0]  (!%p6466_p12), %s7522_s17, 32, %s800_s3, [#allocation15], %s7587_s30, %s7587_s30, %s7586_s26  }
  0xaa   : > { %s6257_s0 = smov [#allocation19]   ;;  %s6258_s27 = smov [#allocation22]  }
  0xab   : > { %s834_s29 = sshll.u32 %s6257_s0, 4  ;;  %s860_s10 = sshll.u32 %s6258_s27, 4  ;;  %s835_s29 = int_to_ptr.vmem [resolvable:$true] %s834_s29  ;;  %s861_s10 = int_to_ptr.vmem [resolvable:$true] %s860_s10 }
  0xac   : > { %s6083_s6 = scalar_lea.vmem %s835_s29, 32  ;;  %p6091_p11 = scmp.lt.s32.totalorder %s835_s29, %s835_s29 }
  0xad   : > { %p6084_p9 = scmp.ne.s32.totalorder %s835_s29, %s6083_s6  ;;  %p6092_p0 = scmp.lt.s32.totalorder %s6083_s6, %s6083_s6 }
  0xaf   : > { %p6086_p8 = pnand %p6084_p9, %p6474_p13  ;;  %p6093_p1 = por %p6092_p0, %p6091_p11 }
  0xb1   : > { %p6087_p7 = pneg %p6086_p8 }
  0xb3   : > { %p6094_p2 = pnand %p6093_p1, %p6087_p7 }
  0xb5   : > { %6097 = shalt.err (!%p6094_p2)
}
  0xb6   : > { %5408 = dma.hbm_to_vmem [thread:$0]  (!%p6466_p12), %s7527_s22, 32, %s835_s29, [#allocation18], %s7587_s30, %s7587_s30, %s7586_s26  }
  0xb7   : > { %s6109_s2 = scalar_lea.vmem %s861_s10, 2048  ;;  %p6117_p8 = scmp.lt.s32.totalorder %s861_s10, %s861_s10 }
  0xb8   : > { %p6110_p3 = scmp.ne.s32.totalorder %s861_s10, %s6109_s2  ;;  %p6118_p11 = scmp.lt.s32.totalorder %s6109_s2, %s6109_s2 }
  0xba   : > { %p6112_p4 = pnand %p6110_p3, %p6474_p13  ;;  %p6119_p7 = por %p6118_p11, %p6117_p8 }
  0xbc   : > { %p6113_p9 = pneg %p6112_p4 }
  0xbe   : > { %p6120_p0 = pnand %p6119_p7, %p6113_p9 }
  0xc0   : > { %6123 = shalt.err (!%p6120_p0)
}
  0xc1   : > { %s6259_s13 = smov 128   ;;  %s6260_s7 = smov 8  }
  0xc2   : > { %5414 = dma.hbm_to_vmem [thread:$0]  (!%p6466_p12), %s7529_s24, 2048, %s861_s10, [#allocation21], %s6259_s13, %s6259_s13, %s6260_s7  }
  0xc3   : > { %s6261_s26 = smov [#allocation23]  }
  0xc4   : > { %s874_s30 = sshll.u32 %s6261_s26, 4  ;;  %s875_s30 = int_to_ptr.vmem [resolvable:$true] %s874_s30 }
  0xc5   : > { %s6135_s29 = scalar_lea.vmem %s875_s30, 32  ;;  %p6143_p4 = scmp.lt.s32.totalorder %s875_s30, %s875_s30 }
  0xc6   : > { %p6136_p1 = scmp.ne.s32.totalorder %s875_s30, %s6135_s29  ;;  %p6144_p9 = scmp.lt.s32.totalorder %s6135_s29, %s6135_s29 }
  0xc8   : > { %p6138_p2 = pnand %p6136_p1, %p6474_p13  ;;  %p6145_p8 = por %p6144_p9, %p6143_p4 }
  0xca   : > { %p6139_p3 = pneg %p6138_p2 }
  0xcc   : > { %p6146_p11 = pnand %p6145_p8, %p6139_p3 }
  0xce   : > { %6149 = shalt.err (!%p6146_p11)
}
  0xcf   : > { %5417 = dma.hbm_to_vmem [thread:$0]  (!%p6466_p12), %s7530_s25, 32, %s875_s30, [#allocation24]  }
  0xd0   : > { %914 = sbr.rel (%p6458_p10) target bundleno = 6917 (0x1b05), region = 124  ;;  %p7591_p7 = scmp.eq.s32.totalorder (!%p6458_p10), %s6430_s9, 0 }
  0xd5   : > { %6193 = dma.done.wait (%p7591_p7), [#allocation3], 16   ;;  %p7592_p13 = pmov %p7591_p7 }
  0xd6   : > { %p7593_p0 = pmov %p7591_p7 }
  0xd7   : > { %6195 = vsyncadd (%p7592_p13), [#allocation3], 4294967280 }
  0xd8   : > { %6197 = dma.done.wait (%p7593_p0), [#allocation6], 48   ;;  %p7594_p1 = pmov %p7593_p0 }
  0xd9   : > { %p7595_p2 = pmov %p7593_p0 }
  0xda   : > { %6199 = vsyncadd (%p7594_p1), [#allocation6], 4294967248 }
  0xdb   : > { %6201 = dma.done.wait (%p7595_p2), [#allocation9], 64   ;;  %p7596_p12 = pmov %p7593_p0 }
  0xdc   : > { %p7597_p10 = pmov %p7593_p0 }
  0xdd   : > { %6203 = vsyncadd (%p7596_p12), [#allocation9], 4294967232 }
  0xde   : > { %6205 = dma.done.wait (%p7597_p10), [#allocation12], 64   ;;  %p7598_p3 = pmov %p7593_p0 }
  0xdf   : > { %p7599_p4 = pmov %p7593_p0 }
  0xe0   : > { %6207 = vsyncadd (%p7598_p3), [#allocation12], 4294967232 }
  0xe1   : > { %6209 = dma.done.wait (%p7599_p4), [#allocation15], 64   ;;  %p7600_p9 = pmov %p7593_p0 }
  0xe2   : > { %p7601_p8 = pmov %p7593_p0 }
  0xe3   : > { %6211 = vsyncadd (%p7600_p9), [#allocation15], 4294967232 }
  0xe4   : > { %6213 = dma.done.wait (%p7601_p8), [#allocation18], 64   ;;  %p7602_p11 = pmov %p7593_p0 }
  0xe5   : > { %p7603_p7 = pmov %p7593_p0 }
  0xe6   : > { %6215 = vsyncadd (%p7602_p11), [#allocation18], 4294967232 }
  0xe7   : > { %6217 = dma.done.wait (%p7603_p7), [#allocation21], 2080   ;;  %p7604_p13 = pmov %p7593_p0 }
  0xe9   : > { %6219 = vsyncadd (%p7604_p13), [#allocation21], 4294965216 }
  0xea   : > { %6221 = dma.done.wait (%p7593_p0), [#allocation24], 32   ;;  %p7605_p1 = pmov %p7593_p0 }
  0xeb   : > { %p1052_p2 = scmp.lt.s32.totalorder %s6430_s9, 1  ;;  %s7606_s8 = sld [smem:[#allocation41_spill]]  ;;  %v6262_v3 = vmov 0.0   ;;  %v6263_v22 = vmov 0   ;;  %vm6264_vm0 = vmmov 0   ;;  %v1155_v41 = vlaneseq }
  0xec   : > { %6223 = vsyncadd (%p7605_p1), [#allocation24], 4294967264  ;;  %s7607_s0 = sld [smem:[#allocation47_spill]]  ;;  %5061 = vmatprep.subr.bf16.mxu1 %v6262_v3  ;;  %1330 = vmatprep.mubr.bf16.mxu0 %v6263_v22  ;;  %v4566_v35 = vld [vmem:[#allocation2] ss:$0 sm:$0xff]  ;;  %vm1447_vm1 = vcmask 1043456  }
  0xed   : > { %s6647_s28 = scalar_select %p1052_p2, %s6430_s9, 1  ;;  %5077 = vmatprep.mubr.msk.bf16.mxu1 %vm6264_vm0, %v6262_v3  ;;  %5507 = vset.pattern.permute.xlu1 %v6263_v22  ;;  %v4567_v37 = vld [vmem:[#allocation5] ss:$0 sm:$0xff]  ;;  %v6752_v42 = vshrl.u32 %v1155_v41, 7  ;;  %vm1382_vm2 = vcmask 261120   ;;  %vm1431_vm3 = vcmask 64512  }
  0xee   : > { %5508 = vset.pattern.permute.xlu0 %v6263_v22  ;;  %s7608_s27 = sld [smem:[#allocation48_spill]]  ;;  %s7550_s26 = smov 64   ;;  %vm1843_vm4 = vcmask 523264   ;;  %vm1845_vm5 = vcmask 785408  }
  0xef   : > { %s6650_s11 = sshll.u32 %s6647_s28, 3  ;;  %v1165_v43 = vsub.s32 2, %v6752_v42  ;;  %v6759_v45 = vsub.s32 1, %v6752_v42  ;;  %v6762_v46 = vsub.s32 0, %v6752_v42  ;;  %s7552_s30 = smov 96  }
  0xf0   : > { %s7548_s29 = smov 32   ;;  %s7609_s5 = sld [smem:[#allocation42_spill]] }
  0xf1   : > { %s1055_s2 = scalar_lea.vmem %s7606_s8, %s6650_s11  ;;  %s7610_s13 = sld [smem:[#allocation49_spill]] }
  0xf2   : > { %v1072_v0 = vld [vmem:[%s1055_s2] sm:$0xff]  ;;  %v5509_v1 = vld [vmem:[%s7607_s0 + $0xac] ss:$12 sps:$4 sm:$0xff]   ;;  %v5511_v2 = vld [vmem:[%s7607_s0 + $0xa8] ss:$12 sps:$4 sm:$0xff]   ;;  %s7612_s15 = smov 96  }
  0xf3   : > { %1075 = vadd.xlane.f32.xlu0 %v1072_v0  ;;  %v5512_v4 = vld [vmem:[%s7607_s0 + $0xb0] ss:$12 sps:$4 sm:$0xff]   ;;  %v5513_v5 = vld [vmem:[%s7607_s0 + $0x94] ss:$12 sps:$4 sm:$0xff]   ;;  %1298 = vmatprep.subr.bf16.mxu0 %v5509_v1  ;;  %v5516_v7 = vld [vmem:[%s7607_s0 + $0x98] ss:$12 sps:$4 sm:$0xff]  }
  0xf4   : > { %v5515_v6 = vld [vmem:[%s7607_s0 + $0x90] ss:$12 sps:$4 sm:$0xff]   ;;  %1299 = vmatpush1.bf16.msra.mxu0 %v5511_v2  ;;  %5062 = vmatpush3.bf16.msra.mxu1 %v5512_v4  ;;  %v5519_v13 = vld [vmem:[%s7607_s0 + $0x78] ss:$12 sps:$4 sm:$0xff]   ;;  %v5520_v14 = vld [vmem:[%s7607_s0 + $0x80] ss:$12 sps:$4 sm:$0xff]  }
  0xf5   : > { %1300 = vmatprep.subr.bf16.mxu0 %v5513_v5  ;;  %5063 = vmatprep.subr.bf16.mxu1 %v6262_v3  ;;  %v5517_v12 = vld [vmem:[%s7607_s0 + $0x7c] ss:$12 sps:$4 sm:$0xff]   ;;  %v5521_v15 = vld [vmem:[%s7607_s0 + $0x64] ss:$12 sps:$4 sm:$0xff]   ;;  %v5523_v16 = vld [vmem:[%s7607_s0 + $0x60] ss:$12 sps:$4 sm:$0xff]  }
  0xf6   : > { %v5524_v17 = vld [vmem:[%s7607_s0 + $0x68] ss:$12 sps:$4 sm:$0xff]   ;;  %v5525_v18 = vld [vmem:[%s7607_s0 + $0x4c] ss:$12 sps:$4 sm:$0xff]   ;;  %v5528_v20 = vld [vmem:[%s7607_s0 + $0x50] ss:$12 sps:$4 sm:$0xff]   ;;  %s6803_s10 = scalar_lea.vmem %s7609_s5, %s6650_s11 }
  0xf7   : > { %v5527_v19 = vld [vmem:[%s7607_s0 + $0x48] ss:$12 sps:$4 sm:$0xff]   ;;  %v5531_v23 = vld [vmem:[%s7607_s0 + $0x30] ss:$12 sps:$4 sm:$0xff]   ;;  %v5532_v24 = vld [vmem:[%s7607_s0 + $0x38] ss:$12 sps:$4 sm:$0xff]  }
  0xf8   : > { %1301 = vmatpush1.bf16.msra.mxu0 %v5515_v6  ;;  %5064 = vmatpush3.bf16.msra.mxu1 %v5516_v7  ;;  %v5529_v21 = vld [vmem:[%s7607_s0 + $0x34] ss:$12 sps:$4 sm:$0xff]   ;;  %v5533_v25 = vld [vmem:[%s7607_s0 + $0x1c] ss:$12 sps:$4 sm:$0xff]   ;;  %v5535_v26 = vld [vmem:[%s7607_s0 + $0x18] ss:$12 sps:$4 sm:$0xff]  }
  0xf9   : > { %5065 = vmatprep.subr.bf16.mxu1 %v6262_v3  ;;  %1302 = vmatprep.subr.bf16.mxu0 %v5517_v12  ;;  %v5536_v27 = vld [vmem:[%s7607_s0 + $0x20] ss:$12 sps:$4 sm:$0xff]   ;;  %v5537_v28 = vld [vmem:[%s7607_s0 + $0x4] ss:$12 sps:$4 sm:$0xff]   ;;  %v5540_v30 = vld [vmem:[%s7607_s0 + $0x8] ss:$12 sps:$4 sm:$0xff]  }
  0xfa   : > { %v5539_v29 = vld [vmem:[%s7607_s0] ss:$12 sps:$4 sm:$0xff]   ;;  %s4912_s7 = sshll.u32 %s6430_s9, 8 }
  0xfb   : > { %v1135_v44 = vld [vmem:[%s7608_s27] sm:$0x7] }
  0xfc   : > { %1303 = vmatpush1.bf16.msra.mxu0 %v5519_v13  ;;  %5066 = vmatpush3.bf16.msra.mxu1 %v5520_v14  ;;  %v1166_v47 = vrot.slane %v1135_v44, %v1165_v43  ;;  %v1162_v48 = vrot.slane %v1135_v44, %v6759_v45  ;;  %v1158_v51 = vrot.slane %v1135_v44, %v6762_v46  ;;  %v6806_v12 = vld [vmem:[%s6803_s10] sm:$0xff] }
  0xfd   : > { %5067 = vmatprep.subr.bf16.mxu1 %v6262_v3  ;;  %1304 = vmatprep.subr.bf16.mxu0 %v5521_v15 }
 0x100   : > { %1305 = vmatpush1.bf16.msra.mxu0 %v5523_v16  ;;  %5068 = vmatpush3.bf16.msra.mxu1 %v5524_v17 }
 0x101   : > { %1306 = vmatprep.subr.bf16.mxu0 %v5525_v18  ;;  %5069 = vmatprep.subr.bf16.mxu1 %v6262_v3 }
 0x104   : > { %1307 = vmatpush1.bf16.msra.mxu0 %v5527_v19  ;;  %5070 = vmatpush3.bf16.msra.mxu1 %v5528_v20 }
 0x105   : > { %1308 = vmatprep.subr.bf16.mxu0 %v5529_v21  ;;  %5071 = vmatprep.subr.bf16.mxu1 %v6262_v3 }
 0x108   : > { %1309 = vmatpush1.bf16.msra.mxu0 %v5531_v23  ;;  %5072 = vmatpush3.bf16.msra.mxu1 %v5532_v24 }
 0x109   : > { %1310 = vmatprep.subr.bf16.mxu0 %v5533_v25  ;;  %5073 = vmatprep.subr.bf16.mxu1 %v6262_v3 }
 0x10c   : > { %1311 = vmatpush1.bf16.msra.mxu0 %v5535_v26  ;;  %5074 = vmatpush3.bf16.msra.mxu1 %v5536_v27 }
 0x10d   : > { %1312 = vmatprep.subr.bf16.mxu0 %v5537_v28  ;;  %5075 = vmatprep.subr.bf16.mxu1 %v6262_v3 }
 0x110   : > { %1313 = vmatpush1.bf16.msra.mxu0 %v5539_v29  ;;  %5076 = vmatpush3.bf16.msra.mxu1 %v5540_v30 }
 0x111   : > { %5087 = vmatprep.subr.bf16.mxu1 %v6262_v3  ;;  %5081 = vmatprep.subr.bf16.mxu0 %v6262_v3 }
 0x17c   : > { %v1076_v8 = vpop.xlane.xlu0 %1075 }
 0x17d   : > { %v1078_v9 = vmul.f32 0.0078125, %v1076_v8 }
 0x17f   : > { %v1079_v10 = vsub.f32 %v1072_v0, %v1078_v9 }
 0x181   : > { %v1080_v11 = vmul.f32 %v1079_v10, %v1079_v10 }
 0x183   : > { %1081 = vadd.xlane.f32.xlu0 %v1080_v11 }
 0x20c   : > { %v1082_v31 = vpop.xlane.xlu0 %1081 }
 0x20d   : > { %v1083_v32 = vmul.f32 0.0078125, %v1082_v31 }
 0x20f   : > { %v1084_v33 = vadd.f32 1e-12, %v1083_v32 }
 0x211   : > { %5725 = vrsqrt.f32 %v1084_v33 }
 0x21e   : > { %v5726_v34 = vpop.eup %5725 }
 0x21f   : > { %v1086_v36 = vmul.f32 %v5726_v34, %v1079_v10 }
 0x221   : > { %v1093_v38 = vmul.f32 %v4566_v35, %v1086_v36 }
 0x223   : > { %v6743_v39 = vadd.f32 %v4567_v37, %v1093_v38 }
 0x225   : > { %v1153_v40 = vpack.c.bf16 %v6743_v39, %v6743_v39 }
 0x227   : > { %1331 = vmatmul.mubr.bf16.vlgmr.msra.gmra.mxu0 %v1153_v40  ;;  %5078 = vmatmul.mubr.bf16.vlgmr.msra.gmra.mxu1 %v1153_v40 }
 0x228   : > { %5083 = vmatprep.mubr.msk.bf16.mxu0 %vm6264_vm0, %v6262_v3  ;;  %5089 = vmatprep.mubr.msk.bf16.mxu1 %vm6264_vm0, %v6262_v3 }
 0x2e7   : > { %v1332_v49 = vpop.f32.mrf.mxu0  ;;  %v1373_v50 = vpop.f32.mrf.mxu1 }
 0x2e8   : > { %v1374_v52 = vadd.f32 %v1373_v50, %v1166_v47  ;;  %v1333_v59 = vadd.f32 %v1332_v49, %v1158_v51 }
 0x2e9   : > { %v1334_v53 = vpop.f32.mrf.mxu0  ;;  %v5079_v54 = vpop.f32.mrf.mxu1 }
 0x2ea   : > { %v6768_v55 = vpack.c.bf16 %v1374_v52, %v1374_v52  ;;  %v1335_v56 = vadd.f32 %v1334_v53, %v1162_v48  ;;  %v1379_v1 = vpack.c.bf16 %v1333_v59, %v1333_v59 }
 0x2eb   : > { %v1336_v57 = vpop.f32.mrf.mxu0  ;;  %v1376_v58 = vpop.f32.mrf.mxu1 }
 0x2ec   : > { %v1380_v60 = vpack.c.bf16 %v1335_v56, %v1335_v56  ;;  %v1449_v61 = vsel %vm1447_vm1, %v6768_v55, 0 }
 0x2ed   : > { %v1337_v62 = vpop.f32.mrf.mxu0  ;;  %v5080_v63 = vpop.f32.mrf.mxu1  ;;  %5088 = vmatpush3.bf16.msra.mxu1 %v1449_v61 }
 0x2ee   : > { %1608 = vrot.lane.b32.xlu0 %v1380_v60, %s7550_s26  ;;  %1495 = vrot.lane.b32.xlu1 %v1380_v60, %s7552_s30  ;;  %v1387_v0 = vsel %vm1382_vm2, %v1380_v60, 0 }
 0x2ef   : > { %5082 = vmatpush3.bf16.xpose.msra.mxu0 %v1387_v0  ;;  %5099 = vmatprep.subr.bf16.mxu1 %v6262_v3 }
 0x2f0   : > { %5093 = vmatprep.subr.bf16.mxu0 %v6262_v3 }
 0x2f2   : > { %1492 = vrot.lane.b32.xlu1 %v1379_v1, %s7552_s30 }
 0x2f6   : > { %1606 = vrot.lane.b32.xlu1 %v1379_v1, %s7550_s26  ;;  %5084 = vmatmul.mubr.msk.bf16.vlgmr.msra.gmra.mxu0 %vm1382_vm2, %v1379_v1 }
 0x2f7   : > { %5095 = vmatprep.mubr.msk.bf16.mxu0 %vm6264_vm0, %v6262_v3 }
 0x2fa   : > { %1720 = vrot.lane.b32.xlu1 %v1380_v60, %s7548_s29 }
 0x2fe   : > { %1718 = vrot.lane.b32.xlu1 %v1379_v1, %s7548_s29 }
 0x360   : > { %v1496_v2 = vpop.permute.xlu1 %1495  ;;  %v1609_v6 = vpop.permute.xlu0 %1608 }
 0x361   : > { %v1501_v4 = vsel %vm1382_vm2, %v1496_v2, 0  ;;  %v1614_v8 = vsel %vm1382_vm2, %v1609_v6, 0 }
 0x362   : > { %5094 = vmatpush3.bf16.xpose.msra.mxu0 %v1501_v4 }
 0x363   : > { %5105 = vmatprep.subr.bf16.mxu0 %v6262_v3 }
 0x364   : > { %v1493_v5 = vpop.permute.xlu1 %1492 }
 0x368   : > { %v1607_v7 = vpop.permute.xlu1 %1606 }
 0x369   : > { %5096 = vmatmul.mubr.msk.bf16.vlgmr.msra.gmra.mxu0 %vm1382_vm2, %v1493_v5 }
 0x36a   : > { %5106 = vmatpush3.bf16.xpose.msra.mxu0 %v1614_v8  ;;  %5107 = vmatprep.mubr.msk.bf16.mxu0 %vm6264_vm0, %v6262_v3 }
 0x36b   : > { %5117 = vmatprep.subr.bf16.mxu0 %v6262_v3 }
 0x36c   : > { %v1721_v9 = vpop.permute.xlu1 %1720 }
 0x36d   : > { %v1726_v10 = vsel %vm1382_vm2, %v1721_v9, 0 }
 0x370   : > { %v1719_v11 = vpop.permute.xlu1 %1718 }
 0x371   : > { %5108 = vmatmul.mubr.msk.bf16.vlgmr.msra.gmra.mxu0 %vm1382_vm2, %v1607_v7 }
 0x372   : > { %5118 = vmatpush3.bf16.xpose.msra.mxu0 %v1726_v10  ;;  %5119 = vmatprep.mubr.msk.bf16.mxu0 %vm6264_vm0, %v6262_v3 }
 0x373   : > { %5129 = vmatprep.subr.bf16.mxu0 %v6262_v3 }
 0x379   : > { %5120 = vmatmul.mubr.msk.bf16.vlgmr.msra.gmra.mxu0 %vm1382_vm2, %v1719_v11 }
 0x37a   : > { %5145 = vmatprep.mubr.msk.bf16.mxu0 %vm6264_vm0, %v6262_v3 }
 0x3b6   : > { %v1423_v13 = vpop.f32.mrf.mxu0 }
 0x3b7   : > { %v1429_v14 = vmul.f32 0.17677669, %v1423_v13 }
 0x3b8   : > { %v5085_v15 = vpop.f32.mrf.mxu0 }
 0x3b9   : > { %v1430_v16 = vadd.f32 %v1429_v14, %v6806_v12 }
 0x3ba   : > { %v1426_v17 = vpop.f32.mrf.mxu0 }
 0x3bb   : > { %v1432_v18 = vsel %vm1431_vm3, %v1430_v16, -inf }
 0x3bc   : > { %1433 = vmax.xlane.f32.xlu1 %v1432_v18  ;;  %v5086_v19 = vpop.f32.mrf.mxu0 }
 0x429   : > { %v1537_v20 = vpop.f32.mrf.mxu0 }
 0x42a   : > { %v1543_v21 = vmul.f32 0.17677669, %v1537_v20 }
 0x42b   : > { %v5097_v23 = vpop.f32.mrf.mxu0 }
 0x42c   : > { %v1544_v24 = vadd.f32 %v1543_v21, %v6806_v12 }
 0x42d   : > { %v1540_v25 = vpop.f32.mrf.mxu0 }
 0x42e   : > { %v1545_v26 = vsel %vm1431_vm3, %v1544_v24, -inf }
 0x42f   : > { %1546 = vmax.xlane.f32.xlu0 %v1545_v26  ;;  %v5098_v27 = vpop.f32.mrf.mxu0 }
 0x431   : > { %v1650_v28 = vpop.f32.mrf.mxu0 }
 0x432   : > { %v1656_v29 = vmul.f32 0.17677669, %v1650_v28 }
 0x433   : > { %v5109_v30 = vpop.f32.mrf.mxu0 }
 0x434   : > { %v1657_v31 = vadd.f32 %v1656_v29, %v6806_v12 }
 0x435   : > { %v1653_v32 = vpop.f32.mrf.mxu0 }
 0x436   : > { %v1658_v33 = vsel %vm1431_vm3, %v1657_v31, -inf }
 0x437   : > { %1659 = vmax.xlane.f32.xlu1 %v1658_v33  ;;  %v5110_v34 = vpop.f32.mrf.mxu0  ;;  %v5541_v33 = vld [vmem:[%s7610_s13 + $0x38] sm:$0xff]  }
 0x438   : > { %5130 = vmatpush3.bf16.msra.mxu0 %v5541_v33  ;;  %v5542_v34 = vld [vmem:[%s7610_s13 + $0x30] sm:$0xff]  }
 0x439   : > { %v1762_v35 = vpop.f32.mrf.mxu0  ;;  %5131 = vmatprep.subr.bf16.mxu0 %v6262_v3 }
 0x43a   : > { %v1768_v36 = vmul.f32 0.17677669, %v1762_v35 }
 0x43b   : > { %v5121_v37 = vpop.f32.mrf.mxu0 }
 0x43c   : > { %v1769_v38 = vadd.f32 %v1768_v36, %v6806_v12  ;;  %5132 = vmatpush3.bf16.msra.mxu0 %v5542_v34  ;;  %v5543_v37 = vld [vmem:[%s7610_s13 + $0x28] sm:$0xff]  }
 0x43d   : > { %v1765_v40 = vpop.f32.mrf.mxu0  ;;  %5133 = vmatprep.subr.bf16.mxu0 %v6262_v3 }
 0x43e   : > { %v1770_v44 = vsel %vm1431_vm3, %v1769_v38, -inf }
 0x43f   : > { %1771 = vmax.xlane.f32.xlu1 %v1770_v44  ;;  %v5122_v47 = vpop.f32.mrf.mxu0  ;;  %v5544_v44 = vld [vmem:[%s7610_s13 + $0x20] sm:$0xff]  }
 0x440   : > { %5134 = vmatpush3.bf16.msra.mxu0 %v5543_v37 }
 0x441   : > { %5135 = vmatprep.subr.bf16.mxu0 %v6262_v3 }
 0x444   : > { %5136 = vmatpush3.bf16.msra.mxu0 %v5544_v44 }
 0x445   : > { %v1434_v48 = vpop.xlane.xlu1 %1433  ;;  %5137 = vmatprep.subr.bf16.mxu0 %v6262_v3 }
 0x446   : > { %v1435_v49 = vsub.f32 %v1430_v16, %v1434_v48 }
 0x448   : > { %v1436_v50 = vmul.f32 1.442695, %v1435_v49  ;;  %v5545_v49 = vld [vmem:[%s7610_s13 + $0x18] sm:$0xff]  }
 0x449   : > { %5138 = vmatpush3.bf16.msra.mxu0 %v5545_v49 }
 0x44a   : > { %5727 = vpow2.f32 %v1436_v50  ;;  %5139 = vmatprep.subr.bf16.mxu0 %v6262_v3 }
 0x457   : > { %v5728_v51 = vpop.eup %5727 }
 0x458   : > { %v1438_v52 = vsel %vm1431_vm3, %v5728_v51, 0.0 }
 0x459   : > { %1439 = vadd.xlane.f32.xlu0 %v1438_v52  ;;  %v5546_v52 = vld [vmem:[%s7610_s13 + $0x10] sm:$0xff]  }
 0x45a   : > { %5140 = vmatpush3.bf16.msra.mxu0 %v5546_v52 }
 0x45b   : > { %5141 = vmatprep.subr.bf16.mxu0 %v6262_v3 }
 0x4b8   : > { %v1547_v53 = vpop.xlane.xlu0 %1546 }
 0x4b9   : > { %v1548_v54 = vsub.f32 %v1544_v24, %v1547_v53  ;;  %v5547_v53 = vld [vmem:[%s7610_s13 + $0x8] sm:$0xff]  }
 0x4ba   : > { %5142 = vmatpush3.bf16.msra.mxu0 %v5547_v53 }
 0x4bb   : > { %v1549_v56 = vmul.f32 1.442695, %v1548_v54  ;;  %5143 = vmatprep.subr.bf16.mxu0 %v6262_v3  ;;  %v5548_v54 = vld [vmem:[%s7610_s13] sm:$0xff]  }
 0x4bd   : > { %5729 = vpow2.f32 %v1549_v56  ;;  %v5549_v56 = vld [vmem:[%s7517_s12 + $0x38] sm:$0xff]  }
 0x4be   : > { %5144 = vmatpush3.bf16.msra.mxu0 %v5548_v54  ;;  %v2093_v54 = vld [vmem:[#allocation13] sm:$0x1] }
 0x4bf   : > { %5169 = vmatprep.subr.bf16.mxu0 %v6262_v3 }
 0x4c0   : > { %v1660_v57 = vpop.xlane.xlu1 %1659 }
 0x4c1   : > { %v1661_v58 = vsub.f32 %v1657_v31, %v1660_v57  ;;  %v5550_v57 = vld [vmem:[%s7517_s12 + $0x30] sm:$0xff]  }
 0x4c3   : > { %v1662_v59 = vmul.f32 1.442695, %v1661_v58  ;;  %v5551_v58 = vld [vmem:[%s7517_s12 + $0x28] sm:$0xff]  }
 0x4c5   : > { %5731 = vpow2.f32 %v1662_v59 }
 0x4c8   : > { %v1772_v1 = vpop.xlane.xlu1 %1771 }
 0x4c9   : > { %v1773_v2 = vsub.f32 %v1769_v38, %v1772_v1  ;;  %v5554_v1 = vld [vmem:[%s7517_s12 + $0x10] sm:$0xff]  }
 0x4ca   : > { %v5730_v60 = vpop.eup %5729 }
 0x4cb   : > { %v1551_v61 = vsel %vm1431_vm3, %v5730_v60, 0.0  ;;  %v1774_v4 = vmul.f32 1.442695, %v1773_v2  ;;  %v5555_v2 = vld [vmem:[%s7517_s12 + $0x8] sm:$0xff]  }
 0x4cc   : > { %1552 = vadd.xlane.f32.xlu1 %v1551_v61 }
 0x4d2   : > { %v5732_v62 = vpop.eup %5731 }
 0x4d3   : > { %v1664_v63 = vsel %vm1431_vm3, %v5732_v62, 0.0 }
 0x4d4   : > { %1665 = vadd.xlane.f32.xlu0 %v1664_v63  ;;  %v5553_v63 = vld [vmem:[%s7517_s12 + $0x18] sm:$0xff]  }
 0x4dd   : > { %1670 = vrot.lane.b32.xlu1 %v6768_v55, %s7550_s26 }
 0x4e2   : > { %v1440_v0 = vpop.xlane.xlu0 %1439 }
 0x4e3   : > { %5733 = vrcp.f32 %v1440_v0 }
 0x4e4   : > { %5735 = vpow2.f32 %v1774_v4  ;;  %v5556_v4 = vld [vmem:[%s7517_s12] sm:$0xff]  }
 0x4ea   : > { %1558 = vrot.lane.b32.xlu0 %v6768_v55, %s7552_s30 }
 0x4f0   : > { %v5734_v5 = vpop.eup %5733 }
 0x4f1   : > { %v1442_v6 = vmul.f32 %v5734_v5, %v5728_v51  ;;  %v5736_v8 = vpop.eup %5735 }
 0x4f2   : > { %v1776_v9 = vsel %vm1431_vm3, %v5736_v8, 0.0 }
 0x4f3   : > { %v1443_v7 = vpack.c.bf16 %v1442_v6, %v1442_v6 }
 0x4f5   : > { %5090 = vmatmul.mubr.msk.bf16.vlgmr.msra.gmra.mxu1 %vm1431_vm3, %v1443_v7 }
 0x4f6   : > { %5101 = vmatprep.mubr.msk.bf16.mxu1 %vm6264_vm0, %v6262_v3 }
 0x501   : > { %1777 = vadd.xlane.f32.xlu1 %v1776_v9 }
 0x512   : > { %1782 = vrot.lane.b32.xlu1 %v6768_v55, %s7548_s29 }
 0x555   : > { %v1553_v10 = vpop.xlane.xlu1 %1552 }
 0x556   : > { %5737 = vrcp.f32 %v1553_v10 }
 0x559   : > { %v1671_v17 = vpop.permute.xlu1 %1670 }
 0x55a   : > { %v1676_v19 = vsel %vm1447_vm1, %v1671_v17, 0  ;;  %v5559_v17 = vld [vmem:[%s7519_s14 + $0x28] sm:$0xff]  }
 0x55d   : > { %v1666_v11 = vpop.xlane.xlu0 %1665 }
 0x55e   : > { %5739 = vrcp.f32 %v1666_v11 }
 0x561   : > { %v1559_v13 = vpop.permute.xlu0 %1558 }
 0x562   : > { %v1564_v14 = vsel %vm1447_vm1, %v1559_v13, 0 }
 0x563   : > { %v5738_v15 = vpop.eup %5737  ;;  %5100 = vmatpush3.bf16.msra.mxu1 %v1564_v14 }
 0x564   : > { %5111 = vmatprep.subr.bf16.mxu1 %v6262_v3  ;;  %v1555_v16 = vmul.f32 %v5738_v15, %v5730_v60  ;;  %v5552_v60 = vld [vmem:[%s7517_s12 + $0x20] sm:$0xff]   ;;  %v5557_v15 = vld [vmem:[%s7519_s14 + $0x38] sm:$0xff]  }
 0x566   : > { %v1556_v18 = vpack.c.bf16 %v1555_v16, %v1555_v16  ;;  %v5558_v16 = vld [vmem:[%s7519_s14 + $0x30] sm:$0xff]  }
 0x568   : > { %5102 = vmatmul.mubr.msk.bf16.vlgmr.msra.gmra.mxu1 %vm1431_vm3, %v1556_v18  ;;  %v5560_v18 = vld [vmem:[%s7519_s14 + $0x20] sm:$0xff]  }
 0x569   : > { %5112 = vmatpush3.bf16.msra.mxu1 %v1676_v19  ;;  %5113 = vmatprep.mubr.msk.bf16.mxu1 %vm6264_vm0, %v6262_v3  ;;  %v5561_v19 = vld [vmem:[%s7519_s14 + $0x18] sm:$0xff]  }
 0x56a   : > { %5123 = vmatprep.subr.bf16.mxu1 %v6262_v3 }
 0x56b   : > { %v5740_v55 = vpop.eup %5739 }
 0x56c   : > { %v1668_v20 = vmul.f32 %v5740_v55, %v5732_v62  ;;  %v5562_v55 = vld [vmem:[%s7519_s14 + $0x10] sm:$0xff]  }
 0x56e   : > { %v1669_v21 = vpack.c.bf16 %v1668_v20, %v1668_v20  ;;  %v5563_v20 = vld [vmem:[%s7519_s14 + $0x8] sm:$0xff]  }
 0x570   : > { %5114 = vmatmul.mubr.msk.bf16.vlgmr.msra.gmra.mxu1 %vm1431_vm3, %v1669_v21  ;;  %v1987_v21 = vld [vmem:[#allocation11] sm:$0x1] }
 0x571   : > { %5125 = vmatprep.mubr.msk.bf16.mxu1 %vm6264_vm0, %v6262_v3 }
 0x58a   : > { %v1778_v23 = vpop.xlane.xlu1 %1777 }
 0x58b   : > { %5741 = vrcp.f32 %v1778_v23  ;;  %v5564_v23 = vld [vmem:[%s7519_s14] sm:$0xff]  }
 0x58e   : > { %v1783_v24 = vpop.permute.xlu1 %1782 }
 0x58f   : > { %v1788_v25 = vsel %vm1447_vm1, %v1783_v24, 0 }
 0x590   : > { %5124 = vmatpush3.bf16.msra.mxu1 %v1788_v25 }
 0x591   : > { %5149 = vmatprep.subr.bf16.mxu1 %v6262_v3 }
 0x598   : > { %v5742_v26 = vpop.eup %5741 }
 0x599   : > { %v1780_v27 = vmul.f32 %v5742_v26, %v5736_v8 }
 0x59b   : > { %v1781_v28 = vpack.c.bf16 %v1780_v27, %v1780_v27 }
 0x59d   : > { %5126 = vmatmul.mubr.msk.bf16.vlgmr.msra.gmra.mxu1 %vm1431_vm3, %v1781_v28 }
 0x59e   : > { %5165 = vmatprep.mubr.msk.bf16.mxu1 %vm6264_vm0, %v6262_v3  ;;  %5150 = vmatpush3.bf16.msra.mxu1 %v5549_v56 }
 0x59f   : > { %5151 = vmatprep.subr.bf16.mxu1 %v6262_v3 }
 0x5a2   : > { %5152 = vmatpush3.bf16.msra.mxu1 %v5550_v57 }
 0x5a3   : > { %5153 = vmatprep.subr.bf16.mxu1 %v6262_v3 }
 0x5a6   : > { %5154 = vmatpush3.bf16.msra.mxu1 %v5551_v58 }
 0x5a7   : > { %5155 = vmatprep.subr.bf16.mxu1 %v6262_v3 }
 0x5aa   : > { %5156 = vmatpush3.bf16.msra.mxu1 %v5552_v60 }
 0x5ab   : > { %5157 = vmatprep.subr.bf16.mxu1 %v6262_v3 }
 0x5ae   : > { %5158 = vmatpush3.bf16.msra.mxu1 %v5553_v63 }
 0x5af   : > { %5159 = vmatprep.subr.bf16.mxu1 %v6262_v3 }
 0x5b2   : > { %5160 = vmatpush3.bf16.msra.mxu1 %v5554_v1  ;;  %v5567_v1 = vld [vmem:[%s7523_s18 + $0x74] ss:$8 sps:$4 sm:$0xff]  }
 0x5b3   : > { %5161 = vmatprep.subr.bf16.mxu1 %v6262_v3 }
 0x5b5   : > { %v6844_v29 = vpop.f32.mrf.mxu1 }
 0x5b6   : > { %5162 = vmatpush3.bf16.msra.mxu1 %v5555_v2  ;;  %v5570_v2 = vld [vmem:[%s7523_s18 + $0x64] ss:$8 sps:$4 sm:$0xff]  }
 0x5b7   : > { %v5091_v30 = vpop.f32.mrf.mxu1  ;;  %5163 = vmatprep.subr.bf16.mxu1 %v6262_v3 }
 0x5b8   : > { %v4600_v30 = vld [vmem:[#allocation7] ss:$0 sm:$0xff] }
 0x5b9   : > { %v1488_v31 = vpop.f32.mrf.mxu1 }
 0x5ba   : > { %5164 = vmatpush3.bf16.msra.mxu1 %v5556_v4  ;;  %v5568_v4 = vld [vmem:[%s7523_s18 + $0x60] ss:$8 sps:$4 sm:$0xff]  }
 0x5bb   : > { %v5092_v32 = vpop.f32.mrf.mxu1  ;;  %2323 = vmatprep.subr.bf16.mxu1 %v5567_v1 }
 0x628   : > { %v1600_v35 = vpop.f32.mrf.mxu1 }
 0x629   : > { %1831 = vrot.lane.b32.xlu0 %v1600_v35, %s7548_s29  ;;  %s7611_s29 = sld [smem:[#allocation43_spill]] }
 0x62a   : > { %v5103_v36 = vpop.f32.mrf.mxu1 }
 0x62c   : > { %v1603_v38 = vpop.f32.mrf.mxu1 }
 0x62e   : > { %v5104_v40 = vpop.f32.mrf.mxu1 }
 0x62f   : > { %s1062_s3 = scalar_lea.vmem %s7611_s29, %s6647_s28  ;;  %s7613_s28 = smov 64  }
 0x630   : > { %v1712_v47 = vpop.f32.mrf.mxu1  ;;  %v1102_v5 = vld [vmem:[%s1062_s3] sm:$0x1]  ;;  %s7616_s3 = sld [smem:[#allocation55_spill]] }
 0x631   : > { %1835 = vrot.lane.b32.xlu1 %v1712_v47, %s7550_s26  ;;  %v6916_v6 = vpack.c.bf16 %v1102_v5, %v1102_v5  ;;  %s7615_s26 = sld [smem:[#allocation44_spill]] }
 0x632   : > { %v5115_v48 = vpop.f32.mrf.mxu1 }
 0x633   : > { %5166 = vmatmul.mubr.bf16.vlgmr.msra.gmra.mxu1 %v6916_v6 }
 0x634   : > { %v1715_v50 = vpop.f32.mrf.mxu1  ;;  %2355 = vmatprep.mubr.bf16.mxu1 %v6263_v22 }
 0x636   : > { %v5116_v51 = vpop.f32.mrf.mxu1 }
 0x637   : > { %s1066_s5 = scalar_lea.vmem %s7615_s26, %s6650_s11 }
 0x65d   : > { %v1824_v59 = vpop.f32.mrf.mxu1 }
 0x65e   : > { %1839 = vrot.lane.b32.xlu0 %v1824_v59, %s7552_s30  ;;  %v4610_v59 = vld [vmem:[#allocation10] ss:$0 sm:$0xff]  ;;  %s7614_s30 = smov 32  }
 0x65f   : > { %v5127_v61 = vpop.f32.mrf.mxu1 }
 0x661   : > { %v1827_v62 = vpop.f32.mrf.mxu1 }
 0x663   : > { %v5128_v0 = vpop.f32.mrf.mxu1 }
 0x664   : > { %v5565_v0 = vld [vmem:[%s7523_s18 + $0x70] ss:$8 sps:$4 sm:$0xff]  }
 0x665   : > { %2324 = vmatpush1.bf16.msra.mxu1 %v5565_v0 }
 0x666   : > { %2325 = vmatprep.subr.bf16.mxu1 %v5570_v2 }
 0x669   : > { %2326 = vmatpush1.bf16.msra.mxu1 %v5568_v4 }
 0x69b   : > { %v1832_v7 = vpop.permute.xlu0 %1831 }
 0x69c   : > { %v1842_v9 = vsel %vm1382_vm2, %v6844_v29, %v1832_v7 }
 0x6a3   : > { %v1836_v8 = vpop.permute.xlu1 %1835 }
 0x6a4   : > { %v1844_v10 = vsel %vm1843_vm4, %v1842_v9, %v1836_v8 }
 0x6d0   : > { %v1840_v11 = vpop.permute.xlu0 %1839 }
 0x6d1   : > { %v1846_v13 = vsel %vm1845_vm5, %v1844_v10, %v1840_v11  ;;  %v5573_v10 = vld [vmem:[%s7523_s18 + $0x54] ss:$8 sps:$4 sm:$0xff]   ;;  %v5571_v11 = vld [vmem:[%s7523_s18 + $0x50] ss:$8 sps:$4 sm:$0xff]  }
 0x6d2   : > { %v1847_v14 = vpack.c.bf16 %v1846_v13, %v1846_v13  ;;  %2327 = vmatprep.subr.bf16.mxu1 %v5573_v10  ;;  %v5574_v13 = vld [vmem:[%s7523_s18 + $0x40] ss:$8 sps:$4 sm:$0xff]  }
 0x6d3   : > { %2328 = vmatpush1.bf16.msra.mxu1 %v5571_v11 }
 0x6d4   : > { %5146 = vmatmul.mubr.bf16.vlgmr.msra.gmra.mxu0 %v1847_v14  ;;  %v5576_v14 = vld [vmem:[%s7523_s18 + $0x44] ss:$8 sps:$4 sm:$0xff]  }
 0x6d5   : > { %5185 = vmatprep.mubr.msk.bf16.mxu0 %vm6264_vm0, %v6262_v3  ;;  %5170 = vmatpush3.bf16.msra.mxu0 %v5557_v15  ;;  %v5579_v15 = vld [vmem:[%s7523_s18 + $0x34] ss:$8 sps:$4 sm:$0xff]  }
 0x6d6   : > { %5171 = vmatprep.subr.bf16.mxu0 %v6262_v3  ;;  %2329 = vmatprep.subr.bf16.mxu1 %v5576_v14 }
 0x6d7   : > { %2330 = vmatpush1.bf16.msra.mxu1 %v5574_v13 }
 0x6d8   : > { %2331 = vmatprep.subr.bf16.mxu1 %v5579_v15 }
 0x6d9   : > { %5172 = vmatpush3.bf16.msra.mxu0 %v5558_v16  ;;  %v5577_v16 = vld [vmem:[%s7523_s18 + $0x30] ss:$8 sps:$4 sm:$0xff]  }
 0x6da   : > { %5173 = vmatprep.subr.bf16.mxu0 %v6262_v3 }
 0x6db   : > { %2332 = vmatpush1.bf16.msra.mxu1 %v5577_v16  ;;  %v4645_v16 = vld [vmem:[#allocation17] ss:$0 sm:$0xff] }
 0x6dd   : > { %5174 = vmatpush3.bf16.msra.mxu0 %v5559_v17  ;;  %v5582_v17 = vld [vmem:[%s7523_s18 + $0x24] ss:$8 sps:$4 sm:$0xff]  }
 0x6de   : > { %5175 = vmatprep.subr.bf16.mxu0 %v6262_v3  ;;  %2333 = vmatprep.subr.bf16.mxu1 %v5582_v17 }
 0x6e1   : > { %5176 = vmatpush3.bf16.msra.mxu0 %v5560_v18  ;;  %v5580_v18 = vld [vmem:[%s7523_s18 + $0x20] ss:$8 sps:$4 sm:$0xff]  }
 0x6e2   : > { %5177 = vmatprep.subr.bf16.mxu0 %v6262_v3  ;;  %2334 = vmatpush1.bf16.msra.mxu1 %v5580_v18 }
 0x6e5   : > { %5178 = vmatpush3.bf16.msra.mxu0 %v5561_v19  ;;  %v5585_v19 = vld [vmem:[%s7523_s18 + $0x14] ss:$8 sps:$4 sm:$0xff]  }
 0x6e6   : > { %5179 = vmatprep.subr.bf16.mxu0 %v6262_v3  ;;  %2335 = vmatprep.subr.bf16.mxu1 %v5585_v19 }
 0x6e9   : > { %5180 = vmatpush3.bf16.msra.mxu0 %v5562_v55  ;;  %v5583_v55 = vld [vmem:[%s7523_s18 + $0x10] ss:$8 sps:$4 sm:$0xff]  }
 0x6ea   : > { %5181 = vmatprep.subr.bf16.mxu0 %v6262_v3  ;;  %2336 = vmatpush1.bf16.msra.mxu1 %v5583_v55 }
 0x6ed   : > { %5182 = vmatpush3.bf16.msra.mxu0 %v5563_v20  ;;  %v5588_v20 = vld [vmem:[%s7523_s18 + $0x4] ss:$8 sps:$4 sm:$0xff]  }
 0x6ee   : > { %5183 = vmatprep.subr.bf16.mxu0 %v6262_v3  ;;  %2337 = vmatprep.subr.bf16.mxu1 %v5588_v20 }
 0x6f1   : > { %5184 = vmatpush3.bf16.msra.mxu0 %v5564_v23  ;;  %v5589_v23 = vld [vmem:[%s7525_s20 + $0x78] sm:$0xff]  }
 0x6f2   : > { %4965 = vmatprep.subr.bf16.mxu0 %v5589_v23  ;;  %v5605_v23 = vld [vmem:[%s7607_s0 + $0x168] ss:$12 sps:$4 sm:$0xff]  }
 0x6f3   : > { %v2070_v24 = vpop.f32.mrf.mxu1 }
 0x6f4   : > { %v2071_v25 = vadd.f32 %v2070_v24, %v1987_v21  ;;  %v5586_v21 = vld [vmem:[%s7523_s18] ss:$8 sps:$4 sm:$0xff]   ;;  %v5590_v24 = vld [vmem:[%s7525_s20 + $0x38] sm:$0xff]  }
 0x6f5   : > { %v5167_v26 = vpop.f32.mrf.mxu1  ;;  %2338 = vmatpush1.bf16.msra.mxu1 %v5586_v21 }
 0x6f6   : > { %v2092_v27 = vpack.c.bf16 %v2071_v25, %v2071_v25 }
 0x6f7   : > { %v2073_v28 = vpop.f32.mrf.mxu1 }
 0x6f8   : > { %5186 = vmatmul.mubr.bf16.vlgmr.msra.gmra.mxu0 %v2092_v27 }
 0x6f9   : > { %v5168_v29 = vpop.f32.mrf.mxu1  ;;  %4966 = vmatpush3.bf16.msra.mxu0 %v5590_v24  ;;  %v5607_v24 = vld [vmem:[%s7607_s0 + $0x16c] ss:$12 sps:$4 sm:$0xff]  }
 0x6fa   : > { %v4627_v29 = vld [vmem:[#allocation14] ss:$0 sm:$0xff]  ;;  %2778 = vmatprep.subr.bf16.mxu1 %v5607_v24 }
 0x794   : > { %v1936_v31 = vpop.f32.mrf.mxu0 }
 0x795   : > { %v1937_v32 = vadd.f32 %v4600_v30, %v1936_v31  ;;  %v4628_v31 = vld [vmem:[#allocation16] ss:$0 sm:$0xff] }
 0x796   : > { %v5147_v33 = vpop.f32.mrf.mxu0 }
 0x797   : > { %v1942_v34 = vadd.f32 %v1937_v32, %v6743_v39  ;;  %v4609_v39 = vld [vmem:[#allocation8] ss:$0 sm:$0xff] }
 0x798   : > { %v1939_v35 = vpop.f32.mrf.mxu0 }
 0x799   : > { %1945 = vadd.xlane.f32.xlu1 %v1942_v34  ;;  %v5591_v35 = vld [vmem:[%s7525_s20 + $0x70] sm:$0xff]  }
 0x79a   : > { %v5148_v36 = vpop.f32.mrf.mxu0  ;;  %4967 = vmatprep.subr.bf16.mxu0 %v5591_v35  ;;  %v5616_v35 = vld [vmem:[%s7607_s0 + $0x140] ss:$12 sps:$4 sm:$0xff]  }
 0x79b   : > { %v5592_v36 = vld [vmem:[%s7525_s20 + $0x30] sm:$0xff]  }
 0x79c   : > { %4968 = vmatpush3.bf16.msra.mxu0 %v5592_v36  ;;  %v5617_v36 = vld [vmem:[%s7607_s0 + $0x120] ss:$12 sps:$4 sm:$0xff]  }
 0x7b8   : > { %v2176_v47 = vpop.f32.mrf.mxu0 }
 0x7b9   : > { %v2177_v56 = vadd.f32 %v2176_v47, %v2093_v54  ;;  %v5597_v47 = vld [vmem:[%s7525_s20 + $0x58] sm:$0xff]   ;;  %v5604_v54 = vld [vmem:[%s7525_s20] sm:$0xff]  }
 0x7ba   : > { %v5187_v48 = vpop.f32.mrf.mxu0 }
 0x7bb   : > { %v2185_v60 = vrot.slane %v2177_v56, %v6762_v46  ;;  %v5598_v48 = vld [vmem:[%s7525_s20 + $0x18] sm:$0xff]   ;;  %v2231_v56 = vld [vmem:[%s7524_s19] sm:$0x3] }
 0x7bc   : > { %v2179_v49 = vpop.f32.mrf.mxu0 }
 0x7bd   : > { %v5599_v49 = vld [vmem:[%s7525_s20 + $0x50] sm:$0xff]  }
 0x7be   : > { %v5188_v50 = vpop.f32.mrf.mxu0 }
 0x7bf   : > { %v5600_v50 = vld [vmem:[%s7525_s20 + $0x10] sm:$0xff]  }
 0x822   : > { %v1946_v37 = vpop.xlane.xlu1 %1945 }
 0x823   : > { %v1947_v38 = vmul.f32 0.0078125, %v1946_v37  ;;  %v5593_v37 = vld [vmem:[%s7525_s20 + $0x68] sm:$0xff]  }
 0x824   : > { %4969 = vmatprep.subr.bf16.mxu0 %v5593_v37  ;;  %v5619_v37 = vld [vmem:[%s7607_s0 + $0x124] ss:$12 sps:$4 sm:$0xff]  }
 0x825   : > { %v1948_v40 = vsub.f32 %v1942_v34, %v1947_v38  ;;  %v5594_v38 = vld [vmem:[%s7525_s20 + $0x28] sm:$0xff]  }
 0x826   : > { %4970 = vmatpush3.bf16.msra.mxu0 %v5594_v38  ;;  %v5620_v38 = vld [vmem:[%s7607_s0 + $0x128] ss:$12 sps:$4 sm:$0xff]  }
 0x827   : > { %v1949_v44 = vmul.f32 %v1948_v40, %v1948_v40 }
 0x829   : > { %1950 = vadd.xlane.f32.xlu0 %v1949_v44  ;;  %v5596_v44 = vld [vmem:[%s7525_s20 + $0x20] sm:$0xff]  }
 0x8b2   : > { %v1951_v51 = vpop.xlane.xlu0 %1950 }
 0x8b3   : > { %v1952_v52 = vmul.f32 0.0078125, %v1951_v51  ;;  %v5601_v51 = vld [vmem:[%s7525_s20 + $0x48] sm:$0xff]  }
 0x8b5   : > { %v1953_v53 = vadd.f32 1e-12, %v1952_v52  ;;  %v5602_v52 = vld [vmem:[%s7525_s20 + $0x8] sm:$0xff]  }
 0x8b7   : > { %5743 = vrsqrt.f32 %v1953_v53  ;;  %v5603_v53 = vld [vmem:[%s7525_s20 + $0x40] sm:$0xff]  }
 0x8c4   : > { %v5744_v57 = vpop.eup %5743 }
 0x8c5   : > { %v1955_v58 = vmul.f32 %v5744_v57, %v1948_v40  ;;  %v5595_v40 = vld [vmem:[%s7525_s20 + $0x60] sm:$0xff]   ;;  %v2236_v57 = vrot.slane %v2231_v56, %v6762_v46 }
 0x8c6   : > { %4971 = vmatprep.subr.bf16.mxu0 %v5595_v40  ;;  %v5623_v40 = vld [vmem:[%s7607_s0 + $0x10c] ss:$12 sps:$4 sm:$0xff]  }
 0x8c7   : > { %v1962_v61 = vmul.f32 %v4609_v39, %v1955_v58  ;;  %4972 = vmatpush3.bf16.msra.mxu0 %v5596_v44  ;;  %v2240_v39 = vrot.slane %v2231_v56, %v6759_v45  ;;  %v5621_v44 = vld [vmem:[%s7607_s0 + $0x108] ss:$12 sps:$4 sm:$0xff]   ;;  %v5633_v56 = vld [vmem:[%s7607_s0 + $0xc0] ss:$12 sps:$4 sm:$0xff]  }
 0x8c8   : > { %4973 = vmatprep.subr.bf16.mxu0 %v5597_v47  ;;  %v5624_v47 = vld [vmem:[%s7607_s0 + $0x110] ss:$12 sps:$4 sm:$0xff]  }
 0x8c9   : > { %v1969_v62 = vadd.f32 %v4610_v59, %v1962_v61 }
 0x8cb   : > { %v2186_v63 = vadd.f32 %v2185_v60, %v1969_v62  ;;  %4974 = vmatpush3.bf16.msra.mxu0 %v5598_v48  ;;  %v5627_v48 = vld [vmem:[%s7607_s0 + $0xf4] ss:$12 sps:$4 sm:$0xff]  }
 0x8cc   : > { %4975 = vmatprep.subr.bf16.mxu0 %v5599_v49  ;;  %v5625_v49 = vld [vmem:[%s7607_s0 + $0xf0] ss:$12 sps:$4 sm:$0xff]  }
 0x8cd   : > { %2189 = vadd.xlane.f32.xlu0 %v2186_v63 }
 0x8cf   : > { %4976 = vmatpush3.bf16.msra.mxu0 %v5600_v50  ;;  %v5628_v50 = vld [vmem:[%s7607_s0 + $0xf8] ss:$12 sps:$4 sm:$0xff]  }
 0x8d0   : > { %4977 = vmatprep.subr.bf16.mxu0 %v5601_v51  ;;  %v5631_v51 = vld [vmem:[%s7607_s0 + $0xdc] ss:$12 sps:$4 sm:$0xff]  }
 0x8d3   : > { %4978 = vmatpush3.bf16.msra.mxu0 %v5602_v52  ;;  %v5629_v52 = vld [vmem:[%s7607_s0 + $0xd8] ss:$12 sps:$4 sm:$0xff]  }
 0x8d4   : > { %4979 = vmatprep.subr.bf16.mxu0 %v5603_v53  ;;  %v5632_v53 = vld [vmem:[%s7607_s0 + $0xe0] ss:$12 sps:$4 sm:$0xff]  }
 0x8d7   : > { %4980 = vmatpush3.bf16.msra.mxu0 %v5604_v54  ;;  %v5635_v54 = vld [vmem:[%s7607_s0 + $0xc4] ss:$12 sps:$4 sm:$0xff]  }
 0x8d8   : > { %5189 = vmatprep.subr.bf16.mxu0 %v6262_v3 }
 0x956   : > { %v2190_v5 = vpop.xlane.xlu0 %2189 }
 0x957   : > { %v2191_v7 = vmul.f32 0.0078125, %v2190_v5 }
 0x959   : > { %v2192_v8 = vsub.f32 %v2186_v63, %v2191_v7 }
 0x95b   : > { %v2193_v9 = vmul.f32 %v2192_v8, %v2192_v8 }
 0x95d   : > { %2194 = vadd.xlane.f32.xlu1 %v2193_v9 }
 0x9e6   : > { %v2195_v25 = vpop.xlane.xlu1 %2194 }
 0x9e7   : > { %v2196_v26 = vmul.f32 0.0078125, %v2195_v25  ;;  %v5608_v25 = vld [vmem:[%s7607_s0 + $0x170] ss:$12 sps:$4 sm:$0xff]  }
 0x9e9   : > { %v2197_v27 = vadd.f32 1e-12, %v2196_v26  ;;  %v5611_v26 = vld [vmem:[%s7607_s0 + $0x154] ss:$12 sps:$4 sm:$0xff]  }
 0x9eb   : > { %5745 = vrsqrt.f32 %v2197_v27  ;;  %v5612_v27 = vld [vmem:[%s7607_s0 + $0x158] ss:$12 sps:$4 sm:$0xff]  }
 0x9f8   : > { %v5746_v28 = vpop.eup %5745 }
 0x9f9   : > { %v2199_v30 = vmul.f32 %v5746_v28, %v2192_v8  ;;  %v5609_v28 = vld [vmem:[%s7607_s0 + $0x150] ss:$12 sps:$4 sm:$0xff]  }
 0x9fb   : > { %v2206_v32 = vmul.f32 %v4627_v29, %v2199_v30 }
 0x9fd   : > { %v7013_v33 = vadd.f32 %v4628_v31, %v2206_v32 }
 0x9ff   : > { %v2230_v34 = vpack.c.bf16 %v7013_v33, %v7013_v33 }
 0xa01   : > { %2356 = vmatmul.mubr.bf16.vlgmr.msra.gmra.mxu1 %v2230_v34  ;;  %v5613_v34 = vld [vmem:[%s7607_s0 + $0x138] ss:$12 sps:$4 sm:$0xff]  }
 0xa02   : > { %2810 = vmatprep.mubr.bf16.mxu1 %v6263_v22  ;;  %2779 = vmatpush1.bf16.msra.mxu1 %v5605_v23 }
 0xa03   : > { %2780 = vmatprep.subr.bf16.mxu1 %v5611_v26 }
 0xa06   : > { %2781 = vmatpush1.bf16.msra.mxu1 %v5609_v28 }
 0xac1   : > { %v2357_v58 = vpop.f32.mrf.mxu1 }
 0xac2   : > { %v2358_v59 = vadd.f32 %v2357_v58, %v2236_v57  ;;  %v5636_v57 = vld [vmem:[%s7607_s0 + $0xc8] ss:$12 sps:$4 sm:$0xff]  }
 0xac3   : > { %v2359_v60 = vpop.f32.mrf.mxu1 }
 0xac4   : > { %v2366_v61 = vmul.f32 0.70710677, %v2358_v59  ;;  %v2360_v62 = vadd.f32 %v2359_v60, %v2240_v39  ;;  %v2364_v7 = vmul.f32 0.5, %v2358_v59 }
 0xac5   : > { %v2361_v63 = vpop.f32.mrf.mxu1 }
 0xac6   : > { %5747 = verf.f32 %v2366_v61  ;;  %v2367_v0 = vmul.f32 0.70710677, %v2360_v62  ;;  %v2365_v8 = vmul.f32 0.5, %v2360_v62  ;;  %v4662_v61 = vld [vmem:[#allocation19] ss:$0 sm:$0xff] }
 0xac7   : > { %v2362_v1 = vpop.f32.mrf.mxu1  ;;  %v4663_v63 = vld [vmem:[#allocation20] ss:$0 sm:$0xff] }
 0xac8   : > { %5749 = verf.f32 %v2367_v0 }
 0xad3   : > { %v5748_v2 = vpop.eup %5747 }
 0xad4   : > { %v2370_v4 = vadd.f32 1.0, %v5748_v2 }
 0xad5   : > { %v5750_v5 = vpop.eup %5749 }
 0xad6   : > { %v2371_v9 = vadd.f32 1.0, %v5750_v5  ;;  %v2372_v10 = vmul.f32 %v2370_v4, %v2364_v7  ;;  %v4696_v4 = vld [vmem:[%s7608_s27 + $0x3] sm:$0x7] }
 0xad7   : > { %v2642_v5 = vrot.slane %v4696_v4, %v6759_v45 }
 0xad8   : > { %v2373_v11 = vmul.f32 %v2371_v9, %v2365_v8  ;;  %v2406_v14 = vpack.c.bf16 %v2372_v10, %v2372_v10 }
 0xada   : > { %v2407_v13 = vpack.c.bf16 %v2373_v11, %v2373_v11  ;;  %v2646_v11 = vrot.slane %v4696_v4, %v1165_v43 }
 0xadc   : > { %2543 = vmatprep.mubr.bf16.mxu0 %v2407_v13 }
 0xadd   : > { %2544 = vmatmul.mubr.bf16.vlgmr.msra.gmra.mxu0 %v2406_v14 }
 0xade   : > { %5205 = vmatprep.mubr.msk.bf16.mxu0 %vm6264_vm0, %v6262_v3  ;;  %5190 = vmatpush3.bf16.msra.mxu0 %v5608_v25 }
 0xadf   : > { %5191 = vmatprep.subr.bf16.mxu0 %v6262_v3 }
 0xae2   : > { %5192 = vmatpush3.bf16.msra.mxu0 %v5612_v27 }
 0xae3   : > { %5193 = vmatprep.subr.bf16.mxu0 %v6262_v3 }
 0xae6   : > { %5194 = vmatpush3.bf16.msra.mxu0 %v5616_v35 }
 0xae7   : > { %5195 = vmatprep.subr.bf16.mxu0 %v6262_v3 }
 0xaea   : > { %5196 = vmatpush3.bf16.msra.mxu0 %v5620_v38 }
 0xaeb   : > { %5197 = vmatprep.subr.bf16.mxu0 %v6262_v3 }
 0xaee   : > { %5198 = vmatpush3.bf16.msra.mxu0 %v5624_v47 }
 0xaef   : > { %5199 = vmatprep.subr.bf16.mxu0 %v6262_v3 }
 0xaf2   : > { %5200 = vmatpush3.bf16.msra.mxu0 %v5628_v50 }
 0xaf3   : > { %5201 = vmatprep.subr.bf16.mxu0 %v6262_v3 }
 0xaf6   : > { %5202 = vmatpush3.bf16.msra.mxu0 %v5632_v53 }
 0xaf7   : > { %5203 = vmatprep.subr.bf16.mxu0 %v6262_v3 }
 0xafa   : > { %5204 = vmatpush3.bf16.msra.mxu0 %v5636_v57 }
 0xafb   : > { %5233 = vmatprep.subr.bf16.mxu0 %v6262_v3 }
 0xb9d   : > { %v4981_v15 = vpop.f32.mrf.mxu0 }
 0xb9f   : > { %v4982_v17 = vpop.f32.mrf.mxu0 }
 0xba0   : > { %v4983_v18 = vadd.f32 %v4982_v17, %v4981_v15 }
 0xba1   : > { %v4984_v19 = vpop.f32.mrf.mxu0 }
 0xba2   : > { %v2546_v55 = vadd.f32 %v4983_v18, %v4645_v16  ;;  %v2638_v16 = vrot.slane %v4696_v4, %v6762_v46 }
 0xba3   : > { %v4985_v20 = vpop.f32.mrf.mxu0 }
 0xba4   : > { %v2551_v21 = vadd.f32 %v2546_v55, %v7013_v33  ;;  %v5615_v33 = vld [vmem:[%s7607_s0 + $0x13c] ss:$12 sps:$4 sm:$0xff]  }
 0xba5   : > { %2782 = vmatprep.subr.bf16.mxu1 %v5615_v33 }
 0xba6   : > { %2554 = vadd.xlane.f32.xlu0 %v2551_v21  ;;  %2783 = vmatpush1.bf16.msra.mxu1 %v5613_v34 }
 0xba7   : > { %2784 = vmatprep.subr.bf16.mxu1 %v5619_v37 }
 0xbaa   : > { %2785 = vmatpush1.bf16.msra.mxu1 %v5617_v36 }
 0xbab   : > { %2786 = vmatprep.subr.bf16.mxu1 %v5623_v40 }
 0xbae   : > { %2787 = vmatpush1.bf16.msra.mxu1 %v5621_v44 }
 0xbaf   : > { %2788 = vmatprep.subr.bf16.mxu1 %v5627_v48 }
 0xbb2   : > { %2789 = vmatpush1.bf16.msra.mxu1 %v5625_v49 }
 0xbb3   : > { %2790 = vmatprep.subr.bf16.mxu1 %v5631_v51 }
 0xbb6   : > { %2791 = vmatpush1.bf16.msra.mxu1 %v5629_v52 }
 0xbb7   : > { %2792 = vmatprep.subr.bf16.mxu1 %v5635_v54 }
 0xbba   : > { %2793 = vmatpush1.bf16.msra.mxu1 %v5633_v56 }
 0xbbb   : > { %5209 = vmatprep.subr.bf16.mxu1 %v6262_v3 }
 0xc2f   : > { %v2555_v29 = vpop.xlane.xlu0 %2554 }
 0xc30   : > { %v2556_v30 = vmul.f32 0.0078125, %v2555_v29 }
 0xc32   : > { %v2557_v31 = vsub.f32 %v2551_v21, %v2556_v30 }
 0xc34   : > { %v2558_v32 = vmul.f32 %v2557_v31, %v2557_v31 }
 0xc36   : > { %2559 = vadd.xlane.f32.xlu1 %v2558_v32 }
 0xcbf   : > { %v2560_v39 = vpop.xlane.xlu1 %2559 }
 0xcc0   : > { %v2561_v58 = vmul.f32 0.0078125, %v2560_v39 }
 0xcc2   : > { %v2562_v59 = vadd.f32 1e-12, %v2561_v58  ;;  %v5785_v58 = vld [vmem:[%s6803_s10] sm:$0xff] }
 0xcc4   : > { %5751 = vrsqrt.f32 %v2562_v59 }
 0xcd1   : > { %v5752_v60 = vpop.eup %5751 }
 0xcd2   : > { %v2564_v62 = vmul.f32 %v5752_v60, %v2557_v31 }
 0xcd4   : > { %v2571_v0 = vmul.f32 %v4662_v61, %v2564_v62 }
 0xcd6   : > { %v7150_v1 = vadd.f32 %v4663_v63, %v2571_v0 }
 0xcd8   : > { %v2633_v2 = vpack.c.bf16 %v7150_v1, %v7150_v1 }
 0xcda   : > { %2811 = vmatmul.mubr.bf16.vlgmr.msra.gmra.mxu1 %v2633_v2  ;;  %5206 = vmatmul.mubr.bf16.vlgmr.msra.gmra.mxu0 %v2633_v2 }
 0xcdb   : > { %5211 = vmatprep.mubr.msk.bf16.mxu1 %vm6264_vm0, %v6262_v3  ;;  %5235 = vmatprep.mubr.msk.bf16.mxu0 %vm6264_vm0, %v6262_v3 }
 0xd9a   : > { %v2812_v7 = vpop.f32.mrf.mxu1  ;;  %v2853_v8 = vpop.f32.mrf.mxu0 }
 0xd9b   : > { %v2854_v55 = vadd.f32 %v2853_v8, %v2646_v11  ;;  %v2813_v21 = vadd.f32 %v2812_v7, %v2638_v16 }
 0xd9c   : > { %v2814_v9 = vpop.f32.mrf.mxu1  ;;  %v5207_v10 = vpop.f32.mrf.mxu0 }
 0xd9d   : > { %v2815_v13 = vadd.f32 %v2814_v9, %v2642_v5  ;;  %v7167_v23 = vpack.c.bf16 %v2854_v55, %v2854_v55  ;;  %v2859_v24 = vpack.c.bf16 %v2813_v21, %v2813_v21 }
 0xd9e   : > { %v2816_v14 = vpop.f32.mrf.mxu1  ;;  %v2856_v15 = vpop.f32.mrf.mxu0 }
 0xd9f   : > { %v2860_v17 = vpack.c.bf16 %v2815_v13, %v2815_v13  ;;  %v2926_v42 = vsel %vm1447_vm1, %v7167_v23, 0 }
 0xda0   : > { %v2817_v18 = vpop.f32.mrf.mxu1  ;;  %v5208_v19 = vpop.f32.mrf.mxu0 }
 0xda1   : > { %v2866_v20 = vsel %vm1382_vm2, %v2860_v17, 0 }
 0xda2   : > { %5210 = vmatpush3.bf16.xpose.msra.mxu1 %v2866_v20 }
 0xda3   : > { %5215 = vmatprep.subr.bf16.mxu1 %v6262_v3 }
 0xda9   : > { %5212 = vmatmul.mubr.msk.bf16.vlgmr.msra.gmra.mxu1 %vm1382_vm2, %v2859_v24 }
 0xdaa   : > { %5216 = vmatpush3.bf16.msra.mxu1 %v2926_v42  ;;  %5217 = vmatprep.mubr.msk.bf16.mxu1 %vm6264_vm0, %v6262_v3 }
 0xdab   : > { %5221 = vmatprep.subr.bf16.mxu1 %v6262_v3 }
 0xe69   : > { %v2902_v43 = vpop.f32.mrf.mxu1 }
 0xe6a   : > { %v2908_v25 = vmul.f32 0.17677669, %v2902_v43 }
 0xe6b   : > { %v5213_v26 = vpop.f32.mrf.mxu1 }
 0xe6c   : > { %v2909_v27 = vadd.f32 %v2908_v25, %v6806_v12 }
 0xe6d   : > { %v2905_v28 = vpop.f32.mrf.mxu1 }
 0xe6e   : > { %v2910_v29 = vsel %vm1431_vm3, %v2909_v27, -inf }
 0xe6f   : > { %2911 = vmax.xlane.f32.xlu0 %v2910_v29  ;;  %v5214_v30 = vpop.f32.mrf.mxu1 }
 0xe85   : > { %2972 = vrot.lane.b32.xlu0 %v2860_v17, %s7612_s15 }
 0xe89   : > { %3083 = vrot.lane.b32.xlu0 %v2859_v24, %s7613_s28 }
 0xe8d   : > { %3195 = vrot.lane.b32.xlu0 %v2859_v24, %s7614_s30 }
 0xef8   : > { %v2912_v31 = vpop.xlane.xlu0 %2911 }
 0xef9   : > { %v2913_v32 = vsub.f32 %v2909_v27, %v2912_v31 }
 0xefb   : > { %v2914_v33 = vmul.f32 1.442695, %v2913_v32 }
 0xefc   : > { %v2973_v40 = vpop.permute.xlu0 %2972 }
 0xefd   : > { %5753 = vpow2.f32 %v2914_v33  ;;  %v2978_v52 = vsel %vm1382_vm2, %v2973_v40, 0 }
 0xf00   : > { %v3084_v49 = vpop.permute.xlu0 %3083 }
 0xf04   : > { %v3196_v53 = vpop.permute.xlu0 %3195 }
 0xf0a   : > { %v5754_v34 = vpop.eup %5753 }
 0xf0b   : > { %v2916_v35 = vsel %vm1431_vm3, %v5754_v34, 0.0 }
 0xf0c   : > { %2917 = vadd.xlane.f32.xlu1 %v2916_v35 }
 0xf1d   : > { %2969 = vrot.lane.b32.xlu1 %v2859_v24, %s7612_s15 }
 0xf21   : > { %3085 = vrot.lane.b32.xlu1 %v2860_v17, %s7613_s28 }
 0xf25   : > { %3197 = vrot.lane.b32.xlu1 %v2860_v17, %s7614_s30 }
 0xf95   : > { %v2918_v12 = vpop.xlane.xlu1 %2917 }
 0xf96   : > { %5755 = vrcp.f32 %v2918_v12 }
 0xf99   : > { %v2970_v36 = vpop.permute.xlu1 %2969 }
 0xf9d   : > { %v3086_v37 = vpop.permute.xlu1 %3085 }
 0xf9e   : > { %v3091_v38 = vsel %vm1382_vm2, %v3086_v37, 0 }
 0xf9f   : > { %5234 = vmatpush3.bf16.xpose.msra.mxu0 %v3091_v38 }
 0xfa0   : > { %5245 = vmatprep.subr.bf16.mxu0 %v6262_v3 }
 0xfa1   : > { %v3198_v47 = vpop.permute.xlu1 %3197 }
 0xfa2   : > { %v3203_v50 = vsel %vm1382_vm2, %v3198_v47, 0 }
 0xfa3   : > { %v5756_v44 = vpop.eup %5755 }
 0xfa4   : > { %v2920_v48 = vmul.f32 %v5756_v44, %v5754_v34 }
 0xfa6   : > { %5236 = vmatmul.mubr.msk.bf16.vlgmr.msra.gmra.mxu0 %vm1382_vm2, %v3084_v49  ;;  %v2921_v51 = vpack.c.bf16 %v2920_v48, %v2920_v48 }
 0xfa7   : > { %5246 = vmatpush3.bf16.xpose.msra.mxu0 %v3203_v50  ;;  %5247 = vmatprep.mubr.msk.bf16.mxu0 %vm6264_vm0, %v6262_v3 }
 0xfa8   : > { %5218 = vmatmul.mubr.msk.bf16.vlgmr.msra.gmra.mxu1 %vm1431_vm3, %v2921_v51  ;;  %5257 = vmatprep.subr.bf16.mxu0 %v6262_v3 }
 0xfa9   : > { %5222 = vmatpush3.bf16.xpose.msra.mxu1 %v2978_v52  ;;  %5223 = vmatprep.mubr.msk.bf16.mxu1 %vm6264_vm0, %v6262_v3 }
 0xfaa   : > { %5227 = vmatprep.subr.bf16.mxu1 %v6262_v3 }
 0xfae   : > { %5248 = vmatmul.mubr.msk.bf16.vlgmr.msra.gmra.mxu0 %vm1382_vm2, %v3196_v53 }
 0xfaf   : > { %5273 = vmatprep.mubr.msk.bf16.mxu0 %vm6264_vm0, %v6262_v3 }
 0xfb0   : > { %5224 = vmatmul.mubr.msk.bf16.vlgmr.msra.gmra.mxu1 %vm1382_vm2, %v2970_v36 }
 0xfb1   : > { %5229 = vmatprep.mubr.msk.bf16.mxu1 %vm6264_vm0, %v6262_v3 }
0x1066   : > { %v3127_v54 = vpop.f32.mrf.mxu0 }
0x1067   : > { %v3133_v56 = vmul.f32 0.17677669, %v3127_v54 }
0x1068   : > { %v7202_v57 = vpop.f32.mrf.mxu1  ;;  %v5237_v39 = vpop.f32.mrf.mxu0 }
0x1069   : > { %v3134_v59 = vadd.f32 %v5785_v58, %v3133_v56  ;;  %v5637_v39 = vld [vmem:[%s7610_s13 + $0x78] sm:$0xff]  }
0x106a   : > { %v5219_v60 = vpop.f32.mrf.mxu1  ;;  %v3130_v61 = vpop.f32.mrf.mxu0  ;;  %5258 = vmatpush3.bf16.msra.mxu0 %v5637_v39 }
0x106b   : > { %v3135_v62 = vsel %vm1431_vm3, %v3134_v59, -inf  ;;  %5259 = vmatprep.subr.bf16.mxu0 %v6262_v3  ;;  %v5640_v60 = vld [vmem:[%s7610_s13 + $0x60] sm:$0xff]   ;;  %v5641_v61 = vld [vmem:[%s7610_s13 + $0x58] sm:$0xff]  }
0x106c   : > { %3136 = vmax.xlane.f32.xlu0 %v3135_v62  ;;  %v2965_v63 = vpop.f32.mrf.mxu1  ;;  %v5238_v0 = vpop.f32.mrf.mxu0  ;;  %v5642_v62 = vld [vmem:[%s7610_s13 + $0x50] sm:$0xff]  }
0x106d   : > { %v5643_v63 = vld [vmem:[%s7610_s13 + $0x48] sm:$0xff]  }
0x106e   : > { %v5220_v2 = vpop.f32.mrf.mxu1  ;;  %v3239_v4 = vpop.f32.mrf.mxu0 }
0x106f   : > { %v3245_v5 = vmul.f32 0.17677669, %v3239_v4  ;;  %v5644_v4 = vld [vmem:[%s7610_s13 + $0x40] sm:$0xff]  }
0x1070   : > { %v3014_v7 = vpop.f32.mrf.mxu1  ;;  %v5249_v8 = vpop.f32.mrf.mxu0 }
0x1071   : > { %v3020_v9 = vmul.f32 0.17677669, %v3014_v7  ;;  %v3246_v10 = vadd.f32 %v5785_v58, %v3245_v5  ;;  %v5645_v8 = vld [vmem:[%s7517_s12 + $0x78] sm:$0xff]  }
0x1072   : > { %v5225_v11 = vpop.f32.mrf.mxu1  ;;  %v3242_v13 = vpop.f32.mrf.mxu0 }
0x1073   : > { %v3247_v14 = vsel %vm1431_vm3, %v3246_v10, -inf  ;;  %v3021_v15 = vadd.f32 %v5785_v58, %v3020_v9  ;;  %v5638_v58 = vld [vmem:[%s7610_s13 + $0x70] sm:$0xff]  }
0x1074   : > { %3248 = vmax.xlane.f32.xlu0 %v3247_v14  ;;  %v3017_v16 = vpop.f32.mrf.mxu1  ;;  %v5250_v17 = vpop.f32.mrf.mxu0  ;;  %5260 = vmatpush3.bf16.msra.mxu0 %v5638_v58  ;;  %v5647_v14 = vld [vmem:[%s7517_s12 + $0x68] sm:$0xff]  }
0x1075   : > { %v3022_v18 = vsel %vm1431_vm3, %v3021_v15, -inf  ;;  %5261 = vmatprep.subr.bf16.mxu0 %v6262_v3  ;;  %v5648_v17 = vld [vmem:[%s7517_s12 + $0x60] sm:$0xff]  }
0x1076   : > { %3023 = vmax.xlane.f32.xlu1 %v3022_v18  ;;  %v5226_v19 = vpop.f32.mrf.mxu1 }
0x10f5   : > { %v3137_v55 = vpop.xlane.xlu0 %3136 }
0x10f6   : > { %v3138_v20 = vsub.f32 %v3134_v59, %v3137_v55  ;;  %v5639_v59 = vld [vmem:[%s7610_s13 + $0x68] sm:$0xff]   ;;  %v5649_v55 = vld [vmem:[%s7517_s12 + $0x58] sm:$0xff]  }
0x10f7   : > { %5262 = vmatpush3.bf16.msra.mxu0 %v5639_v59 }
0x10f8   : > { %v3139_v21 = vmul.f32 1.442695, %v3138_v20  ;;  %5263 = vmatprep.subr.bf16.mxu0 %v6262_v3 }
0x10fa   : > { %5757 = vpow2.f32 %v3139_v21  ;;  %v5650_v21 = vld [vmem:[%s7517_s12 + $0x50] sm:$0xff]  }
0x10fb   : > { %5264 = vmatpush3.bf16.msra.mxu0 %v5640_v60 }
0x10fc   : > { %5265 = vmatprep.subr.bf16.mxu0 %v6262_v3 }
0x10fd   : > { %v3249_v24 = vpop.xlane.xlu0 %3248 }
0x10fe   : > { %v3250_v42 = vsub.f32 %v3246_v10, %v3249_v24  ;;  %v5646_v10 = vld [vmem:[%s7517_s12 + $0x70] sm:$0xff]   ;;  %v5651_v24 = vld [vmem:[%s7517_s12 + $0x48] sm:$0xff]  }
0x10ff   : > { %v3024_v43 = vpop.xlane.xlu1 %3023  ;;  %5266 = vmatpush3.bf16.msra.mxu0 %v5641_v61 }
0x1100   : > { %v3251_v25 = vmul.f32 1.442695, %v3250_v42  ;;  %v3025_v26 = vsub.f32 %v3021_v15, %v3024_v43  ;;  %5267 = vmatprep.subr.bf16.mxu0 %v6262_v3  ;;  %v5652_v42 = vld [vmem:[%s7517_s12 + $0x40] sm:$0xff]  }
0x1102   : > { %5759 = vpow2.f32 %v3251_v25  ;;  %v3026_v27 = vmul.f32 1.442695, %v3025_v26 }
0x1103   : > { %5268 = vmatpush3.bf16.msra.mxu0 %v5642_v62 }
0x1104   : > { %5761 = vpow2.f32 %v3026_v27  ;;  %5269 = vmatprep.subr.bf16.mxu0 %v6262_v3 }
0x1107   : > { %v5758_v28 = vpop.eup %5757  ;;  %5270 = vmatpush3.bf16.msra.mxu0 %v5643_v63 }
0x1108   : > { %v3141_v29 = vsel %vm1431_vm3, %v5758_v28, 0.0  ;;  %5271 = vmatprep.subr.bf16.mxu0 %v6262_v3 }
0x1109   : > { %3142 = vadd.xlane.f32.xlu0 %v3141_v29 }
0x110b   : > { %5272 = vmatpush3.bf16.msra.mxu0 %v5644_v4 }
0x110c   : > { %5297 = vmatprep.subr.bf16.mxu0 %v6262_v3 }
0x110f   : > { %v5760_v30 = vpop.eup %5759 }
0x1110   : > { %v3253_v31 = vsel %vm1431_vm3, %v5760_v30, 0.0 }
0x1111   : > { %v5762_v32 = vpop.eup %5761  ;;  %3254 = vadd.xlane.f32.xlu1 %v3253_v31  ;;  %v5654_v31 = vld [vmem:[%s7519_s14 + $0x70] sm:$0xff]  }
0x1112   : > { %v3028_v33 = vsel %vm1431_vm3, %v5762_v32, 0.0 }
0x1115   : > { %3029 = vadd.xlane.f32.xlu1 %v3028_v33  ;;  %v5657_v33 = vld [vmem:[%s7519_s14 + $0x58] sm:$0xff]  }
0x111f   : > { %3035 = vrot.lane.b32.xlu0 %v7167_v23, %s7612_s15 }
0x1126   : > { %3147 = vrot.lane.b32.xlu1 %v7167_v23, %s7613_s28 }
0x112a   : > { %3259 = vrot.lane.b32.xlu1 %v7167_v23, %s7614_s30 }
0x1192   : > { %v3143_v34 = vpop.xlane.xlu0 %3142 }
0x1196   : > { %v3036_v35 = vpop.permute.xlu0 %3035 }
0x1197   : > { %v3041_v12 = vsel %vm1447_vm1, %v3036_v35, 0  ;;  %v5659_v35 = vld [vmem:[%s7519_s14 + $0x48] sm:$0xff]  }
0x1198   : > { %5228 = vmatpush3.bf16.msra.mxu1 %v3041_v12  ;;  %v3465_v12 = vld [vmem:[#allocation11 + $0x1] sm:$0x1] }
0x1199   : > { %5239 = vmatprep.subr.bf16.mxu1 %v6262_v3 }
0x119a   : > { %v3255_v36 = vpop.xlane.xlu1 %3254 }
0x119e   : > { %v3030_v37 = vpop.xlane.xlu1 %3029 }
0x119f   : > { %5763 = vrcp.f32 %v3030_v37 }
0x11a0   : > { %5765 = vrcp.f32 %v3143_v34  ;;  %v5658_v34 = vld [vmem:[%s7519_s14 + $0x50] sm:$0xff]  }
0x11a1   : > { %5767 = vrcp.f32 %v3255_v36  ;;  %v5660_v36 = vld [vmem:[%s7519_s14 + $0x40] sm:$0xff]  }
0x11a2   : > { %v3148_v44 = vpop.permute.xlu1 %3147 }
0x11a3   : > { %v3153_v49 = vsel %vm1447_vm1, %v3148_v44, 0 }
0x11a6   : > { %v3260_v50 = vpop.permute.xlu1 %3259 }
0x11a7   : > { %v3265_v53 = vsel %vm1447_vm1, %v3260_v50, 0 }
0x11ac   : > { %v5764_v38 = vpop.eup %5763 }
0x11ad   : > { %v3032_v40 = vmul.f32 %v5764_v38, %v5762_v32  ;;  %v5766_v48 = vpop.eup %5765  ;;  %v5656_v32 = vld [vmem:[%s7519_s14 + $0x60] sm:$0xff]  }
0x11ae   : > { %v3145_v23 = vmul.f32 %v5766_v48, %v5758_v28  ;;  %v5768_v52 = vpop.eup %5767 }
0x11af   : > { %v3033_v47 = vpack.c.bf16 %v3032_v40, %v3032_v40  ;;  %v3257_v54 = vmul.f32 %v5768_v52, %v5760_v30 }
0x11b0   : > { %v3146_v51 = vpack.c.bf16 %v3145_v23, %v3145_v23 }
0x11b1   : > { %5230 = vmatmul.mubr.msk.bf16.vlgmr.msra.gmra.mxu1 %vm1431_vm3, %v3033_v47  ;;  %v3258_v56 = vpack.c.bf16 %v3257_v54, %v3257_v54 }
0x11b2   : > { %5240 = vmatpush3.bf16.msra.mxu1 %v3153_v49  ;;  %5241 = vmatprep.mubr.msk.bf16.mxu1 %vm6264_vm0, %v6262_v3  ;;  %v4745_v49 = vld [vmem:[#allocation7 + $0x1] ss:$0 sm:$0xff] }
0x11b3   : > { %5251 = vmatprep.subr.bf16.mxu1 %v6262_v3 }
0x11b9   : > { %5242 = vmatmul.mubr.msk.bf16.vlgmr.msra.gmra.mxu1 %vm1431_vm3, %v3146_v51 }
0x11ba   : > { %5252 = vmatpush3.bf16.msra.mxu1 %v3265_v53  ;;  %5253 = vmatprep.mubr.msk.bf16.mxu1 %vm6264_vm0, %v6262_v3 }
0x11bb   : > { %5277 = vmatprep.subr.bf16.mxu1 %v6262_v3 }
0x11c1   : > { %5254 = vmatmul.mubr.msk.bf16.vlgmr.msra.gmra.mxu1 %vm1431_vm3, %v3258_v56 }
0x11c2   : > { %5293 = vmatprep.mubr.msk.bf16.mxu1 %vm6264_vm0, %v6262_v3  ;;  %5278 = vmatpush3.bf16.msra.mxu1 %v5645_v8 }
0x11c3   : > { %5279 = vmatprep.subr.bf16.mxu1 %v6262_v3 }
0x11c6   : > { %5280 = vmatpush3.bf16.msra.mxu1 %v5646_v10  ;;  %v4755_v10 = vld [vmem:[#allocation10 + $0x1] ss:$0 sm:$0xff] }
0x11c7   : > { %5281 = vmatprep.subr.bf16.mxu1 %v6262_v3 }
0x11ca   : > { %5282 = vmatpush3.bf16.msra.mxu1 %v5647_v14 }
0x11cb   : > { %5283 = vmatprep.subr.bf16.mxu1 %v6262_v3 }
0x11ce   : > { %5284 = vmatpush3.bf16.msra.mxu1 %v5648_v17  ;;  %v5663_v17 = vld [vmem:[%s7523_s18 + $0xf4] ss:$8 sps:$4 sm:$0xff]  }
0x11cf   : > { %5285 = vmatprep.subr.bf16.mxu1 %v6262_v3 }
0x11d2   : > { %5286 = vmatpush3.bf16.msra.mxu1 %v5649_v55 }
0x11d3   : > { %5287 = vmatprep.subr.bf16.mxu1 %v6262_v3 }
0x11d6   : > { %5288 = vmatpush3.bf16.msra.mxu1 %v5650_v21 }
0x11d7   : > { %5289 = vmatprep.subr.bf16.mxu1 %v6262_v3 }
0x11da   : > { %5290 = vmatpush3.bf16.msra.mxu1 %v5651_v24 }
0x11db   : > { %5291 = vmatprep.subr.bf16.mxu1 %v6262_v3 }
0x11de   : > { %5292 = vmatpush3.bf16.msra.mxu1 %v5652_v42  ;;  %v5669_v42 = vld [vmem:[%s7523_s18 + $0xd4] ss:$8 sps:$4 sm:$0xff]  }
0x11df   : > { %3807 = vmatprep.subr.bf16.mxu1 %v5663_v17 }
0x11e1   : > { %5294 = vmatmul.mubr.bf16.vlgmr.msra.gmra.mxu1 %v6916_v6  ;;  %v5653_v6 = vld [vmem:[%s7519_s14 + $0x78] sm:$0xff]  }
0x11e2   : > { %3839 = vmatprep.mubr.bf16.mxu1 %v6263_v22 }
0x1271   : > { %v3077_v0 = vpop.f32.mrf.mxu1 }
0x1272   : > { %3308 = vrot.lane.b32.xlu0 %v3077_v0, %s7614_s30  ;;  %s4272_s30 = scalar_lea.hbm %s7616_s3, %s4912_s7 }
0x1273   : > { %v5231_v2 = vpop.f32.mrf.mxu1 }
0x1275   : > { %v3080_v5 = vpop.f32.mrf.mxu1 }
0x1276   : > { %v3573_v5 = vld [vmem:[#allocation13 + $0x1] sm:$0x1] }
0x1277   : > { %v5232_v7 = vpop.f32.mrf.mxu1 }
0x1279   : > { %v3189_v9 = vpop.f32.mrf.mxu1 }
0x127a   : > { %3312 = vrot.lane.b32.xlu1 %v3189_v9, %s7613_s28  ;;  %s1043_s28 = sand.u32 1, %s6234_s4  }
0x127b   : > { %v5243_v11 = vpop.f32.mrf.mxu1  ;;  %s4561_s8 = sshll.u32 %s1043_s28, 4  ;;  %s4256_s10 = scalar_lea.sflag [#allocation4], %s1043_s28 }
0x127c   : > { %s7458_s2 = scalar_lea.vmem [#allocation25], %s4561_s8 }
0x127d   : > { %v3192_v13 = vpop.f32.mrf.mxu1  ;;  %s4274_s6 = sshll.u32 %s7458_s2, 4  ;;  %s4275_s6 = int_to_ptr.vmem [resolvable:$true] %s4274_s6 }
0x127e   : > { %s6150_s26 = scalar_lea.vmem %s4275_s6, 256 }
0x127f   : > { %v5244_v15 = vpop.f32.mrf.mxu1  ;;  %p6151_p12 = scmp.ne.s32.totalorder %s4275_s6, %s6150_s26 }
0x1281   : > { %v3301_v16 = vpop.f32.mrf.mxu1  ;;  %p6152_p10 = pnand %p6151_p12, %p6447_p5 }
0x1282   : > { %3316 = vrot.lane.b32.xlu0 %v3301_v16, %s7612_s15  ;;  %v5661_v16 = vld [vmem:[%s7523_s18 + $0xf0] ss:$8 sps:$4 sm:$0xff]  }
0x1283   : > { %v5255_v18 = vpop.f32.mrf.mxu1  ;;  %3808 = vmatpush1.bf16.msra.mxu1 %v5661_v16  ;;  %p6153_p3 = pneg %p6152_p10 }
0x1284   : > { %v5666_v18 = vld [vmem:[%s7523_s18 + $0xe4] ss:$8 sps:$4 sm:$0xff]  }
0x1285   : > { %v3304_v19 = vpop.f32.mrf.mxu1  ;;  %3809 = vmatprep.subr.bf16.mxu1 %v5666_v18 }
0x1286   : > { %v5664_v19 = vld [vmem:[%s7523_s18 + $0xe0] ss:$8 sps:$4 sm:$0xff]  }
0x1287   : > { %v5256_v20 = vpop.f32.mrf.mxu1  ;;  %3810 = vmatpush1.bf16.msra.mxu1 %v5664_v19 }
0x1288   : > { %3811 = vmatprep.subr.bf16.mxu1 %v5669_v42  ;;  %v4871_v42 = vld [vmem:[#allocation17 + $0x1] ss:$0 sm:$0xff] }
0x12a1   : > { %v3548_v37 = vpop.f32.mrf.mxu1 }
0x12a2   : > { %v3549_v38 = vadd.f32 %v3548_v37, %v3465_v12 }
0x12a3   : > { %v5295_v40 = vpop.f32.mrf.mxu1 }
0x12a4   : > { %v3571_v44 = vpack.c.bf16 %v3549_v38, %v3549_v38  ;;  %v4804_v38 = vld [vmem:[#allocation14 + $0x1] ss:$0 sm:$0xff] }
0x12a5   : > { %v3551_v47 = vpop.f32.mrf.mxu1 }
0x12a7   : > { %v5296_v48 = vpop.f32.mrf.mxu1 }
0x12e4   : > { %v3309_v43 = vpop.permute.xlu0 %3308 }
0x12e5   : > { %v3319_v26 = vsel %vm1382_vm2, %v7202_v57, %v3309_v43  ;;  %v5655_v57 = vld [vmem:[%s7519_s14 + $0x68] sm:$0xff]   ;;  %v5667_v43 = vld [vmem:[%s7523_s18 + $0xd0] ss:$8 sps:$4 sm:$0xff]  }
0x12e6   : > { %3812 = vmatpush1.bf16.msra.mxu1 %v5667_v43 }
0x12ec   : > { %v3313_v25 = vpop.permute.xlu1 %3312 }
0x12ed   : > { %v3320_v27 = vsel %vm1843_vm4, %v3319_v26, %v3313_v25  ;;  %v5670_v25 = vld [vmem:[%s7523_s18 + $0xc0] ss:$8 sps:$4 sm:$0xff]   ;;  %v5672_v26 = vld [vmem:[%s7523_s18 + $0xc4] ss:$8 sps:$4 sm:$0xff]  }
0x12ee   : > { %3813 = vmatprep.subr.bf16.mxu1 %v5672_v26 }
0x12ef   : > { %3814 = vmatpush1.bf16.msra.mxu1 %v5670_v25 }
0x12f4   : > { %v3317_v28 = vpop.permute.xlu0 %3316 }
0x12f5   : > { %v3321_v29 = vsel %vm1845_vm5, %v3320_v27, %v3317_v28  ;;  %v5675_v27 = vld [vmem:[%s7523_s18 + $0xb4] ss:$8 sps:$4 sm:$0xff]   ;;  %v5673_v28 = vld [vmem:[%s7523_s18 + $0xb0] ss:$8 sps:$4 sm:$0xff]  }
0x12f6   : > { %v3322_v30 = vpack.c.bf16 %v3321_v29, %v3321_v29  ;;  %3815 = vmatprep.subr.bf16.mxu1 %v5675_v27  ;;  %v5678_v29 = vld [vmem:[%s7523_s18 + $0xa4] ss:$8 sps:$4 sm:$0xff]  }
0x12f7   : > { %3816 = vmatpush1.bf16.msra.mxu1 %v5673_v28 }
0x12f8   : > { %5274 = vmatmul.mubr.bf16.vlgmr.msra.gmra.mxu0 %v3322_v30  ;;  %v5676_v30 = vld [vmem:[%s7523_s18 + $0xa0] ss:$8 sps:$4 sm:$0xff]   ;;  %3817 = vmatprep.subr.bf16.mxu1 %v5678_v29 }
0x12f9   : > { %5313 = vmatprep.mubr.msk.bf16.mxu0 %vm6264_vm0, %v6262_v3  ;;  %5298 = vmatpush3.bf16.msra.mxu0 %v5653_v6  ;;  %v5681_v6 = vld [vmem:[%s7523_s18 + $0x94] ss:$8 sps:$4 sm:$0xff]  }
0x12fa   : > { %5299 = vmatprep.subr.bf16.mxu0 %v6262_v3 }
0x12fb   : > { %3818 = vmatpush1.bf16.msra.mxu1 %v5676_v30  ;;  %v5701_v30 = vld [vmem:[#allocation22 + $0x70] ss:$8 sps:$4 sm:$0xff]  }
0x12fc   : > { %3819 = vmatprep.subr.bf16.mxu1 %v5681_v6  ;;  %v5703_v6 = vld [vmem:[#allocation22 + $0x74] ss:$8 sps:$4 sm:$0xff]  }
0x12fd   : > { %5300 = vmatpush3.bf16.msra.mxu0 %v5654_v31  ;;  %v5679_v31 = vld [vmem:[%s7523_s18 + $0x90] ss:$8 sps:$4 sm:$0xff]  }
0x12fe   : > { %5301 = vmatprep.subr.bf16.mxu0 %v6262_v3 }
0x12ff   : > { %3820 = vmatpush1.bf16.msra.mxu1 %v5679_v31  ;;  %v5706_v31 = vld [vmem:[#allocation22 + $0x64] ss:$8 sps:$4 sm:$0xff]  }
0x1301   : > { %5302 = vmatpush3.bf16.msra.mxu0 %v5655_v57  ;;  %v5684_v57 = vld [vmem:[%s7523_s18 + $0x84] ss:$8 sps:$4 sm:$0xff]  }
0x1302   : > { %5303 = vmatprep.subr.bf16.mxu0 %v6262_v3  ;;  %3821 = vmatprep.subr.bf16.mxu1 %v5684_v57  ;;  %v5704_v57 = vld [vmem:[#allocation22 + $0x60] ss:$8 sps:$4 sm:$0xff]  }
0x1305   : > { %5304 = vmatpush3.bf16.msra.mxu0 %v5656_v32  ;;  %v5682_v32 = vld [vmem:[%s7523_s18 + $0x80] ss:$8 sps:$4 sm:$0xff]  }
0x1306   : > { %5305 = vmatprep.subr.bf16.mxu0 %v6262_v3  ;;  %3822 = vmatpush1.bf16.msra.mxu1 %v5682_v32 }
0x1307   : > { %4176 = vmatprep.subr.bf16.mxu1 %v5703_v6 }
0x1309   : > { %5306 = vmatpush3.bf16.msra.mxu0 %v5657_v33  ;;  %v5685_v33 = vld [vmem:[%s7525_s20 + $0xf8] sm:$0xff]  }
0x130a   : > { %5307 = vmatprep.subr.bf16.mxu0 %v6262_v3 }
0x130d   : > { %5308 = vmatpush3.bf16.msra.mxu0 %v5658_v34  ;;  %v5686_v34 = vld [vmem:[%s7525_s20 + $0xb8] sm:$0xff]  }
0x130e   : > { %5309 = vmatprep.subr.bf16.mxu0 %v6262_v3 }
0x1311   : > { %5310 = vmatpush3.bf16.msra.mxu0 %v5659_v35 }
0x1312   : > { %5311 = vmatprep.subr.bf16.mxu0 %v6262_v3 }
0x1315   : > { %5312 = vmatpush3.bf16.msra.mxu0 %v5660_v36 }
0x1316   : > { %5039 = vmatprep.subr.bf16.mxu0 %v5685_v33 }
0x1318   : > { %5314 = vmatmul.mubr.bf16.vlgmr.msra.gmra.mxu0 %v3571_v44  ;;  %v4805_v44 = vld [vmem:[#allocation16 + $0x1] ss:$0 sm:$0xff] }
0x1319   : > { %5040 = vmatpush3.bf16.msra.mxu0 %v5686_v34 }
0x13b8   : > { %v3411_v23 = vpop.f32.mrf.mxu0 }
0x13b9   : > { %v3412_v50 = vadd.f32 %v4745_v49, %v3411_v23  ;;  %v5687_v23 = vld [vmem:[%s7525_s20 + $0xf0] sm:$0xff]  }
0x13ba   : > { %v5275_v51 = vpop.f32.mrf.mxu0  ;;  %5041 = vmatprep.subr.bf16.mxu0 %v5687_v23  ;;  %v5719_v23 = vld [vmem:[#allocation22 + $0x10] ss:$8 sps:$4 sm:$0xff]  }
0x13bb   : > { %v3417_v52 = vadd.f32 %v3412_v50, %v7150_v1  ;;  %v4754_v1 = vld [vmem:[#allocation8 + $0x1] ss:$0 sm:$0xff]  ;;  %v5688_v50 = vld [vmem:[%s7525_s20 + $0xb0] sm:$0xff]   ;;  %v5689_v51 = vld [vmem:[%s7525_s20 + $0xe8] sm:$0xff]  }
0x13bc   : > { %v3414_v53 = vpop.f32.mrf.mxu0  ;;  %5042 = vmatpush3.bf16.msra.mxu0 %v5688_v50  ;;  %v5724_v50 = vld [vmem:[#allocation22 + $0x4] ss:$8 sps:$4 sm:$0xff]  }
0x13bd   : > { %3422 = vadd.xlane.f32.xlu1 %v3417_v52  ;;  %5043 = vmatprep.subr.bf16.mxu0 %v5689_v51  ;;  %v5692_v53 = vld [vmem:[%s7525_s20 + $0xa0] sm:$0xff]  }
0x13be   : > { %v5276_v54 = vpop.f32.mrf.mxu0  ;;  %v5722_v51 = vld [vmem:[#allocation22] ss:$8 sps:$4 sm:$0xff]  }
0x13bf   : > { %v5693_v54 = vld [vmem:[%s7525_s20 + $0xd8] sm:$0xff]  }
0x13d8   : > { %v3656_v60 = vpop.f32.mrf.mxu0 }
0x13d9   : > { %v3657_v7 = vadd.f32 %v3656_v60, %v3573_v5  ;;  %v5698_v60 = vld [vmem:[%s7525_s20 + $0x88] sm:$0xff]  }
0x13da   : > { %v5315_v61 = vpop.f32.mrf.mxu0 }
0x13db   : > { %v3665_v11 = vrot.slane %v3657_v7, %v6762_v46  ;;  %v5699_v61 = vld [vmem:[%s7525_s20 + $0xc0] sm:$0xff]  }
0x13dc   : > { %v3659_v62 = vpop.f32.mrf.mxu0 }
0x13dd   : > { %v5700_v62 = vld [vmem:[%s7525_s20 + $0x80] sm:$0xff]  }
0x13de   : > { %v5316_v63 = vpop.f32.mrf.mxu0 }
0x13df   : > { %v4822_v63 = vld [vmem:[%s7524_s19 + $0x2] sm:$0x3] }
0x1446   : > { %v3423_v56 = vpop.xlane.xlu1 %3422 }
0x1447   : > { %v3424_v39 = vmul.f32 0.0078125, %v3423_v56  ;;  %v5694_v56 = vld [vmem:[%s7525_s20 + $0x98] sm:$0xff]  }
0x1449   : > { %v3425_v58 = vsub.f32 %v3417_v52, %v3424_v39  ;;  %v5690_v52 = vld [vmem:[%s7525_s20 + $0xa8] sm:$0xff]   ;;  %v5695_v39 = vld [vmem:[%s7525_s20 + $0xd0] sm:$0xff]  }
0x144a   : > { %5044 = vmatpush3.bf16.msra.mxu0 %v5690_v52  ;;  %v7450_v52 = vld [vmem:[%s1066_s5] sm:$0xff]  ;;  %s6268_s5 = smov [#allocation25]  }
0x144b   : > { %v3426_v59 = vmul.f32 %v3425_v58, %v3425_v58  ;;  %s6154_s8 = sshll.u32 %s6268_s5, 4  ;;  %s6155_s8 = int_to_ptr.vmem [resolvable:$false] %s6154_s8 }
0x144c   : > { %s6156_s0 = scalar_lea.vmem %s6155_s8, 512  ;;  %p6157_p4 = scmp.lt.s32.totalorder %s4275_s6, %s6155_s8 }
0x144d   : > { %3427 = vadd.xlane.f32.xlu0 %v3426_v59  ;;  %v5697_v59 = vld [vmem:[%s7525_s20 + $0xc8] sm:$0xff]   ;;  %p6158_p9 = scmp.lt.s32.totalorder %s6156_s0, %s6150_s26 }
0x144f   : > { %p6159_p8 = por %p6158_p9, %p6157_p4 }
0x1451   : > { %p6160_p11 = pnand %p6159_p8, %p6153_p3 }
0x14d6   : > { %v3428_v0 = vpop.xlane.xlu0 %3427 }
0x14d7   : > { %v3429_v2 = vmul.f32 0.0078125, %v3428_v0  ;;  %v3720_v0 = vrot.slane %v4822_v63, %v6762_v46 }
0x14d9   : > { %v3430_v4 = vadd.f32 1e-12, %v3429_v2  ;;  %v3724_v2 = vrot.slane %v4822_v63, %v6759_v45  ;;  %v4084_v63 = vld [vmem:[#allocation23] sm:$0x3] }
0x14db   : > { %5769 = vrsqrt.f32 %v3430_v4 }
0x14e8   : > { %v5770_v8 = vpop.eup %5769 }
0x14e9   : > { %v3432_v9 = vmul.f32 %v5770_v8, %v3425_v58  ;;  %v5696_v58 = vld [vmem:[%s7525_s20 + $0x90] sm:$0xff]  }
0x14eb   : > { %v3439_v13 = vmul.f32 %v4754_v1, %v3432_v9 }
0x14ed   : > { %v3446_v14 = vadd.f32 %v4755_v10, %v3439_v13 }
0x14ef   : > { %v3666_v15 = vadd.f32 %v3665_v11, %v3446_v14 }
0x14f1   : > { %3671 = vadd.xlane.f32.xlu0 %v3666_v15 }
0x157a   : > { %v3672_v55 = vpop.xlane.xlu0 %3671 }
0x157b   : > { %v3673_v20 = vmul.f32 0.0078125, %v3672_v55 }
0x157d   : > { %v3674_v21 = vsub.f32 %v3666_v15, %v3673_v20 }
0x157f   : > { %v3675_v24 = vmul.f32 %v3674_v21, %v3674_v21 }
0x1581   : > { %3676 = vadd.xlane.f32.xlu1 %v3675_v24 }
0x160a   : > { %v3677_v35 = vpop.xlane.xlu1 %3676 }
0x160b   : > { %v3678_v12 = vmul.f32 0.0078125, %v3677_v35 }
0x160d   : > { %v3679_v36 = vadd.f32 1e-12, %v3678_v12  ;;  %v5709_v12 = vld [vmem:[#allocation22 + $0x54] ss:$8 sps:$4 sm:$0xff]  }
0x160f   : > { %5771 = vrsqrt.f32 %v3679_v36  ;;  %v5707_v36 = vld [vmem:[#allocation22 + $0x50] ss:$8 sps:$4 sm:$0xff]  }
0x161c   : > { %v5772_v37 = vpop.eup %5771 }
0x161d   : > { %v3681_v40 = vmul.f32 %v5772_v37, %v3674_v21  ;;  %v5710_v37 = vld [vmem:[#allocation22 + $0x40] ss:$8 sps:$4 sm:$0xff]  }
0x161f   : > { %v3688_v47 = vmul.f32 %v4804_v38, %v3681_v40  ;;  %v5712_v38 = vld [vmem:[#allocation22 + $0x44] ss:$8 sps:$4 sm:$0xff]   ;;  %v5715_v40 = vld [vmem:[#allocation22 + $0x34] ss:$8 sps:$4 sm:$0xff]  }
0x1621   : > { %v7393_v48 = vadd.f32 %v4805_v44, %v3688_v47  ;;  %v5713_v44 = vld [vmem:[#allocation22 + $0x30] ss:$8 sps:$4 sm:$0xff]   ;;  %v5718_v47 = vld [vmem:[#allocation22 + $0x24] ss:$8 sps:$4 sm:$0xff]  }
0x1623   : > { %v3713_v49 = vpack.c.bf16 %v7393_v48, %v7393_v48 }
0x1625   : > { %3840 = vmatmul.mubr.bf16.vlgmr.msra.gmra.mxu1 %v3713_v49  ;;  %v5721_v49 = vld [vmem:[#allocation22 + $0x14] ss:$8 sps:$4 sm:$0xff]  }
0x1626   : > { %4208 = vmatprep.mubr.bf16.mxu1 %v6263_v22  ;;  %v5691_v22 = vld [vmem:[%s7525_s20 + $0xe0] sm:$0xff]   ;;  %4177 = vmatpush1.bf16.msra.mxu1 %v5701_v30 }
0x1627   : > { %5045 = vmatprep.subr.bf16.mxu0 %v5691_v22  ;;  %4178 = vmatprep.subr.bf16.mxu1 %v5706_v31 }
0x1628   : > { %5046 = vmatpush3.bf16.msra.mxu0 %v5692_v53 }
0x1629   : > { %5047 = vmatprep.subr.bf16.mxu0 %v5693_v54 }
0x162a   : > { %4179 = vmatpush1.bf16.msra.mxu1 %v5704_v57 }
0x162b   : > { %4180 = vmatprep.subr.bf16.mxu1 %v5709_v12 }
0x162c   : > { %5048 = vmatpush3.bf16.msra.mxu0 %v5694_v56 }
0x162d   : > { %5049 = vmatprep.subr.bf16.mxu0 %v5695_v39  ;;  %v4888_v39 = vld [vmem:[#allocation19 + $0x1] ss:$0 sm:$0xff] }
0x162e   : > { %4181 = vmatpush1.bf16.msra.mxu1 %v5707_v36 }
0x162f   : > { %4182 = vmatprep.subr.bf16.mxu1 %v5712_v38 }
0x1630   : > { %5050 = vmatpush3.bf16.msra.mxu0 %v5696_v58 }
0x1631   : > { %5051 = vmatprep.subr.bf16.mxu0 %v5697_v59  ;;  %v4889_v59 = vld [vmem:[#allocation20 + $0x1] ss:$0 sm:$0xff] }
0x1632   : > { %4183 = vmatpush1.bf16.msra.mxu1 %v5710_v37 }
0x1633   : > { %4184 = vmatprep.subr.bf16.mxu1 %v5715_v40 }
0x1634   : > { %5052 = vmatpush3.bf16.msra.mxu0 %v5698_v60 }
0x1635   : > { %5053 = vmatprep.subr.bf16.mxu0 %v5699_v61 }
0x1636   : > { %4185 = vmatpush1.bf16.msra.mxu1 %v5713_v44 }
0x1637   : > { %4186 = vmatprep.subr.bf16.mxu1 %v5718_v47 }
0x1638   : > { %5054 = vmatpush3.bf16.msra.mxu0 %v5700_v62 }
0x16e5   : > { %v3841_v4 = vpop.f32.mrf.mxu1 }
0x16e6   : > { %v3842_v5 = vadd.f32 %v3841_v4, %v3720_v0  ;;  %v4089_v0 = vrot.slane %v4084_v63, %v6762_v46 }
0x16e7   : > { %v3843_v7 = vpop.f32.mrf.mxu1 }
0x16e8   : > { %v3850_v8 = vmul.f32 0.70710677, %v3842_v5  ;;  %v3844_v1 = vadd.f32 %v3843_v7, %v3724_v2  ;;  %v3848_v16 = vmul.f32 0.5, %v3842_v5  ;;  %v4093_v2 = vrot.slane %v4084_v63, %v6759_v45 }
0x16e9   : > { %v3845_v9 = vpop.f32.mrf.mxu1  ;;  %v4236_v45 = vand.u32 127, %v1155_v41 }
0x16ea   : > { %5773 = verf.f32 %v3850_v8  ;;  %v3851_v10 = vmul.f32 0.70710677, %v3844_v1  ;;  %v3849_v17 = vmul.f32 0.5, %v3844_v1 }
0x16eb   : > { %v3846_v11 = vpop.f32.mrf.mxu1 }
0x16ec   : > { %5775 = verf.f32 %v3851_v10 }
0x16f7   : > { %v5774_v13 = vpop.eup %5773 }
0x16f8   : > { %v3854_v14 = vadd.f32 1.0, %v5774_v13 }
0x16f9   : > { %v5776_v15 = vpop.eup %5775 }
0x16fa   : > { %v3855_v18 = vadd.f32 1.0, %v5776_v15  ;;  %v3856_v19 = vmul.f32 %v3854_v14, %v3848_v16  ;;  %v4237_v16 = vadd.s32 128, %v4236_v45 }
0x16fc   : > { %v3857_v55 = vmul.f32 %v3855_v18, %v3849_v17  ;;  %v3891_v21 = vpack.c.bf16 %v3856_v19, %v3856_v19 }
0x16fe   : > { %v3892_v20 = vpack.c.bf16 %v3857_v55, %v3857_v55 }
0x1700   : > { %4029 = vmatprep.mubr.bf16.mxu0 %v3892_v20 }
0x1701   : > { %4030 = vmatmul.mubr.bf16.vlgmr.msra.gmra.mxu0 %v3891_v21 }
0x17c1   : > { %v5055_v24 = vpop.f32.mrf.mxu0 }
0x17c3   : > { %v5056_v43 = vpop.f32.mrf.mxu0 }
0x17c4   : > { %v5057_v25 = vadd.f32 %v5056_v43, %v5055_v24 }
0x17c5   : > { %v5058_v26 = vpop.f32.mrf.mxu0 }
0x17c6   : > { %v4032_v27 = vadd.f32 %v5057_v25, %v4871_v42 }
0x17c7   : > { %v5059_v28 = vpop.f32.mrf.mxu0 }
0x17c8   : > { %v4037_v29 = vadd.f32 %v4032_v27, %v7393_v48  ;;  %v5716_v48 = vld [vmem:[#allocation22 + $0x20] ss:$8 sps:$4 sm:$0xff]  }
0x17c9   : > { %4187 = vmatpush1.bf16.msra.mxu1 %v5716_v48 }
0x17ca   : > { %4042 = vadd.xlane.f32.xlu0 %v4037_v29  ;;  %4188 = vmatprep.subr.bf16.mxu1 %v5721_v49 }
0x17cd   : > { %4189 = vmatpush1.bf16.msra.mxu1 %v5719_v23 }
0x17ce   : > { %4190 = vmatprep.subr.bf16.mxu1 %v5724_v50 }
0x17d1   : > { %4191 = vmatpush1.bf16.msra.mxu1 %v5722_v51 }
0x1853   : > { %v4043_v32 = vpop.xlane.xlu0 %4042 }
0x1854   : > { %v4044_v33 = vmul.f32 0.0078125, %v4043_v32 }
0x1856   : > { %v4045_v34 = vsub.f32 %v4037_v29, %v4044_v33 }
0x1858   : > { %v4046_v35 = vmul.f32 %v4045_v34, %v4045_v34 }
0x185a   : > { %4047 = vadd.xlane.f32.xlu1 %v4046_v35 }
0x186b   : > { %4239 = vperm.xlu1 %5507, %v7450_v52  }
0x18e3   : > { %v4048_v22 = vpop.xlane.xlu1 %4047 }
0x18e4   : > { %v4049_v53 = vmul.f32 0.0078125, %v4048_v22 }
0x18e6   : > { %v4050_v54 = vadd.f32 1e-12, %v4049_v53 }
0x18e7   : > { %v4240_v17 = vpop.permute.xlu1 %4239 }
0x18e8   : > { %5777 = vrsqrt.f32 %v4050_v54  ;;  %vm4242_vm6 = vcmp.eq.s32.totalorder %v4237_v16, %v4240_v17  ;;  %vm4241_vm7 = vcmp.eq.s32.totalorder %v4236_v45, %v4240_v17 }
0x18f5   : > { %v5778_v56 = vpop.eup %5777 }
0x18f6   : > { %v4052_v58 = vmul.f32 %v5778_v56, %v4045_v34 }
0x18f8   : > { %v4059_v60 = vmul.f32 %v4888_v39, %v4052_v58 }
0x18fa   : > { %v4066_v61 = vadd.f32 %v4889_v59, %v4059_v60 }
0x18fc   : > { %v4083_v62 = vpack.c.bf16 %v4066_v61, %v4066_v61 }
0x18fe   : > { %4209 = vmatmul.mubr.bf16.vlgmr.msra.gmra.mxu1 %v4083_v62 }
0x19be   : > { %v4210_v4 = vpop.f32.mrf.mxu1 }
0x19bf   : > { %v4211_v5 = vadd.f32 %v4210_v4, %v4089_v0 }
0x19c0   : > { %v4212_v7 = vpop.f32.mrf.mxu1 }
0x19c1   : > { %v4213_v8 = vadd.f32 %v4212_v7, %v4093_v2  ;;  %4217 = vst [vmem:[%s7458_s2] sm:$0xff] %v4211_v5  ;;  %v4243_v21 = vsel %vm4241_vm7, %v4211_v5, 0.0 }
0x19c2   : > { %v4214_v1 = vpop.f32.mrf.mxu1 }
0x19c3   : > { %v4220_v9 = vmax.f32 %v4211_v5, %v4213_v8  ;;  %4218 = vst [vmem:[%s7458_s2 + $0x8] sm:$0xff] %v4213_v8  ;;  %v4244_v20 = vsel %vm4242_vm6, %v4213_v8, 0.0 }
0x19c4   : > { %v4215_v10 = vpop.f32.mrf.mxu1  ;;  %v4245_v24 = vadd.f32 %v4244_v20, %v4243_v21 }
0x19c5   : > { %4221 = vmax.xlane.f32.xlu0 %v4220_v9 }
0x1a4e   : > { %v4222_v11 = vpop.xlane.xlu0 %4221 }
0x1a4f   : > { %v4223_v46 = vsub.f32 %v4211_v5, %v4222_v11  ;;  %v4224_v13 = vsub.f32 %v4213_v8, %v4222_v11 }
0x1a51   : > { %v4225_v14 = vmul.f32 1.442695, %v4223_v46  ;;  %v4227_v15 = vmul.f32 1.442695, %v4224_v13 }
0x1a53   : > { %5779 = vpow2.f32 %v4225_v14 }
0x1a54   : > { %5781 = vpow2.f32 %v4227_v15 }
0x1a60   : > { %v5780_v18 = vpop.eup %5779 }
0x1a61   : > { %v5782_v19 = vpop.eup %5781 }
0x1a62   : > { %v4229_v55 = vadd.f32 %v5782_v19, %v5780_v18 }
0x1a64   : > { %4230 = vadd.xlane.f32.xlu0 %v4229_v55 }
0x1a68   : > { %4246 = vadd.xlane.f32.xlu0 %v4245_v24 }
0x1a69   : > { %6163 = shalt.err (!%p6160_p11)
}
0x1a6a   : > { %s6164_s9 = scalar_lea.hbm %s4272_s30, 256  ;;  %s6168_s7 = scalar_lea.hbm %s7616_s3, 512 }
0x1a6b   : > { %p6165_p7 = scmp.ne.s32.totalorder %s4272_s30, %s6164_s9  ;;  %p6169_p1 = scmp.lt.s32.totalorder %s4272_s30, %s7616_s3 }
0x1a6c   : > { %p6170_p2 = scmp.lt.s32.totalorder %s6168_s7, %s6164_s9 }
0x1a6d   : > { %p6166_p13 = pnand %p6165_p7, %p6447_p5 }
0x1a6e   : > { %p6171_p12 = por %p6170_p2, %p6169_p1 }
0x1a6f   : > { %p6167_p0 = pneg %p6166_p13 }
0x1a71   : > { %p6172_p10 = pnand %p6171_p12, %p6167_p0 }
0x1a73   : > { %6175 = shalt.err (!%p6172_p10)
}
0x1a74   : > { %5373 = dma.vmem_to_hbm [thread:$0]  (%p6447_p5), %s4275_s6, 256, %s4272_s30, %s4256_s10   ;;  %vm4248_vm8 = vcmp.ne.s32.totalorder %v7450_v52, 4294967196  ;;  %vm4253_vm9 = vcmask 7168  }
0x1a75   : > { %v4906_v26 = vsel %vm4248_vm8, 1.0, %v6262_v3  ;;  %s7617_s5 = sld [smem:[#allocation56_spill]] }
0x1a7b   : > { %s1070_s8 = scalar_lea.vmem %s7617_s5, %s6650_s11 }
0x1aed   : > { %v4231_v41 = vpop.xlane.xlu0 %4230 }
0x1aee   : > { %5783 = vlog2.f32 %v4231_v41 }
0x1af1   : > { %v4247_v27 = vpop.xlane.xlu0 %4246 }
0x1afb   : > { %v5784_v42 = vpop.eup %5783 }
0x1afc   : > { %v4233_v43 = vmul.f32 0.6931472, %v5784_v42 }
0x1afe   : > { %v4234_v25 = vadd.f32 %v4233_v43, %v4222_v11 }
0x1b00   : > { %v4251_v28 = vsub.f32 %v4234_v25, %v4247_v27 }
0x1b02   : > { %v4252_v29 = vmul.f32 %v4906_v26, %v4251_v28 }
0x1b04   : > { %4254 = vst.msk [vmem:[%s1070_s8] sm:$0xff] %vm4253_vm9, %v4252_v29 }
0x1b05 PF: > { %s7618_s1 = sld [smem:[#allocation37_spill]] }
0x1b06   : > { %s7619_s6 = sld [smem:[#allocation35_spill]] }
0x1b0b   : > { %p5450_p5 = scmp.ge.s32.totalorder %s7618_s1, 2 }
0x1b0c   : > { %s4289_s10 = sand.u32 1, %s7619_s6  }
0x1b0d   : > { %p5419_p3 = pnand %p5450_p5, %p6451_p6  ;;  %s4290_s9 = scalar_lea.sflag [#allocation4], %s4289_s10 }
0x1b0f   : > { %p5420_p4 = pneg %p5419_p3 }
0x1b11   : > { %6225 = dma.done.wait (%p5420_p4), %s4290_s9, 256  }
0x1b12   : > { %6227 = vsyncadd (%p5420_p4), %s4290_s9, 4294967040  ;;  %s7621_s30 = sld [smem:[#allocation38_spill]]  ;;  %s7624_s7 = smov %s6234_s4 }
0x1b13   : > { %s7622_s28 = sld [smem:[#allocation36_spill]] }
0x1b14   : > { %s7623_s8 = sld [smem:[#allocation39_spill]] }
0x1b18   : > { %p46_p9 = scmp.ge.s32.totalorder %s7621_s30, 4  }
0x1b19   : > { %s7625_s4 = smov %s7622_s28 }
0x1b1a   :  { %48 = sbr.rel (!%p46_p9) target bundleno = 28 (0x1c), region = 255 }
0x1b1f   :  { %4302 = vsyncpa [#allocation3], 1 }
0x1b20   :  { %4304 = vsyncpa [#allocation3 + $0x1], 1 }
0x1b21   :  { %4305 = vsyncpa [#allocation6], 1 }
0x1b22   :  { %4306 = vsyncpa [#allocation9], 1 }
0x1b23   :  { %4307 = vsyncpa [#allocation12], 1 }
0x1b24   :  { %4308 = vsyncpa [#allocation15], 1 }
0x1b25   :  { %4309 = vsyncpa [#allocation18], 1 }
0x1b26   :  { %4310 = vsyncpa [#allocation21], 1 }
0x1b27   :  { %4311 = vsyncpa [#allocation24], 1 }
0x1b28   :  { %4312 = vsyncpa [#allocation4], 1 }
0x1b29   :  { %4314 = vsyncpa [#allocation4 + $0x1], 1 }

</bundles_post_ra>
